<compile_context>
chip_gen: v5e
topology: v5e:2x2
jax: 0.10.0
libtpu: 0.0.40
codegen_flags: <defaults>
</compile_context>

<pallas_src>
import functools

import jax
import jax.numpy as jnp
from jax.experimental import pallas as pl
from jax.experimental.pallas import tpu as pltpu


# ----------------------------------------------------------------------------
# Pallas kernels
# ----------------------------------------------------------------------------

def _conv_kernel(x_ref, w_ref, shift_ref, *rest, relu, has_res):
    """im2col conv tile: bf16 (tile_m,K)@(K,Cout) on the MXU, f32 accumulation,
    fused BN shift (+ residual add) (+ ReLU) epilogue; bf16 store."""
    if has_res:
        res_ref, o_ref = rest
    else:
        (o_ref,) = rest
    acc = jnp.dot(x_ref[...], w_ref[...], preferred_element_type=jnp.float32)
    y = acc + shift_ref[...]
    if has_res:
        y = y + res_ref[...].astype(jnp.float32)
    if relu:
        y = jnp.maximum(y, 0.0)
    o_ref[...] = y.astype(o_ref.dtype)


def _head_kernel(x_ref, w_ref, b_ref, feat_ref, logit_ref, *, inv_hw, mode, tau):
    """Fused head: global-average-pool (f32 accumulation) + optional T2FNorm +
    both FC heads (fc / aux_fc weights concatenated into a single GEMM)."""
    feat = jnp.sum(x_ref[...].astype(jnp.float32), axis=1) * inv_hw     # (N, C)
    if mode == "T2FNorm_train":
        # F.normalize(dim=-1) with torch's 1e-12 clamp, then / tau
        nrm = jnp.sqrt(jnp.sum(feat * feat, axis=-1, keepdims=True))
        feat = feat / jnp.maximum(nrm, 1e-12) / tau
    elif mode == "T2FNorm_test":
        feat = feat / tau
    feat_ref[...] = feat
    logit_ref[...] = (jnp.dot(feat, w_ref[...],
                              preferred_element_type=jnp.float32) + b_ref[...])


# ----------------------------------------------------------------------------
# Pallas wrappers
# ----------------------------------------------------------------------------

def _pick_tile_m(M):
    # Largest tile <= 512 that divides M and leaves >= 2 grid steps (so both
    # v7x TensorCores get work); all candidates are multiples of 16 so bf16
    # output blocks stay sublane-pack friendly.
    for t in (512, 256, 128, 64, 32, 16):
        if M % t == 0 and M // t >= 2:
            return t
    # TODO(synk): odd M falls back to a single whole-slab block; fine for the fixed
    #             CIFAR shapes used here, pad M up before running odd batch sizes.
    return M


def conv_matmul(cols, wmat, shift, *, relu, res=None):
    """cols: (M, K) bf16 im2col rows; wmat: (K, Cout) bf16 (BN scale pre-folded);
    shift: (Cout,) f32; optional res: (M, Cout) bf16 residual fused in epilogue.
    Returns (M, Cout) bf16."""
    M, K = cols.shape
    Cout = wmat.shape[1]
    tile_m = _pick_tile_m(M)

    in_specs = [
        pl.BlockSpec((tile_m, K), lambda i: (i, 0)),
        pl.BlockSpec((K, Cout), lambda i: (0, 0)),
        pl.BlockSpec((1, Cout), lambda i: (0, 0)),
    ]
    args = [cols, wmat, shift.reshape(1, Cout)]
    if res is not None:
        in_specs.append(pl.BlockSpec((tile_m, Cout), lambda i: (i, 0)))
        args.append(res)

    kern = functools.partial(_conv_kernel, relu=relu, has_res=res is not None)
    return pl.pallas_call(
        kern,
        out_shape=jax.ShapeDtypeStruct((M, Cout), jnp.bfloat16),
        grid=(M // tile_m,),
        in_specs=in_specs,
        out_specs=pl.BlockSpec((tile_m, Cout), lambda i: (i, 0)),
        compiler_params=pltpu.CompilerParams(
            dimension_semantics=("parallel",)),
    )(*args)


def fused_head(fmap, w_cat, b_cat, mode, tau):
    """fmap: (N, H, W, C) bf16 -> (features (N, C) f32, logits_cat (N, 2*nb) f32)."""
    N, H, W, C = fmap.shape
    out_dim = w_cat.shape[1]
    kern = functools.partial(_head_kernel, inv_hw=1.0 / float(H * W),
                             mode=mode, tau=tau)
    return pl.pallas_call(
        kern,
        out_shape=(jax.ShapeDtypeStruct((N, C), jnp.float32),
                   jax.ShapeDtypeStruct((N, out_dim), jnp.float32)),
    )(fmap.reshape(N, H * W, C), w_cat, b_cat.reshape(1, out_dim))


# ----------------------------------------------------------------------------
# Glue: im2col (patch extraction / reshape only; all matmuls are in Pallas)
# ----------------------------------------------------------------------------

def im2col(x, k, stride, pad):
    """x: (N, H, W, C) -> bf16 im2col rows ((N*Ho*Wo, k*k*C), (N, Ho, Wo))."""
    x = jnp.pad(x.astype(jnp.bfloat16),
                ((0, 0), (pad, pad), (pad, pad), (0, 0)))
    N, Hp, Wp, C = x.shape
    Ho = (Hp - k) // stride + 1
    Wo = (Wp - k) // stride + 1
    patches = []
    for dy in range(k):
        for dx in range(k):
            patches.append(
                x[:, dy:dy + (Ho - 1) * stride + 1:stride,
                  dx:dx + (Wo - 1) * stride + 1:stride, :])
    cols = jnp.concatenate(patches, axis=-1)  # (N, Ho, Wo, k*k*C)
    return cols.reshape(N * Ho * Wo, k * k * C), (N, Ho, Wo)


def conv_bn(x, p, stride, relu, res=None):
    """3x3 conv (pad=1, bias-free) + folded BN (+ optional fused residual/ReLU)."""
    k = p["w"].shape[0]
    cols, (N, Ho, Wo) = im2col(x, k, stride, pad=1)  # resnet32 is all 3x3 / pad 1
    cin, cout = p["w"].shape[2], p["w"].shape[3]
    # Fold the BN scale into the weights; cast to bf16 for the MXU.
    wmat = (p["w"].reshape(k * k * cin, cout)
            * p["scale"][None, :]).astype(jnp.bfloat16)
    res2d = None if res is None else res.astype(jnp.bfloat16).reshape(N * Ho * Wo, cout)
    y = conv_matmul(cols, wmat, p["shift"], relu=relu, res=res2d)
    return y.reshape(N, Ho, Wo, cout)


def basic_block(x, pa, pb, stride):
    """PyCIL resnet32 ResNetBasicblock with DownsampleA shortcut.

    conv_a+bn+relu is one Pallas call; conv_b+bn with the residual add and the
    final ReLU fused into its epilogue is the second."""
    y = conv_bn(x, pa, stride, relu=True)
    cout = pb["w"].shape[3]
    if stride != 1 or x.shape[-1] != cout:
        # DownsampleA: avg_pool2d(kernel=1, stride) == strided subsample,
        # then concat with zeros to double the channel count.
        res = x[:, ::stride, ::stride, :]
        res = jnp.concatenate([res, jnp.zeros_like(res)], axis=-1)
    else:
        res = x
    return conv_bn(y, pb, 1, relu=True, res=res)


# ----------------------------------------------------------------------------
# Parameter init (deterministic, synthetic; BN folded to scale/shift, eval mode)
# ----------------------------------------------------------------------------

def conv_bn_params(key, cin, cout, k=3):
    kw, kg, kb, km, kv = jax.random.split(key, 5)
    fan_in = k * k * cin
    w = jax.random.normal(kw, (k, k, cin, cout), jnp.float32) * (2.0 / fan_in) ** 0.5
    gamma = 1.0 + 0.1 * jax.random.normal(kg, (cout,), jnp.float32)
    beta = 0.1 * jax.random.normal(kb, (cout,), jnp.float32)
    mean = 0.1 * jax.random.normal(km, (cout,), jnp.float32)
    var = 0.5 + jax.random.uniform(kv, (cout,), jnp.float32)
    eps = 1e-5
    scale = gamma * jax.lax.rsqrt(var + eps)
    shift = beta - mean * scale
    return {"w": w, "scale": scale, "shift": shift}


def linear_params(key, in_dim, out_dim):
    w = jax.random.normal(key, (in_dim, out_dim), jnp.float32) * (1.0 / in_dim) ** 0.5
    b = jnp.zeros((out_dim,), jnp.float32)
    return {"w": w, "b": b}


def init_params(key, nb_classes=10, n_blocks=5):
    n_conv = 1 + 3 * n_blocks * 2
    keys = jax.random.split(key, n_conv + 2)
    it = iter(keys)
    convnet = {"stem": conv_bn_params(next(it), 3, 16)}
    stages = []
    cin = 16
    for cout in (16, 32, 64):
        blocks = []
        for b in range(n_blocks):
            blk_cin = cin if b == 0 else cout
            blocks.append({
                "a": conv_bn_params(next(it), blk_cin, cout),
                "b": conv_bn_params(next(it), cout, cout),
            })
        stages.append(blocks)
        cin = cout
    convnet["stages"] = stages
    fc = linear_params(next(it), 64, nb_classes)       # update_fc -> SimpleLinear
    aux_fc = linear_params(next(it), 64, nb_classes)   # aux head, same shape
    return {"convnet": convnet, "fc": fc, "aux_fc": aux_fc}


# ----------------------------------------------------------------------------
# FinetuneNet_wa.forward
# ----------------------------------------------------------------------------

def finetune_net_wa_forward(params, x_nchw, feature_operate=None,
                            feature_operate_parameter=None):
    # layout: input is PyTorch NCHW; convert to NHWC for all TPU kernels.
    x = jnp.transpose(x_nchw, (0, 2, 3, 1)).astype(jnp.float32)

    p = params["convnet"]
    h = conv_bn(x, p["stem"], stride=1, relu=True)       # conv1 + bn + relu
    fmaps = []
    for si, blocks in enumerate(p["stages"]):
        for bi, blk in enumerate(blocks):
            stride = 2 if (si > 0 and bi == 0) else 1
            h = basic_block(h, blk["a"], blk["b"], stride)
        fmaps.append(h)

    # Fused head: GAP + (optional T2FNorm) + fc and aux_fc in a single kernel
    # (the two head weight matrices are concatenated into one (64, 2*nb) GEMM).
    nb = params["fc"]["w"].shape[1]
    w_cat = jnp.concatenate([params["fc"]["w"], params["aux_fc"]["w"]], axis=1)
    b_cat = jnp.concatenate([params["fc"]["b"], params["aux_fc"]["b"]], axis=0)
    tau = 1.0 if feature_operate_parameter is None else float(feature_operate_parameter)
    features, logits_cat = fused_head(h, w_cat, b_cat, feature_operate, tau)

    return {
        "logits": logits_cat[:, :nb],
        "aux_logits": logits_cat[:, nb:],
        "features": features,
        # fmaps are carried in bf16 inside the backbone; cast back at the boundary.
        "fmaps": [f.astype(jnp.float32) for f in fmaps],
    }


# ----------------------------------------------------------------------------
# Entry point
# ----------------------------------------------------------------------------

if __name__ == "__main__":
    key = jax.random.PRNGKey(0)
    kx, kp = jax.random.split(key)

    # CIFAR-style input implied by the resnet32 backbone: (batch=2, C=3, 32, 32)
    x = jax.random.normal(kx, (2, 3, 32, 32), jnp.float32)
    params = init_params(kp, nb_classes=10)

    fwd = jax.jit(finetune_net_wa_forward,
                  static_argnames=("feature_operate", "feature_operate_parameter"))
    out = fwd(params, x)

    jax.block_until_ready(out["logits"])
    jax.block_until_ready(out["aux_logits"])
    jax.block_until_ready(out["features"])
    for f in out["fmaps"]:
        jax.block_until_ready(f)

    assert out["logits"].shape == (2, 10)
    assert out["aux_logits"].shape == (2, 10)
    assert out["features"].shape == (2, 64)
    assert out["fmaps"][0].shape == (2, 32, 32, 16)
    assert out["fmaps"][1].shape == (2, 16, 16, 32)
    assert out["fmaps"][2].shape == (2, 8, 8, 64)

    print("KERNEL_OK")
</pallas_src>

<mosaic_0001>
module attributes {stable_mosaic.version = 11 : i64} {
  func.func @_conv_kernel(%arg0: i32, %arg1: memref<512x27xbf16, #tpu.memory_space<vmem>>, %arg2: memref<27x16xbf16, #tpu.memory_space<vmem>>, %arg3: memref<1x16xf32, #tpu.memory_space<vmem>>, %arg4: memref<512x16xbf16, #tpu.memory_space<vmem>>) attributes {dimension_semantics = [#tpu.dimension_semantics<parallel>], iteration_bounds = array<i64: 4>, scalar_prefetch = 0 : i64, scratch_operands = 0 : i64, tpu.core_type = #tpu.core_type<tc>, window_params = [{transform_indices = @transform_0, window_bounds = array<i64: 512, 27>}, {pipeline_mode = #tpu.pipeline_mode<synchronous>, transform_indices = @transform_1, window_bounds = array<i64: 27, 16>}, {pipeline_mode = #tpu.pipeline_mode<synchronous>, transform_indices = @transform_2, window_bounds = array<i64: 1, 16>}, {transform_indices = @transform_3, window_bounds = array<i64: 512, 16>}]} {
    %c0 = arith.constant 0 : index
    %c0_0 = arith.constant 0 : index
    %0 = vector.load %arg1[%c0, %c0_0] : memref<512x27xbf16, #tpu.memory_space<vmem>>, vector<512x27xbf16>
    %c0_1 = arith.constant 0 : index
    %c0_2 = arith.constant 0 : index
    %1 = vector.load %arg2[%c0_1, %c0_2] : memref<27x16xbf16, #tpu.memory_space<vmem>>, vector<27x16xbf16>
    %cst = arith.constant dense<0.000000e+00> : vector<512x16xf32>
    %2 = tpu.matmul %0, %1, %cst {dimension_numbers = #tpu.dot_dimension_numbers<[1], [0], [0], [1], [0, 0, 1, 1], [], []>} : vector<512x27xbf16>, vector<27x16xbf16>, vector<512x16xf32> -> vector<512x16xf32>
    %c0_3 = arith.constant 0 : index
    %c0_4 = arith.constant 0 : index
    %3 = vector.load %arg3[%c0_3, %c0_4] : memref<1x16xf32, #tpu.memory_space<vmem>>, vector<1x16xf32>
    %4 = vector.broadcast %3 : vector<1x16xf32> to vector<512x16xf32>
    %5 = arith.addf %2, %4 : vector<512x16xf32>
    %cst_5 = arith.constant 0.000000e+00 : f32
    %6 = vector.broadcast %cst_5 : f32 to vector<512x16xf32>
    %7 = arith.maximumf %5, %6 : vector<512x16xf32>
    %8 = arith.truncf %7 : vector<512x16xf32> to vector<512x16xbf16>
    %c0_6 = arith.constant 0 : index
    %c0_7 = arith.constant 0 : index
    %9 = vector.load %arg4[%c0_6, %c0_7] : memref<512x16xbf16, #tpu.memory_space<vmem>>, vector<512x16xbf16>
    tpu.vector_store %arg4[%c0_6, %c0_7], %8 {strides = array<i32>} : memref<512x16xbf16, #tpu.memory_space<vmem>>, vector<512x16xbf16>,
    return
  }
  func.func @transform_0(%arg0: i32) -> (i32, i32) {
    %c0_i32 = arith.constant 0 : i32
    %c0_i32_0 = arith.constant 0 : i32
    return %arg0, %c0_i32 : i32, i32
  }
  func.func @transform_1(%arg0: i32) -> (i32, i32) {
    %c0_i32 = arith.constant 0 : i32
    %c0_i32_0 = arith.constant 0 : i32
    %c0_i32_1 = arith.constant 0 : i32
    return %c0_i32, %c0_i32_0 : i32, i32
  }
  func.func @transform_2(%arg0: i32) -> (i32, i32) {
    %c0_i32 = arith.constant 0 : i32
    %c0_i32_0 = arith.constant 0 : i32
    %c0_i32_1 = arith.constant 0 : i32
    return %c0_i32, %c0_i32_0 : i32, i32
  }
  func.func @transform_3(%arg0: i32) -> (i32, i32) {
    %c0_i32 = arith.constant 0 : i32
    %c0_i32_0 = arith.constant 0 : i32
    return %arg0, %c0_i32 : i32, i32
  }
}

module attributes {stable_mosaic.version = 11 : i64} {
  func.func @_conv_kernel(%arg0: i32, %arg1: memref<512x144xbf16, #tpu.memory_space<vmem>>, %arg2: memref<144x16xbf16, #tpu.memory_space<vmem>>, %arg3: memref<1x16xf32, #tpu.memory_space<vmem>>, %arg4: memref<512x16xbf16, #tpu.memory_space<vmem>>) attributes {dimension_semantics = [#tpu.dimension_semantics<parallel>], iteration_bounds = array<i64: 4>, scalar_prefetch = 0 : i64, scratch_operands = 0 : i64, tpu.core_type = #tpu.core_type<tc>, window_params = [{transform_indices = @transform_0, window_bounds = array<i64: 512, 144>}, {pipeline_mode = #tpu.pipeline_mode<synchronous>, transform_indices = @transform_1, window_bounds = array<i64: 144, 16>}, {pipeline_mode = #tpu.pipeline_mode<synchronous>, transform_indices = @transform_2, window_bounds = array<i64: 1, 16>}, {transform_indices = @transform_3, window_bounds = array<i64: 512, 16>}]} {
    %c0 = arith.constant 0 : index
    %c0_0 = arith.constant 0 : index
    %0 = vector.load %arg1[%c0, %c0_0] : memref<512x144xbf16, #tpu.memory_space<vmem>>, vector<512x144xbf16>
    %c0_1 = arith.constant 0 : index
    %c0_2 = arith.constant 0 : index
    %1 = vector.load %arg2[%c0_1, %c0_2] : memref<144x16xbf16, #tpu.memory_space<vmem>>, vector<144x16xbf16>
    %cst = arith.constant dense<0.000000e+00> : vector<512x16xf32>
    %2 = tpu.matmul %0, %1, %cst {dimension_numbers = #tpu.dot_dimension_numbers<[1], [0], [0], [1], [0, 0, 1, 1], [], []>} : vector<512x144xbf16>, vector<144x16xbf16>, vector<512x16xf32> -> vector<512x16xf32>
    %c0_3 = arith.constant 0 : index
    %c0_4 = arith.constant 0 : index
    %3 = vector.load %arg3[%c0_3, %c0_4] : memref<1x16xf32, #tpu.memory_space<vmem>>, vector<1x16xf32>
    %4 = vector.broadcast %3 : vector<1x16xf32> to vector<512x16xf32>
    %5 = arith.addf %2, %4 : vector<512x16xf32>
    %cst_5 = arith.constant 0.000000e+00 : f32
    %6 = vector.broadcast %cst_5 : f32 to vector<512x16xf32>
    %7 = arith.maximumf %5, %6 : vector<512x16xf32>
    %8 = arith.truncf %7 : vector<512x16xf32> to vector<512x16xbf16>
    %c0_6 = arith.constant 0 : index
    %c0_7 = arith.constant 0 : index
    %9 = vector.load %arg4[%c0_6, %c0_7] : memref<512x16xbf16, #tpu.memory_space<vmem>>, vector<512x16xbf16>
    tpu.vector_store %arg4[%c0_6, %c0_7], %8 {strides = array<i32>} : memref<512x16xbf16, #tpu.memory_space<vmem>>, vector<512x16xbf16>,
    return
  }
  func.func @transform_0(%arg0: i32) -> (i32, i32) {
    %c0_i32 = arith.constant 0 : i32
    %c0_i32_0 = arith.constant 0 : i32
    return %arg0, %c0_i32 : i32, i32
  }
  func.func @transform_1(%arg0: i32) -> (i32, i32) {
    %c0_i32 = arith.constant 0 : i32
    %c0_i32_0 = arith.constant 0 : i32
    %c0_i32_1 = arith.constant 0 : i32
    return %c0_i32, %c0_i32_0 : i32, i32
  }
  func.func @transform_2(%arg0: i32) -> (i32, i32) {
    %c0_i32 = arith.constant 0 : i32
    %c0_i32_0 = arith.constant 0 : i32
    %c0_i32_1 = arith.constant 0 : i32
    return %c0_i32, %c0_i32_0 : i32, i32
  }
  func.func @transform_3(%arg0: i32) -> (i32, i32) {
    %c0_i32 = arith.constant 0 : i32
    %c0_i32_0 = arith.constant 0 : i32
    return %arg0, %c0_i32 : i32, i32
  }
}

module attributes {stable_mosaic.version = 11 : i64} {
  func.func @_conv_kernel(%arg0: i32, %arg1: memref<512x144xbf16, #tpu.memory_space<vmem>>, %arg2: memref<144x16xbf16, #tpu.memory_space<vmem>>, %arg3: memref<1x16xf32, #tpu.memory_space<vmem>>, %arg4: memref<512x16xbf16, #tpu.memory_space<vmem>>, %arg5: memref<512x16xbf16, #tpu.memory_space<vmem>>) attributes {dimension_semantics = [#tpu.dimension_semantics<parallel>], iteration_bounds = array<i64: 4>, scalar_prefetch = 0 : i64, scratch_operands = 0 : i64, tpu.core_type = #tpu.core_type<tc>, window_params = [{transform_indices = @transform_0, window_bounds = array<i64: 512, 144>}, {pipeline_mode = #tpu.pipeline_mode<synchronous>, transform_indices = @transform_1, window_bounds = array<i64: 144, 16>}, {pipeline_mode = #tpu.pipeline_mode<synchronous>, transform_indices = @transform_2, window_bounds = array<i64: 1, 16>}, {transform_indices = @transform_3, window_bounds = array<i64: 512, 16>}, {transform_indices = @transform_4, window_bounds = array<i64: 512, 16>}]} {
    %c0 = arith.constant 0 : index
    %c0_0 = arith.constant 0 : index
    %0 = vector.load %arg1[%c0, %c0_0] : memref<512x144xbf16, #tpu.memory_space<vmem>>, vector<512x144xbf16>
    %c0_1 = arith.constant 0 : index
    %c0_2 = arith.constant 0 : index
    %1 = vector.load %arg2[%c0_1, %c0_2] : memref<144x16xbf16, #tpu.memory_space<vmem>>, vector<144x16xbf16>
    %cst = arith.constant dense<0.000000e+00> : vector<512x16xf32>
    %2 = tpu.matmul %0, %1, %cst {dimension_numbers = #tpu.dot_dimension_numbers<[1], [0], [0], [1], [0, 0, 1, 1], [], []>} : vector<512x144xbf16>, vector<144x16xbf16>, vector<512x16xf32> -> vector<512x16xf32>
    %c0_3 = arith.constant 0 : index
    %c0_4 = arith.constant 0 : index
    %3 = vector.load %arg3[%c0_3, %c0_4] : memref<1x16xf32, #tpu.memory_space<vmem>>, vector<1x16xf32>
    %4 = vector.broadcast %3 : vector<1x16xf32> to vector<512x16xf32>
    %5 = arith.addf %2, %4 : vector<512x16xf32>
    %c0_5 = arith.constant 0 : index
    %c0_6 = arith.constant 0 : index
    %6 = vector.load %arg4[%c0_5, %c0_6] : memref<512x16xbf16, #tpu.memory_space<vmem>>, vector<512x16xbf16>
    %7 = arith.extf %6 : vector<512x16xbf16> to vector<512x16xf32>
    %8 = arith.addf %5, %7 : vector<512x16xf32>
    %cst_7 = arith.constant 0.000000e+00 : f32
    %9 = vector.broadcast %cst_7 : f32 to vector<512x16xf32>
    %10 = arith.maximumf %8, %9 : vector<512x16xf32>
    %11 = arith.truncf %10 : vector<512x16xf32> to vector<512x16xbf16>
    %c0_8 = arith.constant 0 : index
    %c0_9 = arith.constant 0 : index
    %12 = vector.load %arg5[%c0_8, %c0_9] : memref<512x16xbf16, #tpu.memory_space<vmem>>, vector<512x16xbf16>
    tpu.vector_store %arg5[%c0_8, %c0_9], %11 {strides = array<i32>} : memref<512x16xbf16, #tpu.memory_space<vmem>>, vector<512x16xbf16>,
    return
  }
  func.func @transform_0(%arg0: i32) -> (i32, i32) {
    %c0_i32 = arith.constant 0 : i32
    %c0_i32_0 = arith.constant 0 : i32
    return %arg0, %c0_i32 : i32, i32
  }
  func.func @transform_1(%arg0: i32) -> (i32, i32) {
    %c0_i32 = arith.constant 0 : i32
    %c0_i32_0 = arith.constant 0 : i32
    %c0_i32_1 = arith.constant 0 : i32
    return %c0_i32, %c0_i32_0 : i32, i32
  }
  func.func @transform_2(%arg0: i32) -> (i32, i32) {
    %c0_i32 = arith.constant 0 : i32
    %c0_i32_0 = arith.constant 0 : i32
    %c0_i32_1 = arith.constant 0 : i32
    return %c0_i32, %c0_i32_0 : i32, i32
  }
  func.func @transform_3(%arg0: i32) -> (i32, i32) {
    %c0_i32 = arith.constant 0 : i32
    %c0_i32_0 = arith.constant 0 : i32
    return %arg0, %c0_i32 : i32, i32
  }
  func.func @transform_4(%arg0: i32) -> (i32, i32) {
    %c0_i32 = arith.constant 0 : i32
    %c0_i32_0 = arith.constant 0 : i32
    return %arg0, %c0_i32 : i32, i32
  }
}

module attributes {stable_mosaic.version = 11 : i64} {
  func.func @_conv_kernel(%arg0: i32, %arg1: memref<256x144xbf16, #tpu.memory_space<vmem>>, %arg2: memref<144x32xbf16, #tpu.memory_space<vmem>>, %arg3: memref<1x32xf32, #tpu.memory_space<vmem>>, %arg4: memref<256x32xbf16, #tpu.memory_space<vmem>>) attributes {dimension_semantics = [#tpu.dimension_semantics<parallel>], iteration_bounds = array<i64: 2>, scalar_prefetch = 0 : i64, scratch_operands = 0 : i64, tpu.core_type = #tpu.core_type<tc>, window_params = [{transform_indices = @transform_0, window_bounds = array<i64: 256, 144>}, {pipeline_mode = #tpu.pipeline_mode<synchronous>, transform_indices = @transform_1, window_bounds = array<i64: 144, 32>}, {pipeline_mode = #tpu.pipeline_mode<synchronous>, transform_indices = @transform_2, window_bounds = array<i64: 1, 32>}, {transform_indices = @transform_3, window_bounds = array<i64: 256, 32>}]} {
    %c0 = arith.constant 0 : index
    %c0_0 = arith.constant 0 : index
    %0 = vector.load %arg1[%c0, %c0_0] : memref<256x144xbf16, #tpu.memory_space<vmem>>, vector<256x144xbf16>
    %c0_1 = arith.constant 0 : index
    %c0_2 = arith.constant 0 : index
    %1 = vector.load %arg2[%c0_1, %c0_2] : memref<144x32xbf16, #tpu.memory_space<vmem>>, vector<144x32xbf16>
    %cst = arith.constant dense<0.000000e+00> : vector<256x32xf32>
    %2 = tpu.matmul %0, %1, %cst {dimension_numbers = #tpu.dot_dimension_numbers<[1], [0], [0], [1], [0, 0, 1, 1], [], []>} : vector<256x144xbf16>, vector<144x32xbf16>, vector<256x32xf32> -> vector<256x32xf32>
    %c0_3 = arith.constant 0 : index
    %c0_4 = arith.constant 0 : index
    %3 = vector.load %arg3[%c0_3, %c0_4] : memref<1x32xf32, #tpu.memory_space<vmem>>, vector<1x32xf32>
    %4 = vector.broadcast %3 : vector<1x32xf32> to vector<256x32xf32>
    %5 = arith.addf %2, %4 : vector<256x32xf32>
    %cst_5 = arith.constant 0.000000e+00 : f32
    %6 = vector.broadcast %cst_5 : f32 to vector<256x32xf32>
    %7 = arith.maximumf %5, %6 : vector<256x32xf32>
    %8 = arith.truncf %7 : vector<256x32xf32> to vector<256x32xbf16>
    %c0_6 = arith.constant 0 : index
    %c0_7 = arith.constant 0 : index
    %9 = vector.load %arg4[%c0_6, %c0_7] : memref<256x32xbf16, #tpu.memory_space<vmem>>, vector<256x32xbf16>
    tpu.vector_store %arg4[%c0_6, %c0_7], %8 {strides = array<i32>} : memref<256x32xbf16, #tpu.memory_space<vmem>>, vector<256x32xbf16>,
    return
  }
  func.func @transform_0(%arg0: i32) -> (i32, i32) {
    %c0_i32 = arith.constant 0 : i32
    %c0_i32_0 = arith.constant 0 : i32
    return %arg0, %c0_i32 : i32, i32
  }
  func.func @transform_1(%arg0: i32) -> (i32, i32) {
    %c0_i32 = arith.constant 0 : i32
    %c0_i32_0 = arith.constant 0 : i32
    %c0_i32_1 = arith.constant 0 : i32
    return %c0_i32, %c0_i32_0 : i32, i32
  }
  func.func @transform_2(%arg0: i32) -> (i32, i32) {
    %c0_i32 = arith.constant 0 : i32
    %c0_i32_0 = arith.constant 0 : i32
    %c0_i32_1 = arith.constant 0 : i32
    return %c0_i32, %c0_i32_0 : i32, i32
  }
  func.func @transform_3(%arg0: i32) -> (i32, i32) {
    %c0_i32 = arith.constant 0 : i32
    %c0_i32_0 = arith.constant 0 : i32
    return %arg0, %c0_i32 : i32, i32
  }
}

module attributes {stable_mosaic.version = 11 : i64} {
  func.func @_conv_kernel(%arg0: i32, %arg1: memref<256x288xbf16, #tpu.memory_space<vmem>>, %arg2: memref<288x32xbf16, #tpu.memory_space<vmem>>, %arg3: memref<1x32xf32, #tpu.memory_space<vmem>>, %arg4: memref<256x32xbf16, #tpu.memory_space<vmem>>, %arg5: memref<256x32xbf16, #tpu.memory_space<vmem>>) attributes {dimension_semantics = [#tpu.dimension_semantics<parallel>], iteration_bounds = array<i64: 2>, scalar_prefetch = 0 : i64, scratch_operands = 0 : i64, tpu.core_type = #tpu.core_type<tc>, window_params = [{transform_indices = @transform_0, window_bounds = array<i64: 256, 288>}, {pipeline_mode = #tpu.pipeline_mode<synchronous>, transform_indices = @transform_1, window_bounds = array<i64: 288, 32>}, {pipeline_mode = #tpu.pipeline_mode<synchronous>, transform_indices = @transform_2, window_bounds = array<i64: 1, 32>}, {transform_indices = @transform_3, window_bounds = array<i64: 256, 32>}, {transform_indices = @transform_4, window_bounds = array<i64: 256, 32>}]} {
    %c0 = arith.constant 0 : index
    %c0_0 = arith.constant 0 : index
    %0 = vector.load %arg1[%c0, %c0_0] : memref<256x288xbf16, #tpu.memory_space<vmem>>, vector<256x288xbf16>
    %c0_1 = arith.constant 0 : index
    %c0_2 = arith.constant 0 : index
    %1 = vector.load %arg2[%c0_1, %c0_2] : memref<288x32xbf16, #tpu.memory_space<vmem>>, vector<288x32xbf16>
    %cst = arith.constant dense<0.000000e+00> : vector<256x32xf32>
    %2 = tpu.matmul %0, %1, %cst {dimension_numbers = #tpu.dot_dimension_numbers<[1], [0], [0], [1], [0, 0, 1, 1], [], []>} : vector<256x288xbf16>, vector<288x32xbf16>, vector<256x32xf32> -> vector<256x32xf32>
    %c0_3 = arith.constant 0 : index
    %c0_4 = arith.constant 0 : index
    %3 = vector.load %arg3[%c0_3, %c0_4] : memref<1x32xf32, #tpu.memory_space<vmem>>, vector<1x32xf32>
    %4 = vector.broadcast %3 : vector<1x32xf32> to vector<256x32xf32>
    %5 = arith.addf %2, %4 : vector<256x32xf32>
    %c0_5 = arith.constant 0 : index
    %c0_6 = arith.constant 0 : index
    %6 = vector.load %arg4[%c0_5, %c0_6] : memref<256x32xbf16, #tpu.memory_space<vmem>>, vector<256x32xbf16>
    %7 = arith.extf %6 : vector<256x32xbf16> to vector<256x32xf32>
    %8 = arith.addf %5, %7 : vector<256x32xf32>
    %cst_7 = arith.constant 0.000000e+00 : f32
    %9 = vector.broadcast %cst_7 : f32 to vector<256x32xf32>
    %10 = arith.maximumf %8, %9 : vector<256x32xf32>
    %11 = arith.truncf %10 : vector<256x32xf32> to vector<256x32xbf16>
    %c0_8 = arith.constant 0 : index
    %c0_9 = arith.constant 0 : index
    %12 = vector.load %arg5[%c0_8, %c0_9] : memref<256x32xbf16, #tpu.memory_space<vmem>>, vector<256x32xbf16>
    tpu.vector_store %arg5[%c0_8, %c0_9], %11 {strides = array<i32>} : memref<256x32xbf16, #tpu.memory_space<vmem>>, vector<256x32xbf16>,
    return
  }
  func.func @transform_0(%arg0: i32) -> (i32, i32) {
    %c0_i32 = arith.constant 0 : i32
    %c0_i32_0 = arith.constant 0 : i32
    return %arg0, %c0_i32 : i32, i32
  }
  func.func @transform_1(%arg0: i32) -> (i32, i32) {
    %c0_i32 = arith.constant 0 : i32
    %c0_i32_0 = arith.constant 0 : i32
    %c0_i32_1 = arith.constant 0 : i32
    return %c0_i32, %c0_i32_0 : i32, i32
  }
  func.func @transform_2(%arg0: i32) -> (i32, i32) {
    %c0_i32 = arith.constant 0 : i32
    %c0_i32_0 = arith.constant 0 : i32
    %c0_i32_1 = arith.constant 0 : i32
    return %c0_i32, %c0_i32_0 : i32, i32
  }
  func.func @transform_3(%arg0: i32) -> (i32, i32) {
    %c0_i32 = arith.constant 0 : i32
    %c0_i32_0 = arith.constant 0 : i32
    return %arg0, %c0_i32 : i32, i32
  }
  func.func @transform_4(%arg0: i32) -> (i32, i32) {
    %c0_i32 = arith.constant 0 : i32
    %c0_i32_0 = arith.constant 0 : i32
    return %arg0, %c0_i32 : i32, i32
  }
}

module attributes {stable_mosaic.version = 11 : i64} {
  func.func @_conv_kernel(%arg0: i32, %arg1: memref<256x288xbf16, #tpu.memory_space<vmem>>, %arg2: memref<288x32xbf16, #tpu.memory_space<vmem>>, %arg3: memref<1x32xf32, #tpu.memory_space<vmem>>, %arg4: memref<256x32xbf16, #tpu.memory_space<vmem>>) attributes {dimension_semantics = [#tpu.dimension_semantics<parallel>], iteration_bounds = array<i64: 2>, scalar_prefetch = 0 : i64, scratch_operands = 0 : i64, tpu.core_type = #tpu.core_type<tc>, window_params = [{transform_indices = @transform_0, window_bounds = array<i64: 256, 288>}, {pipeline_mode = #tpu.pipeline_mode<synchronous>, transform_indices = @transform_1, window_bounds = array<i64: 288, 32>}, {pipeline_mode = #tpu.pipeline_mode<synchronous>, transform_indices = @transform_2, window_bounds = array<i64: 1, 32>}, {transform_indices = @transform_3, window_bounds = array<i64: 256, 32>}]} {
    %c0 = arith.constant 0 : index
    %c0_0 = arith.constant 0 : index
    %0 = vector.load %arg1[%c0, %c0_0] : memref<256x288xbf16, #tpu.memory_space<vmem>>, vector<256x288xbf16>
    %c0_1 = arith.constant 0 : index
    %c0_2 = arith.constant 0 : index
    %1 = vector.load %arg2[%c0_1, %c0_2] : memref<288x32xbf16, #tpu.memory_space<vmem>>, vector<288x32xbf16>
    %cst = arith.constant dense<0.000000e+00> : vector<256x32xf32>
    %2 = tpu.matmul %0, %1, %cst {dimension_numbers = #tpu.dot_dimension_numbers<[1], [0], [0], [1], [0, 0, 1, 1], [], []>} : vector<256x288xbf16>, vector<288x32xbf16>, vector<256x32xf32> -> vector<256x32xf32>
    %c0_3 = arith.constant 0 : index
    %c0_4 = arith.constant 0 : index
    %3 = vector.load %arg3[%c0_3, %c0_4] : memref<1x32xf32, #tpu.memory_space<vmem>>, vector<1x32xf32>
    %4 = vector.broadcast %3 : vector<1x32xf32> to vector<256x32xf32>
    %5 = arith.addf %2, %4 : vector<256x32xf32>
    %cst_5 = arith.constant 0.000000e+00 : f32
    %6 = vector.broadcast %cst_5 : f32 to vector<256x32xf32>
    %7 = arith.maximumf %5, %6 : vector<256x32xf32>
    %8 = arith.truncf %7 : vector<256x32xf32> to vector<256x32xbf16>
    %c0_6 = arith.constant 0 : index
    %c0_7 = arith.constant 0 : index
    %9 = vector.load %arg4[%c0_6, %c0_7] : memref<256x32xbf16, #tpu.memory_space<vmem>>, vector<256x32xbf16>
    tpu.vector_store %arg4[%c0_6, %c0_7], %8 {strides = array<i32>} : memref<256x32xbf16, #tpu.memory_space<vmem>>, vector<256x32xbf16>,
    return
  }
  func.func @transform_0(%arg0: i32) -> (i32, i32) {
    %c0_i32 = arith.constant 0 : i32
    %c0_i32_0 = arith.constant 0 : i32
    return %arg0, %c0_i32 : i32, i32
  }
  func.func @transform_1(%arg0: i32) -> (i32, i32) {
    %c0_i32 = arith.constant 0 : i32
    %c0_i32_0 = arith.constant 0 : i32
    %c0_i32_1 = arith.constant 0 : i32
    return %c0_i32, %c0_i32_0 : i32, i32
  }
  func.func @transform_2(%arg0: i32) -> (i32, i32) {
    %c0_i32 = arith.constant 0 : i32
    %c0_i32_0 = arith.constant 0 : i32
    %c0_i32_1 = arith.constant 0 : i32
    return %c0_i32, %c0_i32_0 : i32, i32
  }
  func.func @transform_3(%arg0: i32) -> (i32, i32) {
    %c0_i32 = arith.constant 0 : i32
    %c0_i32_0 = arith.constant 0 : i32
    return %arg0, %c0_i32 : i32, i32
  }
}

module attributes {stable_mosaic.version = 11 : i64} {
  func.func @_conv_kernel(%arg0: i32, %arg1: memref<64x288xbf16, #tpu.memory_space<vmem>>, %arg2: memref<288x64xbf16, #tpu.memory_space<vmem>>, %arg3: memref<1x64xf32, #tpu.memory_space<vmem>>, %arg4: memref<64x64xbf16, #tpu.memory_space<vmem>>) attributes {dimension_semantics = [#tpu.dimension_semantics<parallel>], iteration_bounds = array<i64: 2>, scalar_prefetch = 0 : i64, scratch_operands = 0 : i64, tpu.core_type = #tpu.core_type<tc>, window_params = [{transform_indices = @transform_0, window_bounds = array<i64: 64, 288>}, {pipeline_mode = #tpu.pipeline_mode<synchronous>, transform_indices = @transform_1, window_bounds = array<i64: 288, 64>}, {pipeline_mode = #tpu.pipeline_mode<synchronous>, transform_indices = @transform_2, window_bounds = array<i64: 1, 64>}, {transform_indices = @transform_3, window_bounds = array<i64: 64, 64>}]} {
    %c0 = arith.constant 0 : index
    %c0_0 = arith.constant 0 : index
    %0 = vector.load %arg1[%c0, %c0_0] : memref<64x288xbf16, #tpu.memory_space<vmem>>, vector<64x288xbf16>
    %c0_1 = arith.constant 0 : index
    %c0_2 = arith.constant 0 : index
    %1 = vector.load %arg2[%c0_1, %c0_2] : memref<288x64xbf16, #tpu.memory_space<vmem>>, vector<288x64xbf16>
    %cst = arith.constant dense<0.000000e+00> : vector<64x64xf32>
    %2 = tpu.matmul %0, %1, %cst {dimension_numbers = #tpu.dot_dimension_numbers<[1], [0], [0], [1], [0, 0, 1, 1], [], []>} : vector<64x288xbf16>, vector<288x64xbf16>, vector<64x64xf32> -> vector<64x64xf32>
    %c0_3 = arith.constant 0 : index
    %c0_4 = arith.constant 0 : index
    %3 = vector.load %arg3[%c0_3, %c0_4] : memref<1x64xf32, #tpu.memory_space<vmem>>, vector<1x64xf32>
    %4 = vector.broadcast %3 : vector<1x64xf32> to vector<64x64xf32>
    %5 = arith.addf %2, %4 : vector<64x64xf32>
    %cst_5 = arith.constant 0.000000e+00 : f32
    %6 = vector.broadcast %cst_5 : f32 to vector<64x64xf32>
    %7 = arith.maximumf %5, %6 : vector<64x64xf32>
    %8 = arith.truncf %7 : vector<64x64xf32> to vector<64x64xbf16>
    %c0_6 = arith.constant 0 : index
    %c0_7 = arith.constant 0 : index
    %9 = vector.load %arg4[%c0_6, %c0_7] : memref<64x64xbf16, #tpu.memory_space<vmem>>, vector<64x64xbf16>
    tpu.vector_store %arg4[%c0_6, %c0_7], %8 {strides = array<i32>} : memref<64x64xbf16, #tpu.memory_space<vmem>>, vector<64x64xbf16>,
    return
  }
  func.func @transform_0(%arg0: i32) -> (i32, i32) {
    %c0_i32 = arith.constant 0 : i32
    %c0_i32_0 = arith.constant 0 : i32
    return %arg0, %c0_i32 : i32, i32
  }
  func.func @transform_1(%arg0: i32) -> (i32, i32) {
    %c0_i32 = arith.constant 0 : i32
    %c0_i32_0 = arith.constant 0 : i32
    %c0_i32_1 = arith.constant 0 : i32
    return %c0_i32, %c0_i32_0 : i32, i32
  }
  func.func @transform_2(%arg0: i32) -> (i32, i32) {
    %c0_i32 = arith.constant 0 : i32
    %c0_i32_0 = arith.constant 0 : i32
    %c0_i32_1 = arith.constant 0 : i32
    return %c0_i32, %c0_i32_0 : i32, i32
  }
  func.func @transform_3(%arg0: i32) -> (i32, i32) {
    %c0_i32 = arith.constant 0 : i32
    %c0_i32_0 = arith.constant 0 : i32
    return %arg0, %c0_i32 : i32, i32
  }
}

module attributes {stable_mosaic.version = 11 : i64} {
  func.func @_conv_kernel(%arg0: i32, %arg1: memref<64x576xbf16, #tpu.memory_space<vmem>>, %arg2: memref<576x64xbf16, #tpu.memory_space<vmem>>, %arg3: memref<1x64xf32, #tpu.memory_space<vmem>>, %arg4: memref<64x64xbf16, #tpu.memory_space<vmem>>) attributes {dimension_semantics = [#tpu.dimension_semantics<parallel>], iteration_bounds = array<i64: 2>, scalar_prefetch = 0 : i64, scratch_operands = 0 : i64, tpu.core_type = #tpu.core_type<tc>, window_params = [{transform_indices = @transform_0, window_bounds = array<i64: 64, 576>}, {pipeline_mode = #tpu.pipeline_mode<synchronous>, transform_indices = @transform_1, window_bounds = array<i64: 576, 64>}, {pipeline_mode = #tpu.pipeline_mode<synchronous>, transform_indices = @transform_2, window_bounds = array<i64: 1, 64>}, {transform_indices = @transform_3, window_bounds = array<i64: 64, 64>}]} {
    %c0 = arith.constant 0 : index
    %c0_0 = arith.constant 0 : index
    %0 = vector.load %arg1[%c0, %c0_0] : memref<64x576xbf16, #tpu.memory_space<vmem>>, vector<64x576xbf16>
    %c0_1 = arith.constant 0 : index
    %c0_2 = arith.constant 0 : index
    %1 = vector.load %arg2[%c0_1, %c0_2] : memref<576x64xbf16, #tpu.memory_space<vmem>>, vector<576x64xbf16>
    %cst = arith.constant dense<0.000000e+00> : vector<64x64xf32>
    %2 = tpu.matmul %0, %1, %cst {dimension_numbers = #tpu.dot_dimension_numbers<[1], [0], [0], [1], [0, 0, 1, 1], [], []>} : vector<64x576xbf16>, vector<576x64xbf16>, vector<64x64xf32> -> vector<64x64xf32>
    %c0_3 = arith.constant 0 : index
    %c0_4 = arith.constant 0 : index
    %3 = vector.load %arg3[%c0_3, %c0_4] : memref<1x64xf32, #tpu.memory_space<vmem>>, vector<1x64xf32>
    %4 = vector.broadcast %3 : vector<1x64xf32> to vector<64x64xf32>
    %5 = arith.addf %2, %4 : vector<64x64xf32>
    %cst_5 = arith.constant 0.000000e+00 : f32
    %6 = vector.broadcast %cst_5 : f32 to vector<64x64xf32>
    %7 = arith.maximumf %5, %6 : vector<64x64xf32>
    %8 = arith.truncf %7 : vector<64x64xf32> to vector<64x64xbf16>
    %c0_6 = arith.constant 0 : index
    %c0_7 = arith.constant 0 : index
    %9 = vector.load %arg4[%c0_6, %c0_7] : memref<64x64xbf16, #tpu.memory_space<vmem>>, vector<64x64xbf16>
    tpu.vector_store %arg4[%c0_6, %c0_7], %8 {strides = array<i32>} : memref<64x64xbf16, #tpu.memory_space<vmem>>, vector<64x64xbf16>,
    return
  }
  func.func @transform_0(%arg0: i32) -> (i32, i32) {
    %c0_i32 = arith.constant 0 : i32
    %c0_i32_0 = arith.constant 0 : i32
    return %arg0, %c0_i32 : i32, i32
  }
  func.func @transform_1(%arg0: i32) -> (i32, i32) {
    %c0_i32 = arith.constant 0 : i32
    %c0_i32_0 = arith.constant 0 : i32
    %c0_i32_1 = arith.constant 0 : i32
    return %c0_i32, %c0_i32_0 : i32, i32
  }
  func.func @transform_2(%arg0: i32) -> (i32, i32) {
    %c0_i32 = arith.constant 0 : i32
    %c0_i32_0 = arith.constant 0 : i32
    %c0_i32_1 = arith.constant 0 : i32
    return %c0_i32, %c0_i32_0 : i32, i32
  }
  func.func @transform_3(%arg0: i32) -> (i32, i32) {
    %c0_i32 = arith.constant 0 : i32
    %c0_i32_0 = arith.constant 0 : i32
    return %arg0, %c0_i32 : i32, i32
  }
}

module attributes {stable_mosaic.version = 11 : i64} {
  func.func @_conv_kernel(%arg0: i32, %arg1: memref<64x576xbf16, #tpu.memory_space<vmem>>, %arg2: memref<576x64xbf16, #tpu.memory_space<vmem>>, %arg3: memref<1x64xf32, #tpu.memory_space<vmem>>, %arg4: memref<64x64xbf16, #tpu.memory_space<vmem>>, %arg5: memref<64x64xbf16, #tpu.memory_space<vmem>>) attributes {dimension_semantics = [#tpu.dimension_semantics<parallel>], iteration_bounds = array<i64: 2>, scalar_prefetch = 0 : i64, scratch_operands = 0 : i64, tpu.core_type = #tpu.core_type<tc>, window_params = [{transform_indices = @transform_0, window_bounds = array<i64: 64, 576>}, {pipeline_mode = #tpu.pipeline_mode<synchronous>, transform_indices = @transform_1, window_bounds = array<i64: 576, 64>}, {pipeline_mode = #tpu.pipeline_mode<synchronous>, transform_indices = @transform_2, window_bounds = array<i64: 1, 64>}, {transform_indices = @transform_3, window_bounds = array<i64: 64, 64>}, {transform_indices = @transform_4, window_bounds = array<i64: 64, 64>}]} {
    %c0 = arith.constant 0 : index
    %c0_0 = arith.constant 0 : index
    %0 = vector.load %arg1[%c0, %c0_0] : memref<64x576xbf16, #tpu.memory_space<vmem>>, vector<64x576xbf16>
    %c0_1 = arith.constant 0 : index
    %c0_2 = arith.constant 0 : index
    %1 = vector.load %arg2[%c0_1, %c0_2] : memref<576x64xbf16, #tpu.memory_space<vmem>>, vector<576x64xbf16>
    %cst = arith.constant dense<0.000000e+00> : vector<64x64xf32>
    %2 = tpu.matmul %0, %1, %cst {dimension_numbers = #tpu.dot_dimension_numbers<[1], [0], [0], [1], [0, 0, 1, 1], [], []>} : vector<64x576xbf16>, vector<576x64xbf16>, vector<64x64xf32> -> vector<64x64xf32>
    %c0_3 = arith.constant 0 : index
    %c0_4 = arith.constant 0 : index
    %3 = vector.load %arg3[%c0_3, %c0_4] : memref<1x64xf32, #tpu.memory_space<vmem>>, vector<1x64xf32>
    %4 = vector.broadcast %3 : vector<1x64xf32> to vector<64x64xf32>
    %5 = arith.addf %2, %4 : vector<64x64xf32>
    %c0_5 = arith.constant 0 : index
    %c0_6 = arith.constant 0 : index
    %6 = vector.load %arg4[%c0_5, %c0_6] : memref<64x64xbf16, #tpu.memory_space<vmem>>, vector<64x64xbf16>
    %7 = arith.extf %6 : vector<64x64xbf16> to vector<64x64xf32>
    %8 = arith.addf %5, %7 : vector<64x64xf32>
    %cst_7 = arith.constant 0.000000e+00 : f32
    %9 = vector.broadcast %cst_7 : f32 to vector<64x64xf32>
    %10 = arith.maximumf %8, %9 : vector<64x64xf32>
    %11 = arith.truncf %10 : vector<64x64xf32> to vector<64x64xbf16>
    %c0_8 = arith.constant 0 : index
    %c0_9 = arith.constant 0 : index
    %12 = vector.load %arg5[%c0_8, %c0_9] : memref<64x64xbf16, #tpu.memory_space<vmem>>, vector<64x64xbf16>
    tpu.vector_store %arg5[%c0_8, %c0_9], %11 {strides = array<i32>} : memref<64x64xbf16, #tpu.memory_space<vmem>>, vector<64x64xbf16>,
    return
  }
  func.func @transform_0(%arg0: i32) -> (i32, i32) {
    %c0_i32 = arith.constant 0 : i32
    %c0_i32_0 = arith.constant 0 : i32
    return %arg0, %c0_i32 : i32, i32
  }
  func.func @transform_1(%arg0: i32) -> (i32, i32) {
    %c0_i32 = arith.constant 0 : i32
    %c0_i32_0 = arith.constant 0 : i32
    %c0_i32_1 = arith.constant 0 : i32
    return %c0_i32, %c0_i32_0 : i32, i32
  }
  func.func @transform_2(%arg0: i32) -> (i32, i32) {
    %c0_i32 = arith.constant 0 : i32
    %c0_i32_0 = arith.constant 0 : i32
    %c0_i32_1 = arith.constant 0 : i32
    return %c0_i32, %c0_i32_0 : i32, i32
  }
  func.func @transform_3(%arg0: i32) -> (i32, i32) {
    %c0_i32 = arith.constant 0 : i32
    %c0_i32_0 = arith.constant 0 : i32
    return %arg0, %c0_i32 : i32, i32
  }
  func.func @transform_4(%arg0: i32) -> (i32, i32) {
    %c0_i32 = arith.constant 0 : i32
    %c0_i32_0 = arith.constant 0 : i32
    return %arg0, %c0_i32 : i32, i32
  }
}

module attributes {stable_mosaic.version = 11 : i64} {
  func.func @_head_kernel(%arg0: memref<2x64x64xbf16, #tpu.memory_space<vmem>>, %arg1: memref<64x20xf32, #tpu.memory_space<vmem>>, %arg2: memref<1x20xf32, #tpu.memory_space<vmem>>, %arg3: memref<2x64xf32, #tpu.memory_space<vmem>>, %arg4: memref<2x20xf32, #tpu.memory_space<vmem>>) attributes {dimension_semantics = [], scalar_prefetch = 0 : i64, scratch_operands = 0 : i64, tpu.core_type = #tpu.core_type<tc>} {
    %c0 = arith.constant 0 : index
    %c0_0 = arith.constant 0 : index
    %c0_1 = arith.constant 0 : index
    %0 = vector.load %arg0[%c0, %c0_0, %c0_1] : memref<2x64x64xbf16, #tpu.memory_space<vmem>>, vector<2x64x64xbf16>
    %1 = arith.extf %0 : vector<2x64x64xbf16> to vector<2x64x64xf32>
    %cst = arith.constant dense<0.000000e+00> : vector<2x64xf32>
    %2 = vector.multi_reduction <add>, %1, %cst [1] : vector<2x64x64xf32> to vector<2x64xf32>
    %cst_2 = arith.constant 1.562500e-02 : f32
    %3 = vector.broadcast %cst_2 : f32 to vector<2x64xf32>
    %4 = arith.mulf %2, %3 : vector<2x64xf32>
    %c0_3 = arith.constant 0 : index
    %c0_4 = arith.constant 0 : index
    %5 = vector.load %arg3[%c0_3, %c0_4] : memref<2x64xf32, #tpu.memory_space<vmem>>, vector<2x64xf32>
    tpu.vector_store %arg3[%c0_3, %c0_4], %4 {strides = array<i32>} : memref<2x64xf32, #tpu.memory_space<vmem>>, vector<2x64xf32>,
    %c0_5 = arith.constant 0 : index
    %c0_6 = arith.constant 0 : index
    %6 = vector.load %arg1[%c0_5, %c0_6] : memref<64x20xf32, #tpu.memory_space<vmem>>, vector<64x20xf32>
    %cst_7 = arith.constant dense<0.000000e+00> : vector<2x20xf32>
    %7 = tpu.matmul %4, %6, %cst_7 {dimension_numbers = #tpu.dot_dimension_numbers<[1], [0], [0], [1], [0, 0, 1, 1], [], []>} : vector<2x64xf32>, vector<64x20xf32>, vector<2x20xf32> -> vector<2x20xf32>
    %c0_8 = arith.constant 0 : index
    %c0_9 = arith.constant 0 : index
    %8 = vector.load %arg2[%c0_8, %c0_9] : memref<1x20xf32, #tpu.memory_space<vmem>>, vector<1x20xf32>
    %9 = vector.broadcast %8 : vector<1x20xf32> to vector<2x20xf32>
    %10 = arith.addf %7, %9 : vector<2x20xf32>
    %c0_10 = arith.constant 0 : index
    %c0_11 = arith.constant 0 : index
    %11 = vector.load %arg4[%c0_10, %c0_11] : memref<2x20xf32, #tpu.memory_space<vmem>>, vector<2x20xf32>
    tpu.vector_store %arg4[%c0_10, %c0_11], %10 {strides = array<i32>} : memref<2x20xf32, #tpu.memory_space<vmem>>, vector<2x20xf32>,
    return
  }
}

</mosaic_0001>

<bundles_post_ra>
// kernel: finetune_net_wa_forward.32
= control target key start
LH: loop header
LB: loop body
LE: loop exit
PB: predicated region body
PF: predicated region fallthrough
CT: control target
= control target key end

     0   :  { %s1198_s12 = smov 0   ;;  %s1496_s0 = inlined_call_operand.vmem [shape: bf16[2048,27], index: 0, kind: input, shape index: {}]   ;;  %s1497_s1 = inlined_call_operand.vmem [shape: bf16[27,16], index: 1, kind: input, shape index: {}]   ;;  %s1498_s2 = inlined_call_operand.vmem [shape: f32[1,16], index: 2, kind: input, shape index: {}]   ;;  %s1499_s3 = inlined_call_operand.vmem [shape: bf16[2048,16], index: 3, kind: output, shape index: {}]  }
   0x1 LB: > { %s940_s13 = sadd.s32 4294967295, %s1175_s12   ;;  %p944_p0 = scmp.ge.s32.totalorder %s1175_s12, 1  ;;  %s1175_s12 = sphi %s1198_s12, %s13_s12  }
   0x2   : > { %p138_p1 = scmp.lt.s32.totalorder %s1175_s12, 5 }
   0x4   : > { %p139_p2 = pnand %p944_p0, %p138_p1 }
   0x5   : > { %s945_s18 = sshll.u32 (!%p139_p2), %s940_s13, 6 }
   0x6   : > { %142 = sbr.rel (%p139_p2) target bundleno = 285 (0x11d), region = 32  ;;  %p163_p3 = scmp.lt.s32.totalorder (!%p139_p2), %s945_s18, 255 }
   0xb   : > { %v1083_v0 = vld [vmem:[%s1497_s1 + $0x8] sm:$0xf]  ;;  %v1152_v1 = vld [vmem:[%s1497_s1 + $0x8] sm:$0x30]  ;;  %vm515_vm0 = vcmask 1044480   ;;  %vm516_vm1 = vcmask 1045504  }
   0xc   : > { %v1084_v2 = vor.u32 %v1152_v1, %v1083_v0  ;;  %v1177_v3 = vmov 65535   ;;  %s1501_s18 = smov (!%p163_p3, %s945_s18), 255  ;;  %v1151_v7 = vld [vmem:[%s1497_s1] sm:$0xff]  ;;  %vm418_vm2 = vcmask 220160   ;;  %vm819_vm3 = vcmask 125952  }
   0xd   : > { %v517_v4 = vsel %vm515_vm0, 4294967295, %v1177_v3  ;;  %s946_s21 = sshll.u32 %s1501_s18, 2  ;;  %v1292_v40 = vld [vmem:[%s1498_s2] ss:$0 sm:$0xff] }
   0xe   : > { %v518_v5 = vsel %vm516_vm1, %v517_v4, 0  ;;  %s1223_s24 = scalar_lea.vmem %s1496_s0, %s946_s21  ;;  %s1301_s29 = scalar_lea.vmem %s1499_s3, %s946_s21 }
   0xf   : > { %v520_v6 = vand.u32 %v1084_v2, %v518_v5  ;;  %v1119_v8 = vld [vmem:[%s1223_s24] sm:$0xff]  ;;  %v1120_v12 = vld [vmem:[%s1223_s24 + $0x8] sm:$0xff]  ;;  %v1121_v16 = vld [vmem:[%s1223_s24 + $0x10] sm:$0xff] }
  0x10   : > { %v1127_v9 = vld [vmem:[%s1223_s24 + $0x40] sm:$0xff]  ;;  %v1128_v13 = vld [vmem:[%s1223_s24 + $0x48] sm:$0xff]  ;;  %v1129_v17 = vld [vmem:[%s1223_s24 + $0x50] sm:$0xff] }
  0x11   : > { %528 = vmatpush.bf16.msra.mxu0 %v520_v6  ;;  %1153 = vmatpush.bf16.msra.mxu1 %v520_v6  ;;  %v1135_v10 = vld [vmem:[%s1223_s24 + $0x80] sm:$0xff]  ;;  %v1136_v14 = vld [vmem:[%s1223_s24 + $0x88] sm:$0xff]  ;;  %v1137_v18 = vld [vmem:[%s1223_s24 + $0x90] sm:$0xff] }
  0x12   : > { %1154 = vmatpush.bf16.msra.mxu2 %v520_v6  ;;  %1155 = vmatpush.bf16.msra.mxu3 %v520_v6  ;;  %v1143_v11 = vld [vmem:[%s1223_s24 + $0xc0] sm:$0xff]  ;;  %v1144_v15 = vld [vmem:[%s1223_s24 + $0xc8] sm:$0xff]  ;;  %v1145_v19 = vld [vmem:[%s1223_s24 + $0xd0] sm:$0xff] }
  0x13   : > { %v1122_v20 = vld [vmem:[%s1223_s24 + $0x18] sm:$0xff]  ;;  %v1123_v24 = vld [vmem:[%s1223_s24 + $0x20] sm:$0xff]  ;;  %v1124_v28 = vld [vmem:[%s1223_s24 + $0x28] sm:$0xff] }
  0x14   : > { %v1130_v21 = vld [vmem:[%s1223_s24 + $0x58] sm:$0xff]  ;;  %v1131_v25 = vld [vmem:[%s1223_s24 + $0x60] sm:$0xff]  ;;  %v1132_v29 = vld [vmem:[%s1223_s24 + $0x68] sm:$0xff] }
  0x15   : > { %529 = vmatpush.bf16.msra.mxu0 %v1151_v7  ;;  %1156 = vmatpush.bf16.msra.mxu1 %v1151_v7  ;;  %v1138_v22 = vld [vmem:[%s1223_s24 + $0x98] sm:$0xff]  ;;  %v1139_v26 = vld [vmem:[%s1223_s24 + $0xa0] sm:$0xff]  ;;  %v1140_v30 = vld [vmem:[%s1223_s24 + $0xa8] sm:$0xff] }
  0x16   : > { %1157 = vmatpush.bf16.msra.mxu2 %v1151_v7  ;;  %1158 = vmatpush.bf16.msra.mxu3 %v1151_v7  ;;  %v1146_v23 = vld [vmem:[%s1223_s24 + $0xd8] sm:$0xff]  ;;  %v1147_v27 = vld [vmem:[%s1223_s24 + $0xe0] sm:$0xff]  ;;  %v1148_v31 = vld [vmem:[%s1223_s24 + $0xe8] sm:$0xff] }
  0x17   : > { %v1125_v32 = vld [vmem:[%s1223_s24 + $0x30] sm:$0xff]  ;;  %v1126_v36 = vld [vmem:[%s1223_s24 + $0x38] sm:$0xff] }
  0x18   : > { %1085 = vmatmul.msk.bf16.vlgmr.msra.gmra.mxu0 %vm418_vm2, %v1119_v8  ;;  %1093 = vmatmul.msk.bf16.vlgmr.msra.gmra.mxu1 %vm418_vm2, %v1127_v9  ;;  %v1133_v33 = vld [vmem:[%s1223_s24 + $0x70] sm:$0xff]  ;;  %v1134_v37 = vld [vmem:[%s1223_s24 + $0x78] sm:$0xff] }
  0x19   : > { %1101 = vmatmul.msk.bf16.vlgmr.msra.gmra.mxu2 %vm418_vm2, %v1135_v10  ;;  %1109 = vmatmul.msk.bf16.vlgmr.msra.gmra.mxu3 %vm418_vm2, %v1143_v11  ;;  %v1141_v34 = vld [vmem:[%s1223_s24 + $0xb0] sm:$0xff]  ;;  %v1142_v38 = vld [vmem:[%s1223_s24 + $0xb8] sm:$0xff] }
  0x1a   : > { %v1149_v35 = vld [vmem:[%s1223_s24 + $0xf0] sm:$0xff]  ;;  %v1150_v39 = vld [vmem:[%s1223_s24 + $0xf8] sm:$0xff] }
  0x28   : > { %1086 = vmatmul.msk.bf16.gmra.mxu0 %vm418_vm2, %v1120_v12  ;;  %1094 = vmatmul.msk.bf16.gmra.mxu1 %vm418_vm2, %v1128_v13 }
  0x29   : > { %1102 = vmatmul.msk.bf16.gmra.mxu2 %vm418_vm2, %v1136_v14  ;;  %1110 = vmatmul.msk.bf16.gmra.mxu3 %vm418_vm2, %v1144_v15 }
  0x38   : > { %1087 = vmatmul.msk.bf16.gmra.mxu0 %vm418_vm2, %v1121_v16  ;;  %1095 = vmatmul.msk.bf16.gmra.mxu1 %vm418_vm2, %v1129_v17 }
  0x39   : > { %1103 = vmatmul.msk.bf16.gmra.mxu2 %vm418_vm2, %v1137_v18  ;;  %1111 = vmatmul.msk.bf16.gmra.mxu3 %vm418_vm2, %v1145_v19 }
  0x48   : > { %1088 = vmatmul.msk.bf16.gmra.mxu0 %vm418_vm2, %v1122_v20  ;;  %1096 = vmatmul.msk.bf16.gmra.mxu1 %vm418_vm2, %v1130_v21 }
  0x49   : > { %1104 = vmatmul.msk.bf16.gmra.mxu2 %vm418_vm2, %v1138_v22  ;;  %1112 = vmatmul.msk.bf16.gmra.mxu3 %vm418_vm2, %v1146_v23 }
  0x58   : > { %1089 = vmatmul.msk.bf16.gmra.mxu0 %vm418_vm2, %v1123_v24  ;;  %1097 = vmatmul.msk.bf16.gmra.mxu1 %vm418_vm2, %v1131_v25 }
  0x59   : > { %1105 = vmatmul.msk.bf16.gmra.mxu2 %vm418_vm2, %v1139_v26  ;;  %1113 = vmatmul.msk.bf16.gmra.mxu3 %vm418_vm2, %v1147_v27 }
  0x68   : > { %1090 = vmatmul.msk.bf16.gmra.mxu0 %vm418_vm2, %v1124_v28  ;;  %1098 = vmatmul.msk.bf16.gmra.mxu1 %vm418_vm2, %v1132_v29 }
  0x69   : > { %1106 = vmatmul.msk.bf16.gmra.mxu2 %vm418_vm2, %v1140_v30  ;;  %1114 = vmatmul.msk.bf16.gmra.mxu3 %vm418_vm2, %v1148_v31 }
  0x78   : > { %1091 = vmatmul.msk.bf16.gmra.mxu0 %vm418_vm2, %v1125_v32  ;;  %1099 = vmatmul.msk.bf16.gmra.mxu1 %vm418_vm2, %v1133_v33 }
  0x79   : > { %1107 = vmatmul.msk.bf16.gmra.mxu2 %vm418_vm2, %v1141_v34  ;;  %1115 = vmatmul.msk.bf16.gmra.mxu3 %vm418_vm2, %v1149_v35 }
  0x88   : > { %1092 = vmatmul.msk.bf16.gmra.mxu0 %vm418_vm2, %v1126_v36  ;;  %1100 = vmatmul.msk.bf16.gmra.mxu1 %vm418_vm2, %v1134_v37 }
  0x89   : > { %1108 = vmatmul.msk.bf16.gmra.mxu2 %vm418_vm2, %v1142_v38  ;;  %1116 = vmatmul.msk.bf16.gmra.mxu3 %vm418_vm2, %v1150_v39 }
  0x95   : > { %v531_v41 = vpop.f32.mrf.mxu0  ;;  %v571_v42 = vpop.f32.mrf.mxu1 }
  0x96   : > { %v532_v43 = vadd.f32 %v1292_v40, %v531_v41  ;;  %v572_v44 = vadd.f32 %v1292_v40, %v571_v42 }
  0x98   : > { %v691_v45 = vmax.f32 %v532_v43, 0.0  ;;  %v707_v46 = vmax.f32 %v572_v44, 0.0 }
  0x9a   : > { %v755_v47 = vpack.c.bf16 %v691_v45, %v691_v45  ;;  %v771_v48 = vpack.c.bf16 %v707_v46, %v707_v46 }
  0x9c   : > { %820 = vst.msk [vmem:[%s1301_s29] sm:$0xf] %vm819_vm3, %v755_v47  ;;  %v611_v49 = vpop.f32.mrf.mxu2  ;;  %v651_v50 = vpop.f32.mrf.mxu3 }
  0x9d   : > { %836 = vst.msk [vmem:[%s1301_s29 + $0x40] sm:$0xf] %vm819_vm3, %v771_v48  ;;  %v612_v51 = vadd.f32 %v1292_v40, %v611_v49  ;;  %v652_v52 = vadd.f32 %v1292_v40, %v651_v50  ;;  %v533_v53 = vpop.f32.mrf.mxu0  ;;  %v573_v54 = vpop.f32.mrf.mxu1 }
  0x9e   : > { %v534_v55 = vadd.f32 %v1292_v40, %v533_v53  ;;  %v574_v56 = vadd.f32 %v1292_v40, %v573_v54 }
  0x9f   : > { %v723_v57 = vmax.f32 %v612_v51, 0.0  ;;  %v739_v58 = vmax.f32 %v652_v52, 0.0 }
  0xa0   : > { %v692_v59 = vmax.f32 %v534_v55, 0.0  ;;  %v708_v60 = vmax.f32 %v574_v56, 0.0 }
  0xa1   : > { %v787_v61 = vpack.c.bf16 %v723_v57, %v723_v57  ;;  %v803_v62 = vpack.c.bf16 %v739_v58, %v739_v58 }
  0xa2   : > { %v756_v63 = vpack.c.bf16 %v692_v59, %v692_v59  ;;  %v772_v0 = vpack.c.bf16 %v708_v60, %v708_v60 }
  0xa3   : > { %852 = vst.msk [vmem:[%s1301_s29 + $0x80] sm:$0xf] %vm819_vm3, %v787_v61 }
  0xa4   : > { %868 = vst.msk [vmem:[%s1301_s29 + $0xc0] sm:$0xf] %vm819_vm3, %v803_v62  ;;  %v613_v1 = vpop.f32.mrf.mxu2  ;;  %v653_v2 = vpop.f32.mrf.mxu3 }
  0xa5   : > { %821 = vst.msk [vmem:[%s1301_s29 + $0x4] sm:$0xf] %vm819_vm3, %v756_v63  ;;  %v614_v3 = vadd.f32 %v1292_v40, %v613_v1  ;;  %v654_v4 = vadd.f32 %v1292_v40, %v653_v2  ;;  %v536_v5 = vpop.f32.mrf.mxu0  ;;  %v576_v6 = vpop.f32.mrf.mxu1 }
  0xa6   : > { %837 = vst.msk [vmem:[%s1301_s29 + $0x44] sm:$0xf] %vm819_vm3, %v772_v0  ;;  %v537_v7 = vadd.f32 %v1292_v40, %v536_v5  ;;  %v577_v8 = vadd.f32 %v1292_v40, %v576_v6 }
  0xa7   : > { %v724_v9 = vmax.f32 %v614_v3, 0.0  ;;  %v740_v10 = vmax.f32 %v654_v4, 0.0 }
  0xa8   : > { %v693_v11 = vmax.f32 %v537_v7, 0.0  ;;  %v709_v12 = vmax.f32 %v577_v8, 0.0 }
  0xa9   : > { %v788_v13 = vpack.c.bf16 %v724_v9, %v724_v9  ;;  %v804_v14 = vpack.c.bf16 %v740_v10, %v740_v10 }
  0xaa   : > { %v757_v15 = vpack.c.bf16 %v693_v11, %v693_v11  ;;  %v773_v16 = vpack.c.bf16 %v709_v12, %v709_v12 }
  0xab   : > { %853 = vst.msk [vmem:[%s1301_s29 + $0x84] sm:$0xf] %vm819_vm3, %v788_v13 }
  0xac   : > { %869 = vst.msk [vmem:[%s1301_s29 + $0xc4] sm:$0xf] %vm819_vm3, %v804_v14  ;;  %v616_v17 = vpop.f32.mrf.mxu2  ;;  %v656_v18 = vpop.f32.mrf.mxu3 }
  0xad   : > { %822 = vst.msk [vmem:[%s1301_s29 + $0x8] sm:$0xf] %vm819_vm3, %v757_v15  ;;  %v617_v19 = vadd.f32 %v1292_v40, %v616_v17  ;;  %v657_v20 = vadd.f32 %v1292_v40, %v656_v18  ;;  %v538_v21 = vpop.f32.mrf.mxu0  ;;  %v578_v22 = vpop.f32.mrf.mxu1 }
  0xae   : > { %838 = vst.msk [vmem:[%s1301_s29 + $0x48] sm:$0xf] %vm819_vm3, %v773_v16  ;;  %v539_v23 = vadd.f32 %v1292_v40, %v538_v21  ;;  %v579_v24 = vadd.f32 %v1292_v40, %v578_v22 }
  0xaf   : > { %v725_v25 = vmax.f32 %v617_v19, 0.0  ;;  %v741_v26 = vmax.f32 %v657_v20, 0.0 }
  0xb0   : > { %v694_v27 = vmax.f32 %v539_v23, 0.0  ;;  %v710_v28 = vmax.f32 %v579_v24, 0.0 }
  0xb1   : > { %v789_v29 = vpack.c.bf16 %v725_v25, %v725_v25  ;;  %v805_v30 = vpack.c.bf16 %v741_v26, %v741_v26 }
  0xb2   : > { %v758_v31 = vpack.c.bf16 %v694_v27, %v694_v27  ;;  %v774_v32 = vpack.c.bf16 %v710_v28, %v710_v28 }
  0xb3   : > { %854 = vst.msk [vmem:[%s1301_s29 + $0x88] sm:$0xf] %vm819_vm3, %v789_v29 }
  0xb4   : > { %870 = vst.msk [vmem:[%s1301_s29 + $0xc8] sm:$0xf] %vm819_vm3, %v805_v30  ;;  %v618_v33 = vpop.f32.mrf.mxu2  ;;  %v658_v34 = vpop.f32.mrf.mxu3 }
  0xb5   : > { %823 = vst.msk [vmem:[%s1301_s29 + $0xc] sm:$0xf] %vm819_vm3, %v758_v31  ;;  %v619_v35 = vadd.f32 %v1292_v40, %v618_v33  ;;  %v659_v36 = vadd.f32 %v1292_v40, %v658_v34  ;;  %v541_v37 = vpop.f32.mrf.mxu0  ;;  %v581_v38 = vpop.f32.mrf.mxu1 }
  0xb6   : > { %839 = vst.msk [vmem:[%s1301_s29 + $0x4c] sm:$0xf] %vm819_vm3, %v774_v32  ;;  %v542_v39 = vadd.f32 %v1292_v40, %v541_v37  ;;  %v582_v41 = vadd.f32 %v1292_v40, %v581_v38 }
  0xb7   : > { %v726_v42 = vmax.f32 %v619_v35, 0.0  ;;  %v742_v43 = vmax.f32 %v659_v36, 0.0 }
  0xb8   : > { %v695_v44 = vmax.f32 %v542_v39, 0.0  ;;  %v711_v45 = vmax.f32 %v582_v41, 0.0 }
  0xb9   : > { %v790_v46 = vpack.c.bf16 %v726_v42, %v726_v42  ;;  %v806_v47 = vpack.c.bf16 %v742_v43, %v742_v43 }
  0xba   : > { %v759_v48 = vpack.c.bf16 %v695_v44, %v695_v44  ;;  %v775_v49 = vpack.c.bf16 %v711_v45, %v711_v45 }
  0xbb   : > { %855 = vst.msk [vmem:[%s1301_s29 + $0x8c] sm:$0xf] %vm819_vm3, %v790_v46 }
  0xbc   : > { %871 = vst.msk [vmem:[%s1301_s29 + $0xcc] sm:$0xf] %vm819_vm3, %v806_v47  ;;  %v621_v50 = vpop.f32.mrf.mxu2  ;;  %v661_v51 = vpop.f32.mrf.mxu3 }
  0xbd   : > { %824 = vst.msk [vmem:[%s1301_s29 + $0x10] sm:$0xf] %vm819_vm3, %v759_v48  ;;  %v622_v52 = vadd.f32 %v1292_v40, %v621_v50  ;;  %v662_v53 = vadd.f32 %v1292_v40, %v661_v51  ;;  %v543_v54 = vpop.f32.mrf.mxu0  ;;  %v583_v55 = vpop.f32.mrf.mxu1 }
  0xbe   : > { %840 = vst.msk [vmem:[%s1301_s29 + $0x50] sm:$0xf] %vm819_vm3, %v775_v49  ;;  %v544_v56 = vadd.f32 %v1292_v40, %v543_v54  ;;  %v584_v57 = vadd.f32 %v1292_v40, %v583_v55 }
  0xbf   : > { %v727_v58 = vmax.f32 %v622_v52, 0.0  ;;  %v743_v59 = vmax.f32 %v662_v53, 0.0 }
  0xc0   : > { %v696_v60 = vmax.f32 %v544_v56, 0.0  ;;  %v712_v61 = vmax.f32 %v584_v57, 0.0 }
  0xc1   : > { %v791_v62 = vpack.c.bf16 %v727_v58, %v727_v58  ;;  %v807_v63 = vpack.c.bf16 %v743_v59, %v743_v59 }
  0xc2   : > { %v760_v0 = vpack.c.bf16 %v696_v60, %v696_v60  ;;  %v776_v1 = vpack.c.bf16 %v712_v61, %v712_v61 }
  0xc3   : > { %856 = vst.msk [vmem:[%s1301_s29 + $0x90] sm:$0xf] %vm819_vm3, %v791_v62 }
  0xc4   : > { %872 = vst.msk [vmem:[%s1301_s29 + $0xd0] sm:$0xf] %vm819_vm3, %v807_v63  ;;  %v623_v2 = vpop.f32.mrf.mxu2  ;;  %v663_v3 = vpop.f32.mrf.mxu3 }
  0xc5   : > { %825 = vst.msk [vmem:[%s1301_s29 + $0x14] sm:$0xf] %vm819_vm3, %v760_v0  ;;  %v624_v4 = vadd.f32 %v1292_v40, %v623_v2  ;;  %v664_v5 = vadd.f32 %v1292_v40, %v663_v3  ;;  %v546_v6 = vpop.f32.mrf.mxu0  ;;  %v586_v7 = vpop.f32.mrf.mxu1 }
  0xc6   : > { %841 = vst.msk [vmem:[%s1301_s29 + $0x54] sm:$0xf] %vm819_vm3, %v776_v1  ;;  %v547_v8 = vadd.f32 %v1292_v40, %v546_v6  ;;  %v587_v9 = vadd.f32 %v1292_v40, %v586_v7 }
  0xc7   : > { %v728_v10 = vmax.f32 %v624_v4, 0.0  ;;  %v744_v11 = vmax.f32 %v664_v5, 0.0 }
  0xc8   : > { %v697_v12 = vmax.f32 %v547_v8, 0.0  ;;  %v713_v13 = vmax.f32 %v587_v9, 0.0 }
  0xc9   : > { %v792_v14 = vpack.c.bf16 %v728_v10, %v728_v10  ;;  %v808_v15 = vpack.c.bf16 %v744_v11, %v744_v11 }
  0xca   : > { %v761_v16 = vpack.c.bf16 %v697_v12, %v697_v12  ;;  %v777_v17 = vpack.c.bf16 %v713_v13, %v713_v13 }
  0xcb   : > { %857 = vst.msk [vmem:[%s1301_s29 + $0x94] sm:$0xf] %vm819_vm3, %v792_v14 }
  0xcc   : > { %873 = vst.msk [vmem:[%s1301_s29 + $0xd4] sm:$0xf] %vm819_vm3, %v808_v15  ;;  %v626_v18 = vpop.f32.mrf.mxu2  ;;  %v666_v19 = vpop.f32.mrf.mxu3 }
  0xcd   : > { %826 = vst.msk [vmem:[%s1301_s29 + $0x18] sm:$0xf] %vm819_vm3, %v761_v16  ;;  %v627_v20 = vadd.f32 %v1292_v40, %v626_v18  ;;  %v667_v21 = vadd.f32 %v1292_v40, %v666_v19  ;;  %v548_v22 = vpop.f32.mrf.mxu0  ;;  %v588_v23 = vpop.f32.mrf.mxu1 }
  0xce   : > { %842 = vst.msk [vmem:[%s1301_s29 + $0x58] sm:$0xf] %vm819_vm3, %v777_v17  ;;  %v549_v24 = vadd.f32 %v1292_v40, %v548_v22  ;;  %v589_v25 = vadd.f32 %v1292_v40, %v588_v23 }
  0xcf   : > { %v729_v26 = vmax.f32 %v627_v20, 0.0  ;;  %v745_v27 = vmax.f32 %v667_v21, 0.0 }
  0xd0   : > { %v698_v28 = vmax.f32 %v549_v24, 0.0  ;;  %v714_v29 = vmax.f32 %v589_v25, 0.0 }
  0xd1   : > { %v793_v30 = vpack.c.bf16 %v729_v26, %v729_v26  ;;  %v809_v31 = vpack.c.bf16 %v745_v27, %v745_v27 }
  0xd2   : > { %v762_v32 = vpack.c.bf16 %v698_v28, %v698_v28  ;;  %v778_v33 = vpack.c.bf16 %v714_v29, %v714_v29 }
  0xd3   : > { %858 = vst.msk [vmem:[%s1301_s29 + $0x98] sm:$0xf] %vm819_vm3, %v793_v30 }
  0xd4   : > { %874 = vst.msk [vmem:[%s1301_s29 + $0xd8] sm:$0xf] %vm819_vm3, %v809_v31  ;;  %v628_v34 = vpop.f32.mrf.mxu2  ;;  %v668_v35 = vpop.f32.mrf.mxu3 }
  0xd5   : > { %827 = vst.msk [vmem:[%s1301_s29 + $0x1c] sm:$0xf] %vm819_vm3, %v762_v32  ;;  %v629_v36 = vadd.f32 %v1292_v40, %v628_v34  ;;  %v669_v37 = vadd.f32 %v1292_v40, %v668_v35  ;;  %v551_v38 = vpop.f32.mrf.mxu0  ;;  %v591_v39 = vpop.f32.mrf.mxu1 }
  0xd6   : > { %843 = vst.msk [vmem:[%s1301_s29 + $0x5c] sm:$0xf] %vm819_vm3, %v778_v33  ;;  %v552_v41 = vadd.f32 %v1292_v40, %v551_v38  ;;  %v592_v42 = vadd.f32 %v1292_v40, %v591_v39 }
  0xd7   : > { %v730_v43 = vmax.f32 %v629_v36, 0.0  ;;  %v746_v44 = vmax.f32 %v669_v37, 0.0 }
  0xd8   : > { %v699_v45 = vmax.f32 %v552_v41, 0.0  ;;  %v715_v46 = vmax.f32 %v592_v42, 0.0 }
  0xd9   : > { %v794_v47 = vpack.c.bf16 %v730_v43, %v730_v43  ;;  %v810_v48 = vpack.c.bf16 %v746_v44, %v746_v44 }
  0xda   : > { %v763_v49 = vpack.c.bf16 %v699_v45, %v699_v45  ;;  %v779_v50 = vpack.c.bf16 %v715_v46, %v715_v46 }
  0xdb   : > { %859 = vst.msk [vmem:[%s1301_s29 + $0x9c] sm:$0xf] %vm819_vm3, %v794_v47 }
  0xdc   : > { %875 = vst.msk [vmem:[%s1301_s29 + $0xdc] sm:$0xf] %vm819_vm3, %v810_v48  ;;  %v631_v51 = vpop.f32.mrf.mxu2  ;;  %v671_v52 = vpop.f32.mrf.mxu3 }
  0xdd   : > { %828 = vst.msk [vmem:[%s1301_s29 + $0x20] sm:$0xf] %vm819_vm3, %v763_v49  ;;  %v632_v53 = vadd.f32 %v1292_v40, %v631_v51  ;;  %v672_v54 = vadd.f32 %v1292_v40, %v671_v52  ;;  %v553_v55 = vpop.f32.mrf.mxu0  ;;  %v593_v56 = vpop.f32.mrf.mxu1 }
  0xde   : > { %844 = vst.msk [vmem:[%s1301_s29 + $0x60] sm:$0xf] %vm819_vm3, %v779_v50  ;;  %v554_v57 = vadd.f32 %v1292_v40, %v553_v55  ;;  %v594_v58 = vadd.f32 %v1292_v40, %v593_v56 }
  0xdf   : > { %v731_v59 = vmax.f32 %v632_v53, 0.0  ;;  %v747_v60 = vmax.f32 %v672_v54, 0.0 }
  0xe0   : > { %v700_v61 = vmax.f32 %v554_v57, 0.0  ;;  %v716_v62 = vmax.f32 %v594_v58, 0.0 }
  0xe1   : > { %v795_v63 = vpack.c.bf16 %v731_v59, %v731_v59  ;;  %v811_v0 = vpack.c.bf16 %v747_v60, %v747_v60 }
  0xe2   : > { %v764_v1 = vpack.c.bf16 %v700_v61, %v700_v61  ;;  %v780_v2 = vpack.c.bf16 %v716_v62, %v716_v62 }
  0xe3   : > { %860 = vst.msk [vmem:[%s1301_s29 + $0xa0] sm:$0xf] %vm819_vm3, %v795_v63 }
  0xe4   : > { %876 = vst.msk [vmem:[%s1301_s29 + $0xe0] sm:$0xf] %vm819_vm3, %v811_v0  ;;  %v633_v3 = vpop.f32.mrf.mxu2  ;;  %v673_v4 = vpop.f32.mrf.mxu3 }
  0xe5   : > { %829 = vst.msk [vmem:[%s1301_s29 + $0x24] sm:$0xf] %vm819_vm3, %v764_v1  ;;  %v634_v5 = vadd.f32 %v1292_v40, %v633_v3  ;;  %v674_v6 = vadd.f32 %v1292_v40, %v673_v4  ;;  %v556_v7 = vpop.f32.mrf.mxu0  ;;  %v596_v8 = vpop.f32.mrf.mxu1 }
  0xe6   : > { %845 = vst.msk [vmem:[%s1301_s29 + $0x64] sm:$0xf] %vm819_vm3, %v780_v2  ;;  %v557_v9 = vadd.f32 %v1292_v40, %v556_v7  ;;  %v597_v10 = vadd.f32 %v1292_v40, %v596_v8 }
  0xe7   : > { %v732_v11 = vmax.f32 %v634_v5, 0.0  ;;  %v748_v12 = vmax.f32 %v674_v6, 0.0 }
  0xe8   : > { %v701_v13 = vmax.f32 %v557_v9, 0.0  ;;  %v717_v14 = vmax.f32 %v597_v10, 0.0 }
  0xe9   : > { %v796_v15 = vpack.c.bf16 %v732_v11, %v732_v11  ;;  %v812_v16 = vpack.c.bf16 %v748_v12, %v748_v12 }
  0xea   : > { %v765_v17 = vpack.c.bf16 %v701_v13, %v701_v13  ;;  %v781_v18 = vpack.c.bf16 %v717_v14, %v717_v14 }
  0xeb   : > { %861 = vst.msk [vmem:[%s1301_s29 + $0xa4] sm:$0xf] %vm819_vm3, %v796_v15 }
  0xec   : > { %877 = vst.msk [vmem:[%s1301_s29 + $0xe4] sm:$0xf] %vm819_vm3, %v812_v16  ;;  %v636_v19 = vpop.f32.mrf.mxu2  ;;  %v676_v20 = vpop.f32.mrf.mxu3 }
  0xed   : > { %830 = vst.msk [vmem:[%s1301_s29 + $0x28] sm:$0xf] %vm819_vm3, %v765_v17  ;;  %v637_v21 = vadd.f32 %v1292_v40, %v636_v19  ;;  %v677_v22 = vadd.f32 %v1292_v40, %v676_v20  ;;  %v558_v23 = vpop.f32.mrf.mxu0  ;;  %v598_v24 = vpop.f32.mrf.mxu1 }
  0xee   : > { %846 = vst.msk [vmem:[%s1301_s29 + $0x68] sm:$0xf] %vm819_vm3, %v781_v18  ;;  %v559_v25 = vadd.f32 %v1292_v40, %v558_v23  ;;  %v599_v26 = vadd.f32 %v1292_v40, %v598_v24 }
  0xef   : > { %v733_v27 = vmax.f32 %v637_v21, 0.0  ;;  %v749_v28 = vmax.f32 %v677_v22, 0.0 }
  0xf0   : > { %v702_v29 = vmax.f32 %v559_v25, 0.0  ;;  %v718_v30 = vmax.f32 %v599_v26, 0.0 }
  0xf1   : > { %v797_v31 = vpack.c.bf16 %v733_v27, %v733_v27  ;;  %v813_v32 = vpack.c.bf16 %v749_v28, %v749_v28 }
  0xf2   : > { %v766_v33 = vpack.c.bf16 %v702_v29, %v702_v29  ;;  %v782_v34 = vpack.c.bf16 %v718_v30, %v718_v30 }
  0xf3   : > { %862 = vst.msk [vmem:[%s1301_s29 + $0xa8] sm:$0xf] %vm819_vm3, %v797_v31 }
  0xf4   : > { %878 = vst.msk [vmem:[%s1301_s29 + $0xe8] sm:$0xf] %vm819_vm3, %v813_v32  ;;  %v638_v35 = vpop.f32.mrf.mxu2  ;;  %v678_v36 = vpop.f32.mrf.mxu3 }
  0xf5   : > { %831 = vst.msk [vmem:[%s1301_s29 + $0x2c] sm:$0xf] %vm819_vm3, %v766_v33  ;;  %v639_v37 = vadd.f32 %v1292_v40, %v638_v35  ;;  %v679_v38 = vadd.f32 %v1292_v40, %v678_v36  ;;  %v561_v39 = vpop.f32.mrf.mxu0  ;;  %v601_v41 = vpop.f32.mrf.mxu1 }
  0xf6   : > { %847 = vst.msk [vmem:[%s1301_s29 + $0x6c] sm:$0xf] %vm819_vm3, %v782_v34  ;;  %v562_v42 = vadd.f32 %v1292_v40, %v561_v39  ;;  %v602_v43 = vadd.f32 %v1292_v40, %v601_v41 }
  0xf7   : > { %v734_v44 = vmax.f32 %v639_v37, 0.0  ;;  %v750_v45 = vmax.f32 %v679_v38, 0.0 }
  0xf8   : > { %v703_v46 = vmax.f32 %v562_v42, 0.0  ;;  %v719_v47 = vmax.f32 %v602_v43, 0.0 }
  0xf9   : > { %v798_v48 = vpack.c.bf16 %v734_v44, %v734_v44  ;;  %v814_v49 = vpack.c.bf16 %v750_v45, %v750_v45 }
  0xfa   : > { %v767_v50 = vpack.c.bf16 %v703_v46, %v703_v46  ;;  %v783_v51 = vpack.c.bf16 %v719_v47, %v719_v47 }
  0xfb   : > { %863 = vst.msk [vmem:[%s1301_s29 + $0xac] sm:$0xf] %vm819_vm3, %v798_v48 }
  0xfc   : > { %879 = vst.msk [vmem:[%s1301_s29 + $0xec] sm:$0xf] %vm819_vm3, %v814_v49  ;;  %v641_v52 = vpop.f32.mrf.mxu2  ;;  %v681_v53 = vpop.f32.mrf.mxu3 }
  0xfd   : > { %832 = vst.msk [vmem:[%s1301_s29 + $0x30] sm:$0xf] %vm819_vm3, %v767_v50  ;;  %v642_v54 = vadd.f32 %v1292_v40, %v641_v52  ;;  %v682_v55 = vadd.f32 %v1292_v40, %v681_v53  ;;  %v563_v56 = vpop.f32.mrf.mxu0  ;;  %v603_v57 = vpop.f32.mrf.mxu1 }
  0xfe   : > { %848 = vst.msk [vmem:[%s1301_s29 + $0x70] sm:$0xf] %vm819_vm3, %v783_v51  ;;  %v564_v58 = vadd.f32 %v1292_v40, %v563_v56  ;;  %v604_v59 = vadd.f32 %v1292_v40, %v603_v57 }
  0xff   : > { %v735_v60 = vmax.f32 %v642_v54, 0.0  ;;  %v751_v61 = vmax.f32 %v682_v55, 0.0 }
 0x100   : > { %v704_v62 = vmax.f32 %v564_v58, 0.0  ;;  %v720_v63 = vmax.f32 %v604_v59, 0.0 }
 0x101   : > { %v799_v0 = vpack.c.bf16 %v735_v60, %v735_v60  ;;  %v815_v1 = vpack.c.bf16 %v751_v61, %v751_v61 }
 0x102   : > { %v768_v2 = vpack.c.bf16 %v704_v62, %v704_v62  ;;  %v784_v3 = vpack.c.bf16 %v720_v63, %v720_v63 }
 0x103   : > { %864 = vst.msk [vmem:[%s1301_s29 + $0xb0] sm:$0xf] %vm819_vm3, %v799_v0 }
 0x104   : > { %880 = vst.msk [vmem:[%s1301_s29 + $0xf0] sm:$0xf] %vm819_vm3, %v815_v1  ;;  %v643_v4 = vpop.f32.mrf.mxu2  ;;  %v683_v5 = vpop.f32.mrf.mxu3 }
 0x105   : > { %833 = vst.msk [vmem:[%s1301_s29 + $0x34] sm:$0xf] %vm819_vm3, %v768_v2  ;;  %v644_v6 = vadd.f32 %v1292_v40, %v643_v4  ;;  %v684_v7 = vadd.f32 %v1292_v40, %v683_v5  ;;  %v566_v8 = vpop.f32.mrf.mxu0  ;;  %v606_v9 = vpop.f32.mrf.mxu1 }
 0x106   : > { %849 = vst.msk [vmem:[%s1301_s29 + $0x74] sm:$0xf] %vm819_vm3, %v784_v3  ;;  %v567_v10 = vadd.f32 %v1292_v40, %v566_v8  ;;  %v607_v11 = vadd.f32 %v1292_v40, %v606_v9 }
 0x107   : > { %v736_v12 = vmax.f32 %v644_v6, 0.0  ;;  %v752_v13 = vmax.f32 %v684_v7, 0.0 }
 0x108   : > { %v705_v14 = vmax.f32 %v567_v10, 0.0  ;;  %v721_v15 = vmax.f32 %v607_v11, 0.0 }
 0x109   : > { %v800_v16 = vpack.c.bf16 %v736_v12, %v736_v12  ;;  %v816_v17 = vpack.c.bf16 %v752_v13, %v752_v13 }
 0x10a   : > { %v769_v18 = vpack.c.bf16 %v705_v14, %v705_v14  ;;  %v785_v19 = vpack.c.bf16 %v721_v15, %v721_v15 }
 0x10b   : > { %865 = vst.msk [vmem:[%s1301_s29 + $0xb4] sm:$0xf] %vm819_vm3, %v800_v16 }
 0x10c   : > { %881 = vst.msk [vmem:[%s1301_s29 + $0xf4] sm:$0xf] %vm819_vm3, %v816_v17  ;;  %v646_v20 = vpop.f32.mrf.mxu2  ;;  %v686_v21 = vpop.f32.mrf.mxu3 }
 0x10d   : > { %834 = vst.msk [vmem:[%s1301_s29 + $0x38] sm:$0xf] %vm819_vm3, %v769_v18  ;;  %v647_v22 = vadd.f32 %v1292_v40, %v646_v20  ;;  %v687_v23 = vadd.f32 %v1292_v40, %v686_v21  ;;  %v568_v24 = vpop.f32.mrf.mxu0  ;;  %v608_v25 = vpop.f32.mrf.mxu1 }
 0x10e   : > { %850 = vst.msk [vmem:[%s1301_s29 + $0x78] sm:$0xf] %vm819_vm3, %v785_v19  ;;  %v569_v26 = vadd.f32 %v1292_v40, %v568_v24  ;;  %v609_v27 = vadd.f32 %v1292_v40, %v608_v25 }
 0x10f   : > { %v737_v28 = vmax.f32 %v647_v22, 0.0  ;;  %v753_v29 = vmax.f32 %v687_v23, 0.0 }
 0x110   : > { %v706_v30 = vmax.f32 %v569_v26, 0.0  ;;  %v722_v31 = vmax.f32 %v609_v27, 0.0 }
 0x111   : > { %v801_v32 = vpack.c.bf16 %v737_v28, %v737_v28  ;;  %v817_v33 = vpack.c.bf16 %v753_v29, %v753_v29 }
 0x112   : > { %v770_v34 = vpack.c.bf16 %v706_v30, %v706_v30  ;;  %v786_v35 = vpack.c.bf16 %v722_v31, %v722_v31 }
 0x113   : > { %866 = vst.msk [vmem:[%s1301_s29 + $0xb8] sm:$0xf] %vm819_vm3, %v801_v32 }
 0x114   : > { %882 = vst.msk [vmem:[%s1301_s29 + $0xf8] sm:$0xf] %vm819_vm3, %v817_v33  ;;  %v648_v36 = vpop.f32.mrf.mxu2  ;;  %v688_v37 = vpop.f32.mrf.mxu3 }
 0x115   : > { %835 = vst.msk [vmem:[%s1301_s29 + $0x3c] sm:$0xf] %vm819_vm3, %v770_v34  ;;  %v649_v38 = vadd.f32 %v1292_v40, %v648_v36  ;;  %v689_v39 = vadd.f32 %v1292_v40, %v688_v37 }
 0x116   : > { %851 = vst.msk [vmem:[%s1301_s29 + $0x7c] sm:$0xf] %vm819_vm3, %v786_v35 }
 0x117   : > { %v738_v41 = vmax.f32 %v649_v38, 0.0  ;;  %v754_v42 = vmax.f32 %v689_v39, 0.0 }
 0x119   : > { %v802_v43 = vpack.c.bf16 %v738_v41, %v738_v41  ;;  %v818_v44 = vpack.c.bf16 %v754_v42, %v754_v42 }
 0x11b   : > { %867 = vst.msk [vmem:[%s1301_s29 + $0xbc] sm:$0xf] %vm819_vm3, %v802_v43 }
 0x11c   : > { %883 = vst.msk [vmem:[%s1301_s29 + $0xfc] sm:$0xf] %vm819_vm3, %v818_v44 }
 0x11d PF: > { %s13_s12 = sadd.s32 1, %s1175_s12  }
 0x11e   : > { %p10_p4 = scmp.ge.s32.totalorder %s13_s12, 6  }
 0x120   :  { %12 = sbr.rel (!%p10_p4) target bundleno = 1 (0x1), region = 62 }

// kernel: finetune_net_wa_forward.33
= control target key start
LH: loop header
LB: loop body
LE: loop exit
PB: predicated region body
PF: predicated region fallthrough
CT: control target
= control target key end

     0   :  { %s1747_s12 = smov 0   ;;  %s2228_s0 = inlined_call_operand.vmem [shape: bf16[2048,144], index: 0, kind: input, shape index: {}]   ;;  %s2229_s1 = inlined_call_operand.vmem [shape: bf16[144,16], index: 1, kind: input, shape index: {}]   ;;  %s2230_s2 = inlined_call_operand.vmem [shape: f32[1,16], index: 2, kind: input, shape index: {}]   ;;  %s2231_s3 = inlined_call_operand.vmem [shape: bf16[2048,16], index: 3, kind: output, shape index: {}]  }
   0x1 LB: > { %s1290_s13 = sadd.s32 4294967295, %s1725_s12   ;;  %p1294_p0 = scmp.ge.s32.totalorder %s1725_s12, 1  ;;  %s1725_s12 = sphi %s1747_s12, %s13_s12  }
   0x2   : > { %p139_p1 = scmp.lt.s32.totalorder %s1725_s12, 5 }
   0x4   : > { %p140_p2 = pnand %p1294_p0, %p139_p1 }
   0x5   : > { %s1295_s18 = sshll.u32 (!%p140_p2), %s1290_s13, 6 }
   0x6   : > { %143 = sbr.rel (%p140_p2) target bundleno = 432 (0x1b0), region = 32  ;;  %p165_p3 = scmp.lt.s32.totalorder (!%p140_p2), %s1295_s18, 255 }
   0xb   : > { %v1698_v0 = vld [vmem:[%s2229_s1 + $0x38] sm:$0xff]  ;;  %v1699_v1 = vld [vmem:[%s2229_s1 + $0x40] sm:$0xff]  ;;  %v1697_v2 = vld [vmem:[%s2229_s1 + $0x30] sm:$0xff]  ;;  %s2233_s18 = smov (!%p165_p3, %s1295_s18), 255  ;;  %vm606_vm0 = vcmask 130048   ;;  %vm1169_vm1 = vcmask 125952  }
   0xc   : > { %703 = vmatpush.bf16.msra.mxu0 %v1698_v0  ;;  %1700 = vmatpush.bf16.msra.mxu2 %v1698_v0  ;;  %s1626_s21 = sshll.u32 %s2233_s18, 3  ;;  %v1696_v3 = vld [vmem:[%s2229_s1 + $0x28] sm:$0xff]  ;;  %v1695_v7 = vld [vmem:[%s2229_s1 + $0x20] sm:$0xff]  ;;  %v1694_v11 = vld [vmem:[%s2229_s1 + $0x18] sm:$0xff]  ;;  %s1299_s13 = sshll.u32 %s2233_s18, 2 }
   0xd   : > { %879 = vmatpush.bf16.msra.mxu1 %v1699_v1  ;;  %1708 = vmatpush.bf16.msra.mxu3 %v1699_v1  ;;  %s1770_s24 = scalar_lea.vmem %s2228_s0, %s1626_s21  ;;  %v1693_v12 = vld [vmem:[%s2229_s1 + $0x10] sm:$0xff]  ;;  %v1692_v16 = vld [vmem:[%s2229_s1 + $0x8] sm:$0xff]  ;;  %v1691_v19 = vld [vmem:[%s2229_s1] sm:$0xff]  ;;  %s1904_s16 = scalar_lea.vmem %s2231_s3, %s1299_s13 }
   0xe   : > { %v1627_v4 = vld [vmem:[%s1770_s24 + $0x4] sm:$0xf]  ;;  %v1304_v5 = vld [vmem:[%s1770_s24 + $0x8] sm:$0xf0]  ;;  %v1661_v8 = vld [vmem:[%s1770_s24 + $0x114] sm:$0xf] }
   0xf   : > { %v1307_v6 = vor.u32 %v1627_v4, %v1304_v5  ;;  %v1440_v9 = vld [vmem:[%s1770_s24 + $0x118] sm:$0xf0]  ;;  %v1629_v13 = vld [vmem:[%s1770_s24 + $0x14] sm:$0xf]  ;;  %v1663_v17 = vld [vmem:[%s1770_s24 + $0x124] sm:$0xf] }
  0x10   : > { %704 = vmatpush.bf16.msra.mxu0 %v1697_v2  ;;  %1701 = vmatpush.bf16.msra.mxu2 %v1697_v2  ;;  %v1443_v10 = vor.u32 %v1661_v8, %v1440_v9  ;;  %v1312_v14 = vld [vmem:[%s1770_s24 + $0x18] sm:$0xf0]  ;;  %v1448_v18 = vld [vmem:[%s1770_s24 + $0x128] sm:$0xf0]  ;;  %v1302_v20 = vld [vmem:[%s1770_s24] sm:$0xf] }
  0x11   : > { %1592 = vmatmul.msk.bf16.vlgmr.msra.gmra.mxu1 %vm606_vm0, %v1307_v6  ;;  %v1315_v15 = vor.u32 %v1629_v13, %v1312_v14  ;;  %v1628_v21 = vld [vmem:[%s1770_s24 + $0x4] sm:$0xf0]  ;;  %v1451_v22 = vor.u32 %v1663_v17, %v1448_v18  ;;  %v1430_v23 = vld [vmem:[%s1770_s24 + $0x100] sm:$0xf]  ;;  %v1631_v27 = vld [vmem:[%s1770_s24 + $0x24] sm:$0xf] }
  0x12   : > { %1609 = vmatmul.msk.bf16.vlgmr.msra.gmra.mxu3 %vm606_vm0, %v1443_v10  ;;  %v1660_v24 = vld [vmem:[%s1770_s24 + $0x104] sm:$0xf0]  ;;  %v1303_v25 = vor.u32 %v1628_v21, %v1302_v20  ;;  %v1320_v28 = vld [vmem:[%s1770_s24 + $0x28] sm:$0xf0]  ;;  %v1665_v30 = vld [vmem:[%s1770_s24 + $0x134] sm:$0xf] }
  0x13   : > { %v1431_v26 = vor.u32 %v1660_v24, %v1430_v23  ;;  %v1323_v29 = vor.u32 %v1631_v27, %v1320_v28  ;;  %v1456_v31 = vld [vmem:[%s1770_s24 + $0x138] sm:$0xf0]  ;;  %v1310_v32 = vld [vmem:[%s1770_s24 + $0x10] sm:$0xf]  ;;  %v1630_v33 = vld [vmem:[%s1770_s24 + $0x14] sm:$0xf0] }
  0x14   : > { %705 = vmatpush.bf16.msra.mxu0 %v1696_v3  ;;  %1702 = vmatpush.bf16.msra.mxu2 %v1696_v3  ;;  %v1459_v34 = vor.u32 %v1665_v30, %v1456_v31  ;;  %v1438_v35 = vld [vmem:[%s1770_s24 + $0x110] sm:$0xf]  ;;  %v1662_v36 = vld [vmem:[%s1770_s24 + $0x114] sm:$0xf0]  ;;  %v1311_v37 = vor.u32 %v1630_v33, %v1310_v32  ;;  %v1633_v39 = vld [vmem:[%s1770_s24 + $0x34] sm:$0xf] }
  0x15   : > { %v1439_v38 = vor.u32 %v1662_v36, %v1438_v35  ;;  %v1328_v40 = vld [vmem:[%s1770_s24 + $0x38] sm:$0xf0]  ;;  %v1667_v42 = vld [vmem:[%s1770_s24 + $0x144] sm:$0xf]  ;;  %v1464_v43 = vld [vmem:[%s1770_s24 + $0x148] sm:$0xf0] }
  0x16   : > { %v1331_v41 = vor.u32 %v1633_v39, %v1328_v40  ;;  %v1318_v44 = vld [vmem:[%s1770_s24 + $0x20] sm:$0xf]  ;;  %v1632_v45 = vld [vmem:[%s1770_s24 + $0x24] sm:$0xf0]  ;;  %v1467_v46 = vor.u32 %v1667_v42, %v1464_v43  ;;  %v1635_v51 = vld [vmem:[%s1770_s24 + $0x44] sm:$0xf] }
  0x17   : > { %v1446_v47 = vld [vmem:[%s1770_s24 + $0x120] sm:$0xf]  ;;  %v1664_v48 = vld [vmem:[%s1770_s24 + $0x124] sm:$0xf0]  ;;  %v1319_v49 = vor.u32 %v1632_v45, %v1318_v44  ;;  %v1336_v52 = vld [vmem:[%s1770_s24 + $0x48] sm:$0xf0] }
  0x18   : > { %706 = vmatpush.bf16.msra.mxu0 %v1695_v7  ;;  %1703 = vmatpush.bf16.msra.mxu2 %v1695_v7  ;;  %v1447_v50 = vor.u32 %v1664_v48, %v1446_v47  ;;  %v1339_v53 = vor.u32 %v1635_v51, %v1336_v52  ;;  %v1669_v54 = vld [vmem:[%s1770_s24 + $0x154] sm:$0xf]  ;;  %v1472_v55 = vld [vmem:[%s1770_s24 + $0x158] sm:$0xf0]  ;;  %v1326_v56 = vld [vmem:[%s1770_s24 + $0x30] sm:$0xf] }
  0x19   : > { %v1634_v57 = vld [vmem:[%s1770_s24 + $0x34] sm:$0xf0]  ;;  %v1475_v58 = vor.u32 %v1669_v54, %v1472_v55  ;;  %v1454_v59 = vld [vmem:[%s1770_s24 + $0x130] sm:$0xf]  ;;  %v1637_v63 = vld [vmem:[%s1770_s24 + $0x54] sm:$0xf] }
  0x1a   : > { %v1666_v60 = vld [vmem:[%s1770_s24 + $0x134] sm:$0xf0]  ;;  %v1327_v61 = vor.u32 %v1634_v57, %v1326_v56  ;;  %v1344_v0 = vld [vmem:[%s1770_s24 + $0x58] sm:$0xf0]  ;;  %v1671_v2 = vld [vmem:[%s1770_s24 + $0x164] sm:$0xf] }
  0x1b   : > { %v1455_v62 = vor.u32 %v1666_v60, %v1454_v59  ;;  %v1347_v1 = vor.u32 %v1637_v63, %v1344_v0  ;;  %v1480_v3 = vld [vmem:[%s1770_s24 + $0x168] sm:$0xf0]  ;;  %v1334_v4 = vld [vmem:[%s1770_s24 + $0x40] sm:$0xf]  ;;  %v1636_v5 = vld [vmem:[%s1770_s24 + $0x44] sm:$0xf0] }
  0x1c   : > { %707 = vmatpush.bf16.msra.mxu0 %v1694_v11  ;;  %1704 = vmatpush.bf16.msra.mxu2 %v1694_v11  ;;  %v1483_v6 = vor.u32 %v1671_v2, %v1480_v3  ;;  %v1462_v7 = vld [vmem:[%s1770_s24 + $0x140] sm:$0xf]  ;;  %v1668_v8 = vld [vmem:[%s1770_s24 + $0x144] sm:$0xf0]  ;;  %v1335_v9 = vor.u32 %v1636_v5, %v1334_v4  ;;  %v1639_v11 = vld [vmem:[%s1770_s24 + $0x64] sm:$0xf] }
  0x1d   : > { %v1463_v10 = vor.u32 %v1668_v8, %v1462_v7  ;;  %v1673_v14 = vld [vmem:[%s1770_s24 + $0x174] sm:$0xf]  ;;  %v1638_v17 = vld [vmem:[%s1770_s24 + $0x54] sm:$0xf0]  ;;  %v1360_v24 = vld [vmem:[%s1770_s24 + $0x78] sm:$0xf0] }
  0x1e   : > { %v1670_v20 = vld [vmem:[%s1770_s24 + $0x154] sm:$0xf0]  ;;  %v1641_v23 = vld [vmem:[%s1770_s24 + $0x74] sm:$0xf]  ;;  %v1496_v27 = vld [vmem:[%s1770_s24 + $0x188] sm:$0xf0] }
  0x1f   : > { %v1350_v28 = vld [vmem:[%s1770_s24 + $0x60] sm:$0xf]  ;;  %v1672_v32 = vld [vmem:[%s1770_s24 + $0x164] sm:$0xf0]  ;;  %v1643_v35 = vld [vmem:[%s1770_s24 + $0x84] sm:$0xf] }
  0x20   : > { %708 = vmatpush.bf16.msra.mxu0 %v1693_v12  ;;  %1705 = vmatpush.bf16.msra.mxu2 %v1693_v12  ;;  %v1352_v12 = vld [vmem:[%s1770_s24 + $0x68] sm:$0xf0]  ;;  %v1478_v31 = vld [vmem:[%s1770_s24 + $0x160] sm:$0xf]  ;;  %v1677_v39 = vld [vmem:[%s1770_s24 + $0x194] sm:$0xf] }
  0x21   : > { %1593 = vmatmul.msk.bf16.gmra.mxu1 %vm606_vm0, %v1315_v15  ;;  %v1355_v13 = vor.u32 %v1639_v11, %v1352_v12  ;;  %v1488_v15 = vld [vmem:[%s1770_s24 + $0x178] sm:$0xf0]  ;;  %v1368_v36 = vld [vmem:[%s1770_s24 + $0x88] sm:$0xf0]  ;;  %v1642_v42 = vld [vmem:[%s1770_s24 + $0x74] sm:$0xf0] }
  0x22   : > { %1610 = vmatmul.msk.bf16.gmra.mxu3 %vm606_vm0, %v1451_v22  ;;  %v1491_v18 = vor.u32 %v1673_v14, %v1488_v15  ;;  %v1504_v40 = vld [vmem:[%s1770_s24 + $0x198] sm:$0xf0]  ;;  %v1486_v44 = vld [vmem:[%s1770_s24 + $0x170] sm:$0xf]  ;;  %v1674_v45 = vld [vmem:[%s1770_s24 + $0x174] sm:$0xf0] }
  0x23   : > { %v1507_v43 = vor.u32 %v1677_v39, %v1504_v40  ;;  %v1487_v47 = vor.u32 %v1674_v45, %v1486_v44  ;;  %v1376_v51 = vld [vmem:[%s1770_s24 + $0x98] sm:$0xf0]  ;;  %v1679_v55 = vld [vmem:[%s1770_s24 + $0x1a4] sm:$0xf]  ;;  %v1512_v56 = vld [vmem:[%s1770_s24 + $0x1a8] sm:$0xf0] }
  0x24   : > { %709 = vmatpush.bf16.msra.mxu0 %v1692_v16  ;;  %1706 = vmatpush.bf16.msra.mxu2 %v1692_v16  ;;  %v1342_v16 = vld [vmem:[%s1770_s24 + $0x50] sm:$0xf]  ;;  %v1366_v57 = vld [vmem:[%s1770_s24 + $0x80] sm:$0xf]  ;;  %v1515_v59 = vor.u32 %v1679_v55, %v1512_v56  ;;  %v1647_v7 = vld [vmem:[%s1770_s24 + $0xa4] sm:$0xf] }
  0x25   : > { %v1343_v21 = vor.u32 %v1638_v17, %v1342_v16  ;;  %v1890_v60 = vld [vmem:[%s2230_s2] ss:$0 sm:$0xff]  ;;  %v1384_v8 = vld [vmem:[%s1770_s24 + $0xa8] sm:$0xf0]  ;;  %v1681_v17 = vld [vmem:[%s1770_s24 + $0x1b4] sm:$0xf] }
  0x26   : > { %v1387_v12 = vor.u32 %v1647_v7, %v1384_v8  ;;  %v1510_v56 = vld [vmem:[%s1770_s24 + $0x1a0] sm:$0xf] }
  0x28   : > { %710 = vmatpush.bf16.msra.mxu0 %v1691_v19  ;;  %1707 = vmatpush.bf16.msra.mxu2 %v1691_v19  ;;  %v1470_v19 = vld [vmem:[%s1770_s24 + $0x150] sm:$0xf] }
  0x29   : > { %v1471_v22 = vor.u32 %v1670_v20, %v1470_v19  ;;  %v1374_v19 = vld [vmem:[%s1770_s24 + $0x90] sm:$0xf]  ;;  %v1646_v20 = vld [vmem:[%s1770_s24 + $0x94] sm:$0xf0] }
  0x2b   : > { %711 = vmatmul.bf16.vlgmr.msra.gmra.mxu0 %v1303_v25  ;;  %791 = vmatmul.bf16.vlgmr.msra.gmra.mxu2 %v1431_v26  ;;  %v1363_v25 = vor.u32 %v1641_v23, %v1360_v24  ;;  %v1675_v26 = vld [vmem:[%s1770_s24 + $0x184] sm:$0xf]  ;;  %v1502_v23 = vld [vmem:[%s1770_s24 + $0x190] sm:$0xf]  ;;  %v1678_v24 = vld [vmem:[%s1770_s24 + $0x194] sm:$0xf0] }
  0x2c   : > { %v1499_v30 = vor.u32 %v1675_v26, %v1496_v27  ;;  %v1375_v27 = vor.u32 %v1646_v20, %v1374_v19 }
  0x31   : > { %1594 = vmatmul.msk.bf16.gmra.mxu1 %vm606_vm0, %v1323_v29  ;;  %v1640_v29 = vld [vmem:[%s1770_s24 + $0x64] sm:$0xf0] }
  0x32   : > { %1611 = vmatmul.msk.bf16.gmra.mxu3 %vm606_vm0, %v1459_v34  ;;  %v1351_v33 = vor.u32 %v1640_v29, %v1350_v28  ;;  %v1479_v34 = vor.u32 %v1672_v32, %v1478_v31  ;;  %v1503_v29 = vor.u32 %v1678_v24, %v1502_v23  ;;  %v1685_v23 = vld [vmem:[%s1770_s24 + $0x1d4] sm:$0xf]  ;;  %v1536_v24 = vld [vmem:[%s1770_s24 + $0x1d8] sm:$0xf0] }
  0x3b   : > { %716 = vmatmul.bf16.gmra.mxu0 %v1311_v37  ;;  %796 = vmatmul.bf16.gmra.mxu2 %v1439_v38  ;;  %v1371_v37 = vor.u32 %v1643_v35, %v1368_v36  ;;  %v1649_v35 = vld [vmem:[%s1770_s24 + $0xb4] sm:$0xf]  ;;  %v1392_v36 = vld [vmem:[%s1770_s24 + $0xb8] sm:$0xf0] }
  0x41   : > { %1595 = vmatmul.msk.bf16.gmra.mxu1 %vm606_vm0, %v1331_v41  ;;  %v1358_v41 = vld [vmem:[%s1770_s24 + $0x70] sm:$0xf] }
  0x42   : > { %1612 = vmatmul.msk.bf16.gmra.mxu3 %vm606_vm0, %v1467_v46  ;;  %v1359_v46 = vor.u32 %v1642_v42, %v1358_v41  ;;  %v1395_v41 = vor.u32 %v1649_v35, %v1392_v36 }
  0x4b   : > { %721 = vmatmul.bf16.gmra.mxu0 %v1319_v49  ;;  %801 = vmatmul.bf16.gmra.mxu2 %v1447_v50  ;;  %v1645_v50 = vld [vmem:[%s1770_s24 + $0x94] sm:$0xf] }
  0x4c   : > { %v1379_v52 = vor.u32 %v1645_v50, %v1376_v51  ;;  %v1382_v51 = vld [vmem:[%s1770_s24 + $0xa0] sm:$0xf] }
  0x51   : > { %1596 = vmatmul.msk.bf16.gmra.mxu1 %vm606_vm0, %v1339_v53 }
  0x52   : > { %1613 = vmatmul.msk.bf16.gmra.mxu3 %vm606_vm0, %v1475_v58  ;;  %v1644_v58 = vld [vmem:[%s1770_s24 + $0x84] sm:$0xf0] }
  0x53   : > { %v1367_v63 = vor.u32 %v1644_v58, %v1366_v57  ;;  %v1680_v57 = vld [vmem:[%s1770_s24 + $0x1a4] sm:$0xf0] }
  0x5b   : > { %726 = vmatmul.bf16.gmra.mxu0 %v1327_v61  ;;  %806 = vmatmul.bf16.gmra.mxu2 %v1455_v62  ;;  %v1494_v61 = vld [vmem:[%s1770_s24 + $0x180] sm:$0xf]  ;;  %v1676_v62 = vld [vmem:[%s1770_s24 + $0x184] sm:$0xf0] }
  0x61   : > { %1597 = vmatmul.msk.bf16.gmra.mxu1 %vm606_vm0, %v1347_v1  ;;  %v1495_v1 = vor.u32 %v1676_v62, %v1494_v61 }
  0x62   : > { %1614 = vmatmul.msk.bf16.gmra.mxu3 %vm606_vm0, %v1483_v6 }
  0x6b   : > { %731 = vmatmul.bf16.gmra.mxu0 %v1335_v9  ;;  %811 = vmatmul.bf16.gmra.mxu2 %v1463_v10 }
  0x71   : > { %1598 = vmatmul.msk.bf16.gmra.mxu1 %vm606_vm0, %v1355_v13 }
  0x72   : > { %1615 = vmatmul.msk.bf16.gmra.mxu3 %vm606_vm0, %v1491_v18  ;;  %v1520_v18 = vld [vmem:[%s1770_s24 + $0x1b8] sm:$0xf0] }
  0x7b   : > { %736 = vmatmul.bf16.gmra.mxu0 %v1343_v21  ;;  %816 = vmatmul.bf16.gmra.mxu2 %v1471_v22  ;;  %v1523_v21 = vor.u32 %v1681_v17, %v1520_v18 }
  0x81   : > { %1599 = vmatmul.msk.bf16.gmra.mxu1 %vm606_vm0, %v1363_v25 }
  0x82   : > { %1616 = vmatmul.msk.bf16.gmra.mxu3 %vm606_vm0, %v1499_v30 }
  0x8b   : > { %741 = vmatmul.bf16.gmra.mxu0 %v1351_v33  ;;  %821 = vmatmul.bf16.gmra.mxu2 %v1479_v34 }
  0x8e   : > { %v881_v38 = vpop.f32.mrf.mxu1 }
  0x91   : > { %1600 = vmatmul.msk.bf16.gmra.mxu1 %vm606_vm0, %v1371_v37 }
  0x92   : > { %1617 = vmatmul.msk.bf16.gmra.mxu3 %vm606_vm0, %v1507_v43 }
  0x95   : > { %v1876_v49 = vpop.f32.mrf.mxu3 }
  0x96   : > { %v883_v48 = vpop.f32.mrf.mxu1 }
  0x9b   : > { %746 = vmatmul.bf16.gmra.mxu0 %v1359_v46  ;;  %826 = vmatmul.bf16.gmra.mxu2 %v1487_v47  ;;  %v1683_v47 = vld [vmem:[%s1770_s24 + $0x1c4] sm:$0xf] }
  0x9d   : > { %v1880_v54 = vpop.f32.mrf.mxu3 }
  0x9e   : > { %v886_v53 = vpop.f32.mrf.mxu1 }
  0xa1   : > { %1601 = vmatmul.msk.bf16.gmra.mxu1 %vm606_vm0, %v1379_v52  ;;  %v1648_v52 = vld [vmem:[%s1770_s24 + $0xa4] sm:$0xf0] }
  0xa2   : > { %1618 = vmatmul.msk.bf16.gmra.mxu3 %vm606_vm0, %v1515_v59 }
  0xa5   : > { %v1896_v4 = vpop.f32.mrf.mxu3 }
  0xa6   : > { %v888_v3 = vpop.f32.mrf.mxu1 }
  0xa8   : > { %v712_v0 = vpop.f32.mrf.mxu0 }
  0xa9   : > { %v713_v2 = vadd.f32 %v1890_v60, %v712_v0  ;;  %v1511_v0 = vor.u32 %v1680_v57, %v1510_v56 }
  0xab   : > { %v882_v5 = vadd.f32 %v881_v38, %v713_v2  ;;  %751 = vmatmul.bf16.gmra.mxu0 %v1367_v63  ;;  %831 = vmatmul.bf16.gmra.mxu2 %v1495_v1 }
  0xad   : > { %v1041_v6 = vmax.f32 %v882_v5, 0.0  ;;  %v1913_v15 = vpop.f32.mrf.mxu3 }
  0xae   : > { %v1906_v10 = vpop.f32.mrf.mxu2  ;;  %v1911_v14 = vpop.f32.mrf.mxu1 }
  0xaf   : > { %v1105_v9 = vpack.c.bf16 %v1041_v6, %v1041_v6 }
  0xb0   : > { %v714_v11 = vpop.f32.mrf.mxu0 }
  0xb1   : > { %1170 = vst.msk [vmem:[%s1904_s16] sm:$0xf] %vm1169_vm1, %v1105_v9  ;;  %v715_v13 = vadd.f32 %v1890_v60, %v714_v11  ;;  %1602 = vmatmul.msk.bf16.gmra.mxu1 %vm606_vm0, %v1387_v12  ;;  %v1651_v9 = vld [vmem:[%s1770_s24 + $0xc4] sm:$0xf]  ;;  %v1400_v11 = vld [vmem:[%s1770_s24 + $0xc8] sm:$0xf0] }
  0xb2   : > { %1619 = vmatmul.msk.bf16.gmra.mxu3 %vm606_vm0, %v1523_v21 }
  0xb3   : > { %v884_v16 = vadd.f32 %v883_v48, %v715_v13  ;;  %v1528_v48 = vld [vmem:[%s1770_s24 + $0x1c8] sm:$0xf0] }
  0xb5   : > { %v1042_v22 = vmax.f32 %v884_v16, 0.0  ;;  %v1928_v32 = vpop.f32.mrf.mxu3 }
  0xb6   : > { %v1922_v26 = vpop.f32.mrf.mxu2  ;;  %v893_v31 = vpop.f32.mrf.mxu1 }
  0xb7   : > { %v1106_v25 = vpack.c.bf16 %v1042_v22, %v1042_v22 }
  0xb8   : > { %v717_v28 = vpop.f32.mrf.mxu0 }
  0xb9   : > { %1171 = vst.msk [vmem:[%s1904_s16 + $0x4] sm:$0xf] %vm1169_vm1, %v1106_v25  ;;  %v718_v30 = vadd.f32 %v1890_v60, %v717_v28  ;;  %v1650_v28 = vld [vmem:[%s1770_s24 + $0xb4] sm:$0xf0] }
  0xbb   : > { %v887_v33 = vadd.f32 %v886_v53, %v718_v30  ;;  %756 = vmatmul.bf16.gmra.mxu0 %v1375_v27  ;;  %836 = vmatmul.bf16.gmra.mxu2 %v1503_v29  ;;  %v1531_v53 = vor.u32 %v1683_v47, %v1528_v48  ;;  %v1390_v27 = vld [vmem:[%s1770_s24 + $0xb0] sm:$0xf]  ;;  %v1539_v29 = vor.u32 %v1685_v23, %v1536_v24 }
  0xbd   : > { %v1043_v34 = vmax.f32 %v887_v33, 0.0  ;;  %v1939_v45 = vpop.f32.mrf.mxu3  ;;  %v1518_v33 = vld [vmem:[%s1770_s24 + $0x1b0] sm:$0xf] }
  0xbe   : > { %v797_v38 = vpop.f32.mrf.mxu2  ;;  %v1936_v43 = vpop.f32.mrf.mxu1 }
  0xbf   : > { %v1107_v37 = vpack.c.bf16 %v1043_v34, %v1043_v34  ;;  %v798_v39 = vadd.f32 %v1890_v60, %v797_v38  ;;  %v1682_v34 = vld [vmem:[%s1770_s24 + $0x1b4] sm:$0xf0] }
  0xc0   : > { %v719_v40 = vpop.f32.mrf.mxu0 }
  0xc1   : > { %1172 = vst.msk [vmem:[%s1904_s16 + $0x8] sm:$0xf] %vm1169_vm1, %v1107_v37  ;;  %v720_v42 = vadd.f32 %v1890_v60, %v719_v40  ;;  %v967_v44 = vadd.f32 %v1876_v49, %v798_v39  ;;  %1603 = vmatmul.msk.bf16.gmra.mxu1 %vm606_vm0, %v1395_v41  ;;  %v1383_v49 = vor.u32 %v1648_v52, %v1382_v51  ;;  %v1408_v51 = vld [vmem:[%s1770_s24 + $0xd8] sm:$0xf0] }
  0xc2   : > { %1620 = vmatmul.msk.bf16.gmra.mxu3 %vm606_vm0, %v1531_v53  ;;  %v1519_v39 = vor.u32 %v1682_v34, %v1518_v33 }
  0xc3   : > { %v889_v46 = vadd.f32 %v888_v3, %v720_v42  ;;  %v1075_v50 = vmax.f32 %v967_v44, 0.0 }
  0xc5   : > { %v1044_v55 = vmax.f32 %v889_v46, 0.0  ;;  %v1139_v58 = vpack.c.bf16 %v1075_v50, %v1075_v50  ;;  %v1958_v5 = vpop.f32.mrf.mxu3  ;;  %v1653_v50 = vld [vmem:[%s1770_s24 + $0xd4] sm:$0xf] }
  0xc6   : > { %v799_v61 = vpop.f32.mrf.mxu2  ;;  %v1955_v2 = vpop.f32.mrf.mxu1 }
  0xc7   : > { %v1108_v59 = vpack.c.bf16 %v1044_v55, %v1044_v55  ;;  %1204 = vst.msk [vmem:[%s1904_s16 + $0x88] sm:$0xf] %vm1169_vm1, %v1139_v58  ;;  %v800_v62 = vadd.f32 %v1890_v60, %v799_v61 }
  0xc8   : > { %v722_v63 = vpop.f32.mrf.mxu0 }
  0xc9   : > { %1173 = vst.msk [vmem:[%s1904_s16 + $0xc] sm:$0xf] %vm1169_vm1, %v1108_v59  ;;  %v723_v1 = vadd.f32 %v1890_v60, %v722_v63  ;;  %v969_v3 = vadd.f32 %v1880_v54, %v800_v62  ;;  %v1687_v62 = vld [vmem:[%s1770_s24 + $0x1e4] sm:$0xf]  ;;  %v1544_v63 = vld [vmem:[%s1770_s24 + $0x1e8] sm:$0xf0] }
  0xcb   : > { %v892_v6 = vadd.f32 %v1911_v14, %v723_v1  ;;  %761 = vmatmul.bf16.gmra.mxu0 %v1383_v49  ;;  %v1076_v7 = vmax.f32 %v969_v3, 0.0  ;;  %841 = vmatmul.bf16.gmra.mxu2 %v1511_v0  ;;  %v1403_v14 = vor.u32 %v1651_v9, %v1400_v11  ;;  %v1398_v1 = vld [vmem:[%s1770_s24 + $0xc0] sm:$0xf]  ;;  %v1652_v3 = vld [vmem:[%s1770_s24 + $0xc4] sm:$0xf0] }
  0xcc   : > { %v1684_v9 = vld [vmem:[%s1770_s24 + $0x1c4] sm:$0xf0] }
  0xcd   : > { %v1045_v8 = vmax.f32 %v892_v6, 0.0  ;;  %v1140_v12 = vpack.c.bf16 %v1076_v7, %v1076_v7  ;;  %v1972_v21 = vpop.f32.mrf.mxu3  ;;  %v1547_v6 = vor.u32 %v1687_v62, %v1544_v63  ;;  %v1657_v63 = vld [vmem:[%s1770_s24 + $0xf4] sm:$0xf] }
  0xce   : > { %v802_v16 = vpop.f32.mrf.mxu2  ;;  %v1969_v19 = vpop.f32.mrf.mxu1 }
  0xcf   : > { %v1109_v13 = vpack.c.bf16 %v1045_v8, %v1045_v8  ;;  %1205 = vst.msk [vmem:[%s1904_s16 + $0x8c] sm:$0xf] %vm1169_vm1, %v1140_v12  ;;  %v803_v54 = vadd.f32 %v1890_v60, %v802_v16  ;;  %v1526_v8 = vld [vmem:[%s1770_s24 + $0x1c0] sm:$0xf] }
  0xd0   : > { %v724_v17 = vpop.f32.mrf.mxu0 }
  0xd1   : > { %1174 = vst.msk [vmem:[%s1904_s16 + $0x10] sm:$0xf] %vm1169_vm1, %v1109_v13  ;;  %v725_v18 = vadd.f32 %v1890_v60, %v724_v17  ;;  %v972_v20 = vadd.f32 %v1896_v4, %v803_v54  ;;  %1604 = vmatmul.msk.bf16.gmra.mxu1 %vm606_vm0, %v1403_v14  ;;  %v1391_v4 = vor.u32 %v1650_v28, %v1390_v27  ;;  %v1416_v27 = vld [vmem:[%s1770_s24 + $0xe8] sm:$0xf0] }
  0xd2   : > { %1621 = vmatmul.msk.bf16.gmra.mxu3 %vm606_vm0, %v1539_v29  ;;  %v1399_v13 = vor.u32 %v1652_v3, %v1398_v1  ;;  %v1527_v54 = vor.u32 %v1684_v9, %v1526_v8 }
  0xd3   : > { %v894_v22 = vadd.f32 %v893_v31, %v725_v18  ;;  %v1077_v25 = vmax.f32 %v972_v20, 0.0 }
  0xd5   : > { %v1046_v30 = vmax.f32 %v894_v22, 0.0  ;;  %v1141_v35 = vpack.c.bf16 %v1077_v25, %v1077_v25  ;;  %v1991_v44 = vpop.f32.mrf.mxu3  ;;  %v1655_v25 = vld [vmem:[%s1770_s24 + $0xe4] sm:$0xf] }
  0xd6   : > { %v804_v37 = vpop.f32.mrf.mxu2  ;;  %v1988_v41 = vpop.f32.mrf.mxu1  ;;  %v1419_v33 = vor.u32 %v1655_v25, %v1416_v27 }
  0xd7   : > { %v1110_v36 = vpack.c.bf16 %v1046_v30, %v1046_v30  ;;  %1206 = vst.msk [vmem:[%s1904_s16 + $0x90] sm:$0xf] %vm1169_vm1, %v1141_v35  ;;  %v805_v31 = vadd.f32 %v1890_v60, %v804_v37 }
  0xd8   : > { %v727_v38 = vpop.f32.mrf.mxu0 }
  0xd9   : > { %1175 = vst.msk [vmem:[%s1904_s16 + $0x14] sm:$0xf] %vm1169_vm1, %v1110_v36  ;;  %v728_v40 = vadd.f32 %v1890_v60, %v727_v38  ;;  %v974_v42 = vadd.f32 %v1913_v15, %v805_v31  ;;  %v1552_v31 = vld [vmem:[%s1770_s24 + $0x1f8] sm:$0xf0] }
  0xdb   : > { %v897_v46 = vadd.f32 %v1936_v43, %v728_v40  ;;  %766 = vmatmul.bf16.gmra.mxu0 %v1391_v4  ;;  %v1078_v47 = vmax.f32 %v974_v42, 0.0  ;;  %846 = vmatmul.bf16.gmra.mxu2 %v1519_v39  ;;  %v1411_v43 = vor.u32 %v1653_v50, %v1408_v51  ;;  %v1689_v4 = vld [vmem:[%s1770_s24 + $0x1f4] sm:$0xf]  ;;  %v1406_v39 = vld [vmem:[%s1770_s24 + $0xd0] sm:$0xf] }
  0xdc   : > { %v1654_v40 = vld [vmem:[%s1770_s24 + $0xd4] sm:$0xf0]  ;;  %v1555_v42 = vor.u32 %v1689_v4, %v1552_v31 }
  0xdd   : > { %v1047_v48 = vmax.f32 %v897_v46, 0.0  ;;  %v1142_v52 = vpack.c.bf16 %v1078_v47, %v1078_v47  ;;  %v2005_v61 = vpop.f32.mrf.mxu3  ;;  %v1534_v47 = vld [vmem:[%s1770_s24 + $0x1d0] sm:$0xf] }
  0xde   : > { %v807_v55 = vpop.f32.mrf.mxu2  ;;  %v2002_v58 = vpop.f32.mrf.mxu1 }
  0xdf   : > { %v1111_v53 = vpack.c.bf16 %v1047_v48, %v1047_v48  ;;  %1207 = vst.msk [vmem:[%s1904_s16 + $0x94] sm:$0xf] %vm1169_vm1, %v1142_v52  ;;  %v808_v15 = vadd.f32 %v1890_v60, %v807_v55  ;;  %v1686_v48 = vld [vmem:[%s1770_s24 + $0x1d4] sm:$0xf0] }
  0xe0   : > { %v729_v56 = vpop.f32.mrf.mxu0 }
  0xe1   : > { %1176 = vst.msk [vmem:[%s1904_s16 + $0x18] sm:$0xf] %vm1169_vm1, %v1111_v53  ;;  %v730_v57 = vadd.f32 %v1890_v60, %v729_v56  ;;  %v977_v59 = vadd.f32 %v1928_v32, %v808_v15  ;;  %1605 = vmatmul.msk.bf16.gmra.mxu1 %vm606_vm0, %v1411_v43  ;;  %v1535_v15 = vor.u32 %v1686_v48, %v1534_v47 }
  0xe2   : > { %1622 = vmatmul.msk.bf16.gmra.mxu3 %vm606_vm0, %v1547_v6 }
  0xe3   : > { %v899_v49 = vadd.f32 %v1955_v2, %v730_v57  ;;  %v1079_v0 = vmax.f32 %v977_v59, 0.0 }
  0xe5   : > { %v1048_v7 = vmax.f32 %v899_v49, 0.0  ;;  %v1143_v11 = vpack.c.bf16 %v1079_v0, %v1079_v0  ;;  %v2026_v22 = vpop.f32.mrf.mxu3  ;;  %v1424_v0 = vld [vmem:[%s1770_s24 + $0xf8] sm:$0xf0] }
  0xe6   : > { %v809_v32 = vpop.f32.mrf.mxu2  ;;  %v2022_v14 = vpop.f32.mrf.mxu1  ;;  %v1427_v8 = vor.u32 %v1657_v63, %v1424_v0 }
  0xe7   : > { %v1112_v12 = vpack.c.bf16 %v1048_v7, %v1048_v7  ;;  %1208 = vst.msk [vmem:[%s1904_s16 + $0x98] sm:$0xf] %vm1169_vm1, %v1143_v11  ;;  %v810_v2 = vadd.f32 %v1890_v60, %v809_v32 }
  0xe8   : > { %v732_v16 = vpop.f32.mrf.mxu0 }
  0xe9   : > { %1177 = vst.msk [vmem:[%s1904_s16 + $0x1c] sm:$0xf] %vm1169_vm1, %v1112_v12  ;;  %v733_v17 = vadd.f32 %v1890_v60, %v732_v16  ;;  %v979_v18 = vadd.f32 %v1939_v45, %v810_v2  ;;  %v1414_v2 = vld [vmem:[%s1770_s24 + $0xe0] sm:$0xf]  ;;  %v1656_v16 = vld [vmem:[%s1770_s24 + $0xe4] sm:$0xf0] }
  0xea   : > { %v1415_v25 = vor.u32 %v1656_v16, %v1414_v2 }
  0xeb   : > { %v902_v20 = vadd.f32 %v1969_v19, %v733_v17  ;;  %771 = vmatmul.bf16.gmra.mxu0 %v1399_v13  ;;  %v1080_v23 = vmax.f32 %v979_v18, 0.0  ;;  %851 = vmatmul.bf16.gmra.mxu2 %v1527_v54  ;;  %v1542_v17 = vld [vmem:[%s1770_s24 + $0x1e0] sm:$0xf]  ;;  %v1688_v18 = vld [vmem:[%s1770_s24 + $0x1e4] sm:$0xf0] }
  0xec   : > { %v1543_v27 = vor.u32 %v1688_v18, %v1542_v17 }
  0xed   : > { %v1049_v24 = vmax.f32 %v902_v20, 0.0  ;;  %v1144_v28 = vpack.c.bf16 %v1080_v23, %v1080_v23  ;;  %v2047_v50 = vpop.f32.mrf.mxu3 }
  0xee   : > { %v812_v30 = vpop.f32.mrf.mxu2  ;;  %v2036_v35 = vpop.f32.mrf.mxu1 }
  0xef   : > { %v1113_v29 = vpack.c.bf16 %v1049_v24, %v1049_v24  ;;  %1209 = vst.msk [vmem:[%s1904_s16 + $0x9c] sm:$0xf] %vm1169_vm1, %v1144_v28  ;;  %v813_v45 = vadd.f32 %v1890_v60, %v812_v30 }
  0xf0   : > { %v734_v19 = vpop.f32.mrf.mxu0 }
  0xf1   : > { %1178 = vst.msk [vmem:[%s1904_s16 + $0x20] sm:$0xf] %vm1169_vm1, %v1113_v29  ;;  %v735_v34 = vadd.f32 %v1890_v60, %v734_v19  ;;  %v982_v36 = vadd.f32 %v1958_v5, %v813_v45  ;;  %1606 = vmatmul.msk.bf16.gmra.mxu1 %vm606_vm0, %v1419_v33 }
  0xf2   : > { %1623 = vmatmul.msk.bf16.gmra.mxu3 %vm606_vm0, %v1555_v42 }
  0xf3   : > { %v904_v37 = vadd.f32 %v1988_v41, %v735_v34  ;;  %v1081_v38 = vmax.f32 %v982_v36, 0.0  ;;  %v1407_v41 = vor.u32 %v1654_v40, %v1406_v39  ;;  %v1659_v36 = vld [vmem:[%s1770_s24 + $0x104] sm:$0xf] }
  0xf5   : > { %v1050_v46 = vmax.f32 %v904_v37, 0.0  ;;  %v1145_v51 = vpack.c.bf16 %v1081_v38, %v1081_v38  ;;  %v2060_v7 = vpop.f32.mrf.mxu3  ;;  %v1432_v37 = vld [vmem:[%s1770_s24 + $0x108] sm:$0xf0] }
  0xf6   : > { %v814_v5 = vpop.f32.mrf.mxu2  ;;  %v913_v43 = vpop.f32.mrf.mxu1  ;;  %v1435_v40 = vor.u32 %v1659_v36, %v1432_v37 }
  0xf7   : > { %v1114_v52 = vpack.c.bf16 %v1050_v46, %v1050_v46  ;;  %1210 = vst.msk [vmem:[%s1904_s16 + $0xa0] sm:$0xf] %vm1169_vm1, %v1145_v51  ;;  %v815_v53 = vadd.f32 %v1890_v60, %v814_v5  ;;  %v1658_v5 = vld [vmem:[%s1770_s24 + $0xf4] sm:$0xf0] }
  0xf8   : > { %v737_v55 = vpop.f32.mrf.mxu0 }
  0xf9   : > { %1179 = vst.msk [vmem:[%s1904_s16 + $0x24] sm:$0xf] %vm1169_vm1, %v1114_v52  ;;  %v738_v56 = vadd.f32 %v1890_v60, %v737_v55  ;;  %v984_v57 = vadd.f32 %v1972_v21, %v815_v53  ;;  %v1422_v52 = vld [vmem:[%s1770_s24 + $0xf0] sm:$0xf]  ;;  %v1690_v55 = vld [vmem:[%s1770_s24 + $0x1f4] sm:$0xf0] }
  0xfa   : > { %v1550_v53 = vld [vmem:[%s1770_s24 + $0x1f0] sm:$0xf] }
  0xfb   : > { %v907_v59 = vadd.f32 %v2002_v58, %v738_v56  ;;  %776 = vmatmul.bf16.gmra.mxu0 %v1407_v41  ;;  %v1082_v49 = vmax.f32 %v984_v57, 0.0  ;;  %856 = vmatmul.bf16.gmra.mxu2 %v1535_v15 }
  0xfd   : > { %v1051_v62 = vmax.f32 %v907_v59, 0.0  ;;  %v1146_v1 = vpack.c.bf16 %v1082_v49, %v1082_v49  ;;  %v2081_v30 = vpop.f32.mrf.mxu3  ;;  %v1423_v59 = vor.u32 %v1658_v5, %v1422_v52  ;;  %v1551_v49 = vor.u32 %v1690_v55, %v1550_v53 }
  0xfe   : > { %v817_v6 = vpop.f32.mrf.mxu2  ;;  %v916_v11 = vpop.f32.mrf.mxu1 }
  0xff   : > { %v1115_v3 = vpack.c.bf16 %v1051_v62, %v1051_v62  ;;  %1211 = vst.msk [vmem:[%s1904_s16 + $0xa4] sm:$0xf] %vm1169_vm1, %v1146_v1  ;;  %v818_v21 = vadd.f32 %v1890_v60, %v817_v6 }
 0x100   : > { %v739_v58 = vpop.f32.mrf.mxu0 }
 0x101   : > { %1180 = vst.msk [vmem:[%s1904_s16 + $0x28] sm:$0xf] %vm1169_vm1, %v1115_v3  ;;  %v740_v9 = vadd.f32 %v1890_v60, %v739_v58  ;;  %v987_v12 = vadd.f32 %v1991_v44, %v818_v21  ;;  %1607 = vmatmul.msk.bf16.gmra.mxu1 %vm606_vm0, %v1427_v8 }
 0x103   : > { %v909_v32 = vadd.f32 %v2022_v14, %v740_v9  ;;  %v1083_v13 = vmax.f32 %v987_v12, 0.0 }
 0x105   : > { %v1052_v54 = vmax.f32 %v909_v32, 0.0  ;;  %v1147_v20 = vpack.c.bf16 %v1083_v13, %v1083_v13  ;;  %v2094_v48 = vpop.f32.mrf.mxu3 }
 0x106   : > { %v819_v24 = vpop.f32.mrf.mxu2  ;;  %v918_v29 = vpop.f32.mrf.mxu1 }
 0x107   : > { %v1116_v23 = vpack.c.bf16 %v1052_v54, %v1052_v54  ;;  %1212 = vst.msk [vmem:[%s1904_s16 + $0xa8] sm:$0xf] %vm1169_vm1, %v1147_v20  ;;  %v820_v44 = vadd.f32 %v1890_v60, %v819_v24 }
 0x108   : > { %v742_v14 = vpop.f32.mrf.mxu0 }
 0x109   : > { %1181 = vst.msk [vmem:[%s1904_s16 + $0x2c] sm:$0xf] %vm1169_vm1, %v1116_v23  ;;  %v743_v28 = vadd.f32 %v1890_v60, %v742_v14  ;;  %v989_v45 = vadd.f32 %v2005_v61, %v820_v44 }
 0x10b   : > { %v912_v19 = vadd.f32 %v2036_v35, %v743_v28  ;;  %781 = vmatmul.bf16.gmra.mxu0 %v1415_v25  ;;  %v1084_v33 = vmax.f32 %v989_v45, 0.0  ;;  %861 = vmatmul.bf16.gmra.mxu2 %v1543_v27 }
 0x10d   : > { %v1053_v34 = vmax.f32 %v912_v19, 0.0  ;;  %v1148_v4 = vpack.c.bf16 %v1084_v33, %v1084_v33  ;;  %v1003_v21 = vpop.f32.mrf.mxu3 }
 0x10e   : > { %v822_v38 = vpop.f32.mrf.mxu2  ;;  %v921_v42 = vpop.f32.mrf.mxu1 }
 0x10f   : > { %v1117_v31 = vpack.c.bf16 %v1053_v34, %v1053_v34  ;;  %1213 = vst.msk [vmem:[%s1904_s16 + $0xac] sm:$0xf] %vm1169_vm1, %v1148_v4  ;;  %v823_v39 = vadd.f32 %v1890_v60, %v822_v38 }
 0x110   : > { %v744_v61 = vpop.f32.mrf.mxu0 }
 0x111   : > { %1182 = vst.msk [vmem:[%s1904_s16 + $0x30] sm:$0xf] %vm1169_vm1, %v1117_v31  ;;  %v745_v35 = vadd.f32 %v1890_v60, %v744_v61  ;;  %v992_v46 = vadd.f32 %v2026_v22, %v823_v39  ;;  %1608 = vmatmul.msk.bf16.gmra.mxu1 %vm606_vm0, %v1435_v40 }
 0x113   : > { %v914_v47 = vadd.f32 %v913_v43, %v745_v35  ;;  %v1085_v51 = vmax.f32 %v992_v46, 0.0 }
 0x115   : > { %v1054_v41 = vmax.f32 %v914_v47, 0.0  ;;  %v1149_v15 = vpack.c.bf16 %v1085_v51, %v1085_v51  ;;  %v1006_v23 = vpop.f32.mrf.mxu3 }
 0x116   : > { %v824_v57 = vpop.f32.mrf.mxu2  ;;  %v923_v63 = vpop.f32.mrf.mxu1 }
 0x117   : > { %v1118_v56 = vpack.c.bf16 %v1054_v41, %v1054_v41  ;;  %1214 = vst.msk [vmem:[%s1904_s16 + $0xb0] sm:$0xf] %vm1169_vm1, %v1149_v15  ;;  %v825_v22 = vadd.f32 %v1890_v60, %v824_v57 }
 0x118   : > { %v747_v43 = vpop.f32.mrf.mxu0 }
 0x119   : > { %1183 = vst.msk [vmem:[%s1904_s16 + $0x34] sm:$0xf] %vm1169_vm1, %v1118_v56  ;;  %v748_v62 = vadd.f32 %v1890_v60, %v747_v43  ;;  %v994_v0 = vadd.f32 %v2047_v50, %v825_v22 }
 0x11b   : > { %v917_v1 = vadd.f32 %v916_v11, %v748_v62  ;;  %786 = vmatmul.bf16.gmra.mxu0 %v1423_v59  ;;  %v1086_v3 = vmax.f32 %v994_v0, 0.0  ;;  %866 = vmatmul.bf16.gmra.mxu2 %v1551_v49 }
 0x11d   : > { %v1055_v6 = vmax.f32 %v917_v1, 0.0  ;;  %v1150_v58 = vpack.c.bf16 %v1086_v3, %v1086_v3  ;;  %v1008_v31 = vpop.f32.mrf.mxu3 }
 0x11e   : > { %v827_v9 = vpop.f32.mrf.mxu2  ;;  %v926_v11 = vpop.f32.mrf.mxu1 }
 0x11f   : > { %v1119_v8 = vpack.c.bf16 %v1055_v6, %v1055_v6  ;;  %1215 = vst.msk [vmem:[%s1904_s16 + $0xb4] sm:$0xf] %vm1169_vm1, %v1150_v58  ;;  %v828_v12 = vadd.f32 %v1890_v60, %v827_v9 }
 0x120   : > { %v749_v32 = vpop.f32.mrf.mxu0 }
 0x121   : > { %1184 = vst.msk [vmem:[%s1904_s16 + $0x38] sm:$0xf] %vm1169_vm1, %v1119_v8  ;;  %v750_v50 = vadd.f32 %v1890_v60, %v749_v32  ;;  %v997_v13 = vadd.f32 %v2060_v7, %v828_v12 }
 0x123   : > { %v919_v2 = vadd.f32 %v918_v29, %v750_v50  ;;  %v1087_v16 = vmax.f32 %v997_v13, 0.0 }
 0x125   : > { %v1056_v54 = vmax.f32 %v919_v2, 0.0  ;;  %v1151_v17 = vpack.c.bf16 %v1087_v16, %v1087_v16  ;;  %v1011_v41 = vpop.f32.mrf.mxu3 }
 0x126   : > { %v829_v20 = vpop.f32.mrf.mxu2  ;;  %v928_v14 = vpop.f32.mrf.mxu1 }
 0x127   : > { %v1120_v18 = vpack.c.bf16 %v1056_v54, %v1056_v54  ;;  %1216 = vst.msk [vmem:[%s1904_s16 + $0xb8] sm:$0xf] %vm1169_vm1, %v1151_v17  ;;  %v830_v24 = vadd.f32 %v1890_v60, %v829_v20 }
 0x128   : > { %v752_v25 = vpop.f32.mrf.mxu0 }
 0x129   : > { %1185 = vst.msk [vmem:[%s1904_s16 + $0x3c] sm:$0xf] %vm1169_vm1, %v1120_v18  ;;  %v753_v44 = vadd.f32 %v1890_v60, %v752_v25  ;;  %v999_v7 = vadd.f32 %v2081_v30, %v830_v24 }
 0x12b   : > { %v922_v27 = vadd.f32 %v921_v42, %v753_v44  ;;  %v1088_v28 = vmax.f32 %v999_v7, 0.0 }
 0x12d   : > { %v1057_v29 = vmax.f32 %v922_v27, 0.0  ;;  %v1152_v45 = vpack.c.bf16 %v1088_v28, %v1088_v28  ;;  %v1013_v3 = vpop.f32.mrf.mxu3 }
 0x12e   : > { %v832_v33 = vpop.f32.mrf.mxu2  ;;  %v931_v4 = vpop.f32.mrf.mxu1 }
 0x12f   : > { %v1121_v19 = vpack.c.bf16 %v1057_v29, %v1057_v29  ;;  %1217 = vst.msk [vmem:[%s1904_s16 + $0xbc] sm:$0xf] %vm1169_vm1, %v1152_v45  ;;  %v833_v34 = vadd.f32 %v1890_v60, %v832_v33 }
 0x130   : > { %v754_v36 = vpop.f32.mrf.mxu0 }
 0x131   : > { %1186 = vst.msk [vmem:[%s1904_s16 + $0x40] sm:$0xf] %vm1169_vm1, %v1121_v19  ;;  %v755_v37 = vadd.f32 %v1890_v60, %v754_v36  ;;  %v1002_v30 = vadd.f32 %v2094_v48, %v833_v34 }
 0x133   : > { %v924_v38 = vadd.f32 %v923_v63, %v755_v37  ;;  %v1089_v39 = vmax.f32 %v1002_v30, 0.0 }
 0x135   : > { %v1058_v61 = vmax.f32 %v924_v38, 0.0  ;;  %v1153_v40 = vpack.c.bf16 %v1089_v39, %v1089_v39  ;;  %v1016_v18 = vpop.f32.mrf.mxu3 }
 0x136   : > { %v834_v42 = vpop.f32.mrf.mxu2  ;;  %v933_v52 = vpop.f32.mrf.mxu1 }
 0x137   : > { %v1122_v35 = vpack.c.bf16 %v1058_v61, %v1058_v61  ;;  %1218 = vst.msk [vmem:[%s1904_s16 + $0xc0] sm:$0xf] %vm1169_vm1, %v1153_v40  ;;  %v835_v46 = vadd.f32 %v1890_v60, %v834_v42 }
 0x138   : > { %v757_v47 = vpop.f32.mrf.mxu0 }
 0x139   : > { %1187 = vst.msk [vmem:[%s1904_s16 + $0x44] sm:$0xf] %vm1169_vm1, %v1122_v35  ;;  %v758_v51 = vadd.f32 %v1890_v60, %v757_v47  ;;  %v1004_v5 = vadd.f32 %v1003_v21, %v835_v46 }
 0x13b   : > { %v927_v48 = vadd.f32 %v926_v11, %v758_v51  ;;  %v1090_v53 = vmax.f32 %v1004_v5, 0.0 }
 0x13d   : > { %v1059_v55 = vmax.f32 %v927_v48, 0.0  ;;  %v1154_v15 = vpack.c.bf16 %v1090_v53, %v1090_v53  ;;  %v1018_v37 = vpop.f32.mrf.mxu3 }
 0x13e   : > { %v837_v57 = vpop.f32.mrf.mxu2  ;;  %v936_v49 = vpop.f32.mrf.mxu1 }
 0x13f   : > { %v1123_v56 = vpack.c.bf16 %v1059_v55, %v1059_v55  ;;  %1219 = vst.msk [vmem:[%s1904_s16 + $0xc4] sm:$0xf] %vm1169_vm1, %v1154_v15  ;;  %v838_v59 = vadd.f32 %v1890_v60, %v837_v57 }
 0x140   : > { %v759_v22 = vpop.f32.mrf.mxu0 }
 0x141   : > { %1188 = vst.msk [vmem:[%s1904_s16 + $0x48] sm:$0xf] %vm1169_vm1, %v1123_v56  ;;  %v760_v43 = vadd.f32 %v1890_v60, %v759_v22  ;;  %v1007_v62 = vadd.f32 %v1006_v23, %v838_v59 }
 0x143   : > { %v929_v63 = vadd.f32 %v928_v14, %v760_v43  ;;  %v1091_v0 = vmax.f32 %v1007_v62, 0.0 }
 0x145   : > { %v1060_v1 = vmax.f32 %v929_v63, 0.0  ;;  %v1155_v6 = vpack.c.bf16 %v1091_v0, %v1091_v0  ;;  %v1021_v5 = vpop.f32.mrf.mxu3 }
 0x146   : > { %v839_v58 = vpop.f32.mrf.mxu2  ;;  %v938_v32 = vpop.f32.mrf.mxu1 }
 0x147   : > { %v1124_v21 = vpack.c.bf16 %v1060_v1, %v1060_v1  ;;  %1220 = vst.msk [vmem:[%s1904_s16 + $0xc8] sm:$0xf] %vm1169_vm1, %v1155_v6  ;;  %v840_v8 = vadd.f32 %v1890_v60, %v839_v58 }
 0x148   : > { %v762_v9 = vpop.f32.mrf.mxu0 }
 0x149   : > { %1189 = vst.msk [vmem:[%s1904_s16 + $0x4c] sm:$0xf] %vm1169_vm1, %v1124_v21  ;;  %v763_v12 = vadd.f32 %v1890_v60, %v762_v9  ;;  %v1009_v50 = vadd.f32 %v1008_v31, %v840_v8 }
 0x14b   : > { %v932_v11 = vadd.f32 %v931_v4, %v763_v12  ;;  %v1092_v13 = vmax.f32 %v1009_v50, 0.0 }
 0x14d   : > { %v1061_v2 = vmax.f32 %v932_v11, 0.0  ;;  %v1156_v16 = vpack.c.bf16 %v1092_v13, %v1092_v13  ;;  %v1023_v0 = vpop.f32.mrf.mxu3 }
 0x14e   : > { %v842_v17 = vpop.f32.mrf.mxu2  ;;  %v941_v25 = vpop.f32.mrf.mxu1 }
 0x14f   : > { %v1125_v54 = vpack.c.bf16 %v1061_v2, %v1061_v2  ;;  %1221 = vst.msk [vmem:[%s1904_s16 + $0xcc] sm:$0xf] %vm1169_vm1, %v1156_v16  ;;  %v843_v20 = vadd.f32 %v1890_v60, %v842_v17 }
 0x150   : > { %v764_v23 = vpop.f32.mrf.mxu0 }
 0x151   : > { %1190 = vst.msk [vmem:[%s1904_s16 + $0x50] sm:$0xf] %vm1169_vm1, %v1125_v54  ;;  %v765_v24 = vadd.f32 %v1890_v60, %v764_v23  ;;  %v1012_v44 = vadd.f32 %v1011_v41, %v843_v20 }
 0x153   : > { %v934_v14 = vadd.f32 %v933_v52, %v765_v24  ;;  %v1093_v7 = vmax.f32 %v1012_v44, 0.0 }
 0x155   : > { %v1062_v27 = vmax.f32 %v934_v14, 0.0  ;;  %v1157_v28 = vpack.c.bf16 %v1093_v7, %v1093_v7  ;;  %v1026_v54 = vpop.f32.mrf.mxu3 }
 0x156   : > { %v844_v45 = vpop.f32.mrf.mxu2  ;;  %v943_v36 = vpop.f32.mrf.mxu1 }
 0x157   : > { %v1126_v29 = vpack.c.bf16 %v1062_v27, %v1062_v27  ;;  %1222 = vst.msk [vmem:[%s1904_s16 + $0xd0] sm:$0xf] %vm1169_vm1, %v1157_v28  ;;  %v845_v19 = vadd.f32 %v1890_v60, %v844_v45 }
 0x158   : > { %v767_v33 = vpop.f32.mrf.mxu0 }
 0x159   : > { %1191 = vst.msk [vmem:[%s1904_s16 + $0x54] sm:$0xf] %vm1169_vm1, %v1126_v29  ;;  %v768_v34 = vadd.f32 %v1890_v60, %v767_v33  ;;  %v1014_v4 = vadd.f32 %v1013_v3, %v845_v19 }
 0x15b   : > { %v937_v31 = vadd.f32 %v936_v49, %v768_v34  ;;  %v1094_v30 = vmax.f32 %v1014_v4, 0.0 }
 0x15d   : > { %v1063_v38 = vmax.f32 %v937_v31, 0.0  ;;  %v1158_v39 = vpack.c.bf16 %v1094_v30, %v1094_v30  ;;  %v1028_v34 = vpop.f32.mrf.mxu3 }
 0x15e   : > { %v847_v40 = vpop.f32.mrf.mxu2  ;;  %v946_v47 = vpop.f32.mrf.mxu1 }
 0x15f   : > { %v1127_v61 = vpack.c.bf16 %v1063_v38, %v1063_v38  ;;  %1223 = vst.msk [vmem:[%s1904_s16 + $0xd4] sm:$0xf] %vm1169_vm1, %v1158_v39  ;;  %v848_v35 = vadd.f32 %v1890_v60, %v847_v40 }
 0x160   : > { %v769_v42 = vpop.f32.mrf.mxu0 }
 0x161   : > { %1192 = vst.msk [vmem:[%s1904_s16 + $0x58] sm:$0xf] %vm1169_vm1, %v1127_v61  ;;  %v770_v46 = vadd.f32 %v1890_v60, %v769_v42  ;;  %v1017_v51 = vadd.f32 %v1016_v18, %v848_v35 }
 0x163   : > { %v939_v52 = vadd.f32 %v938_v32, %v770_v46  ;;  %v1095_v48 = vmax.f32 %v1017_v51, 0.0 }
 0x165   : > { %v1064_v41 = vmax.f32 %v939_v52, 0.0  ;;  %v1159_v53 = vpack.c.bf16 %v1095_v48, %v1095_v48  ;;  %v1031_v51 = vpop.f32.mrf.mxu3 }
 0x166   : > { %v849_v15 = vpop.f32.mrf.mxu2  ;;  %v948_v22 = vpop.f32.mrf.mxu1 }
 0x167   : > { %v1128_v55 = vpack.c.bf16 %v1064_v41, %v1064_v41  ;;  %1224 = vst.msk [vmem:[%s1904_s16 + $0xd8] sm:$0xf] %vm1169_vm1, %v1159_v53  ;;  %v850_v56 = vadd.f32 %v1890_v60, %v849_v15 }
 0x168   : > { %v772_v57 = vpop.f32.mrf.mxu0 }
 0x169   : > { %1193 = vst.msk [vmem:[%s1904_s16 + $0x5c] sm:$0xf] %vm1169_vm1, %v1128_v55  ;;  %v773_v59 = vadd.f32 %v1890_v60, %v772_v57  ;;  %v1019_v43 = vadd.f32 %v1018_v37, %v850_v56  ;;  %v793_v55 = vadd.f32 %v1890_v60, %v1906_v10 }
 0x16b   : > { %v942_v49 = vadd.f32 %v941_v25, %v773_v59  ;;  %v1096_v62 = vmax.f32 %v1019_v43, 0.0 }
 0x16d   : > { %v1065_v63 = vmax.f32 %v942_v49, 0.0  ;;  %v1160_v1 = vpack.c.bf16 %v1096_v62, %v1096_v62  ;;  %v1033_v10 = vpop.f32.mrf.mxu3 }
 0x16e   : > { %v852_v6 = vpop.f32.mrf.mxu2  ;;  %v951_v9 = vpop.f32.mrf.mxu1 }
 0x16f   : > { %v1129_v3 = vpack.c.bf16 %v1065_v63, %v1065_v63  ;;  %1225 = vst.msk [vmem:[%s1904_s16 + $0xdc] sm:$0xf] %vm1169_vm1, %v1160_v1  ;;  %v853_v21 = vadd.f32 %v1890_v60, %v852_v6 }
 0x170   : > { %v774_v58 = vpop.f32.mrf.mxu0 }
 0x171   : > { %1194 = vst.msk [vmem:[%s1904_s16 + $0x60] sm:$0xf] %vm1169_vm1, %v1129_v3  ;;  %v775_v8 = vadd.f32 %v1890_v60, %v774_v58  ;;  %v1022_v12 = vadd.f32 %v1021_v5, %v853_v21  ;;  %v1718_v58 = vld [vmem:[%s2230_s2] ss:$0 sm:$0xff] }
 0x173   : > { %v944_v32 = vadd.f32 %v943_v36, %v775_v8  ;;  %v1097_v50 = vmax.f32 %v1022_v12, 0.0 }
 0x175   : > { %v1066_v11 = vmax.f32 %v944_v32, 0.0  ;;  %v1161_v13 = vpack.c.bf16 %v1097_v50, %v1097_v50 }
 0x176   : > { %v854_v16 = vpop.f32.mrf.mxu2  ;;  %v953_v23 = vpop.f32.mrf.mxu1 }
 0x177   : > { %v1130_v2 = vpack.c.bf16 %v1066_v11, %v1066_v11  ;;  %1226 = vst.msk [vmem:[%s1904_s16 + $0xe0] sm:$0xf] %vm1169_vm1, %v1161_v13  ;;  %v855_v17 = vadd.f32 %v1890_v60, %v854_v16 }
 0x178   : > { %v777_v18 = vpop.f32.mrf.mxu0 }
 0x179   : > { %1195 = vst.msk [vmem:[%s1904_s16 + $0x64] sm:$0xf] %vm1169_vm1, %v1130_v2  ;;  %v778_v20 = vadd.f32 %v1890_v60, %v777_v18  ;;  %v1024_v24 = vadd.f32 %v1023_v0, %v855_v17 }
 0x17b   : > { %v947_v25 = vadd.f32 %v946_v47, %v778_v20  ;;  %v1098_v44 = vmax.f32 %v1024_v24, 0.0  ;;  %v1036_v20 = vpop.f32.mrf.mxu3 }
 0x17d   : > { %v1067_v14 = vmax.f32 %v947_v25, 0.0  ;;  %v1162_v7 = vpack.c.bf16 %v1098_v44, %v1098_v44 }
 0x17e   : > { %v857_v28 = vpop.f32.mrf.mxu2  ;;  %v956_v33 = vpop.f32.mrf.mxu1 }
 0x17f   : > { %v1131_v27 = vpack.c.bf16 %v1067_v14, %v1067_v14  ;;  %1227 = vst.msk [vmem:[%s1904_s16 + $0xe4] sm:$0xf] %vm1169_vm1, %v1162_v7  ;;  %v858_v29 = vadd.f32 %v1890_v60, %v857_v28 }
 0x180   : > { %v779_v45 = vpop.f32.mrf.mxu0 }
 0x181   : > { %1196 = vst.msk [vmem:[%s1904_s16 + $0x68] sm:$0xf] %vm1169_vm1, %v1131_v27  ;;  %v780_v19 = vadd.f32 %v1890_v60, %v779_v45  ;;  %v1027_v36 = vadd.f32 %v1026_v54, %v858_v29 }
 0x183   : > { %v949_v37 = vadd.f32 %v948_v22, %v780_v19  ;;  %v1099_v4 = vmax.f32 %v1027_v36, 0.0 }
 0x185   : > { %v1068_v31 = vmax.f32 %v949_v37, 0.0  ;;  %v1163_v30 = vpack.c.bf16 %v1099_v4, %v1099_v4 }
 0x186   : > { %v859_v39 = vpop.f32.mrf.mxu2  ;;  %v958_v42 = vpop.f32.mrf.mxu1 }
 0x187   : > { %v1132_v38 = vpack.c.bf16 %v1068_v31, %v1068_v31  ;;  %1228 = vst.msk [vmem:[%s1904_s16 + $0xe8] sm:$0xf] %vm1169_vm1, %v1163_v30  ;;  %v860_v61 = vadd.f32 %v1890_v60, %v859_v39 }
 0x188   : > { %v782_v40 = vpop.f32.mrf.mxu0 }
 0x189   : > { %1197 = vst.msk [vmem:[%s1904_s16 + $0x6c] sm:$0xf] %vm1169_vm1, %v1132_v38  ;;  %v783_v35 = vadd.f32 %v1890_v60, %v782_v40  ;;  %v1029_v46 = vadd.f32 %v1028_v34, %v860_v61  ;;  %v1038_v34 = vpop.f32.mrf.mxu3 }
 0x18b   : > { %v952_v47 = vadd.f32 %v951_v9, %v783_v35  ;;  %v1100_v52 = vmax.f32 %v1029_v46, 0.0 }
 0x18d   : > { %v1069_v5 = vmax.f32 %v952_v47, 0.0  ;;  %v1164_v48 = vpack.c.bf16 %v1100_v52, %v1100_v52 }
 0x18e   : > { %v862_v53 = vpop.f32.mrf.mxu2  ;;  %v961_v59 = vpop.f32.mrf.mxu1 }
 0x18f   : > { %v1133_v41 = vpack.c.bf16 %v1069_v5, %v1069_v5  ;;  %1229 = vst.msk [vmem:[%s1904_s16 + $0xec] sm:$0xf] %vm1169_vm1, %v1164_v48  ;;  %v863_v15 = vadd.f32 %v1890_v60, %v862_v53  ;;  %v962_v43 = vadd.f32 %v961_v59, %v793_v55 }
 0x190   : > { %v784_v56 = vpop.f32.mrf.mxu0 }
 0x191   : > { %1198 = vst.msk [vmem:[%s1904_s16 + $0x70] sm:$0xf] %vm1169_vm1, %v1133_v41  ;;  %v785_v57 = vadd.f32 %v1890_v60, %v784_v56  ;;  %v1032_v22 = vadd.f32 %v1031_v51, %v863_v15  ;;  %v1073_v63 = vmax.f32 %v962_v43, 0.0  ;;  %v795_v60 = vadd.f32 %v1718_v58, %v1922_v26 }
 0x193   : > { %v954_v49 = vadd.f32 %v953_v23, %v785_v57  ;;  %v1101_v62 = vmax.f32 %v1032_v22, 0.0  ;;  %v1137_v3 = vpack.c.bf16 %v1073_v63, %v1073_v63 }
 0x195   : > { %v1070_v0 = vmax.f32 %v954_v49, 0.0  ;;  %v1165_v1 = vpack.c.bf16 %v1101_v62, %v1101_v62  ;;  %1202 = vst.msk [vmem:[%s1904_s16 + $0x80] sm:$0xf] %vm1169_vm1, %v1137_v3 }
 0x196   : > { %v864_v21 = vpop.f32.mrf.mxu2  ;;  %v963_v32 = vpop.f32.mrf.mxu1 }
 0x197   : > { %v1134_v6 = vpack.c.bf16 %v1070_v0, %v1070_v0  ;;  %1230 = vst.msk [vmem:[%s1904_s16 + $0xf0] sm:$0xf] %vm1169_vm1, %v1165_v1  ;;  %v865_v8 = vadd.f32 %v1718_v58, %v864_v21  ;;  %v964_v11 = vadd.f32 %v963_v32, %v795_v60 }
 0x198   : > { %v787_v9 = vpop.f32.mrf.mxu0 }
 0x199   : > { %1199 = vst.msk [vmem:[%s1904_s16 + $0x74] sm:$0xf] %vm1169_vm1, %v1134_v6  ;;  %v788_v12 = vadd.f32 %v1718_v58, %v787_v9  ;;  %v1034_v50 = vadd.f32 %v1033_v10, %v865_v8  ;;  %v1074_v16 = vmax.f32 %v964_v11, 0.0 }
 0x19b   : > { %v957_v13 = vadd.f32 %v956_v33, %v788_v12  ;;  %v1102_v2 = vmax.f32 %v1034_v50, 0.0  ;;  %v1138_v17 = vpack.c.bf16 %v1074_v16, %v1074_v16 }
 0x19d   : > { %v1071_v54 = vmax.f32 %v957_v13, 0.0  ;;  %v1166_v26 = vpack.c.bf16 %v1102_v2, %v1102_v2  ;;  %1203 = vst.msk [vmem:[%s1904_s16 + $0x84] sm:$0xf] %vm1169_vm1, %v1138_v17 }
 0x19e   : > { %v867_v23 = vpop.f32.mrf.mxu2 }
 0x19f   : > { %v1135_v18 = vpack.c.bf16 %v1071_v54, %v1071_v54  ;;  %1231 = vst.msk [vmem:[%s1904_s16 + $0xf4] sm:$0xf] %vm1169_vm1, %v1166_v26  ;;  %v868_v24 = vadd.f32 %v1718_v58, %v867_v23 }
 0x1a0   : > { %v789_v25 = vpop.f32.mrf.mxu0 }
 0x1a1   : > { %1200 = vst.msk [vmem:[%s1904_s16 + $0x78] sm:$0xf] %vm1169_vm1, %v1135_v18  ;;  %v790_v44 = vadd.f32 %v1718_v58, %v789_v25  ;;  %v1037_v14 = vadd.f32 %v1036_v20, %v868_v24 }
 0x1a3   : > { %v959_v7 = vadd.f32 %v958_v42, %v790_v44  ;;  %v1103_v27 = vmax.f32 %v1037_v14, 0.0 }
 0x1a5   : > { %v1072_v28 = vmax.f32 %v959_v7, 0.0  ;;  %v1167_v29 = vpack.c.bf16 %v1103_v27, %v1103_v27 }
 0x1a6   : > { %v869_v19 = vpop.f32.mrf.mxu2 }
 0x1a7   : > { %v1136_v45 = vpack.c.bf16 %v1072_v28, %v1072_v28  ;;  %1232 = vst.msk [vmem:[%s1904_s16 + $0xf8] sm:$0xf] %vm1169_vm1, %v1167_v29  ;;  %v870_v33 = vadd.f32 %v1718_v58, %v869_v19 }
 0x1a9   : > { %1201 = vst.msk [vmem:[%s1904_s16 + $0x7c] sm:$0xf] %vm1169_vm1, %v1136_v45  ;;  %v1039_v36 = vadd.f32 %v1038_v34, %v870_v33 }
 0x1ab   : > { %v1104_v37 = vmax.f32 %v1039_v36, 0.0 }
 0x1ad   : > { %v1168_v4 = vpack.c.bf16 %v1104_v37, %v1104_v37 }
 0x1af   : > { %1233 = vst.msk [vmem:[%s1904_s16 + $0xfc] sm:$0xf] %vm1169_vm1, %v1168_v4 }
 0x1b0 PF: > { %s13_s12 = sadd.s32 1, %s1725_s12  }
 0x1b1   : > { %p10_p4 = scmp.ge.s32.totalorder %s13_s12, 6  }
 0x1b3   :  { %12 = sbr.rel (!%p10_p4) target bundleno = 1 (0x1), region = 62 }

// kernel: finetune_net_wa_forward.34
= control target key start
LH: loop header
LB: loop body
LE: loop exit
PB: predicated region body
PF: predicated region fallthrough
CT: control target
= control target key end

     0   :  { %s2166_s15 = smov 0   ;;  %s2732_s0 = inlined_call_operand.vmem [shape: bf16[2048,144], index: 0, kind: input, shape index: {}]   ;;  %s2733_s1 = inlined_call_operand.vmem [shape: bf16[144,16], index: 1, kind: input, shape index: {}]   ;;  %s2734_s2 = inlined_call_operand.vmem [shape: f32[1,16], index: 2, kind: input, shape index: {}]   ;;  %s2735_s3 = inlined_call_operand.vmem [shape: bf16[2048,16], index: 3, kind: input, shape index: {}]   ;;  %s2736_s4 = inlined_call_operand.vmem [shape: bf16[2048,16], index: 4, kind: output, shape index: {}]  }
   0x1 LB: > { %s1543_s16 = sadd.s32 4294967295, %s2139_s15   ;;  %p1547_p0 = scmp.ge.s32.totalorder %s2139_s15, 1  ;;  %s2139_s15 = sphi %s2166_s15, %s14_s15  }
   0x2   : > { %p175_p1 = scmp.lt.s32.totalorder %s2139_s15, 5 }
   0x4   : > { %p176_p2 = pnand %p1547_p0, %p175_p1 }
   0x5   : > { %s1548_s21 = sshll.u32 (!%p176_p2), %s1543_s16, 6 }
   0x6   : > { %179 = sbr.rel (%p176_p2) target bundleno = 434 (0x1b2), region = 36  ;;  %p208_p3 = scmp.lt.s32.totalorder (!%p176_p2), %s1548_s21, 255 }
   0xb   : > { %v1953_v0 = vld [vmem:[%s2733_s1 + $0x38] sm:$0xff]  ;;  %v1954_v1 = vld [vmem:[%s2733_s1 + $0x40] sm:$0xff]  ;;  %v1952_v2 = vld [vmem:[%s2733_s1 + $0x30] sm:$0xff]  ;;  %s2738_s21 = smov (!%p208_p3, %s1548_s21), 255  ;;  %vm655_vm0 = vcmask 130048   ;;  %vm1410_vm1 = vcmask 125952  }
   0xc   : > { %752 = vmatpush.bf16.msra.mxu0 %v1953_v0  ;;  %2114 = vmatpush.bf16.msra.mxu2 %v1953_v0  ;;  %s1881_s24 = sshll.u32 %s2738_s21, 3  ;;  %v1951_v3 = vld [vmem:[%s2733_s1 + $0x28] sm:$0xff]  ;;  %v1950_v7 = vld [vmem:[%s2733_s1 + $0x20] sm:$0xff]  ;;  %v1949_v11 = vld [vmem:[%s2733_s1 + $0x18] sm:$0xff]  ;;  %s1552_s14 = sshll.u32 %s2738_s21, 2 }
   0xd   : > { %928 = vmatpush.bf16.msra.mxu1 %v1954_v1  ;;  %2122 = vmatpush.bf16.msra.mxu3 %v1954_v1  ;;  %s2189_s27 = scalar_lea.vmem %s2732_s0, %s1881_s24  ;;  %v1948_v12 = vld [vmem:[%s2733_s1 + $0x10] sm:$0xff]  ;;  %v1947_v16 = vld [vmem:[%s2733_s1 + $0x8] sm:$0xff]  ;;  %v1946_v19 = vld [vmem:[%s2733_s1] sm:$0xff]  ;;  %s2307_s18 = scalar_lea.vmem %s2735_s3, %s1552_s14 }
   0xe   : > { %v1882_v4 = vld [vmem:[%s2189_s27 + $0x4] sm:$0xf]  ;;  %v1559_v5 = vld [vmem:[%s2189_s27 + $0x8] sm:$0xf0]  ;;  %v1916_v8 = vld [vmem:[%s2189_s27 + $0x114] sm:$0xf]  ;;  %s2337_s24 = scalar_lea.vmem %s2736_s4, %s1552_s14 }
   0xf   : > { %v1562_v6 = vor.u32 %v1882_v4, %v1559_v5  ;;  %v1695_v9 = vld [vmem:[%s2189_s27 + $0x118] sm:$0xf0]  ;;  %v1884_v13 = vld [vmem:[%s2189_s27 + $0x14] sm:$0xf]  ;;  %v1918_v17 = vld [vmem:[%s2189_s27 + $0x124] sm:$0xf] }
  0x10   : > { %753 = vmatpush.bf16.msra.mxu0 %v1952_v2  ;;  %2115 = vmatpush.bf16.msra.mxu2 %v1952_v2  ;;  %v1698_v10 = vor.u32 %v1916_v8, %v1695_v9  ;;  %v1567_v14 = vld [vmem:[%s2189_s27 + $0x18] sm:$0xf0]  ;;  %v1703_v18 = vld [vmem:[%s2189_s27 + $0x128] sm:$0xf0]  ;;  %v1557_v20 = vld [vmem:[%s2189_s27] sm:$0xf] }
  0x11   : > { %1847 = vmatmul.msk.bf16.vlgmr.msra.gmra.mxu1 %vm655_vm0, %v1562_v6  ;;  %v1570_v15 = vor.u32 %v1884_v13, %v1567_v14  ;;  %v1883_v21 = vld [vmem:[%s2189_s27 + $0x4] sm:$0xf0]  ;;  %v1706_v22 = vor.u32 %v1918_v17, %v1703_v18  ;;  %v1685_v23 = vld [vmem:[%s2189_s27 + $0x100] sm:$0xf]  ;;  %v1886_v27 = vld [vmem:[%s2189_s27 + $0x24] sm:$0xf] }
  0x12   : > { %1864 = vmatmul.msk.bf16.vlgmr.msra.gmra.mxu3 %vm655_vm0, %v1698_v10  ;;  %v1915_v24 = vld [vmem:[%s2189_s27 + $0x104] sm:$0xf0]  ;;  %v1558_v25 = vor.u32 %v1883_v21, %v1557_v20  ;;  %v1575_v28 = vld [vmem:[%s2189_s27 + $0x28] sm:$0xf0]  ;;  %v1920_v30 = vld [vmem:[%s2189_s27 + $0x134] sm:$0xf] }
  0x13   : > { %v1686_v26 = vor.u32 %v1915_v24, %v1685_v23  ;;  %v1578_v29 = vor.u32 %v1886_v27, %v1575_v28  ;;  %v1711_v31 = vld [vmem:[%s2189_s27 + $0x138] sm:$0xf0]  ;;  %v1565_v32 = vld [vmem:[%s2189_s27 + $0x10] sm:$0xf]  ;;  %v1885_v33 = vld [vmem:[%s2189_s27 + $0x14] sm:$0xf0] }
  0x14   : > { %754 = vmatpush.bf16.msra.mxu0 %v1951_v3  ;;  %2116 = vmatpush.bf16.msra.mxu2 %v1951_v3  ;;  %v1714_v34 = vor.u32 %v1920_v30, %v1711_v31  ;;  %v1693_v35 = vld [vmem:[%s2189_s27 + $0x110] sm:$0xf]  ;;  %v1917_v36 = vld [vmem:[%s2189_s27 + $0x114] sm:$0xf0]  ;;  %v1566_v37 = vor.u32 %v1885_v33, %v1565_v32  ;;  %v1888_v39 = vld [vmem:[%s2189_s27 + $0x34] sm:$0xf] }
  0x15   : > { %v1694_v38 = vor.u32 %v1917_v36, %v1693_v35  ;;  %v1583_v40 = vld [vmem:[%s2189_s27 + $0x38] sm:$0xf0]  ;;  %v1922_v42 = vld [vmem:[%s2189_s27 + $0x144] sm:$0xf]  ;;  %v1719_v43 = vld [vmem:[%s2189_s27 + $0x148] sm:$0xf0] }
  0x16   : > { %v1586_v41 = vor.u32 %v1888_v39, %v1583_v40  ;;  %v1573_v44 = vld [vmem:[%s2189_s27 + $0x20] sm:$0xf]  ;;  %v1887_v45 = vld [vmem:[%s2189_s27 + $0x24] sm:$0xf0]  ;;  %v1722_v46 = vor.u32 %v1922_v42, %v1719_v43  ;;  %v1890_v51 = vld [vmem:[%s2189_s27 + $0x44] sm:$0xf] }
  0x17   : > { %v1701_v47 = vld [vmem:[%s2189_s27 + $0x120] sm:$0xf]  ;;  %v1919_v48 = vld [vmem:[%s2189_s27 + $0x124] sm:$0xf0]  ;;  %v1574_v49 = vor.u32 %v1887_v45, %v1573_v44  ;;  %v1591_v52 = vld [vmem:[%s2189_s27 + $0x48] sm:$0xf0] }
  0x18   : > { %755 = vmatpush.bf16.msra.mxu0 %v1950_v7  ;;  %2117 = vmatpush.bf16.msra.mxu2 %v1950_v7  ;;  %v1702_v50 = vor.u32 %v1919_v48, %v1701_v47  ;;  %v1594_v53 = vor.u32 %v1890_v51, %v1591_v52  ;;  %v1924_v54 = vld [vmem:[%s2189_s27 + $0x154] sm:$0xf]  ;;  %v1727_v55 = vld [vmem:[%s2189_s27 + $0x158] sm:$0xf0]  ;;  %v1581_v56 = vld [vmem:[%s2189_s27 + $0x30] sm:$0xf] }
  0x19   : > { %v1889_v57 = vld [vmem:[%s2189_s27 + $0x34] sm:$0xf0]  ;;  %v1730_v58 = vor.u32 %v1924_v54, %v1727_v55  ;;  %v1709_v59 = vld [vmem:[%s2189_s27 + $0x130] sm:$0xf]  ;;  %v1892_v63 = vld [vmem:[%s2189_s27 + $0x54] sm:$0xf] }
  0x1a   : > { %v1921_v60 = vld [vmem:[%s2189_s27 + $0x134] sm:$0xf0]  ;;  %v1582_v61 = vor.u32 %v1889_v57, %v1581_v56  ;;  %v1599_v0 = vld [vmem:[%s2189_s27 + $0x58] sm:$0xf0]  ;;  %v1926_v2 = vld [vmem:[%s2189_s27 + $0x164] sm:$0xf] }
  0x1b   : > { %v1710_v62 = vor.u32 %v1921_v60, %v1709_v59  ;;  %v1602_v1 = vor.u32 %v1892_v63, %v1599_v0  ;;  %v1735_v3 = vld [vmem:[%s2189_s27 + $0x168] sm:$0xf0]  ;;  %v1589_v4 = vld [vmem:[%s2189_s27 + $0x40] sm:$0xf]  ;;  %v1891_v5 = vld [vmem:[%s2189_s27 + $0x44] sm:$0xf0] }
  0x1c   : > { %756 = vmatpush.bf16.msra.mxu0 %v1949_v11  ;;  %2118 = vmatpush.bf16.msra.mxu2 %v1949_v11  ;;  %v1738_v6 = vor.u32 %v1926_v2, %v1735_v3  ;;  %v1717_v7 = vld [vmem:[%s2189_s27 + $0x140] sm:$0xf]  ;;  %v1923_v8 = vld [vmem:[%s2189_s27 + $0x144] sm:$0xf0]  ;;  %v1590_v9 = vor.u32 %v1891_v5, %v1589_v4  ;;  %v1894_v11 = vld [vmem:[%s2189_s27 + $0x64] sm:$0xf] }
  0x1d   : > { %v1718_v10 = vor.u32 %v1923_v8, %v1717_v7  ;;  %v1928_v14 = vld [vmem:[%s2189_s27 + $0x174] sm:$0xf]  ;;  %v1893_v17 = vld [vmem:[%s2189_s27 + $0x54] sm:$0xf0]  ;;  %v1615_v24 = vld [vmem:[%s2189_s27 + $0x78] sm:$0xf0] }
  0x1e   : > { %v1925_v20 = vld [vmem:[%s2189_s27 + $0x154] sm:$0xf0]  ;;  %v1896_v23 = vld [vmem:[%s2189_s27 + $0x74] sm:$0xf]  ;;  %v1751_v27 = vld [vmem:[%s2189_s27 + $0x188] sm:$0xf0] }
  0x1f   : > { %v1605_v28 = vld [vmem:[%s2189_s27 + $0x60] sm:$0xf]  ;;  %v1927_v32 = vld [vmem:[%s2189_s27 + $0x164] sm:$0xf0]  ;;  %v1898_v35 = vld [vmem:[%s2189_s27 + $0x84] sm:$0xf] }
  0x20   : > { %757 = vmatpush.bf16.msra.mxu0 %v1948_v12  ;;  %2119 = vmatpush.bf16.msra.mxu2 %v1948_v12  ;;  %v1607_v12 = vld [vmem:[%s2189_s27 + $0x68] sm:$0xf0]  ;;  %v1733_v31 = vld [vmem:[%s2189_s27 + $0x160] sm:$0xf]  ;;  %v1932_v39 = vld [vmem:[%s2189_s27 + $0x194] sm:$0xf] }
  0x21   : > { %1848 = vmatmul.msk.bf16.gmra.mxu1 %vm655_vm0, %v1570_v15  ;;  %v1610_v13 = vor.u32 %v1894_v11, %v1607_v12  ;;  %v1743_v15 = vld [vmem:[%s2189_s27 + $0x178] sm:$0xf0]  ;;  %v1623_v36 = vld [vmem:[%s2189_s27 + $0x88] sm:$0xf0]  ;;  %v1897_v42 = vld [vmem:[%s2189_s27 + $0x74] sm:$0xf0] }
  0x22   : > { %1865 = vmatmul.msk.bf16.gmra.mxu3 %vm655_vm0, %v1706_v22  ;;  %v1746_v18 = vor.u32 %v1928_v14, %v1743_v15  ;;  %v1759_v40 = vld [vmem:[%s2189_s27 + $0x198] sm:$0xf0]  ;;  %v1741_v44 = vld [vmem:[%s2189_s27 + $0x170] sm:$0xf]  ;;  %v1929_v45 = vld [vmem:[%s2189_s27 + $0x174] sm:$0xf0] }
  0x23   : > { %v1762_v43 = vor.u32 %v1932_v39, %v1759_v40  ;;  %v1742_v47 = vor.u32 %v1929_v45, %v1741_v44  ;;  %v1631_v51 = vld [vmem:[%s2189_s27 + $0x98] sm:$0xf0]  ;;  %v1934_v55 = vld [vmem:[%s2189_s27 + $0x1a4] sm:$0xf]  ;;  %v1767_v56 = vld [vmem:[%s2189_s27 + $0x1a8] sm:$0xf0] }
  0x24   : > { %758 = vmatpush.bf16.msra.mxu0 %v1947_v16  ;;  %2120 = vmatpush.bf16.msra.mxu2 %v1947_v16  ;;  %v1597_v16 = vld [vmem:[%s2189_s27 + $0x50] sm:$0xf]  ;;  %v1621_v57 = vld [vmem:[%s2189_s27 + $0x80] sm:$0xf]  ;;  %v1770_v59 = vor.u32 %v1934_v55, %v1767_v56  ;;  %v1647_v44 = vld [vmem:[%s2189_s27 + $0xb8] sm:$0xf0] }
  0x25   : > { %v1598_v21 = vor.u32 %v1893_v17, %v1597_v16  ;;  %v2317_v60 = vld [vmem:[%s2734_s2] ss:$0 sm:$0xff] }
  0x26   : > { %v1956_v63 = vld [vmem:[%s2307_s18] sm:$0xff]  }
  0x27   : > { %v1957_v4 = vunpack.c.l.bf16 %v1956_v63  ;;  %v1958_v17 = vunpack.c.h.bf16 %v1956_v63 }
  0x28   : > { %759 = vmatpush.bf16.msra.mxu0 %v1946_v19  ;;  %2121 = vmatpush.bf16.msra.mxu2 %v1946_v19  ;;  %v1725_v19 = vld [vmem:[%s2189_s27 + $0x150] sm:$0xf] }
  0x29   : > { %v1726_v22 = vor.u32 %v1925_v20, %v1725_v19 }
  0x2b   : > { %760 = vmatmul.bf16.vlgmr.msra.gmra.mxu0 %v1558_v25  ;;  %840 = vmatmul.bf16.vlgmr.msra.gmra.mxu2 %v1686_v26  ;;  %v1618_v25 = vor.u32 %v1896_v23, %v1615_v24  ;;  %v1930_v26 = vld [vmem:[%s2189_s27 + $0x184] sm:$0xf]  ;;  %v1629_v23 = vld [vmem:[%s2189_s27 + $0x90] sm:$0xf]  ;;  %v1901_v24 = vld [vmem:[%s2189_s27 + $0x94] sm:$0xf0] }
  0x2c   : > { %v1754_v30 = vor.u32 %v1930_v26, %v1751_v27  ;;  %v1757_v27 = vld [vmem:[%s2189_s27 + $0x190] sm:$0xf] }
  0x31   : > { %1849 = vmatmul.msk.bf16.gmra.mxu1 %vm655_vm0, %v1578_v29  ;;  %v1895_v29 = vld [vmem:[%s2189_s27 + $0x64] sm:$0xf0] }
  0x32   : > { %1866 = vmatmul.msk.bf16.gmra.mxu3 %vm655_vm0, %v1714_v34  ;;  %v1606_v33 = vor.u32 %v1895_v29, %v1605_v28  ;;  %v1734_v34 = vor.u32 %v1927_v32, %v1733_v31  ;;  %v1933_v28 = vld [vmem:[%s2189_s27 + $0x194] sm:$0xf0]  ;;  %v2083_v29 = vld [vmem:[%s2307_s18 + $0x8] sm:$0xff]   ;;  %v1630_v32 = vor.u32 %v1901_v24, %v1629_v23 }
  0x33   : > { %v1962_v55 = vunpack.c.h.bf16 %v2083_v29 }
  0x3b   : > { %765 = vmatmul.bf16.gmra.mxu0 %v1566_v37  ;;  %845 = vmatmul.bf16.gmra.mxu2 %v1694_v38  ;;  %v1626_v37 = vor.u32 %v1898_v35, %v1623_v36 }
  0x41   : > { %1850 = vmatmul.msk.bf16.gmra.mxu1 %vm655_vm0, %v1586_v41  ;;  %v1613_v41 = vld [vmem:[%s2189_s27 + $0x70] sm:$0xf] }
  0x42   : > { %1867 = vmatmul.msk.bf16.gmra.mxu3 %vm655_vm0, %v1722_v46  ;;  %v1614_v46 = vor.u32 %v1897_v42, %v1613_v41  ;;  %v2099_v42 = vld [vmem:[%s2307_s18 + $0x88] sm:$0xff]  }
  0x4b   : > { %770 = vmatmul.bf16.gmra.mxu0 %v1574_v49  ;;  %850 = vmatmul.bf16.gmra.mxu2 %v1702_v50  ;;  %v1900_v50 = vld [vmem:[%s2189_s27 + $0x94] sm:$0xf] }
  0x4c   : > { %v1634_v52 = vor.u32 %v1900_v50, %v1631_v51 }
  0x51   : > { %1851 = vmatmul.msk.bf16.gmra.mxu1 %vm655_vm0, %v1594_v53 }
  0x52   : > { %1868 = vmatmul.msk.bf16.gmra.mxu3 %vm655_vm0, %v1730_v58  ;;  %v1899_v58 = vld [vmem:[%s2189_s27 + $0x84] sm:$0xf0] }
  0x53   : > { %v1622_v0 = vor.u32 %v1899_v58, %v1621_v57 }
  0x5b   : > { %775 = vmatmul.bf16.gmra.mxu0 %v1582_v61  ;;  %855 = vmatmul.bf16.gmra.mxu2 %v1710_v62  ;;  %v1749_v61 = vld [vmem:[%s2189_s27 + $0x180] sm:$0xf]  ;;  %v1931_v62 = vld [vmem:[%s2189_s27 + $0x184] sm:$0xf0] }
  0x5c   : > { %v1750_v2 = vor.u32 %v1931_v62, %v1749_v61  ;;  %v1938_v61 = vld [vmem:[%s2189_s27 + $0x1c4] sm:$0xf]  ;;  %v1783_v62 = vld [vmem:[%s2189_s27 + $0x1c8] sm:$0xf0] }
  0x61   : > { %1852 = vmatmul.msk.bf16.gmra.mxu1 %vm655_vm0, %v1602_v1 }
  0x62   : > { %1869 = vmatmul.msk.bf16.gmra.mxu3 %vm655_vm0, %v1738_v6 }
  0x6b   : > { %780 = vmatmul.bf16.gmra.mxu0 %v1590_v9  ;;  %860 = vmatmul.bf16.gmra.mxu2 %v1718_v10  ;;  %v1902_v9 = vld [vmem:[%s2189_s27 + $0xa4] sm:$0xf]  ;;  %v1639_v10 = vld [vmem:[%s2189_s27 + $0xa8] sm:$0xf0] }
  0x6c   : > { %v1642_v14 = vor.u32 %v1902_v9, %v1639_v10 }
  0x71   : > { %1853 = vmatmul.msk.bf16.gmra.mxu1 %vm655_vm0, %v1610_v13 }
  0x72   : > { %1870 = vmatmul.msk.bf16.gmra.mxu3 %vm655_vm0, %v1746_v18 }
  0x7b   : > { %785 = vmatmul.bf16.gmra.mxu0 %v1598_v21  ;;  %865 = vmatmul.bf16.gmra.mxu2 %v1726_v22  ;;  %v1936_v21 = vld [vmem:[%s2189_s27 + $0x1b4] sm:$0xf]  ;;  %v1775_v22 = vld [vmem:[%s2189_s27 + $0x1b8] sm:$0xf0] }
  0x81   : > { %1854 = vmatmul.msk.bf16.gmra.mxu1 %vm655_vm0, %v1618_v25  ;;  %v1778_v25 = vor.u32 %v1936_v21, %v1775_v22 }
  0x82   : > { %1871 = vmatmul.msk.bf16.gmra.mxu3 %vm655_vm0, %v1754_v30 }
  0x8b   : > { %790 = vmatmul.bf16.gmra.mxu0 %v1606_v33  ;;  %870 = vmatmul.bf16.gmra.mxu2 %v1734_v34  ;;  %v1758_v34 = vor.u32 %v1933_v28, %v1757_v27  ;;  %v2100_v28 = vld [vmem:[%s2307_s18 + $0x90] sm:$0xff]  }
  0x8e   : > { %v930_v38 = vpop.f32.mrf.mxu1 }
  0x91   : > { %1855 = vmatmul.msk.bf16.gmra.mxu1 %vm655_vm0, %v1626_v37  ;;  %v1961_v37 = vunpack.c.l.bf16 %v2083_v29  ;;  %v1906_v29 = vld [vmem:[%s2189_s27 + $0xc4] sm:$0xf] }
  0x92   : > { %1872 = vmatmul.msk.bf16.gmra.mxu3 %vm655_vm0, %v1762_v43  ;;  %v1904_v43 = vld [vmem:[%s2189_s27 + $0xb4] sm:$0xf] }
  0x93   : > { %v1650_v51 = vor.u32 %v1904_v43, %v1647_v44 }
  0x95   : > { %v2295_v49 = vpop.f32.mrf.mxu3 }
  0x96   : > { %v932_v48 = vpop.f32.mrf.mxu1 }
  0x9b   : > { %795 = vmatmul.bf16.gmra.mxu0 %v1614_v46  ;;  %875 = vmatmul.bf16.gmra.mxu2 %v1742_v47 }
  0x9d   : > { %v2300_v54 = vpop.f32.mrf.mxu3 }
  0x9e   : > { %v935_v53 = vpop.f32.mrf.mxu1 }
  0xa1   : > { %1856 = vmatmul.msk.bf16.gmra.mxu1 %vm655_vm0, %v1634_v52 }
  0xa2   : > { %1873 = vmatmul.msk.bf16.gmra.mxu3 %vm655_vm0, %v1770_v59 }
  0xa5   : > { %v2326_v6 = vpop.f32.mrf.mxu3 }
  0xa6   : > { %v2324_v5 = vpop.f32.mrf.mxu1 }
  0xa8   : > { %v761_v1 = vpop.f32.mrf.mxu0 }
  0xa9   : > { %v762_v3 = vadd.f32 %v2317_v60, %v761_v1  ;;  %v1903_v1 = vld [vmem:[%s2189_s27 + $0xa4] sm:$0xf0] }
  0xab   : > { %v931_v7 = vadd.f32 %v930_v38, %v762_v3  ;;  %800 = vmatmul.bf16.gmra.mxu0 %v1622_v0  ;;  %880 = vmatmul.bf16.gmra.mxu2 %v1750_v2  ;;  %v1637_v0 = vld [vmem:[%s2189_s27 + $0xa0] sm:$0xf]  ;;  %v1786_v2 = vor.u32 %v1938_v61, %v1783_v62 }
  0xad   : > { %v1218_v8 = vadd.f32 %v1957_v4, %v931_v7  ;;  %v2342_v19 = vpop.f32.mrf.mxu3  ;;  %v1765_v4 = vld [vmem:[%s2189_s27 + $0x1a0] sm:$0xf]  ;;  %v1935_v7 = vld [vmem:[%s2189_s27 + $0x1a4] sm:$0xf0] }
  0xae   : > { %v2330_v12 = vpop.f32.mrf.mxu2  ;;  %v2340_v18 = vpop.f32.mrf.mxu1 }
  0xaf   : > { %v1282_v11 = vmax.f32 %v1218_v8, 0.0 }
  0xb0   : > { %v763_v13 = vpop.f32.mrf.mxu0 }
  0xb1   : > { %v1346_v15 = vpack.c.bf16 %v1282_v11, %v1282_v11  ;;  %v764_v16 = vadd.f32 %v2317_v60, %v763_v13  ;;  %1857 = vmatmul.msk.bf16.gmra.mxu1 %vm655_vm0, %v1642_v14  ;;  %v1638_v11 = vor.u32 %v1903_v1, %v1637_v0  ;;  %v2026_v14 = vunpack.c.h.bf16 %v2099_v42 }
  0xb2   : > { %1874 = vmatmul.msk.bf16.gmra.mxu3 %vm655_vm0, %v1778_v25 }
  0xb3   : > { %1411 = vst.msk [vmem:[%s2337_s24] sm:$0xf] %vm1410_vm1, %v1346_v15  ;;  %v933_v20 = vadd.f32 %v932_v48, %v764_v16  ;;  %v2025_v48 = vunpack.c.l.bf16 %v2099_v42  ;;  %v1766_v16 = vor.u32 %v1935_v7, %v1765_v4 }
  0xb5   : > { %v1219_v26 = vadd.f32 %v1958_v17, %v933_v20  ;;  %v2360_v39 = vpop.f32.mrf.mxu3 }
  0xb6   : > { %v2354_v31 = vpop.f32.mrf.mxu2  ;;  %v2358_v38 = vpop.f32.mrf.mxu1 }
  0xb7   : > { %v1283_v30 = vmax.f32 %v1219_v26, 0.0 }
  0xb8   : > { %v766_v33 = vpop.f32.mrf.mxu0 }
  0xb9   : > { %v1347_v35 = vpack.c.bf16 %v1283_v30, %v1283_v30  ;;  %v767_v36 = vadd.f32 %v2317_v60, %v766_v33  ;;  %v1655_v30 = vld [vmem:[%s2189_s27 + $0xc8] sm:$0xf0] }
  0xbb   : > { %1412 = vst.msk [vmem:[%s2337_s24 + $0x4] sm:$0xf] %vm1410_vm1, %v1347_v35  ;;  %v936_v40 = vadd.f32 %v935_v53, %v767_v36  ;;  %805 = vmatmul.bf16.gmra.mxu0 %v1630_v32  ;;  %885 = vmatmul.bf16.gmra.mxu2 %v1758_v34  ;;  %v2029_v36 = vunpack.c.l.bf16 %v2100_v28 }
  0xbd   : > { %v1220_v41 = vadd.f32 %v1961_v37, %v936_v40  ;;  %v2372_v58 = vpop.f32.mrf.mxu3  ;;  %v1658_v37 = vor.u32 %v1906_v29, %v1655_v30 }
  0xbe   : > { %v846_v46 = vpop.f32.mrf.mxu2  ;;  %v2369_v56 = vpop.f32.mrf.mxu1 }
  0xbf   : > { %v1284_v45 = vmax.f32 %v1220_v41, 0.0  ;;  %v847_v47 = vadd.f32 %v2317_v60, %v846_v46 }
  0xc0   : > { %v768_v50 = vpop.f32.mrf.mxu0 }
  0xc1   : > { %v1348_v52 = vpack.c.bf16 %v1284_v45, %v1284_v45  ;;  %v769_v53 = vadd.f32 %v2317_v60, %v768_v50  ;;  %v1016_v57 = vadd.f32 %v2295_v49, %v847_v47  ;;  %1858 = vmatmul.msk.bf16.gmra.mxu1 %vm655_vm0, %v1650_v51  ;;  %v2084_v49 = vld [vmem:[%s2307_s18 + $0x10] sm:$0xff]  }
  0xc2   : > { %1875 = vmatmul.msk.bf16.gmra.mxu3 %vm655_vm0, %v1786_v2  ;;  %v1965_v21 = vunpack.c.l.bf16 %v2084_v49  ;;  %v1966_v42 = vunpack.c.h.bf16 %v2084_v49  ;;  %v1940_v47 = vld [vmem:[%s2189_s27 + $0x1d4] sm:$0xf]  ;;  %v1645_v51 = vld [vmem:[%s2189_s27 + $0xb0] sm:$0xf]  ;;  %v2030_v2 = vunpack.c.h.bf16 %v2100_v28 }
  0xc3   : > { %1413 = vst.msk [vmem:[%s2337_s24 + $0x8] sm:$0xf] %vm1410_vm1, %v1348_v52  ;;  %v938_v59 = vadd.f32 %v2324_v5, %v769_v53  ;;  %v1252_v63 = vadd.f32 %v2025_v48, %v1016_v57  ;;  %v1791_v48 = vld [vmem:[%s2189_s27 + $0x1d8] sm:$0xf0]  ;;  %v1905_v52 = vld [vmem:[%s2189_s27 + $0xb4] sm:$0xf0] }
  0xc4   : > { %v1794_v53 = vor.u32 %v1940_v47, %v1791_v48  ;;  %v1773_v57 = vld [vmem:[%s2189_s27 + $0x1b0] sm:$0xf]  ;;  %v1646_v0 = vor.u32 %v1905_v52, %v1645_v51 }
  0xc5   : > { %v1221_v3 = vadd.f32 %v1962_v55, %v938_v59  ;;  %v1316_v8 = vmax.f32 %v1252_v63, 0.0  ;;  %v2393_v24 = vpop.f32.mrf.mxu3  ;;  %v1937_v59 = vld [vmem:[%s2189_s27 + $0x1b4] sm:$0xf0] }
  0xc6   : > { %v848_v10 = vpop.f32.mrf.mxu2  ;;  %v2388_v22 = vpop.f32.mrf.mxu1  ;;  %v1774_v4 = vor.u32 %v1937_v59, %v1773_v57 }
  0xc7   : > { %v1285_v9 = vmax.f32 %v1221_v3, 0.0  ;;  %v1380_v5 = vpack.c.bf16 %v1316_v8, %v1316_v8  ;;  %v849_v13 = vadd.f32 %v2317_v60, %v848_v10 }
  0xc8   : > { %v771_v15 = vpop.f32.mrf.mxu0 }
  0xc9   : > { %v1349_v17 = vpack.c.bf16 %v1285_v9, %v1285_v9  ;;  %v772_v20 = vadd.f32 %v2317_v60, %v771_v15  ;;  %1445 = vst.msk [vmem:[%s2337_s24 + $0x88] sm:$0xf] %vm1410_vm1, %v1380_v5  ;;  %v1018_v23 = vadd.f32 %v2300_v54, %v849_v13  ;;  %v2101_v15 = vld [vmem:[%s2307_s18 + $0x98] sm:$0xff]  }
  0xcb   : > { %1414 = vst.msk [vmem:[%s2337_s24 + $0xc] sm:$0xf] %vm1410_vm1, %v1349_v17  ;;  %v941_v25 = vadd.f32 %v2340_v18, %v772_v20  ;;  %810 = vmatmul.bf16.gmra.mxu0 %v1638_v11  ;;  %v1253_v26 = vadd.f32 %v2026_v14, %v1018_v23  ;;  %890 = vmatmul.bf16.gmra.mxu2 %v1766_v16  ;;  %v1908_v16 = vld [vmem:[%s2189_s27 + $0xd4] sm:$0xf]  ;;  %v1663_v17 = vld [vmem:[%s2189_s27 + $0xd8] sm:$0xf0] }
  0xcd   : > { %v1222_v27 = vadd.f32 %v1965_v21, %v941_v25  ;;  %v1317_v32 = vmax.f32 %v1253_v26, 0.0  ;;  %v2408_v45 = vpop.f32.mrf.mxu3  ;;  %v2033_v26 = vunpack.c.l.bf16 %v2101_v15 }
  0xce   : > { %v851_v34 = vpop.f32.mrf.mxu2  ;;  %v2403_v43 = vpop.f32.mrf.mxu1 }
  0xcf   : > { %v1286_v33 = vmax.f32 %v1222_v27, 0.0  ;;  %v1381_v54 = vpack.c.bf16 %v1317_v32, %v1317_v32  ;;  %v852_v35 = vadd.f32 %v2317_v60, %v851_v34  ;;  %v1666_v27 = vor.u32 %v1908_v16, %v1663_v17 }
  0xd0   : > { %v773_v18 = vpop.f32.mrf.mxu0 }
  0xd1   : > { %v1350_v40 = vpack.c.bf16 %v1286_v33, %v1286_v33  ;;  %v774_v41 = vadd.f32 %v2317_v60, %v773_v18  ;;  %1446 = vst.msk [vmem:[%s2337_s24 + $0x8c] sm:$0xf] %vm1410_vm1, %v1381_v54  ;;  %v1021_v44 = vadd.f32 %v2326_v6, %v852_v35  ;;  %1859 = vmatmul.msk.bf16.gmra.mxu1 %vm655_vm0, %v1658_v37  ;;  %v2085_v6 = vld [vmem:[%s2307_s18 + $0x18] sm:$0xff]   ;;  %v1942_v35 = vld [vmem:[%s2189_s27 + $0x1e4] sm:$0xf] }
  0xd2   : > { %1876 = vmatmul.msk.bf16.gmra.mxu3 %vm655_vm0, %v1794_v53  ;;  %v1969_v49 = vunpack.c.l.bf16 %v2085_v6  ;;  %v1970_v30 = vunpack.c.h.bf16 %v2085_v6  ;;  %v1653_v37 = vld [vmem:[%s2189_s27 + $0xc0] sm:$0xf]  ;;  %v2034_v53 = vunpack.c.h.bf16 %v2101_v15 }
  0xd3   : > { %1415 = vst.msk [vmem:[%s2337_s24 + $0x10] sm:$0xf] %vm1410_vm1, %v1350_v40  ;;  %v943_v46 = vadd.f32 %v2358_v38, %v774_v41  ;;  %v1254_v50 = vadd.f32 %v2029_v36, %v1021_v44  ;;  %v1799_v36 = vld [vmem:[%s2189_s27 + $0x1e8] sm:$0xf0]  ;;  %v1907_v40 = vld [vmem:[%s2189_s27 + $0xc4] sm:$0xf0] }
  0xd4   : > { %v1802_v41 = vor.u32 %v1942_v35, %v1799_v36  ;;  %v1781_v44 = vld [vmem:[%s2189_s27 + $0x1c0] sm:$0xf]  ;;  %v1654_v51 = vor.u32 %v1907_v40, %v1653_v37 }
  0xd5   : > { %v1223_v55 = vadd.f32 %v1966_v42, %v943_v46  ;;  %v1318_v61 = vmax.f32 %v1254_v50, 0.0  ;;  %v2429_v11 = vpop.f32.mrf.mxu3  ;;  %v1939_v46 = vld [vmem:[%s2189_s27 + $0x1c4] sm:$0xf0] }
  0xd6   : > { %v853_v63 = vpop.f32.mrf.mxu2  ;;  %v2424_v9 = vpop.f32.mrf.mxu1  ;;  %v1782_v57 = vor.u32 %v1939_v46, %v1781_v44 }
  0xd7   : > { %v1287_v62 = vmax.f32 %v1223_v55, 0.0  ;;  %v1382_v38 = vpack.c.bf16 %v1318_v61, %v1318_v61  ;;  %v854_v1 = vadd.f32 %v2317_v60, %v853_v63 }
  0xd8   : > { %v776_v3 = vpop.f32.mrf.mxu0 }
  0xd9   : > { %v1351_v7 = vpack.c.bf16 %v1287_v62, %v1287_v62  ;;  %v777_v8 = vadd.f32 %v2317_v60, %v776_v3  ;;  %1447 = vst.msk [vmem:[%s2337_s24 + $0x90] sm:$0xf] %vm1410_vm1, %v1382_v38  ;;  %v1023_v10 = vadd.f32 %v2342_v19, %v854_v1  ;;  %v2102_v3 = vld [vmem:[%s2307_s18 + $0xa0] sm:$0xff]  }
  0xdb   : > { %1416 = vst.msk [vmem:[%s2337_s24 + $0x14] sm:$0xf] %vm1410_vm1, %v1351_v7  ;;  %v946_v5 = vadd.f32 %v2369_v56, %v777_v8  ;;  %815 = vmatmul.bf16.gmra.mxu0 %v1646_v0  ;;  %v1255_v13 = vadd.f32 %v2030_v2, %v1023_v10  ;;  %895 = vmatmul.bf16.gmra.mxu2 %v1774_v4  ;;  %v1910_v4 = vld [vmem:[%s2189_s27 + $0xe4] sm:$0xf]  ;;  %v1671_v7 = vld [vmem:[%s2189_s27 + $0xe8] sm:$0xf0] }
  0xdd   : > { %v1224_v14 = vadd.f32 %v1969_v49, %v946_v5  ;;  %v1319_v20 = vmax.f32 %v1255_v13, 0.0  ;;  %v2444_v34 = vpop.f32.mrf.mxu3 }
  0xde   : > { %v856_v23 = vpop.f32.mrf.mxu2  ;;  %v2439_v32 = vpop.f32.mrf.mxu1 }
  0xdf   : > { %v1288_v21 = vmax.f32 %v1224_v14, 0.0  ;;  %v1383_v19 = vpack.c.bf16 %v1319_v20, %v1319_v20  ;;  %v857_v25 = vadd.f32 %v2317_v60, %v856_v23  ;;  %v1674_v14 = vor.u32 %v1910_v4, %v1671_v7 }
  0xe0   : > { %v778_v56 = vpop.f32.mrf.mxu0 }
  0xe1   : > { %v1352_v28 = vpack.c.bf16 %v1288_v21, %v1288_v21  ;;  %v779_v29 = vadd.f32 %v2317_v60, %v778_v56  ;;  %1448 = vst.msk [vmem:[%s2337_s24 + $0x94] sm:$0xf] %vm1410_vm1, %v1383_v19  ;;  %v1026_v33 = vadd.f32 %v2360_v39, %v857_v25  ;;  %1860 = vmatmul.msk.bf16.gmra.mxu1 %vm655_vm0, %v1666_v27  ;;  %v2086_v39 = vld [vmem:[%s2307_s18 + $0x20] sm:$0xff]   ;;  %v1944_v19 = vld [vmem:[%s2189_s27 + $0x1f4] sm:$0xf] }
  0xe2   : > { %1877 = vmatmul.msk.bf16.gmra.mxu3 %vm655_vm0, %v1802_v41  ;;  %v1973_v6 = vunpack.c.l.bf16 %v2086_v39  ;;  %v1974_v17 = vunpack.c.h.bf16 %v2086_v39  ;;  %v1807_v25 = vld [vmem:[%s2189_s27 + $0x1f8] sm:$0xf0]  ;;  %v1661_v56 = vld [vmem:[%s2189_s27 + $0xd0] sm:$0xf]  ;;  %v1909_v27 = vld [vmem:[%s2189_s27 + $0xd4] sm:$0xf0]  ;;  %v2038_v41 = vunpack.c.h.bf16 %v2102_v3 }
  0xe3   : > { %1417 = vst.msk [vmem:[%s2337_s24 + $0x18] sm:$0xf] %vm1410_vm1, %v1352_v28  ;;  %v948_v54 = vadd.f32 %v2388_v22, %v779_v29  ;;  %v1256_v18 = vadd.f32 %v2033_v26, %v1026_v33  ;;  %v1810_v28 = vor.u32 %v1944_v19, %v1807_v25  ;;  %v1941_v33 = vld [vmem:[%s2189_s27 + $0x1d4] sm:$0xf0] }
  0xe5   : > { %v1225_v42 = vadd.f32 %v1970_v30, %v948_v54  ;;  %v1320_v47 = vmax.f32 %v1256_v18, 0.0  ;;  %v2468_v38 = vpop.f32.mrf.mxu3  ;;  %v1789_v30 = vld [vmem:[%s2189_s27 + $0x1d0] sm:$0xf] }
  0xe6   : > { %v858_v50 = vpop.f32.mrf.mxu2  ;;  %v2460_v62 = vpop.f32.mrf.mxu1  ;;  %v1790_v44 = vor.u32 %v1941_v33, %v1789_v30 }
  0xe7   : > { %v1289_v48 = vmax.f32 %v1225_v42, 0.0  ;;  %v1384_v22 = vpack.c.bf16 %v1320_v47, %v1320_v47  ;;  %v859_v52 = vadd.f32 %v2317_v60, %v858_v50 }
  0xe8   : > { %v781_v55 = vpop.f32.mrf.mxu0 }
  0xe9   : > { %v1353_v59 = vpack.c.bf16 %v1289_v48, %v1289_v48  ;;  %v782_v61 = vadd.f32 %v2317_v60, %v781_v55  ;;  %1449 = vst.msk [vmem:[%s2337_s24 + $0x98] sm:$0xf] %vm1410_vm1, %v1384_v22  ;;  %v1028_v63 = vadd.f32 %v2372_v58, %v859_v52  ;;  %v1912_v55 = vld [vmem:[%s2189_s27 + $0xf4] sm:$0xf] }
  0xeb   : > { %1418 = vst.msk [vmem:[%s2337_s24 + $0x1c] sm:$0xf] %vm1410_vm1, %v1353_v59  ;;  %v951_v0 = vadd.f32 %v2403_v43, %v782_v61  ;;  %820 = vmatmul.bf16.gmra.mxu0 %v1654_v51  ;;  %v1257_v1 = vadd.f32 %v2034_v53, %v1028_v63  ;;  %900 = vmatmul.bf16.gmra.mxu2 %v1782_v57  ;;  %v2037_v43 = vunpack.c.l.bf16 %v2102_v3  ;;  %v2103_v53 = vld [vmem:[%s2307_s18 + $0xa8] sm:$0xff]   ;;  %v1679_v57 = vld [vmem:[%s2189_s27 + $0xf8] sm:$0xf0] }
  0xed   : > { %v1226_v2 = vadd.f32 %v1973_v6, %v951_v0  ;;  %v1321_v8 = vmax.f32 %v1257_v1, 0.0  ;;  %v2490_v54 = vpop.f32.mrf.mxu3 }
  0xee   : > { %v861_v58 = vpop.f32.mrf.mxu2  ;;  %v2475_v20 = vpop.f32.mrf.mxu1 }
  0xef   : > { %v1290_v49 = vmax.f32 %v1226_v2, 0.0  ;;  %v1385_v10 = vpack.c.bf16 %v1321_v8, %v1321_v8  ;;  %v862_v5 = vadd.f32 %v2317_v60, %v861_v58  ;;  %v1682_v2 = vor.u32 %v1912_v55, %v1679_v57 }
  0xf0   : > { %v783_v13 = vpop.f32.mrf.mxu0 }
  0xf1   : > { %v1354_v15 = vpack.c.bf16 %v1290_v49, %v1290_v49  ;;  %v784_v16 = vadd.f32 %v2317_v60, %v783_v13  ;;  %1450 = vst.msk [vmem:[%s2337_s24 + $0x9c] sm:$0xf] %vm1410_vm1, %v1385_v10  ;;  %v1031_v21 = vadd.f32 %v2393_v24, %v862_v5  ;;  %1861 = vmatmul.msk.bf16.gmra.mxu1 %vm655_vm0, %v1674_v14  ;;  %v2087_v24 = vld [vmem:[%s2307_s18 + $0x28] sm:$0xff]   ;;  %v1669_v5 = vld [vmem:[%s2189_s27 + $0xe0] sm:$0xf] }
  0xf2   : > { %1878 = vmatmul.msk.bf16.gmra.mxu3 %vm655_vm0, %v1810_v28  ;;  %v1977_v39 = vunpack.c.l.bf16 %v2087_v24  ;;  %v1978_v7 = vunpack.c.h.bf16 %v2087_v24  ;;  %v1797_v14 = vld [vmem:[%s2189_s27 + $0x1e0] sm:$0xf] }
  0xf3   : > { %1419 = vst.msk [vmem:[%s2337_s24 + $0x20] sm:$0xf] %vm1410_vm1, %v1354_v15  ;;  %v953_v23 = vadd.f32 %v2424_v9, %v784_v16  ;;  %v1258_v26 = vadd.f32 %v2037_v43, %v1031_v21  ;;  %v1662_v9 = vor.u32 %v1909_v27, %v1661_v56  ;;  %v1911_v43 = vld [vmem:[%s2189_s27 + $0xe4] sm:$0xf0] }
  0xf4   : > { %v1943_v15 = vld [vmem:[%s2189_s27 + $0x1e4] sm:$0xf0]  ;;  %v1670_v19 = vor.u32 %v1911_v43, %v1669_v5 }
  0xf5   : > { %v1227_v29 = vadd.f32 %v1974_v17, %v953_v23  ;;  %v1322_v35 = vmax.f32 %v1258_v26, 0.0  ;;  %v2507_v63 = vpop.f32.mrf.mxu3  ;;  %v2088_v17 = vld [vmem:[%s2307_s18 + $0x30] sm:$0xff]   ;;  %v2042_v26 = vunpack.c.h.bf16 %v2103_v53  ;;  %v1798_v56 = vor.u32 %v1943_v15, %v1797_v14 }
  0xf6   : > { %v863_v18 = vpop.f32.mrf.mxu2  ;;  %v2496_v48 = vpop.f32.mrf.mxu1 }
  0xf7   : > { %v1291_v36 = vmax.f32 %v1227_v29, 0.0  ;;  %v1386_v37 = vpack.c.bf16 %v1322_v35, %v1322_v35  ;;  %v864_v40 = vadd.f32 %v2317_v60, %v863_v18  ;;  %v1981_v29 = vunpack.c.l.bf16 %v2088_v17 }
  0xf8   : > { %v786_v42 = vpop.f32.mrf.mxu0 }
  0xf9   : > { %v1355_v46 = vpack.c.bf16 %v1291_v36, %v1291_v36  ;;  %v787_v47 = vadd.f32 %v2317_v60, %v786_v42  ;;  %1451 = vst.msk [vmem:[%s2337_s24 + $0xa0] sm:$0xf] %vm1410_vm1, %v1386_v37  ;;  %v1033_v50 = vadd.f32 %v2408_v45, %v864_v40  ;;  %v1914_v37 = vld [vmem:[%s2189_s27 + $0x104] sm:$0xf]  ;;  %v1687_v40 = vld [vmem:[%s2189_s27 + $0x108] sm:$0xf0] }
  0xfb   : > { %1420 = vst.msk [vmem:[%s2337_s24 + $0x24] sm:$0xf] %vm1410_vm1, %v1355_v46  ;;  %v956_v51 = vadd.f32 %v2439_v32, %v787_v47  ;;  %825 = vmatmul.bf16.gmra.mxu0 %v1662_v9  ;;  %v1259_v22 = vadd.f32 %v2038_v41, %v1033_v50  ;;  %905 = vmatmul.bf16.gmra.mxu2 %v1790_v44  ;;  %v2041_v32 = vunpack.c.l.bf16 %v2103_v53  ;;  %v2104_v9 = vld [vmem:[%s2307_s18 + $0xb0] sm:$0xff]  }
  0xfc   : > { %v2045_v47 = vunpack.c.l.bf16 %v2104_v9 }
  0xfd   : > { %v1228_v52 = vadd.f32 %v1977_v39, %v956_v51  ;;  %v1323_v59 = vmax.f32 %v1259_v22, 0.0  ;;  %v2529_v33 = vpop.f32.mrf.mxu3  ;;  %v1982_v22 = vunpack.c.h.bf16 %v2088_v17 }
  0xfe   : > { %v866_v6 = vpop.f32.mrf.mxu2  ;;  %v2511_v8 = vpop.f32.mrf.mxu1 }
  0xff   : > { %v1292_v61 = vmax.f32 %v1228_v52, 0.0  ;;  %v1387_v45 = vpack.c.bf16 %v1323_v59, %v1323_v59  ;;  %v867_v0 = vadd.f32 %v2317_v60, %v866_v6  ;;  %v1913_v6 = vld [vmem:[%s2189_s27 + $0xf4] sm:$0xf0] }
 0x100   : > { %v788_v1 = vpop.f32.mrf.mxu0 }
 0x101   : > { %v1356_v3 = vpack.c.bf16 %v1292_v61, %v1292_v61  ;;  %v789_v4 = vadd.f32 %v2317_v60, %v788_v1  ;;  %1452 = vst.msk [vmem:[%s2337_s24 + $0xa4] sm:$0xf] %vm1410_vm1, %v1387_v45  ;;  %v1036_v49 = vadd.f32 %v2429_v11, %v867_v0  ;;  %1862 = vmatmul.msk.bf16.gmra.mxu1 %vm655_vm0, %v1682_v2  ;;  %v1677_v61 = vld [vmem:[%s2189_s27 + $0xf0] sm:$0xf]  ;;  %v2089_v2 = vld [vmem:[%s2307_s18 + $0x38] sm:$0xff]  }
 0x102   : > { %v1805_v0 = vld [vmem:[%s2189_s27 + $0x1f0] sm:$0xf] }
 0x103   : > { %1421 = vst.msk [vmem:[%s2337_s24 + $0x28] sm:$0xf] %vm1410_vm1, %v1356_v3  ;;  %v958_v58 = vadd.f32 %v2460_v62, %v789_v4  ;;  %v1260_v10 = vadd.f32 %v2041_v32, %v1036_v49  ;;  %v1945_v32 = vld [vmem:[%s2189_s27 + $0x1f4] sm:$0xf0]  ;;  %v1678_v4 = vor.u32 %v1913_v6, %v1677_v61  ;;  %v2046_v49 = vunpack.c.h.bf16 %v2104_v9 }
 0x105   : > { %v1229_v13 = vadd.f32 %v1978_v7, %v958_v58  ;;  %v1324_v16 = vmax.f32 %v1260_v10, 0.0  ;;  %v2550_v57 = vpop.f32.mrf.mxu3  ;;  %v1806_v10 = vor.u32 %v1945_v32, %v1805_v0 }
 0x106   : > { %v868_v23 = vpop.f32.mrf.mxu2  ;;  %v2527_v30 = vpop.f32.mrf.mxu1 }
 0x107   : > { %v1293_v21 = vmax.f32 %v1229_v13, 0.0  ;;  %v1388_v11 = vpack.c.bf16 %v1324_v16, %v1324_v16  ;;  %v869_v25 = vadd.f32 %v2317_v60, %v868_v23  ;;  %v1985_v13 = vunpack.c.l.bf16 %v2089_v2  ;;  %v2105_v23 = vld [vmem:[%s2307_s18 + $0xb8] sm:$0xff]  }
 0x108   : > { %v791_v62 = vpop.f32.mrf.mxu0 }
 0x109   : > { %v1357_v27 = vpack.c.bf16 %v1293_v21, %v1293_v21  ;;  %v792_v28 = vadd.f32 %v2317_v60, %v791_v62  ;;  %1453 = vst.msk [vmem:[%s2337_s24 + $0xa8] sm:$0xf] %vm1410_vm1, %v1388_v11  ;;  %v1038_v35 = vadd.f32 %v2444_v34, %v869_v25 }
 0x10b   : > { %1422 = vst.msk [vmem:[%s2337_s24 + $0x2c] sm:$0xf] %vm1410_vm1, %v1357_v27  ;;  %v961_v24 = vadd.f32 %v2475_v20, %v792_v28  ;;  %830 = vmatmul.bf16.gmra.mxu0 %v1670_v19  ;;  %v1261_v36 = vadd.f32 %v2042_v26, %v1038_v35  ;;  %910 = vmatmul.bf16.gmra.mxu2 %v1798_v56  ;;  %v2049_v56 = vunpack.c.l.bf16 %v2105_v23 }
 0x10c   : > { %v1690_v20 = vor.u32 %v1914_v37, %v1687_v40  ;;  %v2090_v40 = vld [vmem:[%s2307_s18 + $0x40] sm:$0xff]  }
 0x10d   : > { %v1230_v18 = vadd.f32 %v1981_v29, %v961_v24  ;;  %v1325_v41 = vmax.f32 %v1261_v36, 0.0  ;;  %v2569_v19 = vpop.f32.mrf.mxu3  ;;  %v1986_v29 = vunpack.c.h.bf16 %v2089_v2 }
 0x10e   : > { %v871_v44 = vpop.f32.mrf.mxu2  ;;  %v2542_v52 = vpop.f32.mrf.mxu1 }
 0x10f   : > { %v1294_v42 = vmax.f32 %v1230_v18, 0.0  ;;  %v1389_v46 = vpack.c.bf16 %v1325_v41, %v1325_v41  ;;  %v872_v34 = vadd.f32 %v2317_v60, %v871_v44 }
 0x110   : > { %v793_v39 = vpop.f32.mrf.mxu0 }
 0x111   : > { %v1358_v50 = vpack.c.bf16 %v1294_v42, %v1294_v42  ;;  %v794_v51 = vadd.f32 %v2317_v60, %v793_v39  ;;  %1454 = vst.msk [vmem:[%s2337_s24 + $0xac] sm:$0xf] %vm1410_vm1, %v1389_v46  ;;  %v1041_v53 = vadd.f32 %v2468_v38, %v872_v34  ;;  %1863 = vmatmul.msk.bf16.gmra.mxu1 %vm655_vm0, %v1690_v20 }
 0x113   : > { %1423 = vst.msk [vmem:[%s2337_s24 + $0x30] sm:$0xf] %vm1410_vm1, %v1358_v50  ;;  %v963_v55 = vadd.f32 %v2496_v48, %v794_v51  ;;  %v1262_v59 = vadd.f32 %v2045_v47, %v1041_v53  ;;  %v2050_v47 = vunpack.c.h.bf16 %v2105_v23 }
 0x115   : > { %v1231_v45 = vadd.f32 %v1982_v22, %v963_v55  ;;  %v1326_v1 = vmax.f32 %v1262_v59, 0.0  ;;  %v2580_v44 = vpop.f32.mrf.mxu3  ;;  %v2106_v59 = vld [vmem:[%s2307_s18 + $0xc0] sm:$0xff]  }
 0x116   : > { %v873_v38 = vpop.f32.mrf.mxu2  ;;  %v2560_v14 = vpop.f32.mrf.mxu1 }
 0x117   : > { %v1295_v3 = vmax.f32 %v1231_v45, 0.0  ;;  %v1390_v7 = vpack.c.bf16 %v1326_v1, %v1326_v1  ;;  %v874_v48 = vadd.f32 %v2317_v60, %v873_v38  ;;  %v2053_v1 = vunpack.c.l.bf16 %v2106_v59 }
 0x118   : > { %v796_v58 = vpop.f32.mrf.mxu0  ;;  %v1990_v38 = vunpack.c.h.bf16 %v2090_v40 }
 0x119   : > { %v1359_v5 = vpack.c.bf16 %v1295_v3, %v1295_v3  ;;  %v797_v43 = vadd.f32 %v2317_v60, %v796_v58  ;;  %1455 = vst.msk [vmem:[%s2337_s24 + $0xb0] sm:$0xf] %vm1410_vm1, %v1390_v7  ;;  %v1043_v15 = vadd.f32 %v2490_v54, %v874_v48 }
 0x11b   : > { %1424 = vst.msk [vmem:[%s2337_s24 + $0x34] sm:$0xf] %vm1410_vm1, %v1359_v5  ;;  %v966_v16 = vadd.f32 %v2511_v8, %v797_v43  ;;  %835 = vmatmul.bf16.gmra.mxu0 %v1678_v4  ;;  %v1263_v17 = vadd.f32 %v2046_v49, %v1043_v15  ;;  %915 = vmatmul.bf16.gmra.mxu2 %v1806_v10  ;;  %v2091_v5 = vld [vmem:[%s2307_s18 + $0x48] sm:$0xff]  }
 0x11d   : > { %v1232_v21 = vadd.f32 %v1985_v13, %v966_v16  ;;  %v1327_v11 = vmax.f32 %v1263_v17, 0.0  ;;  %v2054_v17 = vunpack.c.h.bf16 %v2106_v59 }
 0x11e   : > { %v876_v26 = vpop.f32.mrf.mxu2  ;;  %v975_v35 = vpop.f32.mrf.mxu1 }
 0x11f   : > { %v1296_v25 = vmax.f32 %v1232_v21, 0.0  ;;  %v1391_v62 = vpack.c.bf16 %v1327_v11, %v1327_v11  ;;  %v877_v54 = vadd.f32 %v2317_v60, %v876_v26  ;;  %v1993_v11 = vunpack.c.l.bf16 %v2091_v5 }
 0x120   : > { %v798_v27 = vpop.f32.mrf.mxu0 }
 0x121   : > { %v1360_v28 = vpack.c.bf16 %v1296_v25, %v1296_v25  ;;  %v799_v8 = vadd.f32 %v2317_v60, %v798_v27  ;;  %1456 = vst.msk [vmem:[%s2337_s24 + $0xb4] sm:$0xf] %vm1410_vm1, %v1391_v62  ;;  %v1046_v24 = vadd.f32 %v2507_v63, %v877_v54  ;;  %v2107_v27 = vld [vmem:[%s2307_s18 + $0xc8] sm:$0xff]  }
 0x123   : > { %1425 = vst.msk [vmem:[%s2337_s24 + $0x38] sm:$0xf] %vm1410_vm1, %v1360_v28  ;;  %v968_v36 = vadd.f32 %v2527_v30, %v799_v8  ;;  %v1264_v18 = vadd.f32 %v2049_v56, %v1046_v24  ;;  %v1989_v30 = vunpack.c.l.bf16 %v2090_v40  ;;  %v1994_v40 = vunpack.c.h.bf16 %v2091_v5 }
 0x125   : > { %v1233_v9 = vadd.f32 %v1986_v29, %v968_v36  ;;  %v1328_v37 = vmax.f32 %v1264_v18, 0.0  ;;  %v2057_v18 = vunpack.c.l.bf16 %v2107_v27 }
 0x126   : > { %v878_v42 = vpop.f32.mrf.mxu2  ;;  %v977_v50 = vpop.f32.mrf.mxu1 }
 0x127   : > { %v1297_v41 = vmax.f32 %v1233_v9, 0.0  ;;  %v1392_v46 = vpack.c.bf16 %v1328_v37, %v1328_v37  ;;  %v879_v34 = vadd.f32 %v2317_v60, %v878_v42 }
 0x128   : > { %v801_v63 = vpop.f32.mrf.mxu0 }
 0x129   : > { %v1361_v39 = vpack.c.bf16 %v1297_v41, %v1297_v41  ;;  %v802_v20 = vadd.f32 %v2317_v60, %v801_v63  ;;  %1457 = vst.msk [vmem:[%s2337_s24 + $0xb8] sm:$0xf] %vm1410_vm1, %v1392_v46  ;;  %v1048_v51 = vadd.f32 %v2529_v33, %v879_v34 }
 0x12b   : > { %1426 = vst.msk [vmem:[%s2337_s24 + $0x3c] sm:$0xf] %vm1410_vm1, %v1361_v39  ;;  %v971_v22 = vadd.f32 %v2542_v52, %v802_v20  ;;  %v1265_v53 = vadd.f32 %v2050_v47, %v1048_v51  ;;  %v1057_v52 = vpop.f32.mrf.mxu3  ;;  %v2092_v39 = vld [vmem:[%s2307_s18 + $0x50] sm:$0xff]  }
 0x12c   : > { %v1998_v5 = vunpack.c.h.bf16 %v2092_v39 }
 0x12d   : > { %v1234_v55 = vadd.f32 %v1989_v30, %v971_v22  ;;  %v1329_v61 = vmax.f32 %v1265_v53, 0.0  ;;  %v2058_v53 = vunpack.c.h.bf16 %v2107_v27 }
 0x12e   : > { %v881_v45 = vpop.f32.mrf.mxu2  ;;  %v980_v4 = vpop.f32.mrf.mxu1 }
 0x12f   : > { %v1298_v6 = vmax.f32 %v1234_v55, 0.0  ;;  %v1393_v0 = vpack.c.bf16 %v1329_v61, %v1329_v61  ;;  %v882_v32 = vadd.f32 %v2317_v60, %v881_v45  ;;  %v1997_v61 = vunpack.c.l.bf16 %v2092_v39 }
 0x130   : > { %v803_v2 = vpop.f32.mrf.mxu0 }
 0x131   : > { %v1362_v3 = vpack.c.bf16 %v1298_v6, %v1298_v6  ;;  %v804_v33 = vadd.f32 %v2317_v60, %v803_v2  ;;  %1458 = vst.msk [vmem:[%s2337_s24 + $0xbc] sm:$0xf] %vm1410_vm1, %v1393_v0  ;;  %v1051_v7 = vadd.f32 %v2550_v57, %v882_v32 }
 0x133   : > { %1427 = vst.msk [vmem:[%s2337_s24 + $0x40] sm:$0xf] %vm1410_vm1, %v1362_v3  ;;  %v973_v48 = vadd.f32 %v2560_v14, %v804_v33  ;;  %v1266_v49 = vadd.f32 %v2053_v1, %v1051_v7  ;;  %v1060_v62 = vpop.f32.mrf.mxu3  ;;  %v2108_v1 = vld [vmem:[%s2307_s18 + $0xd0] sm:$0xff]  }
 0x135   : > { %v1235_v58 = vadd.f32 %v1990_v38, %v973_v48  ;;  %v1330_v10 = vmax.f32 %v1266_v49, 0.0  ;;  %v2061_v49 = vunpack.c.l.bf16 %v2108_v1 }
 0x136   : > { %v883_v13 = vpop.f32.mrf.mxu2  ;;  %v982_v25 = vpop.f32.mrf.mxu1 }
 0x137   : > { %v1299_v43 = vmax.f32 %v1235_v58, 0.0  ;;  %v1394_v15 = vpack.c.bf16 %v1330_v10, %v1330_v10  ;;  %v884_v16 = vadd.f32 %v2317_v60, %v883_v13 }
 0x138   : > { %v806_v21 = vpop.f32.mrf.mxu0 }
 0x139   : > { %v1363_v23 = vpack.c.bf16 %v1299_v43, %v1299_v43  ;;  %v807_v57 = vadd.f32 %v2317_v60, %v806_v21  ;;  %1459 = vst.msk [vmem:[%s2337_s24 + $0xc0] sm:$0xf] %vm1410_vm1, %v1394_v15  ;;  %v1053_v14 = vadd.f32 %v2569_v19, %v884_v16  ;;  %v2093_v21 = vld [vmem:[%s2307_s18 + $0x58] sm:$0xff]  }
 0x13a   : > { %v2001_v27 = vunpack.c.l.bf16 %v2093_v21 }
 0x13b   : > { %1428 = vst.msk [vmem:[%s2337_s24 + $0x44] sm:$0xf] %vm1410_vm1, %v1363_v23  ;;  %v976_v26 = vadd.f32 %v975_v35, %v807_v57  ;;  %v1267_v54 = vadd.f32 %v2054_v17, %v1053_v14  ;;  %v1062_v47 = vpop.f32.mrf.mxu3 }
 0x13d   : > { %v1236_v56 = vadd.f32 %v1993_v11, %v976_v26  ;;  %v1331_v28 = vmax.f32 %v1267_v54, 0.0  ;;  %v2062_v26 = vunpack.c.h.bf16 %v2108_v1 }
 0x13e   : > { %v886_v29 = vpop.f32.mrf.mxu2  ;;  %v985_v35 = vpop.f32.mrf.mxu1 }
 0x13f   : > { %v1300_v8 = vmax.f32 %v1236_v56, 0.0  ;;  %v1395_v24 = vpack.c.bf16 %v1331_v28, %v1331_v28  ;;  %v887_v36 = vadd.f32 %v2317_v60, %v886_v29 }
 0x140   : > { %v808_v9 = vpop.f32.mrf.mxu0 }
 0x141   : > { %v1364_v37 = vpack.c.bf16 %v1300_v8, %v1300_v8  ;;  %v809_v19 = vadd.f32 %v2317_v60, %v808_v9  ;;  %1460 = vst.msk [vmem:[%s2337_s24 + $0xc4] sm:$0xf] %vm1410_vm1, %v1395_v24  ;;  %v1056_v41 = vadd.f32 %v2580_v44, %v887_v36 }
 0x143   : > { %1429 = vst.msk [vmem:[%s2337_s24 + $0x48] sm:$0xf] %vm1410_vm1, %v1364_v37  ;;  %v978_v42 = vadd.f32 %v977_v50, %v809_v19  ;;  %v1268_v46 = vadd.f32 %v2057_v18, %v1056_v41  ;;  %v1065_v38 = vpop.f32.mrf.mxu3  ;;  %v2109_v18 = vld [vmem:[%s2307_s18 + $0xd8] sm:$0xff]  }
 0x145   : > { %v1237_v34 = vadd.f32 %v1994_v40, %v978_v42  ;;  %v1332_v63 = vmax.f32 %v1268_v46, 0.0  ;;  %v2065_v42 = vunpack.c.l.bf16 %v2109_v18 }
 0x146   : > { %v888_v30 = vpop.f32.mrf.mxu2  ;;  %v987_v50 = vpop.f32.mrf.mxu1 }
 0x147   : > { %v1301_v20 = vmax.f32 %v1237_v34, 0.0  ;;  %v1396_v51 = vpack.c.bf16 %v1332_v63, %v1332_v63  ;;  %v889_v22 = vadd.f32 %v2317_v60, %v888_v30 }
 0x148   : > { %v811_v55 = vpop.f32.mrf.mxu0 }
 0x149   : > { %v1365_v59 = vpack.c.bf16 %v1301_v20, %v1301_v20  ;;  %v812_v44 = vadd.f32 %v2317_v60, %v811_v55  ;;  %1461 = vst.msk [vmem:[%s2337_s24 + $0xc8] sm:$0xf] %vm1410_vm1, %v1396_v51  ;;  %v1058_v6 = vadd.f32 %v1057_v52, %v889_v22  ;;  %v2094_v55 = vld [vmem:[%s2307_s18 + $0x60] sm:$0xff]  }
 0x14b   : > { %1430 = vst.msk [vmem:[%s2337_s24 + $0x4c] sm:$0xf] %vm1410_vm1, %v1365_v59  ;;  %v981_v45 = vadd.f32 %v980_v4, %v812_v44  ;;  %v1269_v0 = vadd.f32 %v2058_v53, %v1058_v6 }
 0x14d   : > { %v1238_v32 = vadd.f32 %v1997_v61, %v981_v45  ;;  %v1333_v2 = vmax.f32 %v1269_v0, 0.0  ;;  %v2066_v45 = vunpack.c.h.bf16 %v2109_v18 }
 0x14e   : > { %v891_v33 = vpop.f32.mrf.mxu2  ;;  %v990_v4 = vpop.f32.mrf.mxu1 }
 0x14f   : > { %v1302_v3 = vmax.f32 %v1238_v32, 0.0  ;;  %v1397_v7 = vpack.c.bf16 %v1333_v2, %v1333_v2  ;;  %v892_v48 = vadd.f32 %v2317_v60, %v891_v33  ;;  %v2005_v2 = vunpack.c.l.bf16 %v2094_v55 }
 0x150   : > { %v813_v58 = vpop.f32.mrf.mxu0 }
 0x151   : > { %v1366_v10 = vpack.c.bf16 %v1302_v3, %v1302_v3  ;;  %v814_v52 = vadd.f32 %v2317_v60, %v813_v58  ;;  %1462 = vst.msk [vmem:[%s2337_s24 + $0xcc] sm:$0xf] %vm1410_vm1, %v1397_v7  ;;  %v1061_v43 = vadd.f32 %v1060_v62, %v892_v48  ;;  %v2110_v48 = vld [vmem:[%s2307_s18 + $0xe0] sm:$0xff]  }
 0x153   : > { %1431 = vst.msk [vmem:[%s2337_s24 + $0x50] sm:$0xf] %vm1410_vm1, %v1366_v10  ;;  %v983_v13 = vadd.f32 %v982_v25, %v814_v52  ;;  %v1270_v15 = vadd.f32 %v2061_v49, %v1061_v43  ;;  %v1067_v25 = vpop.f32.mrf.mxu3 }
 0x155   : > { %v1239_v16 = vadd.f32 %v1998_v5, %v983_v13  ;;  %v1334_v17 = vmax.f32 %v1270_v15, 0.0  ;;  %v2069_v13 = vunpack.c.l.bf16 %v2110_v48 }
 0x156   : > { %v893_v57 = vpop.f32.mrf.mxu2  ;;  %v992_v28 = vpop.f32.mrf.mxu1 }
 0x157   : > { %v1303_v23 = vmax.f32 %v1239_v16, 0.0  ;;  %v1398_v11 = vpack.c.bf16 %v1334_v17, %v1334_v17  ;;  %v894_v14 = vadd.f32 %v2317_v60, %v893_v57 }
 0x158   : > { %v816_v54 = vpop.f32.mrf.mxu0 }
 0x159   : > { %v1367_v56 = vpack.c.bf16 %v1303_v23, %v1303_v23  ;;  %v817_v62 = vadd.f32 %v2317_v60, %v816_v54  ;;  %1463 = vst.msk [vmem:[%s2337_s24 + $0xd0] sm:$0xf] %vm1410_vm1, %v1398_v11  ;;  %v1063_v8 = vadd.f32 %v1062_v47, %v894_v14  ;;  %v2640_v60 = vld [vmem:[%s2734_s2] ss:$0 sm:$0xff]  ;;  %v2002_v47 = vunpack.c.h.bf16 %v2093_v21  ;;  %v2095_v54 = vld [vmem:[%s2307_s18 + $0x68] sm:$0xff]  }
 0x15a   : > { %v2006_v21 = vunpack.c.h.bf16 %v2094_v55 }
 0x15b   : > { %1432 = vst.msk [vmem:[%s2337_s24 + $0x54] sm:$0xf] %vm1410_vm1, %v1367_v56  ;;  %v986_v29 = vadd.f32 %v985_v35, %v817_v62  ;;  %v1271_v24 = vadd.f32 %v2062_v26, %v1063_v8  ;;  %v1070_v30 = vpop.f32.mrf.mxu3 }
 0x15d   : > { %v1240_v36 = vadd.f32 %v2001_v27, %v986_v29  ;;  %v1335_v9 = vmax.f32 %v1271_v24, 0.0  ;;  %v2070_v29 = vunpack.c.h.bf16 %v2110_v48 }
 0x15e   : > { %v896_v19 = vpop.f32.mrf.mxu2  ;;  %v995_v63 = vpop.f32.mrf.mxu1 }
 0x15f   : > { %v1304_v37 = vmax.f32 %v1240_v36, 0.0  ;;  %v1399_v40 = vpack.c.bf16 %v1335_v9, %v1335_v9  ;;  %v897_v41 = vadd.f32 %v2640_v60, %v896_v19  ;;  %v2009_v9 = vunpack.c.l.bf16 %v2095_v54 }
 0x160   : > { %v818_v46 = vpop.f32.mrf.mxu0 }
 0x161   : > { %v1368_v35 = vpack.c.bf16 %v1304_v37, %v1304_v37  ;;  %v819_v34 = vadd.f32 %v2640_v60, %v818_v46  ;;  %1464 = vst.msk [vmem:[%s2337_s24 + $0xd4] sm:$0xf] %vm1410_vm1, %v1399_v40  ;;  %v1066_v39 = vadd.f32 %v1065_v38, %v897_v41 }
 0x163   : > { %1433 = vst.msk [vmem:[%s2337_s24 + $0x58] sm:$0xf] %vm1410_vm1, %v1368_v35  ;;  %v988_v20 = vadd.f32 %v987_v50, %v819_v34  ;;  %v1272_v51 = vadd.f32 %v2065_v42, %v1066_v39  ;;  %v1072_v49 = vpop.f32.mrf.mxu3  ;;  %v2111_v42 = vld [vmem:[%s2307_s18 + $0xe8] sm:$0xff]  }
 0x165   : > { %v1241_v22 = vadd.f32 %v2002_v47, %v988_v20  ;;  %v1336_v53 = vmax.f32 %v1272_v51, 0.0  ;;  %v2073_v20 = vunpack.c.l.bf16 %v2111_v42 }
 0x166   : > { %v898_v44 = vpop.f32.mrf.mxu2  ;;  %v997_v50 = vpop.f32.mrf.mxu1 }
 0x167   : > { %v1305_v59 = vmax.f32 %v1241_v22, 0.0  ;;  %v1400_v61 = vpack.c.bf16 %v1336_v53, %v1336_v53  ;;  %v899_v6 = vadd.f32 %v2640_v60, %v898_v44  ;;  %v2010_v53 = vunpack.c.h.bf16 %v2095_v54 }
 0x168   : > { %v821_v0 = vpop.f32.mrf.mxu0 }
 0x169   : > { %v1369_v32 = vpack.c.bf16 %v1305_v59, %v1305_v59  ;;  %v822_v1 = vadd.f32 %v2640_v60, %v821_v0  ;;  %1465 = vst.msk [vmem:[%s2337_s24 + $0xd8] sm:$0xf] %vm1410_vm1, %v1400_v61  ;;  %v1068_v3 = vadd.f32 %v1067_v25, %v899_v6  ;;  %v2096_v0 = vld [vmem:[%s2307_s18 + $0x70] sm:$0xff]  }
 0x16b   : > { %1434 = vst.msk [vmem:[%s2337_s24 + $0x5c] sm:$0xf] %vm1410_vm1, %v1369_v32  ;;  %v991_v33 = vadd.f32 %v990_v4, %v822_v1  ;;  %v1273_v38 = vadd.f32 %v2066_v45, %v1068_v3  ;;  %v1075_v27 = vpop.f32.mrf.mxu3 }
 0x16d   : > { %v1242_v7 = vadd.f32 %v2005_v2, %v991_v33  ;;  %v1337_v58 = vmax.f32 %v1273_v38, 0.0  ;;  %v2074_v33 = vunpack.c.h.bf16 %v2111_v42 }
 0x16e   : > { %v901_v52 = vpop.f32.mrf.mxu2  ;;  %v1000_v4 = vpop.f32.mrf.mxu1 }
 0x16f   : > { %v1306_v10 = vmax.f32 %v1242_v7, 0.0  ;;  %v1401_v5 = vpack.c.bf16 %v1337_v58, %v1337_v58  ;;  %v902_v43 = vadd.f32 %v2640_v60, %v901_v52 }
 0x170   : > { %v823_v15 = vpop.f32.mrf.mxu0 }
 0x171   : > { %v1370_v16 = vpack.c.bf16 %v1306_v10, %v1306_v10  ;;  %v824_v17 = vadd.f32 %v2640_v60, %v823_v15  ;;  %1466 = vst.msk [vmem:[%s2337_s24 + $0xdc] sm:$0xf] %vm1410_vm1, %v1401_v5  ;;  %v1071_v23 = vadd.f32 %v1070_v30, %v902_v43  ;;  %v2098_v15 = vld [vmem:[%s2307_s18 + $0x80] sm:$0xff]  }
 0x172   : > { %v2021_v54 = vunpack.c.l.bf16 %v2098_v15 }
 0x173   : > { %1435 = vst.msk [vmem:[%s2337_s24 + $0x60] sm:$0xf] %vm1410_vm1, %v1370_v16  ;;  %v993_v57 = vadd.f32 %v992_v28, %v824_v17  ;;  %v1274_v11 = vadd.f32 %v2069_v13, %v1071_v23  ;;  %v2112_v13 = vld [vmem:[%s2307_s18 + $0xf0] sm:$0xff]   ;;  %v842_v17 = vadd.f32 %v2640_v60, %v2330_v12 }
 0x175   : > { %v1243_v14 = vadd.f32 %v2006_v21, %v993_v57  ;;  %v1338_v26 = vmax.f32 %v1274_v11, 0.0 }
 0x176   : > { %v903_v62 = vpop.f32.mrf.mxu2  ;;  %v2665_v28 = vpop.f32.mrf.mxu1 }
 0x177   : > { %v1307_v56 = vmax.f32 %v1243_v14, 0.0  ;;  %v1402_v25 = vpack.c.bf16 %v1338_v26, %v1338_v26  ;;  %v904_v8 = vadd.f32 %v2640_v60, %v903_v62  ;;  %v2077_v14 = vunpack.c.l.bf16 %v2112_v13 }
 0x178   : > { %v826_v24 = vpop.f32.mrf.mxu0  ;;  %v2014_v62 = vunpack.c.h.bf16 %v2096_v0 }
 0x179   : > { %v1371_v36 = vpack.c.bf16 %v1307_v56, %v1307_v56  ;;  %v827_v18 = vadd.f32 %v2640_v60, %v826_v24  ;;  %1467 = vst.msk [vmem:[%s2337_s24 + $0xe0] sm:$0xf] %vm1410_vm1, %v1402_v25  ;;  %v1073_v37 = vadd.f32 %v1072_v49, %v904_v8  ;;  %v2013_v49 = vunpack.c.l.bf16 %v2096_v0 }
 0x17b   : > { %1436 = vst.msk [vmem:[%s2337_s24 + $0x64] sm:$0xf] %vm1410_vm1, %v1371_v36  ;;  %v996_v19 = vadd.f32 %v995_v63, %v827_v18  ;;  %v1275_v40 = vadd.f32 %v2070_v29, %v1073_v37  ;;  %v1077_v63 = vpop.f32.mrf.mxu3 }
 0x17d   : > { %v1244_v41 = vadd.f32 %v2009_v9, %v996_v19  ;;  %v1339_v46 = vmax.f32 %v1275_v40, 0.0  ;;  %v2097_v19 = vld [vmem:[%s2307_s18 + $0x78] sm:$0xff]   ;;  %v844_v40 = vadd.f32 %v2640_v60, %v2354_v31 }
 0x17e   : > { %v906_v34 = vpop.f32.mrf.mxu2  ;;  %v2674_v55 = vpop.f32.mrf.mxu1 }
 0x17f   : > { %v1308_v35 = vmax.f32 %v1244_v41, 0.0  ;;  %v1403_v47 = vpack.c.bf16 %v1339_v46, %v1339_v46  ;;  %v907_v39 = vadd.f32 %v2640_v60, %v906_v34  ;;  %v2078_v46 = vunpack.c.h.bf16 %v2112_v13 }
 0x180   : > { %v828_v30 = vpop.f32.mrf.mxu0 }
 0x181   : > { %v1372_v51 = vpack.c.bf16 %v1308_v35, %v1308_v35  ;;  %v829_v22 = vadd.f32 %v2640_v60, %v828_v30  ;;  %1468 = vst.msk [vmem:[%s2337_s24 + $0xe4] sm:$0xf] %vm1410_vm1, %v1403_v47  ;;  %v1076_v59 = vadd.f32 %v1075_v27, %v907_v39  ;;  %v2022_v39 = vunpack.c.h.bf16 %v2098_v15 }
 0x183   : > { %1437 = vst.msk [vmem:[%s2337_s24 + $0x68] sm:$0xf] %vm1410_vm1, %v1372_v51  ;;  %v998_v44 = vadd.f32 %v997_v50, %v829_v22  ;;  %v1276_v61 = vadd.f32 %v2073_v20, %v1076_v59  ;;  %v1080_v52 = vpop.f32.mrf.mxu3  ;;  %v2017_v51 = vunpack.c.l.bf16 %v2097_v19 }
 0x185   : > { %v1245_v6 = vadd.f32 %v2010_v53, %v998_v44  ;;  %v1340_v45 = vmax.f32 %v1276_v61, 0.0 }
 0x186   : > { %v908_v1 = vpop.f32.mrf.mxu2  ;;  %v2683_v58 = vpop.f32.mrf.mxu1 }
 0x187   : > { %v1309_v32 = vmax.f32 %v1245_v6, 0.0  ;;  %v1404_v2 = vpack.c.bf16 %v1340_v45, %v1340_v45  ;;  %v909_v3 = vadd.f32 %v2640_v60, %v908_v1  ;;  %v2113_v6 = vld [vmem:[%s2307_s18 + $0xf8] sm:$0xff]  }
 0x188   : > { %v831_v38 = vpop.f32.mrf.mxu0 }
 0x189   : > { %v1373_v7 = vpack.c.bf16 %v1309_v32, %v1309_v32  ;;  %v832_v48 = vadd.f32 %v2640_v60, %v831_v38  ;;  %1469 = vst.msk [vmem:[%s2337_s24 + $0xe8] sm:$0xf] %vm1410_vm1, %v1404_v2  ;;  %v1078_v50 = vadd.f32 %v1077_v63, %v909_v3 }
 0x18b   : > { %1438 = vst.msk [vmem:[%s2337_s24 + $0x6c] sm:$0xf] %vm1410_vm1, %v1373_v7  ;;  %v1001_v10 = vadd.f32 %v1000_v4, %v832_v48  ;;  %v1277_v5 = vadd.f32 %v2074_v33, %v1078_v50  ;;  %v1082_v18 = vpop.f32.mrf.mxu3  ;;  %v2081_v7 = vunpack.c.l.bf16 %v2113_v6  ;;  %v2018_v50 = vunpack.c.h.bf16 %v2097_v19 }
 0x18d   : > { %v1246_v43 = vadd.f32 %v2013_v49, %v1001_v10  ;;  %v1341_v16 = vmax.f32 %v1277_v5, 0.0 }
 0x18e   : > { %v911_v23 = vpop.f32.mrf.mxu2  ;;  %v1010_v27 = vpop.f32.mrf.mxu1 }
 0x18f   : > { %v1310_v21 = vmax.f32 %v1246_v43, 0.0  ;;  %v1405_v57 = vpack.c.bf16 %v1341_v16, %v1341_v16  ;;  %v912_v11 = vadd.f32 %v2640_v60, %v911_v23  ;;  %v1011_v8 = vadd.f32 %v1010_v27, %v842_v17 }
 0x190   : > { %v833_v26 = vpop.f32.mrf.mxu0  ;;  %v2082_v23 = vunpack.c.h.bf16 %v2113_v6 }
 0x191   : > { %v1374_v4 = vpack.c.bf16 %v1310_v21, %v1310_v21  ;;  %v834_v56 = vadd.f32 %v2640_v60, %v833_v26  ;;  %1470 = vst.msk [vmem:[%s2337_s24 + $0xec] sm:$0xf] %vm1410_vm1, %v1405_v57  ;;  %v1081_v25 = vadd.f32 %v1080_v52, %v912_v11  ;;  %v1250_v24 = vadd.f32 %v2021_v54, %v1011_v8 }
 0x193   : > { %1439 = vst.msk [vmem:[%s2337_s24 + $0x70] sm:$0xf] %vm1410_vm1, %v1374_v4  ;;  %v1003_v12 = vadd.f32 %v2665_v28, %v834_v56  ;;  %v1278_v29 = vadd.f32 %v2077_v14, %v1081_v25  ;;  %v1314_v37 = vmax.f32 %v1250_v24, 0.0  ;;  %v1085_v1 = vpop.f32.mrf.mxu3 }
 0x195   : > { %v1247_v36 = vadd.f32 %v2014_v62, %v1003_v12  ;;  %v1342_v9 = vmax.f32 %v1278_v29, 0.0  ;;  %v1378_v34 = vpack.c.bf16 %v1314_v37, %v1314_v37 }
 0x196   : > { %v913_v42 = vpop.f32.mrf.mxu2  ;;  %v1012_v22 = vpop.f32.mrf.mxu1 }
 0x197   : > { %v1311_v41 = vmax.f32 %v1247_v36, 0.0  ;;  %v1406_v35 = vpack.c.bf16 %v1342_v9, %v1342_v9  ;;  %v914_v28 = vadd.f32 %v2640_v60, %v913_v42  ;;  %v1013_v53 = vadd.f32 %v1012_v22, %v844_v40  ;;  %1443 = vst.msk [vmem:[%s2337_s24 + $0x80] sm:$0xf] %vm1410_vm1, %v1378_v34 }
 0x198   : > { %v836_v47 = vpop.f32.mrf.mxu0 }
 0x199   : > { %v1375_v20 = vpack.c.bf16 %v1311_v41, %v1311_v41  ;;  %v837_v30 = vadd.f32 %v2640_v60, %v836_v47  ;;  %1471 = vst.msk [vmem:[%s2337_s24 + $0xf0] sm:$0xf] %vm1410_vm1, %v1406_v35  ;;  %v1083_v31 = vadd.f32 %v1082_v18, %v914_v28  ;;  %v1251_v44 = vadd.f32 %v2022_v39, %v1013_v53 }
 0x19b   : > { %1440 = vst.msk [vmem:[%s2337_s24 + $0x74] sm:$0xf] %vm1410_vm1, %v1375_v20  ;;  %v1006_v63 = vadd.f32 %v2674_v55, %v837_v30  ;;  %v1279_v59 = vadd.f32 %v2078_v46, %v1083_v31  ;;  %v1315_v0 = vmax.f32 %v1251_v44, 0.0  ;;  %v1087_v11 = vpop.f32.mrf.mxu3 }
 0x19d   : > { %v1248_v61 = vadd.f32 %v2017_v51, %v1006_v63  ;;  %v1343_v45 = vmax.f32 %v1279_v59, 0.0  ;;  %v1379_v33 = vpack.c.bf16 %v1315_v0, %v1315_v0 }
 0x19e   : > { %v916_v2 = vpop.f32.mrf.mxu2 }
 0x19f   : > { %v1312_v32 = vmax.f32 %v1248_v61, 0.0  ;;  %v1407_v3 = vpack.c.bf16 %v1343_v45, %v1343_v45  ;;  %v917_v38 = vadd.f32 %v2640_v60, %v916_v2  ;;  %1444 = vst.msk [vmem:[%s2337_s24 + $0x84] sm:$0xf] %vm1410_vm1, %v1379_v33 }
 0x1a0   : > { %v838_v55 = vpop.f32.mrf.mxu0 }
 0x1a1   : > { %v1376_v48 = vpack.c.bf16 %v1312_v32, %v1312_v32  ;;  %v839_v49 = vadd.f32 %v2640_v60, %v838_v55  ;;  %1472 = vst.msk [vmem:[%s2337_s24 + $0xf4] sm:$0xf] %vm1410_vm1, %v1407_v3  ;;  %v1086_v10 = vadd.f32 %v1085_v1, %v917_v38 }
 0x1a3   : > { %1441 = vst.msk [vmem:[%s2337_s24 + $0x78] sm:$0xf] %vm1410_vm1, %v1376_v48  ;;  %v1008_v52 = vadd.f32 %v2683_v58, %v839_v49  ;;  %v1280_v5 = vadd.f32 %v2081_v7, %v1086_v10 }
 0x1a5   : > { %v1249_v43 = vadd.f32 %v2018_v50, %v1008_v52  ;;  %v1344_v13 = vmax.f32 %v1280_v5, 0.0 }
 0x1a6   : > { %v918_v16 = vpop.f32.mrf.mxu2 }
 0x1a7   : > { %v1313_v15 = vmax.f32 %v1249_v43, 0.0  ;;  %v1408_v17 = vpack.c.bf16 %v1344_v13, %v1344_v13  ;;  %v919_v21 = vadd.f32 %v2640_v60, %v918_v16 }
 0x1a9   : > { %v1377_v57 = vpack.c.bf16 %v1313_v15, %v1313_v15  ;;  %1473 = vst.msk [vmem:[%s2337_s24 + $0xf8] sm:$0xf] %vm1410_vm1, %v1408_v17  ;;  %v1088_v14 = vadd.f32 %v1087_v11, %v919_v21 }
 0x1ab   : > { %1442 = vst.msk [vmem:[%s2337_s24 + $0x7c] sm:$0xf] %vm1410_vm1, %v1377_v57  ;;  %v1281_v58 = vadd.f32 %v2082_v23, %v1088_v14 }
 0x1ad   : > { %v1345_v26 = vmax.f32 %v1281_v58, 0.0 }
 0x1af   : > { %v1409_v54 = vpack.c.bf16 %v1345_v26, %v1345_v26 }
 0x1b1   : > { %1474 = vst.msk [vmem:[%s2337_s24 + $0xfc] sm:$0xf] %vm1410_vm1, %v1409_v54 }
 0x1b2 PF: > { %s14_s15 = sadd.s32 1, %s2139_s15  }
 0x1b3   : > { %p11_p4 = scmp.ge.s32.totalorder %s14_s15, 6  }
 0x1b5   :  { %13 = sbr.rel (!%p11_p4) target bundleno = 1 (0x1), region = 69 }

// kernel: finetune_net_wa_forward.43
= control target key start
LH: loop header
LB: loop body
LE: loop exit
PB: predicated region body
PF: predicated region fallthrough
CT: control target
= control target key end

     0   :  { %s1090_s12 = smov 0   ;;  %s1329_s0 = inlined_call_operand.vmem [shape: bf16[512,144], index: 0, kind: input, shape index: {}]   ;;  %s1330_s1 = inlined_call_operand.vmem [shape: bf16[144,32], index: 1, kind: input, shape index: {}]   ;;  %s1331_s2 = inlined_call_operand.vmem [shape: f32[1,32], index: 2, kind: input, shape index: {}]   ;;  %s1332_s3 = inlined_call_operand.vmem [shape: bf16[512,32], index: 3, kind: output, shape index: {}]  }
   0x1 LB: > { %s810_s13 = sadd.s32 4294967295, %s1068_s12   ;;  %p814_p0 = scmp.ge.s32.totalorder %s1068_s12, 1  ;;  %s1068_s12 = sphi %s1090_s12, %s13_s12  }
   0x2   : > { %p139_p1 = scmp.lt.s32.totalorder %s1068_s12, 3 }
   0x4   : > { %p140_p2 = pnand %p814_p0, %p139_p1 }
   0x5   : > { %s815_s18 = sshll.u32 (!%p140_p2), %s810_s13, 5 }
   0x6   : > { %143 = sbr.rel (%p140_p2) target bundleno = 304 (0x130), region = 32  ;;  %p165_p3 = scmp.lt.s32.totalorder (!%p140_p2), %s815_s18, 63 }
   0xb   : > { %v1042_v0 = vld [vmem:[%s1330_s1 + $0x38] sm:$0xff]  ;;  %v1043_v1 = vld [vmem:[%s1330_s1 + $0x40] sm:$0xff]  ;;  %v1041_v2 = vld [vmem:[%s1330_s1 + $0x30] sm:$0xff]  ;;  %s1334_s18 = smov (!%p165_p3, %s815_s18), 63  ;;  %vm430_vm0 = vcmask 130048   ;;  %vm721_vm1 = vcmask 257024  }
   0xc   : > { %479 = vmatpush.bf16.msra.mxu0 %v1042_v0  ;;  %1044 = vmatpush.bf16.msra.mxu2 %v1042_v0  ;;  %s1002_s21 = sshll.u32 %s1334_s18, 3  ;;  %v1040_v3 = vld [vmem:[%s1330_s1 + $0x28] sm:$0xff]  ;;  %v1039_v7 = vld [vmem:[%s1330_s1 + $0x20] sm:$0xff]  ;;  %v1038_v11 = vld [vmem:[%s1330_s1 + $0x18] sm:$0xff]  ;;  %s819_s13 = sshll.u32 %s1334_s18, 2 }
   0xd   : > { %575 = vmatpush.bf16.msra.mxu1 %v1043_v1  ;;  %1052 = vmatpush.bf16.msra.mxu3 %v1043_v1  ;;  %s1113_s24 = scalar_lea.vmem %s1329_s0, %s1002_s21  ;;  %v1037_v12 = vld [vmem:[%s1330_s1 + $0x10] sm:$0xff]  ;;  %v1036_v16 = vld [vmem:[%s1330_s1 + $0x8] sm:$0xff]  ;;  %v1035_v19 = vld [vmem:[%s1330_s1] sm:$0xff]  ;;  %s1223_s16 = scalar_lea.vmem %s1332_s3, %s819_s13 }
   0xe   : > { %v1003_v4 = vld [vmem:[%s1113_s24 + $0x4] sm:$0xf]  ;;  %v824_v5 = vld [vmem:[%s1113_s24 + $0x8] sm:$0xf0]  ;;  %v1021_v8 = vld [vmem:[%s1113_s24 + $0x94] sm:$0xf] }
   0xf   : > { %v827_v6 = vor.u32 %v1003_v4, %v824_v5  ;;  %v896_v9 = vld [vmem:[%s1113_s24 + $0x98] sm:$0xf0]  ;;  %v1005_v13 = vld [vmem:[%s1113_s24 + $0x14] sm:$0xf]  ;;  %v1023_v17 = vld [vmem:[%s1113_s24 + $0xa4] sm:$0xf] }
  0x10   : > { %480 = vmatpush.bf16.msra.mxu0 %v1041_v2  ;;  %1045 = vmatpush.bf16.msra.mxu2 %v1041_v2  ;;  %v899_v10 = vor.u32 %v1021_v8, %v896_v9  ;;  %v832_v14 = vld [vmem:[%s1113_s24 + $0x18] sm:$0xf0]  ;;  %v904_v18 = vld [vmem:[%s1113_s24 + $0xa8] sm:$0xf0]  ;;  %v822_v20 = vld [vmem:[%s1113_s24] sm:$0xf] }
  0x11   : > { %984 = vmatmul.msk.bf16.vlgmr.msra.gmra.mxu1 %vm430_vm0, %v827_v6  ;;  %v835_v15 = vor.u32 %v1005_v13, %v832_v14  ;;  %v1004_v21 = vld [vmem:[%s1113_s24 + $0x4] sm:$0xf0]  ;;  %v907_v22 = vor.u32 %v1023_v17, %v904_v18  ;;  %v886_v23 = vld [vmem:[%s1113_s24 + $0x80] sm:$0xf]  ;;  %v1007_v27 = vld [vmem:[%s1113_s24 + $0x24] sm:$0xf] }
  0x12   : > { %993 = vmatmul.msk.bf16.vlgmr.msra.gmra.mxu3 %vm430_vm0, %v899_v10  ;;  %v1020_v24 = vld [vmem:[%s1113_s24 + $0x84] sm:$0xf0]  ;;  %v823_v25 = vor.u32 %v1004_v21, %v822_v20  ;;  %v840_v28 = vld [vmem:[%s1113_s24 + $0x28] sm:$0xf0]  ;;  %v1025_v30 = vld [vmem:[%s1113_s24 + $0xb4] sm:$0xf] }
  0x13   : > { %v887_v26 = vor.u32 %v1020_v24, %v886_v23  ;;  %v843_v29 = vor.u32 %v1007_v27, %v840_v28  ;;  %v912_v31 = vld [vmem:[%s1113_s24 + $0xb8] sm:$0xf0]  ;;  %v830_v32 = vld [vmem:[%s1113_s24 + $0x10] sm:$0xf]  ;;  %v1006_v33 = vld [vmem:[%s1113_s24 + $0x14] sm:$0xf0] }
  0x14   : > { %481 = vmatpush.bf16.msra.mxu0 %v1040_v3  ;;  %1046 = vmatpush.bf16.msra.mxu2 %v1040_v3  ;;  %v915_v34 = vor.u32 %v1025_v30, %v912_v31  ;;  %v894_v35 = vld [vmem:[%s1113_s24 + $0x90] sm:$0xf]  ;;  %v1022_v36 = vld [vmem:[%s1113_s24 + $0x94] sm:$0xf0]  ;;  %v831_v37 = vor.u32 %v1006_v33, %v830_v32  ;;  %v1009_v39 = vld [vmem:[%s1113_s24 + $0x34] sm:$0xf] }
  0x15   : > { %v895_v38 = vor.u32 %v1022_v36, %v894_v35  ;;  %v848_v40 = vld [vmem:[%s1113_s24 + $0x38] sm:$0xf0]  ;;  %v1027_v42 = vld [vmem:[%s1113_s24 + $0xc4] sm:$0xf]  ;;  %v920_v43 = vld [vmem:[%s1113_s24 + $0xc8] sm:$0xf0] }
  0x16   : > { %v851_v41 = vor.u32 %v1009_v39, %v848_v40  ;;  %v838_v44 = vld [vmem:[%s1113_s24 + $0x20] sm:$0xf]  ;;  %v1008_v45 = vld [vmem:[%s1113_s24 + $0x24] sm:$0xf0]  ;;  %v923_v46 = vor.u32 %v1027_v42, %v920_v43  ;;  %v1011_v51 = vld [vmem:[%s1113_s24 + $0x44] sm:$0xf] }
  0x17   : > { %v902_v47 = vld [vmem:[%s1113_s24 + $0xa0] sm:$0xf]  ;;  %v1024_v48 = vld [vmem:[%s1113_s24 + $0xa4] sm:$0xf0]  ;;  %v839_v49 = vor.u32 %v1008_v45, %v838_v44  ;;  %v856_v52 = vld [vmem:[%s1113_s24 + $0x48] sm:$0xf0] }
  0x18   : > { %482 = vmatpush.bf16.msra.mxu0 %v1039_v7  ;;  %1047 = vmatpush.bf16.msra.mxu2 %v1039_v7  ;;  %v903_v50 = vor.u32 %v1024_v48, %v902_v47  ;;  %v859_v53 = vor.u32 %v1011_v51, %v856_v52  ;;  %v1029_v54 = vld [vmem:[%s1113_s24 + $0xd4] sm:$0xf]  ;;  %v928_v55 = vld [vmem:[%s1113_s24 + $0xd8] sm:$0xf0]  ;;  %v846_v56 = vld [vmem:[%s1113_s24 + $0x30] sm:$0xf] }
  0x19   : > { %v1010_v57 = vld [vmem:[%s1113_s24 + $0x34] sm:$0xf0]  ;;  %v931_v58 = vor.u32 %v1029_v54, %v928_v55  ;;  %v910_v59 = vld [vmem:[%s1113_s24 + $0xb0] sm:$0xf]  ;;  %v1013_v63 = vld [vmem:[%s1113_s24 + $0x54] sm:$0xf] }
  0x1a   : > { %v1026_v60 = vld [vmem:[%s1113_s24 + $0xb4] sm:$0xf0]  ;;  %v847_v61 = vor.u32 %v1010_v57, %v846_v56  ;;  %v864_v0 = vld [vmem:[%s1113_s24 + $0x58] sm:$0xf0]  ;;  %v1031_v2 = vld [vmem:[%s1113_s24 + $0xe4] sm:$0xf] }
  0x1b   : > { %v911_v62 = vor.u32 %v1026_v60, %v910_v59  ;;  %v867_v1 = vor.u32 %v1013_v63, %v864_v0  ;;  %v936_v3 = vld [vmem:[%s1113_s24 + $0xe8] sm:$0xf0]  ;;  %v854_v4 = vld [vmem:[%s1113_s24 + $0x40] sm:$0xf]  ;;  %v1012_v5 = vld [vmem:[%s1113_s24 + $0x44] sm:$0xf0] }
  0x1c   : > { %483 = vmatpush.bf16.msra.mxu0 %v1038_v11  ;;  %1048 = vmatpush.bf16.msra.mxu2 %v1038_v11  ;;  %v939_v6 = vor.u32 %v1031_v2, %v936_v3  ;;  %v918_v7 = vld [vmem:[%s1113_s24 + $0xc0] sm:$0xf]  ;;  %v1028_v8 = vld [vmem:[%s1113_s24 + $0xc4] sm:$0xf0]  ;;  %v855_v9 = vor.u32 %v1012_v5, %v854_v4  ;;  %v1015_v11 = vld [vmem:[%s1113_s24 + $0x64] sm:$0xf] }
  0x1d   : > { %v919_v10 = vor.u32 %v1028_v8, %v918_v7  ;;  %v1033_v14 = vld [vmem:[%s1113_s24 + $0xf4] sm:$0xf]  ;;  %v1014_v17 = vld [vmem:[%s1113_s24 + $0x54] sm:$0xf0]  ;;  %v880_v24 = vld [vmem:[%s1113_s24 + $0x78] sm:$0xf0] }
  0x1e   : > { %v1030_v20 = vld [vmem:[%s1113_s24 + $0xd4] sm:$0xf0]  ;;  %v1017_v23 = vld [vmem:[%s1113_s24 + $0x74] sm:$0xf]  ;;  %v1016_v27 = vld [vmem:[%s1113_s24 + $0x64] sm:$0xf0] }
  0x1f   : > { %v934_v28 = vld [vmem:[%s1113_s24 + $0xe0] sm:$0xf]  ;;  %v1019_v32 = vld [vmem:[%s1113_s24 + $0x84] sm:$0xf]  ;;  %v888_v33 = vld [vmem:[%s1113_s24 + $0x88] sm:$0xf0] }
  0x20   : > { %484 = vmatpush.bf16.msra.mxu0 %v1037_v12  ;;  %1049 = vmatpush.bf16.msra.mxu2 %v1037_v12  ;;  %v872_v12 = vld [vmem:[%s1113_s24 + $0x68] sm:$0xf0]  ;;  %v878_v36 = vld [vmem:[%s1113_s24 + $0x70] sm:$0xf]  ;;  %v1034_v39 = vld [vmem:[%s1113_s24 + $0xf4] sm:$0xf0] }
  0x21   : > { %985 = vmatmul.msk.bf16.gmra.mxu1 %vm430_vm0, %v835_v15  ;;  %v875_v13 = vor.u32 %v1015_v11, %v872_v12  ;;  %v944_v15 = vld [vmem:[%s1113_s24 + $0xf8] sm:$0xf0]  ;;  %v1216_v44 = vld [vmem:[%s1331_s2] ss:$0 sm:$0xff] }
  0x22   : > { %994 = vmatmul.msk.bf16.gmra.mxu3 %vm430_vm0, %v907_v22  ;;  %v947_v18 = vor.u32 %v1033_v14, %v944_v15 }
  0x24   : > { %485 = vmatpush.bf16.msra.mxu0 %v1036_v16  ;;  %1050 = vmatpush.bf16.msra.mxu2 %v1036_v16  ;;  %v862_v16 = vld [vmem:[%s1113_s24 + $0x50] sm:$0xf] }
  0x25   : > { %v863_v21 = vor.u32 %v1014_v17, %v862_v16 }
  0x28   : > { %486 = vmatpush.bf16.msra.mxu0 %v1035_v19  ;;  %1051 = vmatpush.bf16.msra.mxu2 %v1035_v19  ;;  %v926_v19 = vld [vmem:[%s1113_s24 + $0xd0] sm:$0xf] }
  0x29   : > { %v927_v22 = vor.u32 %v1030_v20, %v926_v19 }
  0x2b   : > { %487 = vmatmul.bf16.vlgmr.msra.gmra.mxu0 %v823_v25  ;;  %527 = vmatmul.bf16.vlgmr.msra.gmra.mxu2 %v887_v26  ;;  %v883_v25 = vor.u32 %v1017_v23, %v880_v24  ;;  %v870_v26 = vld [vmem:[%s1113_s24 + $0x60] sm:$0xf] }
  0x2c   : > { %v871_v30 = vor.u32 %v1016_v27, %v870_v26 }
  0x31   : > { %986 = vmatmul.msk.bf16.gmra.mxu1 %vm430_vm0, %v843_v29  ;;  %v1032_v29 = vld [vmem:[%s1113_s24 + $0xe4] sm:$0xf0] }
  0x32   : > { %995 = vmatmul.msk.bf16.gmra.mxu3 %vm430_vm0, %v915_v34  ;;  %v935_v31 = vor.u32 %v1032_v29, %v934_v28  ;;  %v891_v34 = vor.u32 %v1019_v32, %v888_v33 }
  0x3b   : > { %492 = vmatmul.bf16.gmra.mxu0 %v831_v37  ;;  %532 = vmatmul.bf16.gmra.mxu2 %v895_v38  ;;  %v1018_v37 = vld [vmem:[%s1113_s24 + $0x74] sm:$0xf0]  ;;  %v942_v38 = vld [vmem:[%s1113_s24 + $0xf0] sm:$0xf] }
  0x3c   : > { %v879_v40 = vor.u32 %v1018_v37, %v878_v36 }
  0x41   : > { %987 = vmatmul.msk.bf16.gmra.mxu1 %vm430_vm0, %v851_v41  ;;  %v943_v41 = vor.u32 %v1034_v39, %v942_v38 }
  0x42   : > { %996 = vmatmul.msk.bf16.gmra.mxu3 %vm430_vm0, %v923_v46 }
  0x4b   : > { %497 = vmatmul.bf16.gmra.mxu0 %v839_v49  ;;  %537 = vmatmul.bf16.gmra.mxu2 %v903_v50 }
  0x51   : > { %988 = vmatmul.msk.bf16.gmra.mxu1 %vm430_vm0, %v859_v53 }
  0x52   : > { %997 = vmatmul.msk.bf16.gmra.mxu3 %vm430_vm0, %v931_v58 }
  0x5b   : > { %502 = vmatmul.bf16.gmra.mxu0 %v847_v61  ;;  %542 = vmatmul.bf16.gmra.mxu2 %v911_v62 }
  0x61   : > { %989 = vmatmul.msk.bf16.gmra.mxu1 %vm430_vm0, %v867_v1 }
  0x62   : > { %998 = vmatmul.msk.bf16.gmra.mxu3 %vm430_vm0, %v939_v6 }
  0x6b   : > { %507 = vmatmul.bf16.gmra.mxu0 %v855_v9  ;;  %547 = vmatmul.bf16.gmra.mxu2 %v919_v10 }
  0x71   : > { %990 = vmatmul.msk.bf16.gmra.mxu1 %vm430_vm0, %v875_v13 }
  0x72   : > { %999 = vmatmul.msk.bf16.gmra.mxu3 %vm430_vm0, %v947_v18 }
  0x7b   : > { %512 = vmatmul.bf16.gmra.mxu0 %v863_v21  ;;  %552 = vmatmul.bf16.gmra.mxu2 %v927_v22 }
  0x81   : > { %991 = vmatmul.msk.bf16.gmra.mxu1 %vm430_vm0, %v883_v25 }
  0x8b   : > { %517 = vmatmul.bf16.gmra.mxu0 %v871_v30  ;;  %557 = vmatmul.bf16.gmra.mxu2 %v935_v31 }
  0x8e   : > { %v577_v35 = vpop.f32.mrf.mxu1 }
  0x91   : > { %992 = vmatmul.msk.bf16.gmra.mxu1 %vm430_vm0, %v891_v34 }
  0x95   : > { %v622_v45 = vpop.f32.mrf.mxu3 }
  0x96   : > { %v579_v42 = vpop.f32.mrf.mxu1 }
  0x9b   : > { %522 = vmatmul.bf16.gmra.mxu0 %v879_v40  ;;  %562 = vmatmul.bf16.gmra.mxu2 %v943_v41 }
  0x9d   : > { %v624_v56 = vpop.f32.mrf.mxu3 }
  0x9e   : > { %v582_v43 = vpop.f32.mrf.mxu1 }
  0xa5   : > { %v627_v1 = vpop.f32.mrf.mxu3 }
  0xa6   : > { %v584_v48 = vpop.f32.mrf.mxu1 }
  0xa8   : > { %v488_v46 = vpop.f32.mrf.mxu0 }
  0xa9   : > { %v489_v47 = vadd.f32 %v1216_v44, %v488_v46 }
  0xab   : > { %v578_v49 = vadd.f32 %v577_v35, %v489_v47 }
  0xad   : > { %v657_v50 = vmax.f32 %v578_v49, 0.0  ;;  %v629_v13 = vpop.f32.mrf.mxu3 }
  0xae   : > { %v1225_v52 = vpop.f32.mrf.mxu2  ;;  %v587_v55 = vpop.f32.mrf.mxu1 }
  0xaf   : > { %v689_v51 = vpack.c.bf16 %v657_v50, %v657_v50 }
  0xb0   : > { %v490_v53 = vpop.f32.mrf.mxu0 }
  0xb1   : > { %722 = vst.msk [vmem:[%s1223_s16] sm:$0xf] %vm721_vm1, %v689_v51  ;;  %v491_v54 = vadd.f32 %v1216_v44, %v490_v53 }
  0xb3   : > { %v580_v57 = vadd.f32 %v579_v42, %v491_v54 }
  0xb5   : > { %v658_v58 = vmax.f32 %v580_v57, 0.0  ;;  %v632_v28 = vpop.f32.mrf.mxu3 }
  0xb6   : > { %v1230_v60 = vpop.f32.mrf.mxu2  ;;  %v589_v63 = vpop.f32.mrf.mxu1 }
  0xb7   : > { %v690_v59 = vpack.c.bf16 %v658_v58, %v658_v58 }
  0xb8   : > { %v493_v61 = vpop.f32.mrf.mxu0 }
  0xb9   : > { %723 = vst.msk [vmem:[%s1223_s16 + $0x4] sm:$0xf] %vm721_vm1, %v690_v59  ;;  %v494_v62 = vadd.f32 %v1216_v44, %v493_v61 }
  0xbb   : > { %v583_v0 = vadd.f32 %v582_v43, %v494_v62 }
  0xbd   : > { %v659_v2 = vmax.f32 %v583_v0, 0.0 }
  0xbe   : > { %v533_v4 = vpop.f32.mrf.mxu2  ;;  %v592_v8 = vpop.f32.mrf.mxu1 }
  0xbf   : > { %v691_v3 = vpack.c.bf16 %v659_v2, %v659_v2  ;;  %v534_v5 = vadd.f32 %v1216_v44, %v533_v4 }
  0xc0   : > { %v495_v6 = vpop.f32.mrf.mxu0 }
  0xc1   : > { %724 = vst.msk [vmem:[%s1223_s16 + $0x8] sm:$0xf] %vm721_vm1, %v691_v3  ;;  %v496_v7 = vadd.f32 %v1216_v44, %v495_v6  ;;  %v623_v9 = vadd.f32 %v622_v45, %v534_v5  ;;  %v634_v45 = vpop.f32.mrf.mxu3 }
  0xc3   : > { %v585_v10 = vadd.f32 %v584_v48, %v496_v7  ;;  %v675_v11 = vmax.f32 %v623_v9, 0.0 }
  0xc5   : > { %v660_v12 = vmax.f32 %v585_v10, 0.0  ;;  %v707_v14 = vpack.c.bf16 %v675_v11, %v675_v11 }
  0xc6   : > { %v535_v16 = vpop.f32.mrf.mxu2  ;;  %v594_v20 = vpop.f32.mrf.mxu1 }
  0xc7   : > { %v692_v15 = vpack.c.bf16 %v660_v12, %v660_v12  ;;  %740 = vst.msk [vmem:[%s1223_s16 + $0x48] sm:$0xf] %vm721_vm1, %v707_v14  ;;  %v536_v17 = vadd.f32 %v1216_v44, %v535_v16 }
  0xc8   : > { %v498_v18 = vpop.f32.mrf.mxu0 }
  0xc9   : > { %725 = vst.msk [vmem:[%s1223_s16 + $0xc] sm:$0xf] %vm721_vm1, %v692_v15  ;;  %v499_v19 = vadd.f32 %v1216_v44, %v498_v18  ;;  %v625_v21 = vadd.f32 %v624_v56, %v536_v17  ;;  %v637_v61 = vpop.f32.mrf.mxu3 }
  0xcb   : > { %v588_v22 = vadd.f32 %v587_v55, %v499_v19  ;;  %v676_v23 = vmax.f32 %v625_v21, 0.0 }
  0xcd   : > { %v661_v24 = vmax.f32 %v588_v22, 0.0  ;;  %v708_v25 = vpack.c.bf16 %v676_v23, %v676_v23 }
  0xce   : > { %v538_v27 = vpop.f32.mrf.mxu2  ;;  %v597_v32 = vpop.f32.mrf.mxu1 }
  0xcf   : > { %v693_v26 = vpack.c.bf16 %v661_v24, %v661_v24  ;;  %741 = vst.msk [vmem:[%s1223_s16 + $0x4c] sm:$0xf] %vm721_vm1, %v708_v25  ;;  %v539_v29 = vadd.f32 %v1216_v44, %v538_v27 }
  0xd0   : > { %v500_v30 = vpop.f32.mrf.mxu0 }
  0xd1   : > { %726 = vst.msk [vmem:[%s1223_s16 + $0x10] sm:$0xf] %vm721_vm1, %v693_v26  ;;  %v501_v31 = vadd.f32 %v1216_v44, %v500_v30  ;;  %v628_v33 = vadd.f32 %v627_v1, %v539_v29  ;;  %v639_v11 = vpop.f32.mrf.mxu3 }
  0xd3   : > { %v590_v34 = vadd.f32 %v589_v63, %v501_v31  ;;  %v677_v35 = vmax.f32 %v628_v33, 0.0 }
  0xd5   : > { %v662_v36 = vmax.f32 %v590_v34, 0.0  ;;  %v709_v37 = vpack.c.bf16 %v677_v35, %v677_v35 }
  0xd6   : > { %v540_v39 = vpop.f32.mrf.mxu2  ;;  %v599_v43 = vpop.f32.mrf.mxu1 }
  0xd7   : > { %v694_v38 = vpack.c.bf16 %v662_v36, %v662_v36  ;;  %742 = vst.msk [vmem:[%s1223_s16 + $0x50] sm:$0xf] %vm721_vm1, %v709_v37  ;;  %v541_v40 = vadd.f32 %v1216_v44, %v540_v39 }
  0xd8   : > { %v503_v41 = vpop.f32.mrf.mxu0 }
  0xd9   : > { %727 = vst.msk [vmem:[%s1223_s16 + $0x14] sm:$0xf] %vm721_vm1, %v694_v38  ;;  %v504_v42 = vadd.f32 %v1216_v44, %v503_v41  ;;  %v630_v46 = vadd.f32 %v629_v13, %v541_v40  ;;  %v642_v26 = vpop.f32.mrf.mxu3 }
  0xdb   : > { %v593_v47 = vadd.f32 %v592_v8, %v504_v42  ;;  %v678_v48 = vmax.f32 %v630_v46, 0.0 }
  0xdd   : > { %v663_v49 = vmax.f32 %v593_v47, 0.0  ;;  %v710_v50 = vpack.c.bf16 %v678_v48, %v678_v48 }
  0xde   : > { %v543_v53 = vpop.f32.mrf.mxu2  ;;  %v602_v57 = vpop.f32.mrf.mxu1 }
  0xdf   : > { %v695_v51 = vpack.c.bf16 %v663_v49, %v663_v49  ;;  %743 = vst.msk [vmem:[%s1223_s16 + $0x54] sm:$0xf] %vm721_vm1, %v710_v50  ;;  %v544_v54 = vadd.f32 %v1216_v44, %v543_v53 }
  0xe0   : > { %v505_v55 = vpop.f32.mrf.mxu0 }
  0xe1   : > { %728 = vst.msk [vmem:[%s1223_s16 + $0x18] sm:$0xf] %vm721_vm1, %v695_v51  ;;  %v506_v56 = vadd.f32 %v1216_v44, %v505_v55  ;;  %v633_v58 = vadd.f32 %v632_v28, %v544_v54  ;;  %v644_v42 = vpop.f32.mrf.mxu3 }
  0xe3   : > { %v595_v59 = vadd.f32 %v594_v20, %v506_v56  ;;  %v679_v62 = vmax.f32 %v633_v58, 0.0 }
  0xe5   : > { %v664_v63 = vmax.f32 %v595_v59, 0.0  ;;  %v711_v0 = vpack.c.bf16 %v679_v62, %v679_v62 }
  0xe6   : > { %v545_v2 = vpop.f32.mrf.mxu2  ;;  %v604_v6 = vpop.f32.mrf.mxu1 }
  0xe7   : > { %v696_v1 = vpack.c.bf16 %v664_v63, %v664_v63  ;;  %744 = vst.msk [vmem:[%s1223_s16 + $0x58] sm:$0xf] %vm721_vm1, %v711_v0  ;;  %v546_v3 = vadd.f32 %v1216_v44, %v545_v2 }
  0xe8   : > { %v508_v4 = vpop.f32.mrf.mxu0 }
  0xe9   : > { %729 = vst.msk [vmem:[%s1223_s16 + $0x1c] sm:$0xf] %vm721_vm1, %v696_v1  ;;  %v509_v5 = vadd.f32 %v1216_v44, %v508_v4  ;;  %v635_v7 = vadd.f32 %v634_v45, %v546_v3  ;;  %v647_v58 = vpop.f32.mrf.mxu3  ;;  %v529_v1 = vadd.f32 %v1216_v44, %v1225_v52 }
  0xeb   : > { %v598_v8 = vadd.f32 %v597_v32, %v509_v5  ;;  %v680_v9 = vmax.f32 %v635_v7, 0.0 }
  0xed   : > { %v665_v10 = vmax.f32 %v598_v8, 0.0  ;;  %v712_v12 = vpack.c.bf16 %v680_v9, %v680_v9 }
  0xee   : > { %v548_v14 = vpop.f32.mrf.mxu2  ;;  %v607_v18 = vpop.f32.mrf.mxu1 }
  0xef   : > { %v697_v13 = vpack.c.bf16 %v665_v10, %v665_v10  ;;  %745 = vst.msk [vmem:[%s1223_s16 + $0x5c] sm:$0xf] %vm721_vm1, %v712_v12  ;;  %v549_v15 = vadd.f32 %v1216_v44, %v548_v14 }
  0xf0   : > { %v510_v16 = vpop.f32.mrf.mxu0 }
  0xf1   : > { %730 = vst.msk [vmem:[%s1223_s16 + $0x20] sm:$0xf] %vm721_vm1, %v697_v13  ;;  %v511_v17 = vadd.f32 %v1216_v44, %v510_v16  ;;  %v638_v19 = vadd.f32 %v637_v61, %v549_v15  ;;  %v649_v52 = vpop.f32.mrf.mxu3  ;;  %v531_v16 = vadd.f32 %v1216_v44, %v1230_v60 }
  0xf3   : > { %v600_v20 = vadd.f32 %v599_v43, %v511_v17  ;;  %v681_v21 = vmax.f32 %v638_v19, 0.0 }
  0xf5   : > { %v666_v22 = vmax.f32 %v600_v20, 0.0  ;;  %v713_v23 = vpack.c.bf16 %v681_v21, %v681_v21 }
  0xf6   : > { %v550_v25 = vpop.f32.mrf.mxu2  ;;  %v609_v30 = vpop.f32.mrf.mxu1 }
  0xf7   : > { %v698_v24 = vpack.c.bf16 %v666_v22, %v666_v22  ;;  %746 = vst.msk [vmem:[%s1223_s16 + $0x60] sm:$0xf] %vm721_vm1, %v713_v23  ;;  %v551_v27 = vadd.f32 %v1216_v44, %v550_v25 }
  0xf8   : > { %v513_v28 = vpop.f32.mrf.mxu0 }
  0xf9   : > { %731 = vst.msk [vmem:[%s1223_s16 + $0x24] sm:$0xf] %vm721_vm1, %v698_v24  ;;  %v514_v29 = vadd.f32 %v1216_v44, %v513_v28  ;;  %v640_v31 = vadd.f32 %v639_v11, %v551_v27 }
  0xfb   : > { %v603_v32 = vadd.f32 %v602_v57, %v514_v29  ;;  %v682_v33 = vmax.f32 %v640_v31, 0.0  ;;  %v652_v29 = vpop.f32.mrf.mxu3 }
  0xfd   : > { %v667_v34 = vmax.f32 %v603_v32, 0.0  ;;  %v714_v35 = vpack.c.bf16 %v682_v33, %v682_v33 }
  0xfe   : > { %v553_v37 = vpop.f32.mrf.mxu2  ;;  %v612_v41 = vpop.f32.mrf.mxu1 }
  0xff   : > { %v699_v36 = vpack.c.bf16 %v667_v34, %v667_v34  ;;  %747 = vst.msk [vmem:[%s1223_s16 + $0x64] sm:$0xf] %vm721_vm1, %v714_v35  ;;  %v554_v38 = vadd.f32 %v1216_v44, %v553_v37 }
 0x100   : > { %v515_v39 = vpop.f32.mrf.mxu0 }
 0x101   : > { %732 = vst.msk [vmem:[%s1223_s16 + $0x28] sm:$0xf] %vm721_vm1, %v699_v36  ;;  %v516_v40 = vadd.f32 %v1216_v44, %v515_v39  ;;  %v643_v43 = vadd.f32 %v642_v26, %v554_v38 }
 0x103   : > { %v605_v45 = vadd.f32 %v604_v6, %v516_v40  ;;  %v683_v46 = vmax.f32 %v643_v43, 0.0 }
 0x105   : > { %v668_v47 = vmax.f32 %v605_v45, 0.0  ;;  %v715_v48 = vpack.c.bf16 %v683_v46, %v683_v46 }
 0x106   : > { %v555_v50 = vpop.f32.mrf.mxu2  ;;  %v614_v55 = vpop.f32.mrf.mxu1 }
 0x107   : > { %v700_v49 = vpack.c.bf16 %v668_v47, %v668_v47  ;;  %748 = vst.msk [vmem:[%s1223_s16 + $0x68] sm:$0xf] %vm721_vm1, %v715_v48  ;;  %v556_v51 = vadd.f32 %v1216_v44, %v555_v50 }
 0x108   : > { %v518_v53 = vpop.f32.mrf.mxu0 }
 0x109   : > { %733 = vst.msk [vmem:[%s1223_s16 + $0x2c] sm:$0xf] %vm721_vm1, %v700_v49  ;;  %v519_v54 = vadd.f32 %v1216_v44, %v518_v53  ;;  %v645_v56 = vadd.f32 %v644_v42, %v556_v51  ;;  %v654_v42 = vpop.f32.mrf.mxu3 }
 0x10b   : > { %v608_v57 = vadd.f32 %v607_v18, %v519_v54  ;;  %v684_v59 = vmax.f32 %v645_v56, 0.0 }
 0x10d   : > { %v669_v61 = vmax.f32 %v608_v57, 0.0  ;;  %v716_v62 = vpack.c.bf16 %v684_v59, %v684_v59 }
 0x10e   : > { %v558_v0 = vpop.f32.mrf.mxu2  ;;  %v617_v5 = vpop.f32.mrf.mxu1 }
 0x10f   : > { %v701_v63 = vpack.c.bf16 %v669_v61, %v669_v61  ;;  %749 = vst.msk [vmem:[%s1223_s16 + $0x6c] sm:$0xf] %vm721_vm1, %v716_v62  ;;  %v559_v2 = vadd.f32 %v1216_v44, %v558_v0  ;;  %v618_v7 = vadd.f32 %v617_v5, %v529_v1 }
 0x110   : > { %v520_v3 = vpop.f32.mrf.mxu0 }
 0x111   : > { %734 = vst.msk [vmem:[%s1223_s16 + $0x30] sm:$0xf] %vm721_vm1, %v701_v63  ;;  %v521_v4 = vadd.f32 %v1216_v44, %v520_v3  ;;  %v648_v6 = vadd.f32 %v647_v58, %v559_v2  ;;  %v673_v10 = vmax.f32 %v618_v7, 0.0 }
 0x113   : > { %v610_v8 = vadd.f32 %v609_v30, %v521_v4  ;;  %v685_v9 = vmax.f32 %v648_v6, 0.0  ;;  %v705_v13 = vpack.c.bf16 %v673_v10, %v673_v10 }
 0x115   : > { %v670_v11 = vmax.f32 %v610_v8, 0.0  ;;  %v717_v12 = vpack.c.bf16 %v685_v9, %v685_v9  ;;  %738 = vst.msk [vmem:[%s1223_s16 + $0x40] sm:$0xf] %vm721_vm1, %v705_v13 }
 0x116   : > { %v560_v15 = vpop.f32.mrf.mxu2  ;;  %v619_v20 = vpop.f32.mrf.mxu1 }
 0x117   : > { %v702_v14 = vpack.c.bf16 %v670_v11, %v670_v11  ;;  %750 = vst.msk [vmem:[%s1223_s16 + $0x70] sm:$0xf] %vm721_vm1, %v717_v12  ;;  %v561_v17 = vadd.f32 %v1216_v44, %v560_v15  ;;  %v620_v22 = vadd.f32 %v619_v20, %v531_v16 }
 0x118   : > { %v523_v18 = vpop.f32.mrf.mxu0 }
 0x119   : > { %735 = vst.msk [vmem:[%s1223_s16 + $0x34] sm:$0xf] %vm721_vm1, %v702_v14  ;;  %v524_v19 = vadd.f32 %v1216_v44, %v523_v18  ;;  %v650_v21 = vadd.f32 %v649_v52, %v561_v17  ;;  %v674_v60 = vmax.f32 %v620_v22, 0.0 }
 0x11b   : > { %v613_v23 = vadd.f32 %v612_v41, %v524_v19  ;;  %v686_v24 = vmax.f32 %v650_v21, 0.0  ;;  %v706_v27 = vpack.c.bf16 %v674_v60, %v674_v60 }
 0x11d   : > { %v671_v25 = vmax.f32 %v613_v23, 0.0  ;;  %v718_v26 = vpack.c.bf16 %v686_v24, %v686_v24  ;;  %739 = vst.msk [vmem:[%s1223_s16 + $0x44] sm:$0xf] %vm721_vm1, %v706_v27 }
 0x11e   : > { %v563_v30 = vpop.f32.mrf.mxu2 }
 0x11f   : > { %v703_v28 = vpack.c.bf16 %v671_v25, %v671_v25  ;;  %751 = vst.msk [vmem:[%s1223_s16 + $0x74] sm:$0xf] %vm721_vm1, %v718_v26  ;;  %v564_v31 = vadd.f32 %v1216_v44, %v563_v30 }
 0x120   : > { %v525_v32 = vpop.f32.mrf.mxu0 }
 0x121   : > { %736 = vst.msk [vmem:[%s1223_s16 + $0x38] sm:$0xf] %vm721_vm1, %v703_v28  ;;  %v526_v33 = vadd.f32 %v1216_v44, %v525_v32  ;;  %v653_v34 = vadd.f32 %v652_v29, %v564_v31 }
 0x123   : > { %v615_v35 = vadd.f32 %v614_v55, %v526_v33  ;;  %v687_v36 = vmax.f32 %v653_v34, 0.0 }
 0x125   : > { %v672_v37 = vmax.f32 %v615_v35, 0.0  ;;  %v719_v38 = vpack.c.bf16 %v687_v36, %v687_v36 }
 0x126   : > { %v565_v40 = vpop.f32.mrf.mxu2 }
 0x127   : > { %v704_v39 = vpack.c.bf16 %v672_v37, %v672_v37  ;;  %752 = vst.msk [vmem:[%s1223_s16 + $0x78] sm:$0xf] %vm721_vm1, %v719_v38  ;;  %v566_v41 = vadd.f32 %v1216_v44, %v565_v40 }
 0x129   : > { %737 = vst.msk [vmem:[%s1223_s16 + $0x3c] sm:$0xf] %vm721_vm1, %v704_v39  ;;  %v655_v43 = vadd.f32 %v654_v42, %v566_v41 }
 0x12b   : > { %v688_v45 = vmax.f32 %v655_v43, 0.0 }
 0x12d   : > { %v720_v46 = vpack.c.bf16 %v688_v45, %v688_v45 }
 0x12f   : > { %753 = vst.msk [vmem:[%s1223_s16 + $0x7c] sm:$0xf] %vm721_vm1, %v720_v46 }
 0x130 PF: > { %s13_s12 = sadd.s32 1, %s1068_s12  }
 0x131   : > { %p10_p4 = scmp.ge.s32.totalorder %s13_s12, 4  }
 0x133   :  { %12 = sbr.rel (!%p10_p4) target bundleno = 1 (0x1), region = 62 }

// kernel: finetune_net_wa_forward.45
= control target key start
LH: loop header
LB: loop body
LE: loop exit
PB: predicated region body
PF: predicated region fallthrough
CT: control target
= control target key end

     0   :  { %s1512_s12 = smov 0   ;;  %s1852_s0 = inlined_call_operand.vmem [shape: bf16[512,288], index: 0, kind: input, shape index: {}]   ;;  %s1853_s1 = inlined_call_operand.vmem [shape: bf16[288,32], index: 1, kind: input, shape index: {}]   ;;  %s1854_s2 = inlined_call_operand.vmem [shape: f32[1,32], index: 2, kind: input, shape index: {}]   ;;  %s1855_s3 = inlined_call_operand.vmem [shape: bf16[512,32], index: 3, kind: output, shape index: {}]  }
   0x1 LB: > { %s1099_s13 = sadd.s32 4294967295, %s1490_s12   ;;  %p1103_p0 = scmp.ge.s32.totalorder %s1490_s12, 1  ;;  %s1490_s12 = sphi %s1512_s12, %s13_s12  }
   0x2   : > { %p139_p1 = scmp.lt.s32.totalorder %s1490_s12, 3 }
   0x4   : > { %p140_p2 = pnand %p1103_p0, %p139_p1 }
   0x5   : > { %s1104_s20 = sshll.u32 (!%p140_p2), %s1099_s13, 5 }
   0x6   : > { %143 = sbr.rel (%p140_p2) target bundleno = 376 (0x178), region = 32  ;;  %p165_p3 = scmp.lt.s32.totalorder (!%p140_p2), %s1104_s20, 63 }
   0xb   : > { %v1445_v0 = vld [vmem:[%s1853_s1 + $0x38] sm:$0xff]  ;;  %v1526_v1 = vld [vmem:[%s1853_s1 + $0x88] sm:$0xff]  ;;  %v1444_v3 = vld [vmem:[%s1853_s1 + $0x30] sm:$0xff]  ;;  %s1857_s20 = smov (!%p165_p3, %s1104_s20), 63  ;;  %vm630_vm0 = vcmask 261120   ;;  %vm1010_vm1 = vcmask 257024  }
   0xc   : > { %v1531_v2 = vld [vmem:[%s1853_s1 + $0x78] sm:$0xff]  ;;  %679 = vmatpush.bf16.msra.mxu0 %v1445_v0  ;;  %1456 = vmatpush.bf16.msra.mxu3 %v1445_v0  ;;  %v1541_v4 = vld [vmem:[%s1853_s1 + $0x80] sm:$0xff]  ;;  %v1452_v5 = vld [vmem:[%s1853_s1 + $0x70] sm:$0xff]  ;;  %s1474_s27 = smul.u32 12, %s1857_s20  ;;  %s1107_s6 = sshll.u32 %s1857_s20, 2 }
   0xd   : > { %863 = vmatpush.bf16.msra.mxu2 %v1526_v1  ;;  %768 = vmatpush.bf16.msra.mxu1 %v1531_v2  ;;  %v1443_v6 = vld [vmem:[%s1853_s1 + $0x28] sm:$0xff]  ;;  %v1442_v11 = vld [vmem:[%s1853_s1 + $0x20] sm:$0xff]  ;;  %v1441_v13 = vld [vmem:[%s1853_s1 + $0x18] sm:$0xff]  ;;  %s1693_s9 = scalar_lea.vmem %s1855_s3, %s1107_s6 }
   0xe   : > { %s1556_s5 = scalar_lea.vmem %s1852_s0, %s1474_s27  ;;  %v1451_v7 = vld [vmem:[%s1853_s1 + $0x68] sm:$0xff]  ;;  %v1450_v12 = vld [vmem:[%s1853_s1 + $0x60] sm:$0xff]  ;;  %v1449_v14 = vld [vmem:[%s1853_s1 + $0x58] sm:$0xff] }
   0xf   : > { %v1118_v8 = vld [vmem:[%s1556_s5 + $0x8] sm:$0xf]  ;;  %v1392_v9 = vld [vmem:[%s1556_s5 + $0x10] sm:$0xf0]  ;;  %v1130_v17 = vld [vmem:[%s1556_s5 + $0x20] sm:$0xf] }
  0x10   : > { %680 = vmatpush.bf16.msra.mxu0 %v1444_v3  ;;  %1457 = vmatpush.bf16.msra.mxu3 %v1444_v3  ;;  %v1119_v10 = vor.u32 %v1392_v9, %v1118_v8  ;;  %v1440_v15 = vld [vmem:[%s1853_s1 + $0x10] sm:$0xff]  ;;  %v1395_v18 = vld [vmem:[%s1556_s5 + $0x28] sm:$0xf0]  ;;  %v1438_v22 = vld [vmem:[%s1853_s1] sm:$0xff] }
  0x11   : > { %864 = vmatpush.bf16.msra.mxu2 %v1541_v4  ;;  %769 = vmatpush.bf16.msra.mxu1 %v1452_v5  ;;  %v1448_v16 = vld [vmem:[%s1853_s1 + $0x50] sm:$0xff]  ;;  %v1439_v19 = vld [vmem:[%s1853_s1 + $0x8] sm:$0xff]  ;;  %v1131_v20 = vor.u32 %v1395_v18, %v1130_v17  ;;  %v1110_v23 = vld [vmem:[%s1556_s5] sm:$0xf] }
  0x12   : > { %v1447_v21 = vld [vmem:[%s1853_s1 + $0x48] sm:$0xff]  ;;  %v1254_v25 = vld [vmem:[%s1556_s5 + $0x120] sm:$0xf]  ;;  %v1390_v28 = vld [vmem:[%s1556_s5 + $0x4] sm:$0xf] }
  0x13   : > { %v1391_v24 = vld [vmem:[%s1556_s5 + $0x8] sm:$0xf0]  ;;  %v1446_v27 = vld [vmem:[%s1853_s1 + $0x40] sm:$0xff]  ;;  %v1112_v29 = vld [vmem:[%s1556_s5 + $0xc] sm:$0xf0] }
  0x14   : > { %681 = vmatpush.bf16.msra.mxu0 %v1443_v6  ;;  %1458 = vmatpush.bf16.msra.mxu3 %v1443_v6  ;;  %v1427_v26 = vld [vmem:[%s1556_s5 + $0x128] sm:$0xf0]  ;;  %v1111_v30 = vor.u32 %v1391_v24, %v1110_v23  ;;  %v1115_v32 = vor.u32 %v1390_v28, %v1112_v29  ;;  %v1142_v33 = vld [vmem:[%s1556_s5 + $0x38] sm:$0xf]  ;;  %v1398_v34 = vld [vmem:[%s1556_s5 + $0x40] sm:$0xf0] }
  0x15   : > { %1372 = vmatmul.msk.bf16.vlgmr.msra.gmra.mxu2 %vm630_vm0, %v1119_v10  ;;  %770 = vmatpush.bf16.msra.mxu1 %v1451_v7  ;;  %v1255_v31 = vor.u32 %v1427_v26, %v1254_v25  ;;  %v1143_v35 = vor.u32 %v1398_v34, %v1142_v33  ;;  %v1122_v36 = vld [vmem:[%s1556_s5 + $0x18] sm:$0xf]  ;;  %v1394_v37 = vld [vmem:[%s1556_s5 + $0x20] sm:$0xf0]  ;;  %v1393_v40 = vld [vmem:[%s1556_s5 + $0x1c] sm:$0xf] }
  0x16   : > { %v1266_v38 = vld [vmem:[%s1556_s5 + $0x138] sm:$0xf]  ;;  %v1430_v39 = vld [vmem:[%s1556_s5 + $0x140] sm:$0xf0]  ;;  %v1124_v41 = vld [vmem:[%s1556_s5 + $0x24] sm:$0xf0]  ;;  %v1123_v42 = vor.u32 %v1394_v37, %v1122_v36 }
  0x17   : > { %v1267_v43 = vor.u32 %v1430_v39, %v1266_v38  ;;  %v1127_v44 = vor.u32 %v1393_v40, %v1124_v41  ;;  %v1154_v45 = vld [vmem:[%s1556_s5 + $0x50] sm:$0xf]  ;;  %v1401_v46 = vld [vmem:[%s1556_s5 + $0x58] sm:$0xf0]  ;;  %v1396_v52 = vld [vmem:[%s1556_s5 + $0x34] sm:$0xf] }
  0x18   : > { %682 = vmatpush.bf16.msra.mxu0 %v1442_v11  ;;  %1459 = vmatpush.bf16.msra.mxu3 %v1442_v11  ;;  %v1155_v47 = vor.u32 %v1401_v46, %v1154_v45  ;;  %v1134_v48 = vld [vmem:[%s1556_s5 + $0x30] sm:$0xf]  ;;  %v1397_v49 = vld [vmem:[%s1556_s5 + $0x38] sm:$0xf0]  ;;  %v1136_v53 = vld [vmem:[%s1556_s5 + $0x3c] sm:$0xf0] }
  0x19   : > { %771 = vmatpush.bf16.msra.mxu1 %v1450_v12  ;;  %v1278_v50 = vld [vmem:[%s1556_s5 + $0x150] sm:$0xf]  ;;  %v1433_v51 = vld [vmem:[%s1556_s5 + $0x158] sm:$0xf0]  ;;  %v1135_v54 = vor.u32 %v1397_v49, %v1134_v48  ;;  %v1139_v56 = vor.u32 %v1396_v52, %v1136_v53  ;;  %v1166_v57 = vld [vmem:[%s1556_s5 + $0x68] sm:$0xf] }
  0x1a   : > { %v1279_v55 = vor.u32 %v1433_v51, %v1278_v50  ;;  %v1404_v58 = vld [vmem:[%s1556_s5 + $0x70] sm:$0xf0]  ;;  %v1146_v60 = vld [vmem:[%s1556_s5 + $0x48] sm:$0xf]  ;;  %v1399_v0 = vld [vmem:[%s1556_s5 + $0x4c] sm:$0xf] }
  0x1b   : > { %v1167_v59 = vor.u32 %v1404_v58, %v1166_v57  ;;  %v1400_v61 = vld [vmem:[%s1556_s5 + $0x50] sm:$0xf0]  ;;  %v1290_v62 = vld [vmem:[%s1556_s5 + $0x168] sm:$0xf]  ;;  %v1407_v6 = vld [vmem:[%s1556_s5 + $0x88] sm:$0xf0] }
  0x1c   : > { %683 = vmatpush.bf16.msra.mxu0 %v1441_v13  ;;  %1460 = vmatpush.bf16.msra.mxu3 %v1441_v13  ;;  %v1436_v63 = vld [vmem:[%s1556_s5 + $0x170] sm:$0xf0]  ;;  %v1158_v8 = vld [vmem:[%s1556_s5 + $0x60] sm:$0xf]  ;;  %v1403_v9 = vld [vmem:[%s1556_s5 + $0x68] sm:$0xf0] }
  0x1d   : > { %772 = vmatpush.bf16.msra.mxu1 %v1449_v14  ;;  %v1291_v3 = vor.u32 %v1436_v63, %v1290_v62  ;;  %v1426_v10 = vld [vmem:[%s1556_s5 + $0x124] sm:$0xf]  ;;  %v1256_v11 = vld [vmem:[%s1556_s5 + $0x12c] sm:$0xf0]  ;;  %v1190_v17 = vld [vmem:[%s1556_s5 + $0x98] sm:$0xf] }
  0x1e   : > { %v1160_v13 = vld [vmem:[%s1556_s5 + $0x6c] sm:$0xf0]  ;;  %v1410_v18 = vld [vmem:[%s1556_s5 + $0xa0] sm:$0xf0]  ;;  %v1268_v23 = vld [vmem:[%s1556_s5 + $0x144] sm:$0xf0] }
  0x1f   : > { %v1405_v24 = vld [vmem:[%s1556_s5 + $0x7c] sm:$0xf]  ;;  %v1172_v25 = vld [vmem:[%s1556_s5 + $0x84] sm:$0xf0]  ;;  %v1202_v29 = vld [vmem:[%s1556_s5 + $0xb0] sm:$0xf] }
  0x20   : > { %684 = vmatpush.bf16.msra.mxu0 %v1440_v15  ;;  %1461 = vmatpush.bf16.msra.mxu3 %v1440_v15  ;;  %v1259_v15 = vor.u32 %v1426_v10, %v1256_v11  ;;  %v1175_v28 = vor.u32 %v1405_v24, %v1172_v25  ;;  %v1409_v33 = vld [vmem:[%s1556_s5 + $0x98] sm:$0xf0]  ;;  %v1432_v34 = vld [vmem:[%s1556_s5 + $0x154] sm:$0xf]  ;;  %v1184_v37 = vld [vmem:[%s1556_s5 + $0x9c] sm:$0xf0] }
  0x21   : > { %773 = vmatpush.bf16.msra.mxu1 %v1448_v16  ;;  %v1408_v36 = vld [vmem:[%s1556_s5 + $0x94] sm:$0xf]  ;;  %v1214_v41 = vld [vmem:[%s1556_s5 + $0xc8] sm:$0xf]  ;;  %v1435_v46 = vld [vmem:[%s1556_s5 + $0x16c] sm:$0xf] }
  0x22   : > { %v1187_v40 = vor.u32 %v1408_v36, %v1184_v37  ;;  %v1412_v45 = vld [vmem:[%s1556_s5 + $0xb0] sm:$0xf0]  ;;  %v1411_v48 = vld [vmem:[%s1556_s5 + $0xac] sm:$0xf]  ;;  %v1196_v49 = vld [vmem:[%s1556_s5 + $0xb4] sm:$0xf0] }
  0x23   : > { %v1199_v53 = vor.u32 %v1411_v48, %v1196_v49  ;;  %v1206_v58 = vld [vmem:[%s1556_s5 + $0xc0] sm:$0xf]  ;;  %v1414_v63 = vld [vmem:[%s1556_s5 + $0xc4] sm:$0xf]  ;;  %v1238_v11 = vld [vmem:[%s1556_s5 + $0xf8] sm:$0xf] }
  0x24   : > { %685 = vmatpush.bf16.msra.mxu0 %v1439_v19  ;;  %1462 = vmatpush.bf16.msra.mxu3 %v1439_v19  ;;  %v1191_v19 = vor.u32 %v1410_v18, %v1190_v17  ;;  %v1679_v62 = vld [vmem:[%s1854_s2] ss:$0 sm:$0xff]  ;;  %v1437_v24 = vld [vmem:[%s1556_s5 + $0x178] sm:$0xf0] }
  0x25   : > { %1373 = vmatmul.msk.bf16.gmra.mxu2 %vm630_vm0, %v1131_v20  ;;  %774 = vmatpush.bf16.msra.mxu1 %v1447_v21  ;;  %v1170_v20 = vld [vmem:[%s1556_s5 + $0x78] sm:$0xf] }
  0x28   : > { %686 = vmatpush.bf16.msra.mxu0 %v1438_v22  ;;  %1463 = vmatpush.bf16.msra.mxu3 %v1438_v22  ;;  %v1429_v22 = vld [vmem:[%s1556_s5 + $0x13c] sm:$0xf] }
  0x29   : > { %775 = vmatpush.bf16.msra.mxu1 %v1446_v27 }
  0x2b   : > { %687 = vmatmul.bf16.vlgmr.msra.gmra.mxu0 %v1111_v30  ;;  %747 = vmatmul.bf16.vlgmr.msra.gmra.mxu3 %v1255_v31  ;;  %v1413_v30 = vld [vmem:[%s1556_s5 + $0xb8] sm:$0xf0] }
  0x2c   : > { %1464 = vmatpush.bf16.msrb.mxu3 %v1531_v2  ;;  %776 = vmatmul.bf16.vlgmr.msra.gmra.mxu1 %v1115_v32  ;;  %v1147_v2 = vor.u32 %v1400_v61, %v1146_v60  ;;  %v1203_v31 = vor.u32 %v1413_v30, %v1202_v29  ;;  %v1182_v32 = vld [vmem:[%s1556_s5 + $0x90] sm:$0xf]  ;;  %v1286_v60 = vld [vmem:[%s1556_s5 + $0x158] sm:$0xf]  ;;  %v1434_v61 = vld [vmem:[%s1556_s5 + $0x160] sm:$0xf0] }
  0x2d   : > { %v1183_v38 = vor.u32 %v1409_v33, %v1182_v32 }
  0x30   : > { %1465 = vmatpush.bf16.msrb.mxu3 %v1452_v5  ;;  %v1178_v5 = vld [vmem:[%s1556_s5 + $0x80] sm:$0xf] }
  0x34   : > { %1466 = vmatpush.bf16.msrb.mxu3 %v1451_v7  ;;  %v1179_v7 = vor.u32 %v1407_v6, %v1178_v5 }
  0x35   : > { %1374 = vmatmul.msk.bf16.gmra.mxu2 %vm630_vm0, %v1143_v35  ;;  %v1280_v35 = vld [vmem:[%s1556_s5 + $0x15c] sm:$0xf0] }
  0x36   : > { %v1283_v39 = vor.u32 %v1432_v34, %v1280_v35 }
  0x38   : > { %1467 = vmatpush.bf16.msrb.mxu3 %v1450_v12  ;;  %v1402_v12 = vld [vmem:[%s1556_s5 + $0x64] sm:$0xf] }
  0x3b   : > { %692 = vmatmul.bf16.gmra.mxu0 %v1123_v42  ;;  %752 = vmatmul.bf16.gmra.mxu3 %v1267_v43  ;;  %v1416_v42 = vld [vmem:[%s1556_s5 + $0xd0] sm:$0xf0] }
  0x3c   : > { %1468 = vmatpush.bf16.msrb.mxu3 %v1449_v14  ;;  %781 = vmatmul.bf16.gmra.mxu1 %v1127_v44  ;;  %v1159_v14 = vor.u32 %v1403_v9, %v1158_v8  ;;  %v1215_v43 = vor.u32 %v1416_v42, %v1214_v41  ;;  %v1194_v44 = vld [vmem:[%s1556_s5 + $0xa8] sm:$0xf]  ;;  %v1250_v41 = vld [vmem:[%s1556_s5 + $0x110] sm:$0xf]  ;;  %v1425_v42 = vld [vmem:[%s1556_s5 + $0x118] sm:$0xf0] }
  0x3d   : > { %v1195_v50 = vor.u32 %v1412_v45, %v1194_v44  ;;  %v1251_v49 = vor.u32 %v1425_v42, %v1250_v41 }
  0x40   : > { %1469 = vmatpush.bf16.msrb.mxu3 %v1448_v16  ;;  %v1163_v16 = vor.u32 %v1402_v12, %v1160_v13  ;;  %v1422_v12 = vld [vmem:[%s1556_s5 + $0x100] sm:$0xf0] }
  0x44   : > { %1470 = vmatpush.bf16.msrb.mxu3 %v1447_v21  ;;  %v1406_v21 = vld [vmem:[%s1556_s5 + $0x80] sm:$0xf0] }
  0x45   : > { %1375 = vmatmul.msk.bf16.gmra.mxu2 %vm630_vm0, %v1155_v47  ;;  %v1171_v26 = vor.u32 %v1406_v21, %v1170_v20  ;;  %v1292_v47 = vld [vmem:[%s1556_s5 + $0x174] sm:$0xf0] }
  0x46   : > { %v1295_v51 = vor.u32 %v1435_v46, %v1292_v47  ;;  %v1218_v21 = vld [vmem:[%s1556_s5 + $0xd8] sm:$0xf] }
  0x48   : > { %1471 = vmatpush.bf16.msrb.mxu3 %v1446_v27  ;;  %v1271_v27 = vor.u32 %v1429_v22, %v1268_v23  ;;  %v1418_v22 = vld [vmem:[%s1556_s5 + $0xe0] sm:$0xf0]  ;;  %v1298_v23 = vld [vmem:[%s1556_s5 + $0x170] sm:$0xf] }
  0x49   : > { %v1219_v30 = vor.u32 %v1418_v22, %v1218_v21 }
  0x4b   : > { %697 = vmatmul.bf16.gmra.mxu0 %v1135_v54  ;;  %757 = vmatmul.bf16.gmra.mxu3 %v1279_v55  ;;  %v1226_v54 = vld [vmem:[%s1556_s5 + $0xe0] sm:$0xf]  ;;  %v1419_v55 = vld [vmem:[%s1556_s5 + $0xe8] sm:$0xf0] }
  0x4c   : > { %1472 = vmatpush.bf16.msra.mxu3 %v1526_v1  ;;  %786 = vmatmul.bf16.gmra.mxu1 %v1139_v56  ;;  %v1148_v1 = vld [vmem:[%s1556_s5 + $0x54] sm:$0xf0]  ;;  %v1227_v57 = vor.u32 %v1419_v55, %v1226_v54  ;;  %v1420_v54 = vld [vmem:[%s1556_s5 + $0xf4] sm:$0xf]  ;;  %v1232_v55 = vld [vmem:[%s1556_s5 + $0xfc] sm:$0xf0] }
  0x50   : > { %1473 = vmatpush.bf16.msra.mxu3 %v1541_v4  ;;  %v1151_v4 = vor.u32 %v1399_v0, %v1148_v1  ;;  %v1208_v0 = vld [vmem:[%s1556_s5 + $0xcc] sm:$0xf0] }
  0x51   : > { %v1211_v5 = vor.u32 %v1414_v63, %v1208_v0 }
  0x55   : > { %1376 = vmatmul.msk.bf16.gmra.mxu2 %vm630_vm0, %v1167_v59  ;;  %v1415_v59 = vld [vmem:[%s1556_s5 + $0xc8] sm:$0xf0] }
  0x56   : > { %v1207_v1 = vor.u32 %v1415_v59, %v1206_v58 }
  0x5b   : > { %702 = vmatmul.bf16.gmra.mxu0 %v1147_v2  ;;  %762 = vmatmul.bf16.gmra.mxu3 %v1291_v3  ;;  %v1287_v2 = vor.u32 %v1434_v61, %v1286_v60  ;;  %v1235_v61 = vor.u32 %v1420_v54, %v1232_v55 }
  0x5c   : > { %791 = vmatmul.bf16.gmra.mxu1 %v1151_v4 }
  0x65   : > { %1377 = vmatmul.msk.bf16.gmra.mxu2 %vm630_vm0, %v1179_v7 }
  0x6b   : > { %707 = vmatmul.bf16.gmra.mxu0 %v1159_v14  ;;  %836 = vmatmul.bf16.vlgmr.msrb.gmra.mxu3 %v1259_v15 }
  0x6c   : > { %796 = vmatmul.bf16.gmra.mxu1 %v1163_v16 }
  0x75   : > { %1378 = vmatmul.msk.bf16.gmra.mxu2 %vm630_vm0, %v1191_v19  ;;  %v1239_v19 = vor.u32 %v1422_v12, %v1238_v11 }
  0x7b   : > { %712 = vmatmul.bf16.gmra.mxu0 %v1171_v26  ;;  %841 = vmatmul.bf16.gmra.mxu3 %v1271_v27  ;;  %v1417_v26 = vld [vmem:[%s1556_s5 + $0xdc] sm:$0xf]  ;;  %v1220_v27 = vld [vmem:[%s1556_s5 + $0xe4] sm:$0xf0] }
  0x7c   : > { %801 = vmatmul.bf16.gmra.mxu1 %v1175_v28  ;;  %v1223_v34 = vor.u32 %v1417_v26, %v1220_v27 }
  0x85   : > { %1379 = vmatmul.msk.bf16.gmra.mxu2 %vm630_vm0, %v1203_v31  ;;  %v1299_v31 = vor.u32 %v1437_v24, %v1298_v23 }
  0x8b   : > { %717 = vmatmul.bf16.gmra.mxu0 %v1183_v38  ;;  %846 = vmatmul.bf16.gmra.mxu3 %v1283_v39 }
  0x8c   : > { %806 = vmatmul.bf16.gmra.mxu1 %v1187_v40 }
  0x95   : > { %1380 = vmatmul.msk.bf16.gmra.mxu2 %vm630_vm0, %v1215_v43 }
  0x98   : > { %v866_v52 = vpop.f32.mrf.mxu2 }
  0x9b   : > { %722 = vmatmul.bf16.gmra.mxu0 %v1195_v50  ;;  %851 = vmatmul.bf16.gmra.mxu3 %v1295_v51  ;;  %v1230_v51 = vld [vmem:[%s1556_s5 + $0xf0] sm:$0xf] }
  0x9c   : > { %811 = vmatmul.bf16.gmra.mxu1 %v1199_v53 }
  0xa0   : > { %v868_v56 = vpop.f32.mrf.mxu2 }
  0xa5   : > { %1381 = vmatmul.msk.bf16.gmra.mxu2 %vm630_vm0, %v1227_v57 }
  0xa8   : > { %v871_v3 = vpop.f32.mrf.mxu2  ;;  %v688_v4 = vpop.f32.mrf.mxu0 }
  0xa9   : > { %v689_v6 = vadd.f32 %v1679_v62, %v688_v4  ;;  %v777_v7 = vpop.f32.mrf.mxu1 }
  0xab   : > { %v778_v8 = vadd.f32 %v777_v7, %v689_v6  ;;  %727 = vmatmul.bf16.gmra.mxu0 %v1207_v1  ;;  %1386 = vmatmul.msk.bf16.vlgmr.msra.gmra.mxu3 %vm630_vm0, %v1287_v2  ;;  %v1428_v6 = vld [vmem:[%s1556_s5 + $0x130] sm:$0xf0] }
  0xac   : > { %816 = vmatmul.bf16.gmra.mxu1 %v1211_v5  ;;  %v1262_v5 = vld [vmem:[%s1556_s5 + $0x128] sm:$0xf] }
  0xad   : > { %v867_v9 = vadd.f32 %v866_v52, %v778_v8  ;;  %v1421_v52 = vld [vmem:[%s1556_s5 + $0xf8] sm:$0xf0] }
  0xae   : > { %v1686_v10 = vpop.f32.mrf.mxu3  ;;  %v1231_v58 = vor.u32 %v1421_v52, %v1230_v51 }
  0xaf   : > { %v946_v13 = vmax.f32 %v867_v9, 0.0  ;;  %v749_v54 = vadd.f32 %v1679_v62, %v1686_v10 }
  0xb0   : > { %v873_v14 = vpop.f32.mrf.mxu2  ;;  %v690_v15 = vpop.f32.mrf.mxu0 }
  0xb1   : > { %v978_v16 = vpack.c.bf16 %v946_v13, %v946_v13  ;;  %v691_v17 = vadd.f32 %v1679_v62, %v690_v15  ;;  %v779_v18 = vpop.f32.mrf.mxu1 }
  0xb3   : > { %1011 = vst.msk [vmem:[%s1693_s9] sm:$0xf] %vm1010_vm1, %v978_v16  ;;  %v780_v20 = vadd.f32 %v779_v18, %v691_v17  ;;  %v1242_v16 = vld [vmem:[%s1556_s5 + $0x108] sm:$0xf]  ;;  %v1424_v17 = vld [vmem:[%s1556_s5 + $0x110] sm:$0xf0] }
  0xb4   : > { %v1243_v23 = vor.u32 %v1424_v17, %v1242_v16 }
  0xb5   : > { %v869_v25 = vadd.f32 %v868_v56, %v780_v20  ;;  %1382 = vmatmul.msk.bf16.gmra.mxu2 %vm630_vm0, %v1239_v19  ;;  %v1423_v19 = vld [vmem:[%s1556_s5 + $0x10c] sm:$0xf]  ;;  %v1244_v20 = vld [vmem:[%s1556_s5 + $0x114] sm:$0xf0] }
  0xb6   : > { %v1705_v28 = vpop.f32.mrf.mxu3  ;;  %v1247_v26 = vor.u32 %v1423_v19, %v1244_v20 }
  0xb7   : > { %v947_v29 = vmax.f32 %v869_v25, 0.0 }
  0xb8   : > { %v876_v32 = vpop.f32.mrf.mxu2  ;;  %v693_v33 = vpop.f32.mrf.mxu0 }
  0xb9   : > { %v979_v35 = vpack.c.bf16 %v947_v29, %v947_v29  ;;  %v694_v36 = vadd.f32 %v1679_v62, %v693_v33  ;;  %v782_v37 = vpop.f32.mrf.mxu1 }
  0xbb   : > { %1012 = vst.msk [vmem:[%s1693_s9 + $0x4] sm:$0xf] %vm1010_vm1, %v979_v35  ;;  %v783_v38 = vadd.f32 %v782_v37, %v694_v36  ;;  %732 = vmatmul.bf16.gmra.mxu0 %v1219_v30  ;;  %1387 = vmatmul.msk.bf16.gmra.mxu3 %vm630_vm0, %v1299_v31  ;;  %v1431_v35 = vld [vmem:[%s1556_s5 + $0x148] sm:$0xf0] }
  0xbc   : > { %821 = vmatmul.bf16.gmra.mxu1 %v1223_v34  ;;  %v1274_v34 = vld [vmem:[%s1556_s5 + $0x140] sm:$0xf] }
  0xbd   : > { %v872_v39 = vadd.f32 %v871_v3, %v783_v38 }
  0xbe   : > { %v1711_v40 = vpop.f32.mrf.mxu3 }
  0xbf   : > { %v948_v43 = vmax.f32 %v872_v39, 0.0 }
  0xc0   : > { %v878_v44 = vpop.f32.mrf.mxu2  ;;  %v695_v45 = vpop.f32.mrf.mxu0 }
  0xc1   : > { %v980_v46 = vpack.c.bf16 %v948_v43, %v948_v43  ;;  %v696_v47 = vadd.f32 %v1679_v62, %v695_v45  ;;  %v784_v48 = vpop.f32.mrf.mxu1  ;;  %v1275_v43 = vor.u32 %v1431_v35, %v1274_v34 }
  0xc3   : > { %1013 = vst.msk [vmem:[%s1693_s9 + $0x8] sm:$0xf] %vm1010_vm1, %v980_v46  ;;  %v785_v50 = vadd.f32 %v784_v48, %v696_v47 }
  0xc5   : > { %v874_v53 = vadd.f32 %v873_v14, %v785_v50  ;;  %1383 = vmatmul.msk.bf16.gmra.mxu2 %vm630_vm0, %v1251_v49  ;;  %v1263_v14 = vor.u32 %v1428_v6, %v1262_v5 }
  0xc6   : > { %v1723_v56 = vpop.f32.mrf.mxu3 }
  0xc7   : > { %v949_v57 = vmax.f32 %v874_v53, 0.0 }
  0xc8   : > { %v881_v59 = vpop.f32.mrf.mxu2  ;;  %v698_v60 = vpop.f32.mrf.mxu0 }
  0xc9   : > { %v981_v63 = vpack.c.bf16 %v949_v57, %v949_v57  ;;  %v699_v0 = vadd.f32 %v1679_v62, %v698_v60  ;;  %v787_v1 = vpop.f32.mrf.mxu1 }
  0xcb   : > { %1014 = vst.msk [vmem:[%s1693_s9 + $0xc] sm:$0xf] %vm1010_vm1, %v981_v63  ;;  %v788_v2 = vadd.f32 %v787_v1, %v699_v0  ;;  %737 = vmatmul.bf16.gmra.mxu0 %v1231_v58 }
  0xcc   : > { %826 = vmatmul.bf16.gmra.mxu1 %v1235_v61 }
  0xcd   : > { %v877_v3 = vadd.f32 %v876_v32, %v788_v2 }
  0xce   : > { %v1728_v4 = vpop.f32.mrf.mxu3 }
  0xcf   : > { %v950_v7 = vmax.f32 %v877_v3, 0.0  ;;  %v751_v3 = vadd.f32 %v1679_v62, %v1705_v28 }
  0xd0   : > { %v883_v8 = vpop.f32.mrf.mxu2  ;;  %v700_v9 = vpop.f32.mrf.mxu0 }
  0xd1   : > { %v982_v11 = vpack.c.bf16 %v950_v7, %v950_v7  ;;  %v701_v12 = vadd.f32 %v1679_v62, %v700_v9  ;;  %v789_v13 = vpop.f32.mrf.mxu1 }
  0xd3   : > { %1015 = vst.msk [vmem:[%s1693_s9 + $0x10] sm:$0xf] %vm1010_vm1, %v982_v11  ;;  %v790_v15 = vadd.f32 %v789_v13, %v701_v12 }
  0xd5   : > { %v879_v18 = vadd.f32 %v878_v44, %v790_v15  ;;  %1384 = vmatmul.msk.bf16.gmra.mxu2 %vm630_vm0, %v1263_v14  ;;  %v754_v15 = vadd.f32 %v1679_v62, %v1711_v40 }
  0xd6   : > { %v1740_v21 = vpop.f32.mrf.mxu3 }
  0xd7   : > { %v951_v22 = vmax.f32 %v879_v18, 0.0 }
  0xd8   : > { %v886_v24 = vpop.f32.mrf.mxu2  ;;  %v703_v25 = vpop.f32.mrf.mxu0 }
  0xd9   : > { %v983_v27 = vpack.c.bf16 %v951_v22, %v951_v22  ;;  %v704_v29 = vadd.f32 %v1679_v62, %v703_v25  ;;  %v792_v30 = vpop.f32.mrf.mxu1 }
  0xdb   : > { %1016 = vst.msk [vmem:[%s1693_s9 + $0x14] sm:$0xf] %vm1010_vm1, %v983_v27  ;;  %v793_v31 = vadd.f32 %v792_v30, %v704_v29  ;;  %742 = vmatmul.bf16.gmra.mxu0 %v1243_v23 }
  0xdc   : > { %831 = vmatmul.bf16.gmra.mxu1 %v1247_v26  ;;  %v756_v26 = vadd.f32 %v1679_v62, %v1723_v56 }
  0xdd   : > { %v882_v32 = vadd.f32 %v881_v59, %v793_v31 }
  0xde   : > { %v1745_v33 = vpop.f32.mrf.mxu3 }
  0xdf   : > { %v952_v36 = vmax.f32 %v882_v32, 0.0 }
  0xe0   : > { %v888_v37 = vpop.f32.mrf.mxu2  ;;  %v705_v38 = vpop.f32.mrf.mxu0 }
  0xe1   : > { %v984_v39 = vpack.c.bf16 %v952_v36, %v952_v36  ;;  %v706_v41 = vadd.f32 %v1679_v62, %v705_v38  ;;  %v794_v42 = vpop.f32.mrf.mxu1 }
  0xe3   : > { %1017 = vst.msk [vmem:[%s1693_s9 + $0x18] sm:$0xf] %vm1010_vm1, %v984_v39  ;;  %v795_v44 = vadd.f32 %v794_v42, %v706_v41 }
  0xe5   : > { %v884_v45 = vadd.f32 %v883_v8, %v795_v44  ;;  %1385 = vmatmul.msk.bf16.gmra.mxu2 %vm630_vm0, %v1275_v43 }
  0xe6   : > { %v1753_v46 = vpop.f32.mrf.mxu3 }
  0xe7   : > { %v953_v47 = vmax.f32 %v884_v45, 0.0 }
  0xe8   : > { %v891_v48 = vpop.f32.mrf.mxu2  ;;  %v708_v49 = vpop.f32.mrf.mxu0 }
  0xe9   : > { %v985_v50 = vpack.c.bf16 %v953_v47, %v953_v47  ;;  %v709_v51 = vadd.f32 %v1679_v62, %v708_v49  ;;  %v797_v52 = vpop.f32.mrf.mxu1 }
  0xeb   : > { %1018 = vst.msk [vmem:[%s1693_s9 + $0x1c] sm:$0xf] %vm1010_vm1, %v985_v50  ;;  %v798_v53 = vadd.f32 %v797_v52, %v709_v51 }
  0xed   : > { %v887_v55 = vadd.f32 %v886_v24, %v798_v53 }
  0xee   : > { %v837_v57 = vpop.f32.mrf.mxu3 }
  0xef   : > { %v954_v58 = vmax.f32 %v887_v55, 0.0  ;;  %v1760_v59 = vadd.f32 %v837_v57, %v749_v54 }
  0xf0   : > { %v893_v60 = vpop.f32.mrf.mxu2  ;;  %v710_v61 = vpop.f32.mrf.mxu0 }
  0xf1   : > { %v986_v63 = vpack.c.bf16 %v954_v58, %v954_v58  ;;  %v711_v0 = vadd.f32 %v1679_v62, %v710_v61  ;;  %v799_v1 = vpop.f32.mrf.mxu1 }
  0xf3   : > { %1019 = vst.msk [vmem:[%s1693_s9 + $0x20] sm:$0xf] %vm1010_vm1, %v986_v63  ;;  %v800_v2 = vadd.f32 %v799_v1, %v711_v0 }
  0xf5   : > { %v889_v5 = vadd.f32 %v888_v37, %v800_v2 }
  0xf6   : > { %v839_v10 = vpop.f32.mrf.mxu3 }
  0xf7   : > { %v955_v6 = vmax.f32 %v889_v5, 0.0  ;;  %v1767_v7 = vadd.f32 %v839_v10, %v751_v3 }
  0xf8   : > { %v896_v8 = vpop.f32.mrf.mxu2  ;;  %v713_v9 = vpop.f32.mrf.mxu0 }
  0xf9   : > { %v987_v11 = vpack.c.bf16 %v955_v6, %v955_v6  ;;  %v714_v12 = vadd.f32 %v1679_v62, %v713_v9  ;;  %v802_v13 = vpop.f32.mrf.mxu1 }
  0xfb   : > { %1020 = vst.msk [vmem:[%s1693_s9 + $0x24] sm:$0xf] %vm1010_vm1, %v987_v11  ;;  %v803_v14 = vadd.f32 %v802_v13, %v714_v12 }
  0xfd   : > { %v892_v16 = vadd.f32 %v891_v48, %v803_v14 }
  0xfe   : > { %v842_v28 = vpop.f32.mrf.mxu3 }
  0xff   : > { %v956_v17 = vmax.f32 %v892_v16, 0.0  ;;  %v1774_v18 = vadd.f32 %v842_v28, %v754_v15  ;;  %v759_v15 = vadd.f32 %v1679_v62, %v1728_v4 }
 0x100   : > { %v898_v19 = vpop.f32.mrf.mxu2  ;;  %v715_v20 = vpop.f32.mrf.mxu0 }
 0x101   : > { %v988_v22 = vpack.c.bf16 %v956_v17, %v956_v17  ;;  %v716_v23 = vadd.f32 %v1679_v62, %v715_v20  ;;  %v804_v24 = vpop.f32.mrf.mxu1 }
 0x103   : > { %1021 = vst.msk [vmem:[%s1693_s9 + $0x28] sm:$0xf] %vm1010_vm1, %v988_v22  ;;  %v805_v25 = vadd.f32 %v804_v24, %v716_v23 }
 0x105   : > { %v894_v27 = vadd.f32 %v893_v60, %v805_v25 }
 0x106   : > { %v844_v40 = vpop.f32.mrf.mxu3 }
 0x107   : > { %v957_v29 = vmax.f32 %v894_v27, 0.0  ;;  %v1781_v30 = vadd.f32 %v844_v40, %v756_v26 }
 0x108   : > { %v901_v31 = vpop.f32.mrf.mxu2  ;;  %v718_v32 = vpop.f32.mrf.mxu0 }
 0x109   : > { %v989_v34 = vpack.c.bf16 %v957_v29, %v957_v29  ;;  %v719_v35 = vadd.f32 %v1679_v62, %v718_v32  ;;  %v807_v36 = vpop.f32.mrf.mxu1  ;;  %v761_v29 = vadd.f32 %v1679_v62, %v1740_v21 }
 0x10b   : > { %1022 = vst.msk [vmem:[%s1693_s9 + $0x2c] sm:$0xf] %vm1010_vm1, %v989_v34  ;;  %v808_v37 = vadd.f32 %v807_v36, %v719_v35 }
 0x10d   : > { %v897_v38 = vadd.f32 %v896_v8, %v808_v37 }
 0x10e   : > { %v847_v39 = vpop.f32.mrf.mxu3 }
 0x10f   : > { %v958_v41 = vmax.f32 %v897_v38, 0.0  ;;  %v848_v28 = vadd.f32 %v847_v39, %v759_v15 }
 0x110   : > { %v903_v56 = vpop.f32.mrf.mxu2  ;;  %v720_v42 = vpop.f32.mrf.mxu0 }
 0x111   : > { %v990_v43 = vpack.c.bf16 %v958_v41, %v958_v41  ;;  %v721_v44 = vadd.f32 %v1679_v62, %v720_v42  ;;  %v809_v45 = vpop.f32.mrf.mxu1 }
 0x113   : > { %1023 = vst.msk [vmem:[%s1693_s9 + $0x30] sm:$0xf] %vm1010_vm1, %v990_v43  ;;  %v810_v47 = vadd.f32 %v809_v45, %v721_v44  ;;  %v764_v43 = vadd.f32 %v1679_v62, %v1745_v33 }
 0x115   : > { %v899_v48 = vadd.f32 %v898_v19, %v810_v47 }
 0x116   : > { %v849_v49 = vpop.f32.mrf.mxu3 }
 0x117   : > { %v959_v50 = vmax.f32 %v899_v48, 0.0  ;;  %v850_v32 = vadd.f32 %v849_v49, %v761_v29 }
 0x118   : > { %v906_v51 = vpop.f32.mrf.mxu2  ;;  %v723_v52 = vpop.f32.mrf.mxu0 }
 0x119   : > { %v991_v53 = vpack.c.bf16 %v959_v50, %v959_v50  ;;  %v724_v54 = vadd.f32 %v1679_v62, %v723_v52  ;;  %v812_v55 = vpop.f32.mrf.mxu1 }
 0x11b   : > { %1024 = vst.msk [vmem:[%s1693_s9 + $0x34] sm:$0xf] %vm1010_vm1, %v991_v53  ;;  %v813_v57 = vadd.f32 %v812_v55, %v724_v54 }
 0x11d   : > { %v902_v58 = vadd.f32 %v901_v31, %v813_v57 }
 0x11e   : > { %v852_v60 = vpop.f32.mrf.mxu3 }
 0x11f   : > { %v960_v61 = vmax.f32 %v902_v58, 0.0  ;;  %v853_v47 = vadd.f32 %v852_v60, %v764_v43  ;;  %v766_v58 = vadd.f32 %v1679_v62, %v1753_v46 }
 0x120   : > { %v908_v63 = vpop.f32.mrf.mxu2  ;;  %v725_v0 = vpop.f32.mrf.mxu0 }
 0x121   : > { %v992_v1 = vpack.c.bf16 %v960_v61, %v960_v61  ;;  %v726_v2 = vadd.f32 %v1679_v62, %v725_v0  ;;  %v814_v3 = vpop.f32.mrf.mxu1 }
 0x123   : > { %1025 = vst.msk [vmem:[%s1693_s9 + $0x38] sm:$0xf] %vm1010_vm1, %v992_v1  ;;  %v815_v5 = vadd.f32 %v814_v3, %v726_v2 }
 0x125   : > { %v904_v10 = vadd.f32 %v903_v56, %v815_v5 }
 0x126   : > { %v854_v6 = vpop.f32.mrf.mxu3 }
 0x127   : > { %v961_v8 = vmax.f32 %v904_v10, 0.0 }
 0x128   : > { %v911_v9 = vpop.f32.mrf.mxu2  ;;  %v728_v11 = vpop.f32.mrf.mxu0 }
 0x129   : > { %v993_v12 = vpack.c.bf16 %v961_v8, %v961_v8  ;;  %v729_v13 = vadd.f32 %v1679_v62, %v728_v11  ;;  %v817_v14 = vpop.f32.mrf.mxu1 }
 0x12b   : > { %1026 = vst.msk [vmem:[%s1693_s9 + $0x3c] sm:$0xf] %vm1010_vm1, %v993_v12  ;;  %v818_v16 = vadd.f32 %v817_v14, %v729_v13 }
 0x12d   : > { %v907_v17 = vadd.f32 %v906_v51, %v818_v16 }
 0x12e   : > { %v936_v19 = vpop.f32.mrf.mxu3 }
 0x12f   : > { %v962_v20 = vmax.f32 %v907_v17, 0.0  ;;  %v937_v22 = vadd.f32 %v936_v19, %v848_v28 }
 0x130   : > { %v913_v23 = vpop.f32.mrf.mxu2  ;;  %v730_v24 = vpop.f32.mrf.mxu0 }
 0x131   : > { %v994_v25 = vpack.c.bf16 %v962_v20, %v962_v20  ;;  %v974_v26 = vmax.f32 %v937_v22, 0.0  ;;  %v731_v27 = vadd.f32 %v1679_v62, %v730_v24  ;;  %v819_v40 = vpop.f32.mrf.mxu1 }
 0x133   : > { %1027 = vst.msk [vmem:[%s1693_s9 + $0x40] sm:$0xf] %vm1010_vm1, %v994_v25  ;;  %v1006_v4 = vpack.c.bf16 %v974_v26, %v974_v26  ;;  %v820_v31 = vadd.f32 %v819_v40, %v731_v27 }
 0x135   : > { %1039 = vst.msk [vmem:[%s1693_s9 + $0x70] sm:$0xf] %vm1010_vm1, %v1006_v4  ;;  %v909_v34 = vadd.f32 %v908_v63, %v820_v31  ;;  %v855_v63 = vadd.f32 %v854_v6, %v766_v58 }
 0x136   : > { %v938_v35 = vpop.f32.mrf.mxu3 }
 0x137   : > { %v963_v36 = vmax.f32 %v909_v34, 0.0  ;;  %v939_v37 = vadd.f32 %v938_v35, %v850_v32 }
 0x138   : > { %v916_v38 = vpop.f32.mrf.mxu2  ;;  %v733_v39 = vpop.f32.mrf.mxu0 }
 0x139   : > { %v995_v41 = vpack.c.bf16 %v963_v36, %v963_v36  ;;  %v975_v56 = vmax.f32 %v939_v37, 0.0  ;;  %v734_v42 = vadd.f32 %v1679_v62, %v733_v39  ;;  %v822_v21 = vpop.f32.mrf.mxu1 }
 0x13b   : > { %1028 = vst.msk [vmem:[%s1693_s9 + $0x44] sm:$0xf] %vm1010_vm1, %v995_v41  ;;  %v1007_v44 = vpack.c.bf16 %v975_v56, %v975_v56  ;;  %v823_v45 = vadd.f32 %v822_v21, %v734_v42 }
 0x13d   : > { %1040 = vst.msk [vmem:[%s1693_s9 + $0x74] sm:$0xf] %vm1010_vm1, %v1007_v44  ;;  %v912_v48 = vadd.f32 %v911_v9, %v823_v45 }
 0x13e   : > { %v941_v49 = vpop.f32.mrf.mxu3 }
 0x13f   : > { %v964_v50 = vmax.f32 %v912_v48, 0.0  ;;  %v942_v51 = vadd.f32 %v941_v49, %v853_v47 }
 0x140   : > { %v918_v52 = vpop.f32.mrf.mxu2  ;;  %v735_v53 = vpop.f32.mrf.mxu0 }
 0x141   : > { %v996_v54 = vpack.c.bf16 %v964_v50, %v964_v50  ;;  %v976_v55 = vmax.f32 %v942_v51, 0.0  ;;  %v736_v57 = vadd.f32 %v1679_v62, %v735_v53  ;;  %v824_v33 = vpop.f32.mrf.mxu1 }
 0x143   : > { %1029 = vst.msk [vmem:[%s1693_s9 + $0x48] sm:$0xf] %vm1010_vm1, %v996_v54  ;;  %v1008_v60 = vpack.c.bf16 %v976_v55, %v976_v55  ;;  %v825_v61 = vadd.f32 %v824_v33, %v736_v57 }
 0x145   : > { %1041 = vst.msk [vmem:[%s1693_s9 + $0x78] sm:$0xf] %vm1010_vm1, %v1008_v60  ;;  %v914_v0 = vadd.f32 %v913_v23, %v825_v61 }
 0x146   : > { %v943_v1 = vpop.f32.mrf.mxu3 }
 0x147   : > { %v965_v2 = vmax.f32 %v914_v0, 0.0  ;;  %v944_v3 = vadd.f32 %v943_v1, %v855_v63 }
 0x148   : > { %v921_v5 = vpop.f32.mrf.mxu2  ;;  %v738_v10 = vpop.f32.mrf.mxu0 }
 0x149   : > { %v997_v8 = vpack.c.bf16 %v965_v2, %v965_v2  ;;  %v977_v9 = vmax.f32 %v944_v3, 0.0  ;;  %v739_v46 = vadd.f32 %v1679_v62, %v738_v10  ;;  %v827_v11 = vpop.f32.mrf.mxu1 }
 0x14b   : > { %1030 = vst.msk [vmem:[%s1693_s9 + $0x4c] sm:$0xf] %vm1010_vm1, %v997_v8  ;;  %v1009_v12 = vpack.c.bf16 %v977_v9, %v977_v9  ;;  %v828_v13 = vadd.f32 %v827_v11, %v739_v46 }
 0x14d   : > { %1042 = vst.msk [vmem:[%s1693_s9 + $0x7c] sm:$0xf] %vm1010_vm1, %v1009_v12  ;;  %v917_v6 = vadd.f32 %v916_v38, %v828_v13 }
 0x14f   : > { %v966_v14 = vmax.f32 %v917_v6, 0.0 }
 0x150   : > { %v923_v15 = vpop.f32.mrf.mxu2  ;;  %v740_v16 = vpop.f32.mrf.mxu0 }
 0x151   : > { %v998_v28 = vpack.c.bf16 %v966_v14, %v966_v14  ;;  %v741_v17 = vadd.f32 %v1679_v62, %v740_v16  ;;  %v829_v19 = vpop.f32.mrf.mxu1 }
 0x153   : > { %1031 = vst.msk [vmem:[%s1693_s9 + $0x50] sm:$0xf] %vm1010_vm1, %v998_v28  ;;  %v830_v20 = vadd.f32 %v829_v19, %v741_v17 }
 0x155   : > { %v919_v22 = vadd.f32 %v918_v52, %v830_v20 }
 0x157   : > { %v967_v23 = vmax.f32 %v919_v22, 0.0 }
 0x158   : > { %v926_v24 = vpop.f32.mrf.mxu2  ;;  %v743_v25 = vpop.f32.mrf.mxu0 }
 0x159   : > { %v999_v26 = vpack.c.bf16 %v967_v23, %v967_v23  ;;  %v927_v27 = vadd.f32 %v926_v24, %v1760_v59  ;;  %v744_v40 = vadd.f32 %v1679_v62, %v743_v25  ;;  %v832_v29 = vpop.f32.mrf.mxu1 }
 0x15b   : > { %1032 = vst.msk [vmem:[%s1693_s9 + $0x54] sm:$0xf] %vm1010_vm1, %v999_v26  ;;  %v970_v4 = vmax.f32 %v927_v27, 0.0  ;;  %v833_v31 = vadd.f32 %v832_v29, %v744_v40 }
 0x15d   : > { %v1002_v32 = vpack.c.bf16 %v970_v4, %v970_v4  ;;  %v922_v34 = vadd.f32 %v921_v5, %v833_v31 }
 0x15f   : > { %1035 = vst.msk [vmem:[%s1693_s9 + $0x60] sm:$0xf] %vm1010_vm1, %v1002_v32  ;;  %v968_v35 = vmax.f32 %v922_v34, 0.0 }
 0x160   : > { %v928_v36 = vpop.f32.mrf.mxu2  ;;  %v745_v37 = vpop.f32.mrf.mxu0 }
 0x161   : > { %v1000_v38 = vpack.c.bf16 %v968_v35, %v968_v35  ;;  %v929_v59 = vadd.f32 %v928_v36, %v1767_v7  ;;  %v746_v39 = vadd.f32 %v1679_v62, %v745_v37  ;;  %v834_v41 = vpop.f32.mrf.mxu1 }
 0x163   : > { %1033 = vst.msk [vmem:[%s1693_s9 + $0x58] sm:$0xf] %vm1010_vm1, %v1000_v38  ;;  %v971_v56 = vmax.f32 %v929_v59, 0.0  ;;  %v835_v42 = vadd.f32 %v834_v41, %v746_v39 }
 0x165   : > { %v1003_v21 = vpack.c.bf16 %v971_v56, %v971_v56  ;;  %v924_v43 = vadd.f32 %v923_v15, %v835_v42 }
 0x167   : > { %1036 = vst.msk [vmem:[%s1693_s9 + $0x64] sm:$0xf] %vm1010_vm1, %v1003_v21  ;;  %v969_v44 = vmax.f32 %v924_v43, 0.0 }
 0x168   : > { %v931_v45 = vpop.f32.mrf.mxu2 }
 0x169   : > { %v1001_v47 = vpack.c.bf16 %v969_v44, %v969_v44  ;;  %v932_v48 = vadd.f32 %v931_v45, %v1774_v18 }
 0x16b   : > { %1034 = vst.msk [vmem:[%s1693_s9 + $0x5c] sm:$0xf] %vm1010_vm1, %v1001_v47  ;;  %v972_v7 = vmax.f32 %v932_v48, 0.0 }
 0x16d   : > { %v1004_v49 = vpack.c.bf16 %v972_v7, %v972_v7 }
 0x16f   : > { %1037 = vst.msk [vmem:[%s1693_s9 + $0x68] sm:$0xf] %vm1010_vm1, %v1004_v49 }
 0x170   : > { %v933_v62 = vpop.f32.mrf.mxu2 }
 0x171   : > { %v934_v50 = vadd.f32 %v933_v62, %v1781_v30 }
 0x173   : > { %v973_v51 = vmax.f32 %v934_v50, 0.0 }
 0x175   : > { %v1005_v52 = vpack.c.bf16 %v973_v51, %v973_v51 }
 0x177   : > { %1038 = vst.msk [vmem:[%s1693_s9 + $0x6c] sm:$0xf] %vm1010_vm1, %v1005_v52 }
 0x178 PF: > { %s13_s12 = sadd.s32 1, %s1490_s12  }
 0x179   : > { %p10_p4 = scmp.ge.s32.totalorder %s13_s12, 4  }
 0x17b   :  { %12 = sbr.rel (!%p10_p4) target bundleno = 1 (0x1), region = 62 }

// kernel: finetune_net_wa_forward.44
= control target key start
LH: loop header
LB: loop body
LE: loop exit
PB: predicated region body
PF: predicated region fallthrough
CT: control target
= control target key end

     0   :  { %s1755_s15 = smov 0   ;;  %s2126_s0 = inlined_call_operand.vmem [shape: bf16[512,288], index: 0, kind: input, shape index: {}]   ;;  %s2127_s1 = inlined_call_operand.vmem [shape: bf16[288,32], index: 1, kind: input, shape index: {}]   ;;  %s2128_s2 = inlined_call_operand.vmem [shape: f32[1,32], index: 2, kind: input, shape index: {}]   ;;  %s2129_s3 = inlined_call_operand.vmem [shape: bf16[512,32], index: 3, kind: input, shape index: {}]   ;;  %s2130_s4 = inlined_call_operand.vmem [shape: bf16[512,32], index: 4, kind: output, shape index: {}]  }
   0x1 LB: > { %s1256_s16 = sadd.s32 4294967295, %s1728_s15   ;;  %p1260_p0 = scmp.ge.s32.totalorder %s1728_s15, 1  ;;  %s1728_s15 = sphi %s1755_s15, %s14_s15  }
   0x2   : > { %p175_p1 = scmp.lt.s32.totalorder %s1728_s15, 3 }
   0x4   : > { %p176_p2 = pnand %p1260_p0, %p175_p1 }
   0x5   : > { %s1261_s23 = sshll.u32 (!%p176_p2), %s1256_s16, 5 }
   0x6   : > { %179 = sbr.rel (%p176_p2) target bundleno = 378 (0x17a), region = 36  ;;  %p208_p3 = scmp.lt.s32.totalorder (!%p176_p2), %s1261_s23, 63 }
   0xb   : > { %v1604_v0 = vld [vmem:[%s2127_s1 + $0x38] sm:$0xff]  ;;  %v1769_v1 = vld [vmem:[%s2127_s1 + $0x88] sm:$0xff]  ;;  %v1603_v3 = vld [vmem:[%s2127_s1 + $0x30] sm:$0xff]  ;;  %s2132_s23 = smov (!%p208_p3, %s1261_s23), 63  ;;  %vm679_vm0 = vcmask 261120   ;;  %vm1155_vm1 = vcmask 257024  }
   0xc   : > { %v1774_v2 = vld [vmem:[%s2127_s1 + $0x78] sm:$0xff]  ;;  %728 = vmatpush.bf16.msra.mxu0 %v1604_v0  ;;  %1694 = vmatpush.bf16.msra.mxu3 %v1604_v0  ;;  %v1784_v4 = vld [vmem:[%s2127_s1 + $0x80] sm:$0xff]  ;;  %v1611_v5 = vld [vmem:[%s2127_s1 + $0x70] sm:$0xff]  ;;  %s1712_s30 = smul.u32 12, %s2132_s23  ;;  %s1264_s8 = sshll.u32 %s2132_s23, 2 }
   0xd   : > { %912 = vmatpush.bf16.msra.mxu2 %v1769_v1  ;;  %817 = vmatpush.bf16.msra.mxu1 %v1774_v2  ;;  %v1602_v6 = vld [vmem:[%s2127_s1 + $0x28] sm:$0xff]  ;;  %v1601_v11 = vld [vmem:[%s2127_s1 + $0x20] sm:$0xff]  ;;  %v1600_v13 = vld [vmem:[%s2127_s1 + $0x18] sm:$0xff]  ;;  %s1930_s14 = scalar_lea.vmem %s2129_s3, %s1264_s8  ;;  %s1947_s18 = scalar_lea.vmem %s2130_s4, %s1264_s8 }
   0xe   : > { %s1799_s9 = scalar_lea.vmem %s2126_s0, %s1712_s30  ;;  %v1610_v7 = vld [vmem:[%s2127_s1 + $0x68] sm:$0xff]  ;;  %v1609_v12 = vld [vmem:[%s2127_s1 + $0x60] sm:$0xff]  ;;  %v1608_v14 = vld [vmem:[%s2127_s1 + $0x58] sm:$0xff] }
   0xf   : > { %v1277_v8 = vld [vmem:[%s1799_s9 + $0x8] sm:$0xf]  ;;  %v1551_v9 = vld [vmem:[%s1799_s9 + $0x10] sm:$0xf0]  ;;  %v1289_v17 = vld [vmem:[%s1799_s9 + $0x20] sm:$0xf] }
  0x10   : > { %729 = vmatpush.bf16.msra.mxu0 %v1603_v3  ;;  %1695 = vmatpush.bf16.msra.mxu3 %v1603_v3  ;;  %v1278_v10 = vor.u32 %v1551_v9, %v1277_v8  ;;  %v1599_v15 = vld [vmem:[%s2127_s1 + $0x10] sm:$0xff]  ;;  %v1554_v18 = vld [vmem:[%s1799_s9 + $0x28] sm:$0xf0]  ;;  %v1597_v22 = vld [vmem:[%s2127_s1] sm:$0xff] }
  0x11   : > { %913 = vmatpush.bf16.msra.mxu2 %v1784_v4  ;;  %818 = vmatpush.bf16.msra.mxu1 %v1611_v5  ;;  %v1607_v16 = vld [vmem:[%s2127_s1 + $0x50] sm:$0xff]  ;;  %v1598_v19 = vld [vmem:[%s2127_s1 + $0x8] sm:$0xff]  ;;  %v1290_v20 = vor.u32 %v1554_v18, %v1289_v17  ;;  %v1269_v23 = vld [vmem:[%s1799_s9] sm:$0xf] }
  0x12   : > { %v1606_v21 = vld [vmem:[%s2127_s1 + $0x48] sm:$0xff]  ;;  %v1413_v25 = vld [vmem:[%s1799_s9 + $0x120] sm:$0xf]  ;;  %v1549_v28 = vld [vmem:[%s1799_s9 + $0x4] sm:$0xf] }
  0x13   : > { %v1550_v24 = vld [vmem:[%s1799_s9 + $0x8] sm:$0xf0]  ;;  %v1605_v27 = vld [vmem:[%s2127_s1 + $0x40] sm:$0xff]  ;;  %v1271_v29 = vld [vmem:[%s1799_s9 + $0xc] sm:$0xf0] }
  0x14   : > { %730 = vmatpush.bf16.msra.mxu0 %v1602_v6  ;;  %1696 = vmatpush.bf16.msra.mxu3 %v1602_v6  ;;  %v1586_v26 = vld [vmem:[%s1799_s9 + $0x128] sm:$0xf0]  ;;  %v1270_v30 = vor.u32 %v1550_v24, %v1269_v23  ;;  %v1274_v32 = vor.u32 %v1549_v28, %v1271_v29  ;;  %v1301_v33 = vld [vmem:[%s1799_s9 + $0x38] sm:$0xf]  ;;  %v1557_v34 = vld [vmem:[%s1799_s9 + $0x40] sm:$0xf0] }
  0x15   : > { %1531 = vmatmul.msk.bf16.vlgmr.msra.gmra.mxu2 %vm679_vm0, %v1278_v10  ;;  %819 = vmatpush.bf16.msra.mxu1 %v1610_v7  ;;  %v1414_v31 = vor.u32 %v1586_v26, %v1413_v25  ;;  %v1302_v35 = vor.u32 %v1557_v34, %v1301_v33  ;;  %v1281_v36 = vld [vmem:[%s1799_s9 + $0x18] sm:$0xf]  ;;  %v1553_v37 = vld [vmem:[%s1799_s9 + $0x20] sm:$0xf0]  ;;  %v1552_v40 = vld [vmem:[%s1799_s9 + $0x1c] sm:$0xf] }
  0x16   : > { %v1425_v38 = vld [vmem:[%s1799_s9 + $0x138] sm:$0xf]  ;;  %v1589_v39 = vld [vmem:[%s1799_s9 + $0x140] sm:$0xf0]  ;;  %v1283_v41 = vld [vmem:[%s1799_s9 + $0x24] sm:$0xf0]  ;;  %v1282_v42 = vor.u32 %v1553_v37, %v1281_v36 }
  0x17   : > { %v1426_v43 = vor.u32 %v1589_v39, %v1425_v38  ;;  %v1286_v44 = vor.u32 %v1552_v40, %v1283_v41  ;;  %v1313_v45 = vld [vmem:[%s1799_s9 + $0x50] sm:$0xf]  ;;  %v1560_v46 = vld [vmem:[%s1799_s9 + $0x58] sm:$0xf0]  ;;  %v1555_v52 = vld [vmem:[%s1799_s9 + $0x34] sm:$0xf] }
  0x18   : > { %731 = vmatpush.bf16.msra.mxu0 %v1601_v11  ;;  %1697 = vmatpush.bf16.msra.mxu3 %v1601_v11  ;;  %v1314_v47 = vor.u32 %v1560_v46, %v1313_v45  ;;  %v1293_v48 = vld [vmem:[%s1799_s9 + $0x30] sm:$0xf]  ;;  %v1556_v49 = vld [vmem:[%s1799_s9 + $0x38] sm:$0xf0]  ;;  %v1295_v53 = vld [vmem:[%s1799_s9 + $0x3c] sm:$0xf0] }
  0x19   : > { %820 = vmatpush.bf16.msra.mxu1 %v1609_v12  ;;  %v1437_v50 = vld [vmem:[%s1799_s9 + $0x150] sm:$0xf]  ;;  %v1592_v51 = vld [vmem:[%s1799_s9 + $0x158] sm:$0xf0]  ;;  %v1294_v54 = vor.u32 %v1556_v49, %v1293_v48  ;;  %v1298_v56 = vor.u32 %v1555_v52, %v1295_v53  ;;  %v1325_v57 = vld [vmem:[%s1799_s9 + $0x68] sm:$0xf] }
  0x1a   : > { %v1438_v55 = vor.u32 %v1592_v51, %v1437_v50  ;;  %v1563_v58 = vld [vmem:[%s1799_s9 + $0x70] sm:$0xf0]  ;;  %v1305_v60 = vld [vmem:[%s1799_s9 + $0x48] sm:$0xf]  ;;  %v1558_v0 = vld [vmem:[%s1799_s9 + $0x4c] sm:$0xf] }
  0x1b   : > { %v1326_v59 = vor.u32 %v1563_v58, %v1325_v57  ;;  %v1559_v61 = vld [vmem:[%s1799_s9 + $0x50] sm:$0xf0]  ;;  %v1449_v62 = vld [vmem:[%s1799_s9 + $0x168] sm:$0xf]  ;;  %v1566_v6 = vld [vmem:[%s1799_s9 + $0x88] sm:$0xf0] }
  0x1c   : > { %732 = vmatpush.bf16.msra.mxu0 %v1600_v13  ;;  %1698 = vmatpush.bf16.msra.mxu3 %v1600_v13  ;;  %v1595_v63 = vld [vmem:[%s1799_s9 + $0x170] sm:$0xf0]  ;;  %v1317_v8 = vld [vmem:[%s1799_s9 + $0x60] sm:$0xf]  ;;  %v1562_v9 = vld [vmem:[%s1799_s9 + $0x68] sm:$0xf0] }
  0x1d   : > { %821 = vmatpush.bf16.msra.mxu1 %v1608_v14  ;;  %v1450_v3 = vor.u32 %v1595_v63, %v1449_v62  ;;  %v1585_v10 = vld [vmem:[%s1799_s9 + $0x124] sm:$0xf]  ;;  %v1415_v11 = vld [vmem:[%s1799_s9 + $0x12c] sm:$0xf0]  ;;  %v1349_v17 = vld [vmem:[%s1799_s9 + $0x98] sm:$0xf] }
  0x1e   : > { %v1319_v13 = vld [vmem:[%s1799_s9 + $0x6c] sm:$0xf0]  ;;  %v1569_v18 = vld [vmem:[%s1799_s9 + $0xa0] sm:$0xf0]  ;;  %v1427_v23 = vld [vmem:[%s1799_s9 + $0x144] sm:$0xf0] }
  0x1f   : > { %v1564_v24 = vld [vmem:[%s1799_s9 + $0x7c] sm:$0xf]  ;;  %v1331_v25 = vld [vmem:[%s1799_s9 + $0x84] sm:$0xf0]  ;;  %v1361_v29 = vld [vmem:[%s1799_s9 + $0xb0] sm:$0xf] }
  0x20   : > { %733 = vmatpush.bf16.msra.mxu0 %v1599_v15  ;;  %1699 = vmatpush.bf16.msra.mxu3 %v1599_v15  ;;  %v1418_v15 = vor.u32 %v1585_v10, %v1415_v11  ;;  %v1334_v28 = vor.u32 %v1564_v24, %v1331_v25  ;;  %v1568_v33 = vld [vmem:[%s1799_s9 + $0x98] sm:$0xf0]  ;;  %v1591_v34 = vld [vmem:[%s1799_s9 + $0x154] sm:$0xf]  ;;  %v1343_v37 = vld [vmem:[%s1799_s9 + $0x9c] sm:$0xf0] }
  0x21   : > { %822 = vmatpush.bf16.msra.mxu1 %v1607_v16  ;;  %v1567_v36 = vld [vmem:[%s1799_s9 + $0x94] sm:$0xf]  ;;  %v1373_v41 = vld [vmem:[%s1799_s9 + $0xc8] sm:$0xf]  ;;  %v1594_v46 = vld [vmem:[%s1799_s9 + $0x16c] sm:$0xf] }
  0x22   : > { %v1346_v40 = vor.u32 %v1567_v36, %v1343_v37  ;;  %v1571_v45 = vld [vmem:[%s1799_s9 + $0xb0] sm:$0xf0]  ;;  %v1570_v48 = vld [vmem:[%s1799_s9 + $0xac] sm:$0xf]  ;;  %v1355_v49 = vld [vmem:[%s1799_s9 + $0xb4] sm:$0xf0] }
  0x23   : > { %v1358_v53 = vor.u32 %v1570_v48, %v1355_v49  ;;  %v1365_v58 = vld [vmem:[%s1799_s9 + $0xc0] sm:$0xf]  ;;  %v1573_v63 = vld [vmem:[%s1799_s9 + $0xc4] sm:$0xf]  ;;  %v1377_v25 = vld [vmem:[%s1799_s9 + $0xd8] sm:$0xf] }
  0x24   : > { %734 = vmatpush.bf16.msra.mxu0 %v1598_v19  ;;  %1700 = vmatpush.bf16.msra.mxu3 %v1598_v19  ;;  %v1350_v19 = vor.u32 %v1569_v18, %v1349_v17  ;;  %v1923_v62 = vld [vmem:[%s2128_s2] ss:$0 sm:$0xff]  ;;  %v1409_v48 = vld [vmem:[%s1799_s9 + $0x110] sm:$0xf]  ;;  %v1584_v49 = vld [vmem:[%s1799_s9 + $0x118] sm:$0xf0] }
  0x25   : > { %1532 = vmatmul.msk.bf16.gmra.mxu2 %vm679_vm0, %v1290_v20  ;;  %823 = vmatpush.bf16.msra.mxu1 %v1606_v21  ;;  %v1329_v20 = vld [vmem:[%s1799_s9 + $0x78] sm:$0xf] }
  0x28   : > { %735 = vmatpush.bf16.msra.mxu0 %v1597_v22  ;;  %1701 = vmatpush.bf16.msra.mxu3 %v1597_v22  ;;  %v1588_v22 = vld [vmem:[%s1799_s9 + $0x13c] sm:$0xf] }
  0x29   : > { %824 = vmatpush.bf16.msra.mxu1 %v1605_v27 }
  0x2b   : > { %736 = vmatmul.bf16.vlgmr.msra.gmra.mxu0 %v1270_v30  ;;  %796 = vmatmul.bf16.vlgmr.msra.gmra.mxu3 %v1414_v31  ;;  %v1572_v30 = vld [vmem:[%s1799_s9 + $0xb8] sm:$0xf0] }
  0x2c   : > { %1702 = vmatpush.bf16.msrb.mxu3 %v1774_v2  ;;  %825 = vmatmul.bf16.vlgmr.msra.gmra.mxu1 %v1274_v32  ;;  %v1306_v2 = vor.u32 %v1559_v61, %v1305_v60  ;;  %v1362_v31 = vor.u32 %v1572_v30, %v1361_v29  ;;  %v1341_v32 = vld [vmem:[%s1799_s9 + $0x90] sm:$0xf]  ;;  %v1445_v60 = vld [vmem:[%s1799_s9 + $0x158] sm:$0xf]  ;;  %v1593_v61 = vld [vmem:[%s1799_s9 + $0x160] sm:$0xf0] }
  0x2d   : > { %v1342_v38 = vor.u32 %v1568_v33, %v1341_v32  ;;  %v1576_v30 = vld [vmem:[%s1799_s9 + $0xdc] sm:$0xf] }
  0x30   : > { %1703 = vmatpush.bf16.msrb.mxu3 %v1611_v5  ;;  %v1337_v5 = vld [vmem:[%s1799_s9 + $0x80] sm:$0xf] }
  0x34   : > { %1704 = vmatpush.bf16.msrb.mxu3 %v1610_v7  ;;  %v1338_v7 = vor.u32 %v1566_v6, %v1337_v5  ;;  %v1616_v5 = vld [vmem:[%s1930_s14] sm:$0xff]  }
  0x35   : > { %1533 = vmatmul.msk.bf16.gmra.mxu2 %vm679_vm0, %v1302_v35  ;;  %v1439_v35 = vld [vmem:[%s1799_s9 + $0x15c] sm:$0xf0]  ;;  %v1617_v10 = vunpack.c.l.bf16 %v1616_v5  ;;  %v1618_v24 = vunpack.c.h.bf16 %v1616_v5 }
  0x36   : > { %v1442_v39 = vor.u32 %v1591_v34, %v1439_v35 }
  0x38   : > { %1705 = vmatpush.bf16.msrb.mxu3 %v1609_v12  ;;  %v1561_v12 = vld [vmem:[%s1799_s9 + $0x64] sm:$0xf] }
  0x3b   : > { %741 = vmatmul.bf16.gmra.mxu0 %v1282_v42  ;;  %801 = vmatmul.bf16.gmra.mxu3 %v1426_v43  ;;  %v1575_v42 = vld [vmem:[%s1799_s9 + $0xd0] sm:$0xf0] }
  0x3c   : > { %1706 = vmatpush.bf16.msrb.mxu3 %v1608_v14  ;;  %830 = vmatmul.bf16.gmra.mxu1 %v1286_v44  ;;  %v1318_v14 = vor.u32 %v1562_v9, %v1317_v8  ;;  %v1374_v43 = vor.u32 %v1575_v42, %v1373_v41  ;;  %v1353_v44 = vld [vmem:[%s1799_s9 + $0xa8] sm:$0xf] }
  0x3d   : > { %v1354_v50 = vor.u32 %v1571_v45, %v1353_v44 }
  0x40   : > { %1707 = vmatpush.bf16.msrb.mxu3 %v1607_v16  ;;  %v1322_v16 = vor.u32 %v1561_v12, %v1319_v13  ;;  %v1397_v13 = vld [vmem:[%s1799_s9 + $0xf8] sm:$0xf] }
  0x44   : > { %1708 = vmatpush.bf16.msrb.mxu3 %v1606_v21  ;;  %v1565_v21 = vld [vmem:[%s1799_s9 + $0x80] sm:$0xf0] }
  0x45   : > { %1534 = vmatmul.msk.bf16.gmra.mxu2 %vm679_vm0, %v1314_v47  ;;  %v1330_v26 = vor.u32 %v1565_v21, %v1329_v20  ;;  %v1451_v47 = vld [vmem:[%s1799_s9 + $0x174] sm:$0xf0] }
  0x46   : > { %v1454_v51 = vor.u32 %v1594_v46, %v1451_v47 }
  0x48   : > { %1709 = vmatpush.bf16.msrb.mxu3 %v1605_v27  ;;  %v1430_v27 = vor.u32 %v1588_v22, %v1427_v23 }
  0x4b   : > { %746 = vmatmul.bf16.gmra.mxu0 %v1294_v54  ;;  %806 = vmatmul.bf16.gmra.mxu3 %v1438_v55  ;;  %v1385_v54 = vld [vmem:[%s1799_s9 + $0xe0] sm:$0xf]  ;;  %v1578_v55 = vld [vmem:[%s1799_s9 + $0xe8] sm:$0xf0] }
  0x4c   : > { %1710 = vmatpush.bf16.msra.mxu3 %v1769_v1  ;;  %835 = vmatmul.bf16.gmra.mxu1 %v1298_v56  ;;  %v1307_v1 = vld [vmem:[%s1799_s9 + $0x54] sm:$0xf0]  ;;  %v1386_v57 = vor.u32 %v1578_v55, %v1385_v54 }
  0x50   : > { %1711 = vmatpush.bf16.msra.mxu3 %v1784_v4  ;;  %v1310_v4 = vor.u32 %v1558_v0, %v1307_v1  ;;  %v1367_v0 = vld [vmem:[%s1799_s9 + $0xcc] sm:$0xf0] }
  0x51   : > { %v1370_v6 = vor.u32 %v1573_v63, %v1367_v0  ;;  %v1579_v0 = vld [vmem:[%s1799_s9 + $0xf4] sm:$0xf] }
  0x55   : > { %1535 = vmatmul.msk.bf16.gmra.mxu2 %vm679_vm0, %v1326_v59  ;;  %v1574_v59 = vld [vmem:[%s1799_s9 + $0xc8] sm:$0xf0] }
  0x56   : > { %v1366_v1 = vor.u32 %v1574_v59, %v1365_v58 }
  0x5b   : > { %751 = vmatmul.bf16.gmra.mxu0 %v1306_v2  ;;  %811 = vmatmul.bf16.gmra.mxu3 %v1450_v3  ;;  %v1446_v2 = vor.u32 %v1593_v61, %v1445_v60  ;;  %v1389_v60 = vld [vmem:[%s1799_s9 + $0xf0] sm:$0xf]  ;;  %v1580_v61 = vld [vmem:[%s1799_s9 + $0xf8] sm:$0xf0] }
  0x5c   : > { %840 = vmatmul.bf16.gmra.mxu1 %v1310_v4 }
  0x65   : > { %1536 = vmatmul.msk.bf16.gmra.mxu2 %vm679_vm0, %v1338_v7 }
  0x6b   : > { %756 = vmatmul.bf16.gmra.mxu0 %v1318_v14  ;;  %885 = vmatmul.bf16.vlgmr.msrb.gmra.mxu3 %v1418_v15  ;;  %v1581_v14 = vld [vmem:[%s1799_s9 + $0x100] sm:$0xf0] }
  0x6c   : > { %845 = vmatmul.bf16.gmra.mxu1 %v1322_v16  ;;  %v1398_v21 = vor.u32 %v1581_v14, %v1397_v13 }
  0x75   : > { %1537 = vmatmul.msk.bf16.gmra.mxu2 %vm679_vm0, %v1350_v19 }
  0x7b   : > { %761 = vmatmul.bf16.gmra.mxu0 %v1330_v26  ;;  %890 = vmatmul.bf16.gmra.mxu3 %v1430_v27  ;;  %v1577_v26 = vld [vmem:[%s1799_s9 + $0xe0] sm:$0xf0]  ;;  %v1457_v27 = vld [vmem:[%s1799_s9 + $0x170] sm:$0xf] }
  0x7c   : > { %850 = vmatmul.bf16.gmra.mxu1 %v1334_v28  ;;  %v1596_v28 = vld [vmem:[%s1799_s9 + $0x178] sm:$0xf0]  ;;  %v1378_v34 = vor.u32 %v1577_v26, %v1377_v25 }
  0x7d   : > { %v1458_v35 = vor.u32 %v1596_v28, %v1457_v27 }
  0x85   : > { %1538 = vmatmul.msk.bf16.gmra.mxu2 %vm679_vm0, %v1362_v31  ;;  %v1379_v31 = vld [vmem:[%s1799_s9 + $0xe4] sm:$0xf0] }
  0x8b   : > { %766 = vmatmul.bf16.gmra.mxu0 %v1342_v38  ;;  %895 = vmatmul.bf16.gmra.mxu3 %v1442_v39  ;;  %v1679_v38 = vld [vmem:[%s1930_s14 + $0x8] sm:$0xff]   ;;  %v1382_v39 = vor.u32 %v1576_v30, %v1379_v31  ;;  %v1583_v31 = vld [vmem:[%s1799_s9 + $0x110] sm:$0xf0] }
  0x8c   : > { %855 = vmatmul.bf16.gmra.mxu1 %v1346_v40  ;;  %v1621_v45 = vunpack.c.l.bf16 %v1679_v38  ;;  %v1622_v59 = vunpack.c.h.bf16 %v1679_v38  ;;  %v1401_v30 = vld [vmem:[%s1799_s9 + $0x108] sm:$0xf] }
  0x8d   : > { %v1402_v38 = vor.u32 %v1583_v31, %v1401_v30 }
  0x95   : > { %1539 = vmatmul.msk.bf16.gmra.mxu2 %vm679_vm0, %v1374_v43 }
  0x98   : > { %v915_v52 = vpop.f32.mrf.mxu2 }
  0x9b   : > { %771 = vmatmul.bf16.gmra.mxu0 %v1354_v50  ;;  %900 = vmatmul.bf16.gmra.mxu3 %v1454_v51 }
  0x9c   : > { %860 = vmatmul.bf16.gmra.mxu1 %v1358_v53 }
  0xa0   : > { %v917_v56 = vpop.f32.mrf.mxu2 }
  0xa5   : > { %1540 = vmatmul.msk.bf16.gmra.mxu2 %vm679_vm0, %v1386_v57 }
  0xa8   : > { %v920_v3 = vpop.f32.mrf.mxu2  ;;  %v737_v4 = vpop.f32.mrf.mxu0 }
  0xa9   : > { %v738_v7 = vadd.f32 %v1923_v62, %v737_v4  ;;  %v826_v8 = vpop.f32.mrf.mxu1  ;;  %v1390_v4 = vor.u32 %v1580_v61, %v1389_v60 }
  0xab   : > { %v827_v9 = vadd.f32 %v826_v8, %v738_v7  ;;  %776 = vmatmul.bf16.gmra.mxu0 %v1366_v1  ;;  %1545 = vmatmul.msk.bf16.vlgmr.msra.gmra.mxu3 %vm679_vm0, %v1446_v2  ;;  %v1391_v1 = vld [vmem:[%s1799_s9 + $0xfc] sm:$0xf0]  ;;  %v1680_v7 = vld [vmem:[%s1930_s14 + $0x10] sm:$0xff]  }
  0xac   : > { %865 = vmatmul.bf16.gmra.mxu1 %v1370_v6  ;;  %v1394_v8 = vor.u32 %v1579_v0, %v1391_v1 }
  0xad   : > { %v916_v11 = vadd.f32 %v915_v52, %v827_v9 }
  0xae   : > { %v1937_v12 = vpop.f32.mrf.mxu3 }
  0xaf   : > { %v1059_v15 = vadd.f32 %v1617_v10, %v916_v11 }
  0xb0   : > { %v922_v16 = vpop.f32.mrf.mxu2  ;;  %v739_v17 = vpop.f32.mrf.mxu0 }
  0xb1   : > { %v1091_v18 = vmax.f32 %v1059_v15, 0.0  ;;  %v740_v19 = vadd.f32 %v1923_v62, %v739_v17  ;;  %v828_v20 = vpop.f32.mrf.mxu1  ;;  %v1625_v15 = vunpack.c.l.bf16 %v1680_v7 }
  0xb3   : > { %v1123_v22 = vpack.c.bf16 %v1091_v18, %v1091_v18  ;;  %v829_v23 = vadd.f32 %v828_v20, %v740_v19  ;;  %v1421_v18 = vld [vmem:[%s1799_s9 + $0x128] sm:$0xf]  ;;  %v1587_v19 = vld [vmem:[%s1799_s9 + $0x130] sm:$0xf0] }
  0xb4   : > { %v1422_v26 = vor.u32 %v1587_v19, %v1421_v18 }
  0xb5   : > { %1156 = vst.msk [vmem:[%s1947_s18] sm:$0xf] %vm1155_vm1, %v1123_v22  ;;  %v918_v29 = vadd.f32 %v917_v56, %v829_v23  ;;  %1541 = vmatmul.msk.bf16.gmra.mxu2 %vm679_vm0, %v1398_v21  ;;  %v1410_v56 = vor.u32 %v1584_v49, %v1409_v48 }
  0xb6   : > { %v1958_v32 = vpop.f32.mrf.mxu3 }
  0xb7   : > { %v1060_v33 = vadd.f32 %v1618_v24, %v918_v29  ;;  %v1626_v29 = vunpack.c.h.bf16 %v1680_v7  ;;  %v1682_v7 = vld [vmem:[%s1930_s14 + $0x20] sm:$0xff]  }
  0xb8   : > { %v925_v36 = vpop.f32.mrf.mxu2  ;;  %v742_v37 = vpop.f32.mrf.mxu0 }
  0xb9   : > { %v1092_v40 = vmax.f32 %v1060_v33, 0.0  ;;  %v743_v41 = vadd.f32 %v1923_v62, %v742_v37  ;;  %v831_v42 = vpop.f32.mrf.mxu1 }
  0xbb   : > { %v1124_v43 = vpack.c.bf16 %v1092_v40, %v1092_v40  ;;  %v832_v44 = vadd.f32 %v831_v42, %v743_v41  ;;  %781 = vmatmul.bf16.gmra.mxu0 %v1378_v34  ;;  %1546 = vmatmul.msk.bf16.gmra.mxu3 %vm679_vm0, %v1458_v35  ;;  %v1582_v34 = vld [vmem:[%s1799_s9 + $0x10c] sm:$0xf]  ;;  %v1403_v35 = vld [vmem:[%s1799_s9 + $0x114] sm:$0xf0] }
  0xbc   : > { %870 = vmatmul.bf16.gmra.mxu1 %v1382_v39  ;;  %v1681_v41 = vld [vmem:[%s1930_s14 + $0x18] sm:$0xff]   ;;  %v1406_v42 = vor.u32 %v1582_v34, %v1403_v35 }
  0xbd   : > { %1157 = vst.msk [vmem:[%s1947_s18 + $0x4] sm:$0xf] %vm1155_vm1, %v1124_v43  ;;  %v921_v46 = vadd.f32 %v920_v3, %v832_v44  ;;  %v1629_v49 = vunpack.c.l.bf16 %v1681_v41  ;;  %v1630_v0 = vunpack.c.h.bf16 %v1681_v41 }
  0xbe   : > { %v1965_v47 = vpop.f32.mrf.mxu3 }
  0xbf   : > { %v1061_v50 = vadd.f32 %v1621_v45, %v921_v46 }
  0xc0   : > { %v927_v51 = vpop.f32.mrf.mxu2  ;;  %v744_v52 = vpop.f32.mrf.mxu0 }
  0xc1   : > { %v1093_v53 = vmax.f32 %v1061_v50, 0.0  ;;  %v745_v54 = vadd.f32 %v1923_v62, %v744_v52  ;;  %v833_v55 = vpop.f32.mrf.mxu1  ;;  %v1433_v52 = vld [vmem:[%s1799_s9 + $0x140] sm:$0xf] }
  0xc3   : > { %v1125_v57 = vpack.c.bf16 %v1093_v53, %v1093_v53  ;;  %v834_v58 = vadd.f32 %v833_v55, %v745_v54  ;;  %v1590_v53 = vld [vmem:[%s1799_s9 + $0x148] sm:$0xf0] }
  0xc4   : > { %v1434_v60 = vor.u32 %v1590_v53, %v1433_v52 }
  0xc5   : > { %1158 = vst.msk [vmem:[%s1947_s18 + $0x8] sm:$0xf] %vm1155_vm1, %v1125_v57  ;;  %v923_v63 = vadd.f32 %v922_v16, %v834_v58  ;;  %1542 = vmatmul.msk.bf16.gmra.mxu2 %vm679_vm0, %v1410_v56 }
  0xc6   : > { %v1977_v2 = vpop.f32.mrf.mxu3 }
  0xc7   : > { %v1062_v3 = vadd.f32 %v1622_v59, %v923_v63 }
  0xc8   : > { %v930_v5 = vpop.f32.mrf.mxu2  ;;  %v747_v6 = vpop.f32.mrf.mxu0 }
  0xc9   : > { %v1094_v9 = vmax.f32 %v1062_v3, 0.0  ;;  %v748_v10 = vadd.f32 %v1923_v62, %v747_v6  ;;  %v836_v11 = vpop.f32.mrf.mxu1 }
  0xcb   : > { %v1126_v13 = vpack.c.bf16 %v1094_v9, %v1094_v9  ;;  %v837_v14 = vadd.f32 %v836_v11, %v748_v10  ;;  %786 = vmatmul.bf16.gmra.mxu0 %v1390_v4 }
  0xcc   : > { %875 = vmatmul.bf16.gmra.mxu1 %v1394_v8 }
  0xcd   : > { %1159 = vst.msk [vmem:[%s1947_s18 + $0xc] sm:$0xf] %vm1155_vm1, %v1126_v13  ;;  %v926_v16 = vadd.f32 %v925_v36, %v837_v14  ;;  %v1633_v14 = vunpack.c.l.bf16 %v1682_v7 }
  0xce   : > { %v1983_v17 = vpop.f32.mrf.mxu3 }
  0xcf   : > { %v1063_v20 = vadd.f32 %v1625_v15, %v926_v16  ;;  %v798_v15 = vadd.f32 %v1923_v62, %v1937_v12  ;;  %v800_v12 = vadd.f32 %v1923_v62, %v1958_v32  ;;  %v803_v32 = vadd.f32 %v1923_v62, %v1965_v47 }
  0xd0   : > { %v932_v21 = vpop.f32.mrf.mxu2  ;;  %v749_v22 = vpop.f32.mrf.mxu0  ;;  %v805_v47 = vadd.f32 %v1923_v62, %v1977_v2 }
  0xd1   : > { %v1095_v23 = vmax.f32 %v1063_v20, 0.0  ;;  %v750_v24 = vadd.f32 %v1923_v62, %v749_v22  ;;  %v838_v25 = vpop.f32.mrf.mxu1 }
  0xd3   : > { %v1127_v27 = vpack.c.bf16 %v1095_v23, %v1095_v23  ;;  %v839_v28 = vadd.f32 %v838_v25, %v750_v24 }
  0xd5   : > { %1160 = vst.msk [vmem:[%s1947_s18 + $0x10] sm:$0xf] %vm1155_vm1, %v1127_v27  ;;  %v928_v33 = vadd.f32 %v927_v51, %v839_v28  ;;  %1543 = vmatmul.msk.bf16.gmra.mxu2 %vm679_vm0, %v1422_v26  ;;  %v1634_v28 = vunpack.c.h.bf16 %v1682_v7 }
  0xd6   : > { %v1995_v36 = vpop.f32.mrf.mxu3 }
  0xd7   : > { %v1064_v37 = vadd.f32 %v1626_v29, %v928_v33 }
  0xd8   : > { %v935_v39 = vpop.f32.mrf.mxu2  ;;  %v752_v40 = vpop.f32.mrf.mxu0 }
  0xd9   : > { %v1096_v43 = vmax.f32 %v1064_v37, 0.0  ;;  %v753_v44 = vadd.f32 %v1923_v62, %v752_v40  ;;  %v841_v45 = vpop.f32.mrf.mxu1  ;;  %v1683_v37 = vld [vmem:[%s1930_s14 + $0x28] sm:$0xff]  }
  0xdb   : > { %v1128_v46 = vpack.c.bf16 %v1096_v43, %v1096_v43  ;;  %v842_v48 = vadd.f32 %v841_v45, %v753_v44  ;;  %791 = vmatmul.bf16.gmra.mxu0 %v1402_v38  ;;  %v1637_v43 = vunpack.c.l.bf16 %v1683_v37 }
  0xdc   : > { %880 = vmatmul.bf16.gmra.mxu1 %v1406_v42 }
  0xdd   : > { %1161 = vst.msk [vmem:[%s1947_s18 + $0x14] sm:$0xf] %vm1155_vm1, %v1128_v46  ;;  %v931_v50 = vadd.f32 %v930_v5, %v842_v48 }
  0xde   : > { %v2001_v51 = vpop.f32.mrf.mxu3 }
  0xdf   : > { %v1065_v54 = vadd.f32 %v1629_v49, %v931_v50 }
  0xe0   : > { %v937_v55 = vpop.f32.mrf.mxu2  ;;  %v754_v56 = vpop.f32.mrf.mxu0 }
  0xe1   : > { %v1097_v57 = vmax.f32 %v1065_v54, 0.0  ;;  %v755_v58 = vadd.f32 %v1923_v62, %v754_v56  ;;  %v843_v59 = vpop.f32.mrf.mxu1 }
  0xe3   : > { %v1129_v61 = vpack.c.bf16 %v1097_v57, %v1097_v57  ;;  %v844_v63 = vadd.f32 %v843_v59, %v755_v58  ;;  %v1638_v57 = vunpack.c.h.bf16 %v1683_v37 }
  0xe5   : > { %1162 = vst.msk [vmem:[%s1947_s18 + $0x18] sm:$0xf] %vm1155_vm1, %v1129_v61  ;;  %v933_v1 = vadd.f32 %v932_v21, %v844_v63  ;;  %1544 = vmatmul.msk.bf16.gmra.mxu2 %vm679_vm0, %v1434_v60 }
  0xe6   : > { %v2009_v3 = vpop.f32.mrf.mxu3 }
  0xe7   : > { %v1066_v4 = vadd.f32 %v1630_v0, %v933_v1  ;;  %v1684_v1 = vld [vmem:[%s1930_s14 + $0x30] sm:$0xff]  }
  0xe8   : > { %v940_v5 = vpop.f32.mrf.mxu2  ;;  %v757_v6 = vpop.f32.mrf.mxu0 }
  0xe9   : > { %v1098_v8 = vmax.f32 %v1066_v4, 0.0  ;;  %v758_v9 = vadd.f32 %v1923_v62, %v757_v6  ;;  %v846_v10 = vpop.f32.mrf.mxu1 }
  0xeb   : > { %v1130_v11 = vpack.c.bf16 %v1098_v8, %v1098_v8  ;;  %v847_v13 = vadd.f32 %v846_v10, %v758_v9  ;;  %v1641_v9 = vunpack.c.l.bf16 %v1684_v1 }
  0xed   : > { %1163 = vst.msk [vmem:[%s1947_s18 + $0x1c] sm:$0xf] %vm1155_vm1, %v1130_v11  ;;  %v936_v16 = vadd.f32 %v935_v39, %v847_v13 }
  0xee   : > { %v886_v18 = vpop.f32.mrf.mxu3 }
  0xef   : > { %v1067_v19 = vadd.f32 %v1633_v14, %v936_v16  ;;  %v2017_v20 = vadd.f32 %v886_v18, %v798_v15 }
  0xf0   : > { %v942_v21 = vpop.f32.mrf.mxu2  ;;  %v759_v22 = vpop.f32.mrf.mxu0 }
  0xf1   : > { %v1099_v23 = vmax.f32 %v1067_v19, 0.0  ;;  %v760_v24 = vadd.f32 %v1923_v62, %v759_v22  ;;  %v848_v25 = vpop.f32.mrf.mxu1  ;;  %v1642_v22 = vunpack.c.h.bf16 %v1684_v1 }
  0xf3   : > { %v1131_v26 = vpack.c.bf16 %v1099_v23, %v1099_v23  ;;  %v849_v27 = vadd.f32 %v848_v25, %v760_v24 }
  0xf5   : > { %1164 = vst.msk [vmem:[%s1947_s18 + $0x20] sm:$0xf] %vm1155_vm1, %v1131_v26  ;;  %v938_v29 = vadd.f32 %v937_v55, %v849_v27 }
  0xf6   : > { %v888_v30 = vpop.f32.mrf.mxu3 }
  0xf7   : > { %v1068_v31 = vadd.f32 %v1634_v28, %v938_v29  ;;  %v2024_v33 = vadd.f32 %v888_v30, %v800_v12  ;;  %v1685_v28 = vld [vmem:[%s1930_s14 + $0x38] sm:$0xff]  }
  0xf8   : > { %v945_v34 = vpop.f32.mrf.mxu2  ;;  %v762_v35 = vpop.f32.mrf.mxu0 }
  0xf9   : > { %v1100_v38 = vmax.f32 %v1068_v31, 0.0  ;;  %v763_v39 = vadd.f32 %v1923_v62, %v762_v35  ;;  %v851_v40 = vpop.f32.mrf.mxu1  ;;  %v1645_v35 = vunpack.c.l.bf16 %v1685_v28 }
  0xfb   : > { %v1132_v41 = vpack.c.bf16 %v1100_v38, %v1100_v38  ;;  %v852_v42 = vadd.f32 %v851_v40, %v763_v39 }
  0xfd   : > { %1165 = vst.msk [vmem:[%s1947_s18 + $0x24] sm:$0xf] %vm1155_vm1, %v1132_v41  ;;  %v941_v44 = vadd.f32 %v940_v5, %v852_v42 }
  0xfe   : > { %v891_v45 = vpop.f32.mrf.mxu3 }
  0xff   : > { %v1069_v46 = vadd.f32 %v1637_v43, %v941_v44  ;;  %v2032_v48 = vadd.f32 %v891_v45, %v803_v32 }
 0x100   : > { %v947_v49 = vpop.f32.mrf.mxu2  ;;  %v764_v50 = vpop.f32.mrf.mxu0 }
 0x101   : > { %v1101_v52 = vmax.f32 %v1069_v46, 0.0  ;;  %v765_v53 = vadd.f32 %v1923_v62, %v764_v50  ;;  %v853_v54 = vpop.f32.mrf.mxu1  ;;  %v1646_v46 = vunpack.c.h.bf16 %v1685_v28 }
 0x103   : > { %v1133_v55 = vpack.c.bf16 %v1101_v52, %v1101_v52  ;;  %v854_v56 = vadd.f32 %v853_v54, %v765_v53 }
 0x105   : > { %1166 = vst.msk [vmem:[%s1947_s18 + $0x28] sm:$0xf] %vm1155_vm1, %v1133_v55  ;;  %v943_v58 = vadd.f32 %v942_v21, %v854_v56  ;;  %v1686_v55 = vld [vmem:[%s1930_s14 + $0x40] sm:$0xff]  }
 0x106   : > { %v893_v59 = vpop.f32.mrf.mxu3 }
 0x107   : > { %v1070_v60 = vadd.f32 %v1638_v57, %v943_v58  ;;  %v2039_v61 = vadd.f32 %v893_v59, %v805_v47  ;;  %v1692_v58 = vld [vmem:[%s1930_s14 + $0x70] sm:$0xff]   ;;  %v808_v59 = vadd.f32 %v1923_v62, %v1983_v17 }
 0x108   : > { %v950_v63 = vpop.f32.mrf.mxu2  ;;  %v767_v0 = vpop.f32.mrf.mxu0 }
 0x109   : > { %v1102_v4 = vmax.f32 %v1070_v60, 0.0  ;;  %v768_v5 = vadd.f32 %v1923_v62, %v767_v0  ;;  %v856_v6 = vpop.f32.mrf.mxu1  ;;  %v1649_v0 = vunpack.c.l.bf16 %v1686_v55 }
 0x10b   : > { %v1134_v7 = vpack.c.bf16 %v1102_v4, %v1102_v4  ;;  %v857_v8 = vadd.f32 %v856_v6, %v768_v5  ;;  %v1673_v5 = vunpack.c.l.bf16 %v1692_v58 }
 0x10d   : > { %1167 = vst.msk [vmem:[%s1947_s18 + $0x2c] sm:$0xf] %vm1155_vm1, %v1134_v7  ;;  %v946_v2 = vadd.f32 %v945_v34, %v857_v8 }
 0x10e   : > { %v896_v10 = vpop.f32.mrf.mxu3 }
 0x10f   : > { %v1071_v11 = vadd.f32 %v1641_v9, %v946_v2  ;;  %v897_v1 = vadd.f32 %v896_v10, %v808_v59 }
 0x110   : > { %v952_v13 = vpop.f32.mrf.mxu2  ;;  %v769_v14 = vpop.f32.mrf.mxu0 }
 0x111   : > { %v1103_v15 = vmax.f32 %v1071_v11, 0.0  ;;  %v770_v16 = vadd.f32 %v1923_v62, %v769_v14  ;;  %v858_v18 = vpop.f32.mrf.mxu1 }
 0x113   : > { %v1135_v19 = vpack.c.bf16 %v1103_v15, %v1103_v15  ;;  %v859_v21 = vadd.f32 %v858_v18, %v770_v16  ;;  %v810_v15 = vadd.f32 %v1923_v62, %v1995_v36 }
 0x115   : > { %1168 = vst.msk [vmem:[%s1947_s18 + $0x30] sm:$0xf] %vm1155_vm1, %v1135_v19  ;;  %v948_v23 = vadd.f32 %v947_v49, %v859_v21  ;;  %v1650_v19 = vunpack.c.h.bf16 %v1686_v55 }
 0x116   : > { %v898_v24 = vpop.f32.mrf.mxu3 }
 0x117   : > { %v1072_v25 = vadd.f32 %v1642_v22, %v948_v23  ;;  %v899_v21 = vadd.f32 %v898_v24, %v810_v15 }
 0x118   : > { %v955_v26 = vpop.f32.mrf.mxu2  ;;  %v772_v27 = vpop.f32.mrf.mxu0 }
 0x119   : > { %v1104_v12 = vmax.f32 %v1072_v25, 0.0  ;;  %v773_v29 = vadd.f32 %v1923_v62, %v772_v27  ;;  %v861_v30 = vpop.f32.mrf.mxu1  ;;  %v1674_v25 = vunpack.c.h.bf16 %v1692_v58 }
 0x11b   : > { %v1136_v31 = vpack.c.bf16 %v1104_v12, %v1104_v12  ;;  %v862_v34 = vadd.f32 %v861_v30, %v773_v29  ;;  %v1687_v29 = vld [vmem:[%s1930_s14 + $0x48] sm:$0xff]  }
 0x11d   : > { %1169 = vst.msk [vmem:[%s1947_s18 + $0x34] sm:$0xf] %vm1155_vm1, %v1136_v31  ;;  %v951_v37 = vadd.f32 %v950_v63, %v862_v34 }
 0x11e   : > { %v2052_v38 = vpop.f32.mrf.mxu3 }
 0x11f   : > { %v1073_v39 = vadd.f32 %v1645_v35, %v951_v37  ;;  %v813_v35 = vadd.f32 %v1923_v62, %v2001_v51  ;;  %v1693_v37 = vld [vmem:[%s1930_s14 + $0x78] sm:$0xff]  }
 0x120   : > { %v957_v40 = vpop.f32.mrf.mxu2  ;;  %v774_v41 = vpop.f32.mrf.mxu0 }
 0x121   : > { %v1105_v42 = vmax.f32 %v1073_v39, 0.0  ;;  %v775_v43 = vadd.f32 %v1923_v62, %v774_v41  ;;  %v863_v32 = vpop.f32.mrf.mxu1 }
 0x123   : > { %v1137_v44 = vpack.c.bf16 %v1105_v42, %v1105_v42  ;;  %v864_v45 = vadd.f32 %v863_v32, %v775_v43  ;;  %v1653_v42 = vunpack.c.l.bf16 %v1687_v29  ;;  %v902_v43 = vadd.f32 %v2052_v38, %v813_v35  ;;  %v1689_v35 = vld [vmem:[%s1930_s14 + $0x58] sm:$0xff]  }
 0x124   : > { %v815_v38 = vadd.f32 %v1923_v62, %v2009_v3 }
 0x125   : > { %1170 = vst.msk [vmem:[%s1947_s18 + $0x38] sm:$0xf] %vm1155_vm1, %v1137_v44  ;;  %v953_v49 = vadd.f32 %v952_v13, %v864_v45  ;;  %v1677_v45 = vunpack.c.l.bf16 %v1693_v37 }
 0x126   : > { %v2057_v50 = vpop.f32.mrf.mxu3 }
 0x127   : > { %v1074_v52 = vadd.f32 %v1646_v46, %v953_v49 }
 0x128   : > { %v960_v53 = vpop.f32.mrf.mxu2  ;;  %v777_v54 = vpop.f32.mrf.mxu0 }
 0x129   : > { %v1106_v56 = vmax.f32 %v1074_v52, 0.0  ;;  %v778_v57 = vadd.f32 %v1923_v62, %v777_v54  ;;  %v866_v47 = vpop.f32.mrf.mxu1 }
 0x12b   : > { %v1138_v60 = vpack.c.bf16 %v1106_v56, %v1106_v56  ;;  %v867_v63 = vadd.f32 %v866_v47, %v778_v57 }
 0x12d   : > { %1171 = vst.msk [vmem:[%s1947_s18 + $0x3c] sm:$0xf] %vm1155_vm1, %v1138_v60  ;;  %v956_v4 = vadd.f32 %v955_v26, %v867_v63  ;;  %v1654_v60 = vunpack.c.h.bf16 %v1687_v29  ;;  %v904_v63 = vadd.f32 %v2057_v50, %v815_v38  ;;  %v1690_v29 = vld [vmem:[%s1930_s14 + $0x60] sm:$0xff]  }
 0x12e   : > { %v985_v6 = vpop.f32.mrf.mxu3 }
 0x12f   : > { %v1075_v7 = vadd.f32 %v1649_v0, %v956_v4  ;;  %v986_v8 = vadd.f32 %v985_v6, %v897_v1  ;;  %v1678_v4 = vunpack.c.h.bf16 %v1693_v37 }
 0x130   : > { %v962_v9 = vpop.f32.mrf.mxu2  ;;  %v779_v2 = vpop.f32.mrf.mxu0 }
 0x131   : > { %v1107_v11 = vmax.f32 %v1075_v7, 0.0  ;;  %v1087_v13 = vadd.f32 %v1673_v5, %v986_v8  ;;  %v780_v14 = vadd.f32 %v1923_v62, %v779_v2  ;;  %v868_v17 = vpop.f32.mrf.mxu1  ;;  %v1688_v2 = vld [vmem:[%s1930_s14 + $0x50] sm:$0xff]  }
 0x133   : > { %v1139_v10 = vpack.c.bf16 %v1107_v11, %v1107_v11  ;;  %v1119_v16 = vmax.f32 %v1087_v13, 0.0  ;;  %v869_v18 = vadd.f32 %v868_v17, %v780_v14 }
 0x135   : > { %1172 = vst.msk [vmem:[%s1947_s18 + $0x40] sm:$0xf] %vm1155_vm1, %v1139_v10  ;;  %v1151_v22 = vpack.c.bf16 %v1119_v16, %v1119_v16  ;;  %v958_v23 = vadd.f32 %v957_v40, %v869_v18  ;;  %v1657_v10 = vunpack.c.l.bf16 %v1688_v2 }
 0x136   : > { %v987_v26 = vpop.f32.mrf.mxu3 }
 0x137   : > { %1184 = vst.msk [vmem:[%s1947_s18 + $0x70] sm:$0xf] %vm1155_vm1, %v1151_v22  ;;  %v1076_v27 = vadd.f32 %v1650_v19, %v958_v23  ;;  %v988_v28 = vadd.f32 %v987_v26, %v899_v21 }
 0x138   : > { %v965_v12 = vpop.f32.mrf.mxu2  ;;  %v782_v36 = vpop.f32.mrf.mxu0 }
 0x139   : > { %v1108_v30 = vmax.f32 %v1076_v27, 0.0  ;;  %v1088_v31 = vadd.f32 %v1674_v25, %v988_v28  ;;  %v783_v24 = vadd.f32 %v1923_v62, %v782_v36  ;;  %v871_v34 = vpop.f32.mrf.mxu1  ;;  %v1658_v36 = vunpack.c.h.bf16 %v1688_v2 }
 0x13b   : > { %v1140_v39 = vpack.c.bf16 %v1108_v30, %v1108_v30  ;;  %v1120_v40 = vmax.f32 %v1088_v31, 0.0  ;;  %v872_v41 = vadd.f32 %v871_v34, %v783_v24 }
 0x13d   : > { %1173 = vst.msk [vmem:[%s1947_s18 + $0x44] sm:$0xf] %vm1155_vm1, %v1140_v39  ;;  %v1152_v32 = vpack.c.bf16 %v1120_v40, %v1120_v40  ;;  %v961_v44 = vadd.f32 %v960_v53, %v872_v41 }
 0x13e   : > { %v990_v46 = vpop.f32.mrf.mxu3 }
 0x13f   : > { %1185 = vst.msk [vmem:[%s1947_s18 + $0x74] sm:$0xf] %vm1155_vm1, %v1152_v32  ;;  %v1077_v49 = vadd.f32 %v1653_v42, %v961_v44  ;;  %v991_v52 = vadd.f32 %v990_v46, %v902_v43  ;;  %v1661_v44 = vunpack.c.l.bf16 %v1689_v35 }
 0x140   : > { %v967_v54 = vpop.f32.mrf.mxu2  ;;  %v784_v51 = vpop.f32.mrf.mxu0 }
 0x141   : > { %v1109_v55 = vmax.f32 %v1077_v49, 0.0  ;;  %v1089_v56 = vadd.f32 %v1677_v45, %v991_v52  ;;  %v785_v57 = vadd.f32 %v1923_v62, %v784_v51  ;;  %v873_v47 = vpop.f32.mrf.mxu1 }
 0x143   : > { %v1141_v53 = vpack.c.bf16 %v1109_v55, %v1109_v55  ;;  %v1121_v58 = vmax.f32 %v1089_v56, 0.0  ;;  %v874_v59 = vadd.f32 %v873_v47, %v785_v57 }
 0x145   : > { %1174 = vst.msk [vmem:[%s1947_s18 + $0x48] sm:$0xf] %vm1155_vm1, %v1141_v53  ;;  %v1153_v0 = vpack.c.bf16 %v1121_v58, %v1121_v58  ;;  %v963_v1 = vadd.f32 %v962_v9, %v874_v59  ;;  %v1662_v59 = vunpack.c.h.bf16 %v1689_v35 }
 0x146   : > { %v992_v5 = vpop.f32.mrf.mxu3 }
 0x147   : > { %1186 = vst.msk [vmem:[%s1947_s18 + $0x78] sm:$0xf] %vm1155_vm1, %v1153_v0  ;;  %v1078_v6 = vadd.f32 %v1654_v60, %v963_v1  ;;  %v993_v7 = vadd.f32 %v992_v5, %v904_v63  ;;  %v1691_v60 = vld [vmem:[%s1930_s14 + $0x68] sm:$0xff]  }
 0x148   : > { %v970_v3 = vpop.f32.mrf.mxu2  ;;  %v787_v8 = vpop.f32.mrf.mxu0  ;;  %v1669_v5 = vunpack.c.l.bf16 %v1691_v60 }
 0x149   : > { %v1110_v11 = vmax.f32 %v1078_v6, 0.0  ;;  %v1090_v13 = vadd.f32 %v1678_v4, %v993_v7  ;;  %v788_v14 = vadd.f32 %v1923_v62, %v787_v8  ;;  %v876_v50 = vpop.f32.mrf.mxu1 }
 0x14b   : > { %v1142_v17 = vpack.c.bf16 %v1110_v11, %v1110_v11  ;;  %v1122_v15 = vmax.f32 %v1090_v13, 0.0  ;;  %v877_v9 = vadd.f32 %v876_v50, %v788_v14  ;;  %v1670_v11 = vunpack.c.h.bf16 %v1691_v60 }
 0x14d   : > { %1175 = vst.msk [vmem:[%s1947_s18 + $0x4c] sm:$0xf] %vm1155_vm1, %v1142_v17  ;;  %v1154_v16 = vpack.c.bf16 %v1122_v15, %v1122_v15  ;;  %v966_v18 = vadd.f32 %v965_v12, %v877_v9  ;;  %v1665_v12 = vunpack.c.l.bf16 %v1690_v29 }
 0x14f   : > { %1187 = vst.msk [vmem:[%s1947_s18 + $0x7c] sm:$0xf] %vm1155_vm1, %v1154_v16  ;;  %v1079_v19 = vadd.f32 %v1657_v10, %v966_v18 }
 0x150   : > { %v972_v21 = vpop.f32.mrf.mxu2  ;;  %v789_v22 = vpop.f32.mrf.mxu0 }
 0x151   : > { %v1111_v23 = vmax.f32 %v1079_v19, 0.0  ;;  %v790_v25 = vadd.f32 %v1923_v62, %v789_v22  ;;  %v878_v26 = vpop.f32.mrf.mxu1 }
 0x153   : > { %v1143_v27 = vpack.c.bf16 %v1111_v23, %v1111_v23  ;;  %v879_v28 = vadd.f32 %v878_v26, %v790_v25 }
 0x155   : > { %1176 = vst.msk [vmem:[%s1947_s18 + $0x50] sm:$0xf] %vm1155_vm1, %v1143_v27  ;;  %v968_v30 = vadd.f32 %v967_v54, %v879_v28  ;;  %v1666_v54 = vunpack.c.h.bf16 %v1690_v29 }
 0x157   : > { %v1080_v31 = vadd.f32 %v1658_v36, %v968_v30 }
 0x158   : > { %v975_v24 = vpop.f32.mrf.mxu2  ;;  %v792_v34 = vpop.f32.mrf.mxu0 }
 0x159   : > { %v1112_v37 = vmax.f32 %v1080_v31, 0.0  ;;  %v976_v39 = vadd.f32 %v975_v24, %v2017_v20  ;;  %v793_v40 = vadd.f32 %v1923_v62, %v792_v34  ;;  %v881_v41 = vpop.f32.mrf.mxu1 }
 0x15b   : > { %v1144_v42 = vpack.c.bf16 %v1112_v37, %v1112_v37  ;;  %v1083_v43 = vadd.f32 %v1665_v12, %v976_v39  ;;  %v882_v32 = vadd.f32 %v881_v41, %v793_v40 }
 0x15d   : > { %1177 = vst.msk [vmem:[%s1947_s18 + $0x54] sm:$0xf] %vm1155_vm1, %v1144_v42  ;;  %v1115_v45 = vmax.f32 %v1083_v43, 0.0  ;;  %v971_v46 = vadd.f32 %v970_v3, %v882_v32 }
 0x15f   : > { %v1147_v49 = vpack.c.bf16 %v1115_v45, %v1115_v45  ;;  %v1081_v52 = vadd.f32 %v1661_v44, %v971_v46 }
 0x160   : > { %v977_v51 = vpop.f32.mrf.mxu2  ;;  %v794_v55 = vpop.f32.mrf.mxu0 }
 0x161   : > { %1180 = vst.msk [vmem:[%s1947_s18 + $0x60] sm:$0xf] %vm1155_vm1, %v1147_v49  ;;  %v1113_v20 = vmax.f32 %v1081_v52, 0.0  ;;  %v978_v56 = vadd.f32 %v977_v51, %v2024_v33  ;;  %v795_v57 = vadd.f32 %v1923_v62, %v794_v55  ;;  %v883_v47 = vpop.f32.mrf.mxu1 }
 0x163   : > { %v1145_v38 = vpack.c.bf16 %v1113_v20, %v1113_v20  ;;  %v1084_v53 = vadd.f32 %v1666_v54, %v978_v56  ;;  %v884_v58 = vadd.f32 %v883_v47, %v795_v57 }
 0x165   : > { %1178 = vst.msk [vmem:[%s1947_s18 + $0x58] sm:$0xf] %vm1155_vm1, %v1145_v38  ;;  %v1116_v63 = vmax.f32 %v1084_v53, 0.0  ;;  %v973_v0 = vadd.f32 %v972_v21, %v884_v58 }
 0x167   : > { %v1148_v1 = vpack.c.bf16 %v1116_v63, %v1116_v63  ;;  %v1082_v4 = vadd.f32 %v1662_v59, %v973_v0 }
 0x168   : > { %v980_v6 = vpop.f32.mrf.mxu2 }
 0x169   : > { %1181 = vst.msk [vmem:[%s1947_s18 + $0x64] sm:$0xf] %vm1155_vm1, %v1148_v1  ;;  %v1114_v62 = vmax.f32 %v1082_v4, 0.0  ;;  %v981_v33 = vadd.f32 %v980_v6, %v2032_v48 }
 0x16b   : > { %v1146_v7 = vpack.c.bf16 %v1114_v62, %v1114_v62  ;;  %v1085_v3 = vadd.f32 %v1669_v5, %v981_v33 }
 0x16d   : > { %1179 = vst.msk [vmem:[%s1947_s18 + $0x5c] sm:$0xf] %vm1155_vm1, %v1146_v7  ;;  %v1117_v8 = vmax.f32 %v1085_v3, 0.0 }
 0x16f   : > { %v1149_v2 = vpack.c.bf16 %v1117_v8, %v1117_v8 }
 0x170   : > { %v982_v13 = vpop.f32.mrf.mxu2 }
 0x171   : > { %1182 = vst.msk [vmem:[%s1947_s18 + $0x68] sm:$0xf] %vm1155_vm1, %v1149_v2  ;;  %v983_v14 = vadd.f32 %v982_v13, %v2039_v61 }
 0x173   : > { %v1086_v50 = vadd.f32 %v1670_v11, %v983_v14 }
 0x175   : > { %v1118_v17 = vmax.f32 %v1086_v50, 0.0 }
 0x177   : > { %v1150_v15 = vpack.c.bf16 %v1118_v17, %v1118_v17 }
 0x179   : > { %1183 = vst.msk [vmem:[%s1947_s18 + $0x6c] sm:$0xf] %vm1155_vm1, %v1150_v15 }
 0x17a PF: > { %s14_s15 = sadd.s32 1, %s1728_s15  }
 0x17b   : > { %p11_p4 = scmp.ge.s32.totalorder %s14_s15, 4  }
 0x17d   :  { %13 = sbr.rel (!%p11_p4) target bundleno = 1 (0x1), region = 69 }

// kernel: finetune_net_wa_forward.53
= control target key start
LH: loop header
LB: loop body
LE: loop exit
PB: predicated region body
PF: predicated region fallthrough
CT: control target
= control target key end

     0   :  { %s802_s12 = smov 0   ;;  %s942_s0 = inlined_call_operand.vmem [shape: bf16[128,288], index: 0, kind: input, shape index: {}]   ;;  %s943_s1 = inlined_call_operand.vmem [shape: bf16[288,64], index: 1, kind: input, shape index: {}]   ;;  %s944_s2 = inlined_call_operand.vmem [shape: f32[1,64], index: 2, kind: input, shape index: {}]   ;;  %s945_s3 = inlined_call_operand.vmem [shape: bf16[128,64], index: 3, kind: output, shape index: {}]  }
   0x1 LB: > { %s583_s13 = sadd.s32 4294967295, %s780_s12   ;;  %p587_p0 = scmp.ge.s32.totalorder %s780_s12, 1  ;;  %s780_s12 = sphi %s802_s12, %s13_s12  }
   0x2   : > { %p139_p1 = scmp.lt.s32.totalorder %s780_s12, 3 }
   0x4   : > { %p140_p2 = pnand %p587_p0, %p139_p1 }
   0x5   : > { %s588_s18 = sshll.u32 (!%p140_p2), %s583_s13, 3 }
   0x6   : > { %143 = sbr.rel (%p140_p2) target bundleno = 226 (0xe2), region = 32  ;;  %p165_p3 = scmp.lt.s32.totalorder (!%p140_p2), %s588_s18, 15 }
   0xb   : > { %v737_v0 = vld [vmem:[%s943_s1 + $0x38] sm:$0xff]  ;;  %v747_v2 = vld [vmem:[%s943_s1 + $0x88] sm:$0xff]  ;;  %v736_v3 = vld [vmem:[%s943_s1 + $0x30] sm:$0xff]  ;;  %s947_s18 = smov (!%p165_p3, %s588_s18), 15  ;;  %vm402_vm0 = vcmask 261120   ;;  %vm518_vm1 = vcmask 519168  }
   0xc   : > { %v816_v1 = vld [vmem:[%s943_s1 + $0x78] sm:$0xff]  ;;  %415 = vmatpush.bf16.msra.mxu0 %v737_v0  ;;  %748 = vmatpush.bf16.msra.mxu3 %v737_v0  ;;  %v744_v4 = vld [vmem:[%s943_s1 + $0x70] sm:$0xff]  ;;  %v746_v5 = vld [vmem:[%s943_s1 + $0x80] sm:$0xff]  ;;  %s764_s27 = smul.u32 12, %s947_s18  ;;  %s591_s5 = sshll.u32 %s947_s18, 2 }
   0xd   : > { %756 = vmatpush.bf16.msra.mxu1 %v816_v1  ;;  %479 = vmatpush.bf16.msra.mxu2 %v747_v2  ;;  %v735_v6 = vld [vmem:[%s943_s1 + $0x28] sm:$0xff]  ;;  %v734_v11 = vld [vmem:[%s943_s1 + $0x20] sm:$0xff]  ;;  %v733_v13 = vld [vmem:[%s943_s1 + $0x18] sm:$0xff]  ;;  %s914_s8 = scalar_lea.vmem %s945_s3, %s591_s5 }
   0xe   : > { %v743_v7 = vld [vmem:[%s943_s1 + $0x68] sm:$0xff]  ;;  %s843_s7 = scalar_lea.vmem %s942_s0, %s764_s27  ;;  %v742_v12 = vld [vmem:[%s943_s1 + $0x60] sm:$0xff]  ;;  %v741_v14 = vld [vmem:[%s943_s1 + $0x58] sm:$0xff] }
   0xf   : > { %v602_v8 = vld [vmem:[%s843_s7 + $0x8] sm:$0xf]  ;;  %v720_v9 = vld [vmem:[%s843_s7 + $0x10] sm:$0xf0]  ;;  %v614_v17 = vld [vmem:[%s843_s7 + $0x20] sm:$0xf] }
  0x10   : > { %416 = vmatpush.bf16.msra.mxu0 %v736_v3  ;;  %749 = vmatpush.bf16.msra.mxu3 %v736_v3  ;;  %v603_v10 = vor.u32 %v720_v9, %v602_v8  ;;  %v732_v15 = vld [vmem:[%s943_s1 + $0x10] sm:$0xff]  ;;  %v723_v18 = vld [vmem:[%s843_s7 + $0x28] sm:$0xf0]  ;;  %v730_v22 = vld [vmem:[%s943_s1] sm:$0xff] }
  0x11   : > { %757 = vmatpush.bf16.msra.mxu1 %v744_v4  ;;  %480 = vmatpush.bf16.msra.mxu2 %v746_v5  ;;  %v740_v16 = vld [vmem:[%s943_s1 + $0x50] sm:$0xff]  ;;  %v731_v19 = vld [vmem:[%s943_s1 + $0x8] sm:$0xff]  ;;  %v615_v21 = vor.u32 %v723_v18, %v614_v17  ;;  %v606_v23 = vld [vmem:[%s843_s7 + $0x18] sm:$0xf] }
  0x12   : > { %v739_v20 = vld [vmem:[%s943_s1 + $0x48] sm:$0xff]  ;;  %v722_v24 = vld [vmem:[%s843_s7 + $0x20] sm:$0xf0]  ;;  %v594_v25 = vld [vmem:[%s843_s7] sm:$0xf] }
  0x13   : > { %v719_v26 = vld [vmem:[%s843_s7 + $0x8] sm:$0xf0]  ;;  %v738_v27 = vld [vmem:[%s943_s1 + $0x40] sm:$0xff]  ;;  %v721_v28 = vld [vmem:[%s843_s7 + $0x1c] sm:$0xf]  ;;  %v607_v30 = vor.u32 %v722_v24, %v606_v23 }
  0x14   : > { %417 = vmatpush.bf16.msra.mxu0 %v735_v6  ;;  %750 = vmatpush.bf16.msra.mxu3 %v735_v6  ;;  %v608_v29 = vld [vmem:[%s843_s7 + $0x24] sm:$0xf0]  ;;  %v595_v31 = vor.u32 %v719_v26, %v594_v25  ;;  %v626_v33 = vld [vmem:[%s843_s7 + $0x38] sm:$0xf]  ;;  %v726_v34 = vld [vmem:[%s843_s7 + $0x40] sm:$0xf0] }
  0x15   : > { %758 = vmatpush.bf16.msra.mxu1 %v743_v7  ;;  %712 = vmatmul.msk.bf16.vlgmr.msra.gmra.mxu2 %vm402_vm0, %v603_v10  ;;  %v611_v32 = vor.u32 %v721_v28, %v608_v29  ;;  %v627_v35 = vor.u32 %v726_v34, %v626_v33  ;;  %v618_v36 = vld [vmem:[%s843_s7 + $0x30] sm:$0xf]  ;;  %v725_v37 = vld [vmem:[%s843_s7 + $0x38] sm:$0xf0]  ;;  %v724_v38 = vld [vmem:[%s843_s7 + $0x34] sm:$0xf] }
  0x16   : > { %v620_v39 = vld [vmem:[%s843_s7 + $0x3c] sm:$0xf0]  ;;  %v619_v40 = vor.u32 %v725_v37, %v618_v36  ;;  %v638_v42 = vld [vmem:[%s843_s7 + $0x50] sm:$0xf]  ;;  %v729_v43 = vld [vmem:[%s843_s7 + $0x58] sm:$0xf0] }
  0x17   : > { %v623_v41 = vor.u32 %v724_v38, %v620_v39  ;;  %v639_v44 = vor.u32 %v729_v43, %v638_v42  ;;  %v718_v45 = vld [vmem:[%s843_s7 + $0x4] sm:$0xf]  ;;  %v596_v46 = vld [vmem:[%s843_s7 + $0xc] sm:$0xf0]  ;;  %v630_v48 = vld [vmem:[%s843_s7 + $0x48] sm:$0xf] }
  0x18   : > { %418 = vmatpush.bf16.msra.mxu0 %v734_v11  ;;  %751 = vmatpush.bf16.msra.mxu3 %v734_v11  ;;  %v599_v47 = vor.u32 %v718_v45, %v596_v46  ;;  %v728_v49 = vld [vmem:[%s843_s7 + $0x50] sm:$0xf0]  ;;  %v727_v50 = vld [vmem:[%s843_s7 + $0x4c] sm:$0xf]  ;;  %v632_v51 = vld [vmem:[%s843_s7 + $0x54] sm:$0xf0] }
  0x19   : > { %759 = vmatpush.bf16.msra.mxu1 %v742_v12  ;;  %v631_v52 = vor.u32 %v728_v49, %v630_v48  ;;  %v635_v53 = vor.u32 %v727_v50, %v632_v51  ;;  %v907_v58 = vld [vmem:[%s944_s2] ss:$0 sm:$0xff] }
  0x1c   : > { %419 = vmatpush.bf16.msra.mxu0 %v733_v13  ;;  %752 = vmatpush.bf16.msra.mxu3 %v733_v13 }
  0x1d   : > { %760 = vmatpush.bf16.msra.mxu1 %v741_v14 }
  0x20   : > { %420 = vmatpush.bf16.msra.mxu0 %v732_v15  ;;  %753 = vmatpush.bf16.msra.mxu3 %v732_v15 }
  0x21   : > { %761 = vmatpush.bf16.msra.mxu1 %v740_v16 }
  0x24   : > { %421 = vmatpush.bf16.msra.mxu0 %v731_v19  ;;  %754 = vmatpush.bf16.msra.mxu3 %v731_v19 }
  0x25   : > { %762 = vmatpush.bf16.msra.mxu1 %v739_v20  ;;  %713 = vmatmul.msk.bf16.gmra.mxu2 %vm402_vm0, %v615_v21 }
  0x28   : > { %422 = vmatpush.bf16.msra.mxu0 %v730_v22  ;;  %755 = vmatpush.bf16.msra.mxu3 %v730_v22 }
  0x29   : > { %763 = vmatpush.bf16.msra.mxu1 %v738_v27 }
  0x2b   : > { %428 = vmatmul.bf16.vlgmr.msra.gmra.mxu3 %v607_v30  ;;  %423 = vmatmul.bf16.vlgmr.msra.gmra.mxu0 %v595_v31 }
  0x2c   : > { %444 = vmatpush.bf16.msrb.mxu0 %v816_v1  ;;  %457 = vmatmul.bf16.vlgmr.msra.gmra.mxu1 %v611_v32 }
  0x30   : > { %445 = vmatpush.bf16.msrb.mxu0 %v744_v4 }
  0x34   : > { %446 = vmatpush.bf16.msrb.mxu0 %v743_v7 }
  0x35   : > { %714 = vmatmul.msk.bf16.gmra.mxu2 %vm402_vm0, %v627_v35 }
  0x38   : > { %447 = vmatpush.bf16.msrb.mxu0 %v742_v12 }
  0x3b   : > { %433 = vmatmul.bf16.gmra.mxu3 %v619_v40 }
  0x3c   : > { %448 = vmatpush.bf16.msrb.mxu0 %v741_v14  ;;  %462 = vmatmul.bf16.gmra.mxu1 %v623_v41 }
  0x40   : > { %449 = vmatpush.bf16.msrb.mxu0 %v740_v16 }
  0x44   : > { %450 = vmatpush.bf16.msrb.mxu0 %v739_v20 }
  0x45   : > { %715 = vmatmul.msk.bf16.gmra.mxu2 %vm402_vm0, %v639_v44 }
  0x48   : > { %451 = vmatpush.bf16.msrb.mxu0 %v738_v27 }
  0x4b   : > { %452 = vmatmul.bf16.vlgmr.msrb.gmra.mxu0 %v599_v47  ;;  %438 = vmatmul.bf16.gmra.mxu3 %v631_v52 }
  0x4c   : > { %467 = vmatmul.bf16.gmra.mxu1 %v635_v53 }
  0x98   : > { %v482_v54 = vpop.f32.mrf.mxu2 }
  0xa0   : > { %v484_v55 = vpop.f32.mrf.mxu2 }
  0xa8   : > { %v487_v56 = vpop.f32.mrf.mxu2  ;;  %v424_v63 = vpop.f32.mrf.mxu0 }
  0xa9   : > { %v458_v57 = vpop.f32.mrf.mxu1  ;;  %v425_v17 = vadd.f32 %v907_v58, %v424_v63 }
  0xae   : > { %v429_v59 = vpop.f32.mrf.mxu3 }
  0xaf   : > { %v430_v60 = vadd.f32 %v907_v58, %v429_v59 }
  0xb0   : > { %v489_v0 = vpop.f32.mrf.mxu2  ;;  %v426_v9 = vpop.f32.mrf.mxu0 }
  0xb1   : > { %v459_v61 = vadd.f32 %v458_v57, %v430_v60  ;;  %v460_v62 = vpop.f32.mrf.mxu1  ;;  %v427_v30 = vadd.f32 %v907_v58, %v426_v9 }
  0xb3   : > { %v488_v1 = vadd.f32 %v487_v56, %v459_v61 }
  0xb5   : > { %v504_v2 = vmax.f32 %v488_v1, 0.0 }
  0xb6   : > { %v431_v3 = vpop.f32.mrf.mxu3 }
  0xb7   : > { %v512_v4 = vpack.c.bf16 %v504_v2, %v504_v2  ;;  %v432_v5 = vadd.f32 %v907_v58, %v431_v3 }
  0xb8   : > { %v492_v10 = vpop.f32.mrf.mxu2 }
  0xb9   : > { %521 = vst.msk [vmem:[%s914_s8 + $0x8] sm:$0xf] %vm518_vm1, %v512_v4  ;;  %v461_v6 = vadd.f32 %v460_v62, %v432_v5  ;;  %v463_v7 = vpop.f32.mrf.mxu1 }
  0xbb   : > { %v490_v8 = vadd.f32 %v489_v0, %v461_v6 }
  0xbd   : > { %v505_v11 = vmax.f32 %v490_v8, 0.0 }
  0xbe   : > { %v434_v12 = vpop.f32.mrf.mxu3 }
  0xbf   : > { %v513_v13 = vpack.c.bf16 %v505_v11, %v505_v11  ;;  %v435_v14 = vadd.f32 %v907_v58, %v434_v12 }
  0xc0   : > { %v494_v21 = vpop.f32.mrf.mxu2 }
  0xc1   : > { %522 = vst.msk [vmem:[%s914_s8 + $0xc] sm:$0xf] %vm518_vm1, %v513_v13  ;;  %v464_v15 = vadd.f32 %v463_v7, %v435_v14  ;;  %v465_v18 = vpop.f32.mrf.mxu1 }
  0xc3   : > { %v493_v16 = vadd.f32 %v492_v10, %v464_v15 }
  0xc5   : > { %v506_v19 = vmax.f32 %v493_v16, 0.0 }
  0xc6   : > { %v436_v23 = vpop.f32.mrf.mxu3 }
  0xc7   : > { %v514_v24 = vpack.c.bf16 %v506_v19, %v506_v19  ;;  %v437_v25 = vadd.f32 %v907_v58, %v436_v23 }
  0xc8   : > { %v453_v20 = vpop.f32.mrf.mxu0  ;;  %v497_v39 = vpop.f32.mrf.mxu2 }
  0xc9   : > { %v454_v22 = vadd.f32 %v453_v20, %v425_v17  ;;  %523 = vst.msk [vmem:[%s914_s8 + $0x10] sm:$0xf] %vm518_vm1, %v514_v24  ;;  %v466_v27 = vadd.f32 %v465_v18, %v437_v25  ;;  %v468_v34 = vpop.f32.mrf.mxu1 }
  0xcb   : > { %v483_v26 = vadd.f32 %v482_v54, %v454_v22  ;;  %v495_v29 = vadd.f32 %v494_v21, %v466_v27 }
  0xcd   : > { %v502_v28 = vmax.f32 %v483_v26, 0.0  ;;  %v507_v32 = vmax.f32 %v495_v29, 0.0 }
  0xce   : > { %v439_v36 = vpop.f32.mrf.mxu3 }
  0xcf   : > { %v510_v31 = vpack.c.bf16 %v502_v28, %v502_v28  ;;  %v515_v37 = vpack.c.bf16 %v507_v32, %v507_v32  ;;  %v440_v38 = vadd.f32 %v907_v58, %v439_v36 }
  0xd0   : > { %v455_v33 = vpop.f32.mrf.mxu0  ;;  %v499_v51 = vpop.f32.mrf.mxu2 }
  0xd1   : > { %519 = vst.msk [vmem:[%s914_s8] sm:$0xf] %vm518_vm1, %v510_v31  ;;  %v456_v35 = vadd.f32 %v455_v33, %v427_v30  ;;  %v469_v41 = vadd.f32 %v468_v34, %v440_v38  ;;  %v470_v49 = vpop.f32.mrf.mxu1 }
  0xd2   : > { %524 = vst.msk [vmem:[%s914_s8 + $0x14] sm:$0xf] %vm518_vm1, %v515_v37 }
  0xd3   : > { %v485_v40 = vadd.f32 %v484_v55, %v456_v35  ;;  %v498_v43 = vadd.f32 %v497_v39, %v469_v41 }
  0xd5   : > { %v503_v42 = vmax.f32 %v485_v40, 0.0  ;;  %v508_v45 = vmax.f32 %v498_v43, 0.0 }
  0xd6   : > { %v441_v46 = vpop.f32.mrf.mxu3 }
  0xd7   : > { %v511_v44 = vpack.c.bf16 %v503_v42, %v503_v42  ;;  %v516_v47 = vpack.c.bf16 %v508_v45, %v508_v45  ;;  %v442_v48 = vadd.f32 %v907_v58, %v441_v46 }
  0xd9   : > { %520 = vst.msk [vmem:[%s914_s8 + $0x4] sm:$0xf] %vm518_vm1, %v511_v44  ;;  %v471_v50 = vadd.f32 %v470_v49, %v442_v48 }
  0xda   : > { %525 = vst.msk [vmem:[%s914_s8 + $0x18] sm:$0xf] %vm518_vm1, %v516_v47 }
  0xdb   : > { %v500_v52 = vadd.f32 %v499_v51, %v471_v50 }
  0xdd   : > { %v509_v53 = vmax.f32 %v500_v52, 0.0 }
  0xdf   : > { %v517_v54 = vpack.c.bf16 %v509_v53, %v509_v53 }
  0xe1   : > { %526 = vst.msk [vmem:[%s914_s8 + $0x1c] sm:$0xf] %vm518_vm1, %v517_v54 }
  0xe2 PF: > { %s13_s12 = sadd.s32 1, %s780_s12  }
  0xe3   : > { %p10_p4 = scmp.ge.s32.totalorder %s13_s12, 4  }
  0xe5   :  { %12 = sbr.rel (!%p10_p4) target bundleno = 1 (0x1), region = 62 }

// kernel: finetune_net_wa_forward.63
= control target key start
LH: loop header
LB: loop body
LE: loop exit
PB: predicated region body
PF: predicated region fallthrough
CT: control target
= control target key end

     0   :  { %vm49_vm0 = vcmask 523264   ;;  %s325_s0 = inlined_call_operand.vmem [shape: bf16[2,64,64], index: 0, kind: input, shape index: {}]   ;;  %s326_s1 = inlined_call_operand.vmem [shape: f32[64,20], index: 1, kind: input, shape index: {}]   ;;  %s327_s2 = inlined_call_operand.vmem [shape: f32[1,20], index: 2, kind: input, shape index: {}]   ;;  %s328_s3 = inlined_call_operand.hbm [shape: f32[2,64], index: 3, kind: output, shape index: {0}]   ;;  %s329_s4 = inlined_call_operand.vmem [shape: f32[2,20], index: 4, kind: output, shape index: {1}]  }
   0x1   :  { %v108_v0 = vld [vmem:[%s326_s1 + $0x38] sm:$0xff]  ;;  %v107_v1 = vld [vmem:[%s326_s1 + $0x30] sm:$0xff]  ;;  %v106_v2 = vld [vmem:[%s326_s1 + $0x28] sm:$0xff] }
   0x2   :  { %123 = vmatpush.msra.mxu0 %v108_v0  ;;  %v159_v3 = vld [vmem:[%s325_s0] sm:$0xff]   ;;  %v190_v7 = vld [vmem:[%s325_s0 + $0x8] sm:$0xff]   ;;  %v191_v9 = vld [vmem:[%s325_s0 + $0x10] sm:$0xff]  }
   0x3   :  { %v105_v4 = vld [vmem:[%s326_s1 + $0x20] sm:$0xff]  ;;  %v160_v5 = vunpack.c.l.bf16 %v159_v3  ;;  %v161_v6 = vunpack.c.h.bf16 %v159_v3  ;;  %v164_v8 = vunpack.c.l.bf16 %v190_v7  ;;  %v194_v11 = vld [vmem:[%s325_s0 + $0x28] sm:$0xff]   ;;  %v165_v12 = vunpack.c.h.bf16 %v190_v7 }
   0x4   :  { %124 = vmatpush.msra.mxu0 %v107_v1  ;;  %v193_v10 = vld [vmem:[%s325_s0 + $0x20] sm:$0xff]  }
   0x5   :  { %v176_v13 = vunpack.c.l.bf16 %v193_v10 }
   0x6   :  { %125 = vmatpush.msra.mxu0 %v106_v2 }
   0x7   :  { %10 = vsyncpa [#allocation3], 0  ;;  %v104_v14 = vld [vmem:[%s326_s1 + $0x18] sm:$0xff]  ;;  %v177_v15 = vunpack.c.h.bf16 %v193_v10  ;;  %v180_v16 = vunpack.c.l.bf16 %v194_v11  ;;  %v168_v17 = vunpack.c.l.bf16 %v191_v9  ;;  %v195_v18 = vld [vmem:[%s325_s0 + $0x30] sm:$0xff]   ;;  %v50_v19 = vsel %vm49_vm0, %v160_v5, 0.0  ;;  %s144_s23 = sshll.u32 %s328_s3, 4  ;;  %s145_s23 = int_to_ptr.hbm [resolvable:$true] %s144_s23 }
   0x8   :  { %126 = vmatpush.msra.mxu0 %v105_v4  ;;  %v51_v20 = vsel %vm49_vm0, %v161_v6, 0.0  ;;  %v103_v21 = vld [vmem:[%s326_s1 + $0x10] sm:$0xff]  ;;  %v192_v22 = vld [vmem:[%s325_s0 + $0x18] sm:$0xff]   ;;  %v181_v23 = vunpack.c.h.bf16 %v194_v11  ;;  %v53_v25 = vsel %vm49_vm0, %v164_v8, 0.0  ;;  %v169_v26 = vunpack.c.h.bf16 %v191_v9  ;;  %v102_v29 = vld [vmem:[%s326_s1 + $0x8] sm:$0xff] }
   0x9   :  { %v52_v24 = vadd.f32 %v51_v20, %v50_v19  ;;  %v55_v27 = vsel %vm49_vm0, %v165_v12, 0.0  ;;  %v71_v28 = vsel %vm49_vm0, %v176_v13, 0.0  ;;  %v184_v30 = vunpack.c.l.bf16 %v195_v18  ;;  %v196_v35 = vld [vmem:[%s325_s0 + $0x38] sm:$0xff]   ;;  %v101_v38 = vld [vmem:[%s326_s1] sm:$0xff]  ;;  %s225_s0 = smov [#allocation2]  }
   0xa   :  { %127 = vmatpush.msra.mxu0 %v104_v14  ;;  %v72_v32 = vsel %vm49_vm0, %v177_v15, 0.0  ;;  %v74_v33 = vsel %vm49_vm0, %v180_v16, 0.0  ;;  %v172_v34 = vunpack.c.l.bf16 %v192_v22  ;;  %v57_v36 = vsel %vm49_vm0, %v168_v17, 0.0  ;;  %s142_s1 = sshll.u32 %s225_s0, 4  ;;  %v198_v13 = vld [vmem:[%s327_s2] ss:$0 sm:$0xff]  ;;  %s143_s1 = int_to_ptr.vmem [resolvable:$true] %s142_s1 }
   0xb   :  { %v54_v31 = vadd.f32 %v53_v25, %v52_v24  ;;  %v73_v37 = vadd.f32 %v72_v32, %v71_v28  ;;  %v185_v39 = vunpack.c.h.bf16 %v195_v18  ;;  %v76_v41 = vsel %vm49_vm0, %v181_v23, 0.0 }
   0xc   :  { %128 = vmatpush.msra.mxu0 %v103_v21  ;;  %v173_v42 = vunpack.c.h.bf16 %v192_v22  ;;  %v59_v43 = vsel %vm49_vm0, %v169_v26, 0.0  ;;  %v188_v45 = vunpack.c.l.bf16 %v196_v35  ;;  %v78_v47 = vsel %vm49_vm0, %v184_v30, 0.0 }
   0xd   :  { %v56_v40 = vadd.f32 %v55_v27, %v54_v31  ;;  %v75_v44 = vadd.f32 %v74_v33, %v73_v37  ;;  %v61_v48 = vsel %vm49_vm0, %v172_v34, 0.0  ;;  %v189_v50 = vunpack.c.h.bf16 %v196_v35 }
   0xe   :  { %129 = vmatpush.msra.mxu0 %v102_v29  ;;  %v80_v52 = vsel %vm49_vm0, %v185_v39, 0.0  ;;  %v63_v53 = vsel %vm49_vm0, %v173_v42, 0.0  ;;  %v82_v56 = vsel %vm49_vm0, %v188_v45, 0.0  ;;  %vm96_vm1 = vcmask 1041409  }
   0xf   :  { %v58_v46 = vadd.f32 %v57_v36, %v56_v40  ;;  %v77_v49 = vadd.f32 %v76_v41, %v75_v44  ;;  %v84_v59 = vsel %vm49_vm0, %v189_v50, 0.0  ;;  %vm99_vm2 = vcmask 517120  }
  0x10   :  { %130 = vmatpush.msra.mxu0 %v101_v38  ;;  %vm135_vm3 = vcmask 156672  }
  0x11   :  { %v60_v51 = vadd.f32 %v59_v43, %v58_v46  ;;  %v79_v54 = vadd.f32 %v78_v47, %v77_v49 }
  0x13   :  { %v62_v55 = vadd.f32 %v61_v48, %v60_v51  ;;  %v81_v57 = vadd.f32 %v80_v52, %v79_v54 }
  0x15   :  { %v64_v58 = vadd.f32 %v63_v53, %v62_v55  ;;  %v83_v60 = vadd.f32 %v82_v56, %v81_v57 }
  0x17   :  { %v65_v61 = vrot.slane %v64_v58, 4  ;;  %v85_v62 = vadd.f32 %v84_v59, %v83_v60 }
  0x19   :  { %v66_v63 = vadd.f32 %v65_v61, %v64_v58  ;;  %v86_v0 = vrot.slane %v85_v62, 4 }
  0x1b   :  { %v67_v1 = vrot.slane %v66_v63, 2  ;;  %v87_v2 = vadd.f32 %v86_v0, %v85_v62 }
  0x1d   :  { %v68_v3 = vadd.f32 %v67_v1, %v66_v63  ;;  %v88_v4 = vrot.slane %v87_v2, 2 }
  0x1f   :  { %v69_v5 = vrot.slane %v68_v3, 1  ;;  %v89_v6 = vadd.f32 %v88_v4, %v87_v2 }
  0x21   :  { %v70_v7 = vadd.f32 %v69_v5, %v68_v3  ;;  %v90_v8 = vrot.slane %v89_v6, 1 }
  0x23   :  { %v91_v9 = vadd.f32 %v90_v8, %v89_v6  ;;  %v92_v10 = vmul.f32 0.015625, %v70_v7 }
  0x25   :  { %v93_v11 = vmul.f32 0.015625, %v91_v9 }
  0x27   :  { %v97_v12 = vsel %vm96_vm1, %v93_v11, %v92_v10 }
  0x28   :  { %100 = vst.msk [vmem:[#allocation2] sm:$0x3] %vm99_vm2, %v97_v12  ;;  %157 = vmatmul.msk.f32.vlgmr.msra.gmra.mxu0 %vm49_vm0, %v97_v12 }
  0x29   :  { %147 = dma.vmem_to_hbm [thread:$0]  %s143_s1, 32, %s145_s23, [#allocation3]  }
  0xa5   :  { %v132_v14 = vpop.f32.mrf.mxu0 }
  0xa6   :  { %v133_v15 = vadd.f32 %v198_v13, %v132_v14 }
  0xa8   :  { %136 = vst.msk [vmem:[%s329_s4] sm:$0x3] %vm135_vm3, %v133_v15 }
  0xa9   :  { %223 = dma.done.wait [#allocation3], 32  }
  0xaa   :  { %224 = vsyncadd [#allocation3], 4294967264 }
  0xab   :  { %156 = vsyncpa [#allocation3], 1 }

// kernel: finetune_net_wa_forward.55
= control target key start
LH: loop header
LB: loop body
LE: loop exit
PB: predicated region body
PF: predicated region fallthrough
CT: control target
= control target key end

     0   :  { %s1182_s12 = smov 0   ;;  %s1394_s0 = inlined_call_operand.vmem [shape: bf16[128,576], index: 0, kind: input, shape index: {}]   ;;  %s1395_s1 = inlined_call_operand.vmem [shape: bf16[576,64], index: 1, kind: input, shape index: {}]   ;;  %s1396_s2 = inlined_call_operand.vmem [shape: f32[1,64], index: 2, kind: input, shape index: {}]   ;;  %s1397_s3 = inlined_call_operand.vmem [shape: bf16[128,64], index: 3, kind: output, shape index: {}]  }
   0x1 LB: > { %s833_s13 = sadd.s32 4294967295, %s1160_s12   ;;  %p837_p0 = scmp.ge.s32.totalorder %s1160_s12, 1  ;;  %s1160_s12 = sphi %s1182_s12, %s13_s12  }
   0x2   : > { %p139_p1 = scmp.lt.s32.totalorder %s1160_s12, 3 }
   0x4   : > { %p140_p2 = pnand %p837_p0, %p139_p1 }
   0x5   : > { %s838_s24 = sshll.u32 (!%p140_p2), %s833_s13, 3 }
   0x6   : > { %143 = sbr.rel (%p140_p2) target bundleno = 274 (0x112), region = 32  ;;  %p165_p3 = scmp.lt.s32.totalorder (!%p140_p2), %s838_s24, 15 }
   0xb   : > { %v1099_v0 = vld [vmem:[%s1395_s1 + $0x38] sm:$0xff]  ;;  %v1098_v1 = vld [vmem:[%s1395_s1 + $0x30] sm:$0xff]  ;;  %v1097_v4 = vld [vmem:[%s1395_s1 + $0x28] sm:$0xff]  ;;  %s1399_s24 = smov (!%p165_p3, %s838_s24), 15  ;;  %vm594_vm0 = vcmask 523264   ;;  %vm768_vm1 = vcmask 519168  }
   0xc   : > { %1128 = vmatpush.bf16.msra.mxu1 %v1099_v0  ;;  %1129 = vmatpush.bf16.msra.mxu2 %v1099_v0  ;;  %v1123_v2 = vld [vmem:[%s1395_s1 + $0xf8] sm:$0xff]  ;;  %v1122_v3 = vld [vmem:[%s1395_s1 + $0xf0] sm:$0xff]  ;;  %v1121_v5 = vld [vmem:[%s1395_s1 + $0xe8] sm:$0xff]  ;;  %s1144_s10 = smul.u32 20, %s1399_s24 }
   0xd   : > { %607 = vmatpush.bf16.msra.mxu0 %v1099_v0  ;;  %694 = vmatpush.bf16.msra.mxu3 %v1123_v2  ;;  %v1096_v6 = vld [vmem:[%s1395_s1 + $0x20] sm:$0xff]  ;;  %v1095_v8 = vld [vmem:[%s1395_s1 + $0x18] sm:$0xff]  ;;  %v1094_v10 = vld [vmem:[%s1395_s1 + $0x10] sm:$0xff] }
   0xe   : > { %v1120_v7 = vld [vmem:[%s1395_s1 + $0xe0] sm:$0xff]  ;;  %v1119_v9 = vld [vmem:[%s1395_s1 + $0xd8] sm:$0xff]  ;;  %v1118_v11 = vld [vmem:[%s1395_s1 + $0xd0] sm:$0xff]  ;;  %s1235_s18 = scalar_lea.vmem %s1394_s0, %s1144_s10 }
   0xf   : > { %v1093_v12 = vld [vmem:[%s1395_s1 + $0x8] sm:$0xff]  ;;  %v1092_v14 = vld [vmem:[%s1395_s1] sm:$0xff]  ;;  %v1079_v16 = vld [vmem:[%s1235_s18 + $0x38] sm:$0xf0] }
  0x10   : > { %1130 = vmatpush.bf16.msra.mxu1 %v1098_v1  ;;  %1131 = vmatpush.bf16.msra.mxu2 %v1098_v1  ;;  %v1117_v13 = vld [vmem:[%s1395_s1 + $0xc8] sm:$0xff]  ;;  %v904_v17 = vld [vmem:[%s1235_s18 + $0x78] sm:$0xf]  ;;  %v844_v21 = vld [vmem:[%s1235_s18] sm:$0xf] }
  0x11   : > { %608 = vmatpush.bf16.msra.mxu0 %v1098_v1  ;;  %695 = vmatpush.bf16.msra.mxu3 %v1122_v3  ;;  %v864_v15 = vld [vmem:[%s1235_s18 + $0x28] sm:$0xf]  ;;  %v1089_v18 = vld [vmem:[%s1235_s18 + $0x88] sm:$0xf0]  ;;  %v1115_v19 = vld [vmem:[%s1395_s1 + $0xb8] sm:$0xff] }
  0x12   : > { %v1107_v20 = vld [vmem:[%s1395_s1 + $0x78] sm:$0xff]  ;;  %v1116_v22 = vld [vmem:[%s1395_s1 + $0xc0] sm:$0xff]  ;;  %v865_v23 = vor.u32 %v1079_v16, %v864_v15  ;;  %v905_v24 = vor.u32 %v1089_v18, %v904_v17  ;;  %v1074_v25 = vld [vmem:[%s1235_s18 + $0x10] sm:$0xf0] }
  0x13   : > { %v1073_v26 = vld [vmem:[%s1235_s18 + $0xc] sm:$0xf]  ;;  %v854_v27 = vld [vmem:[%s1235_s18 + $0x1c] sm:$0xf0]  ;;  %v1127_v28 = vld [vmem:[%s1395_s1 + $0x118] sm:$0xff]  ;;  %v845_v31 = vor.u32 %v1074_v25, %v844_v21 }
  0x14   : > { %1132 = vmatpush.bf16.msra.mxu1 %v1097_v4  ;;  %1133 = vmatpush.bf16.msra.mxu2 %v1097_v4  ;;  %v1114_v29 = vld [vmem:[%s1395_s1 + $0xb0] sm:$0xff]  ;;  %v857_v32 = vor.u32 %v1073_v26, %v854_v27  ;;  %v1113_v34 = vld [vmem:[%s1395_s1 + $0xa8] sm:$0xff]  ;;  %v1112_v37 = vld [vmem:[%s1395_s1 + $0xa0] sm:$0xff] }
  0x15   : > { %609 = vmatpush.bf16.msra.mxu0 %v1097_v4  ;;  %696 = vmatpush.bf16.msra.mxu3 %v1121_v5  ;;  %v1106_v30 = vld [vmem:[%s1395_s1 + $0x70] sm:$0xff]  ;;  %v1105_v35 = vld [vmem:[%s1395_s1 + $0x68] sm:$0xff]  ;;  %v1104_v38 = vld [vmem:[%s1395_s1 + $0x60] sm:$0xff] }
  0x16   : > { %v1126_v33 = vld [vmem:[%s1395_s1 + $0x110] sm:$0xff]  ;;  %v1125_v36 = vld [vmem:[%s1395_s1 + $0x108] sm:$0xff]  ;;  %v1084_v40 = vld [vmem:[%s1235_s18 + $0x60] sm:$0xf0] }
  0x17   : > { %v884_v39 = vld [vmem:[%s1235_s18 + $0x50] sm:$0xf]  ;;  %v1124_v41 = vld [vmem:[%s1395_s1 + $0x100] sm:$0xff]  ;;  %v1111_v42 = vld [vmem:[%s1395_s1 + $0x98] sm:$0xff] }
  0x18   : > { %1134 = vmatpush.bf16.msra.mxu1 %v1096_v6  ;;  %1135 = vmatpush.bf16.msra.mxu2 %v1096_v6  ;;  %v1103_v43 = vld [vmem:[%s1395_s1 + $0x58] sm:$0xff]  ;;  %v860_v44 = vld [vmem:[%s1235_s18 + $0x10] sm:$0xf]  ;;  %v885_v45 = vor.u32 %v1084_v40, %v884_v39  ;;  %v1076_v46 = vld [vmem:[%s1235_s18 + $0x20] sm:$0xf0] }
  0x19   : > { %610 = vmatpush.bf16.msra.mxu0 %v1096_v6  ;;  %697 = vmatpush.bf16.msra.mxu3 %v1120_v7  ;;  %v1078_v47 = vld [vmem:[%s1235_s18 + $0x34] sm:$0xf]  ;;  %v874_v48 = vld [vmem:[%s1235_s18 + $0x44] sm:$0xf0]  ;;  %v861_v51 = vor.u32 %v1076_v46, %v860_v44  ;;  %v1108_v55 = vld [vmem:[%s1395_s1 + $0x80] sm:$0xff] }
  0x1a   : > { %v1110_v49 = vld [vmem:[%s1395_s1 + $0x90] sm:$0xff]  ;;  %v877_v52 = vor.u32 %v1078_v47, %v874_v48  ;;  %v1109_v53 = vld [vmem:[%s1395_s1 + $0x88] sm:$0xff]  ;;  %v1100_v56 = vld [vmem:[%s1395_s1 + $0x40] sm:$0xff] }
  0x1b   : > { %v1102_v50 = vld [vmem:[%s1395_s1 + $0x50] sm:$0xff]  ;;  %v1101_v54 = vld [vmem:[%s1395_s1 + $0x48] sm:$0xff]  ;;  %v1075_v58 = vld [vmem:[%s1235_s18 + $0x18] sm:$0xf0] }
  0x1c   : > { %1136 = vmatpush.bf16.msra.mxu1 %v1095_v8  ;;  %1137 = vmatpush.bf16.msra.mxu2 %v1095_v8  ;;  %v852_v57 = vld [vmem:[%s1235_s18 + $0x8] sm:$0xf]  ;;  %v1072_v60 = vld [vmem:[%s1235_s18 + $0x4] sm:$0xf]  ;;  %v846_v61 = vld [vmem:[%s1235_s18 + $0x14] sm:$0xf0] }
  0x1d   : > { %611 = vmatpush.bf16.msra.mxu0 %v1095_v8  ;;  %698 = vmatpush.bf16.msra.mxu3 %v1119_v9  ;;  %v853_v59 = vor.u32 %v1075_v58, %v852_v57  ;;  %v880_v62 = vld [vmem:[%s1235_s18 + $0x38] sm:$0xf]  ;;  %v849_v63 = vor.u32 %v1072_v60, %v846_v61  ;;  %v1081_v0 = vld [vmem:[%s1235_s18 + $0x48] sm:$0xf0]  ;;  %v1083_v1 = vld [vmem:[%s1235_s18 + $0x5c] sm:$0xf] }
  0x1e   : > { %v894_v2 = vld [vmem:[%s1235_s18 + $0x6c] sm:$0xf0]  ;;  %v881_v3 = vor.u32 %v1081_v0, %v880_v62  ;;  %v1080_v6 = vld [vmem:[%s1235_s18 + $0x40] sm:$0xf0]  ;;  %v1077_v8 = vld [vmem:[%s1235_s18 + $0x2c] sm:$0xf] }
  0x1f   : > { %v897_v4 = vor.u32 %v1083_v1, %v894_v2  ;;  %v872_v5 = vld [vmem:[%s1235_s18 + $0x30] sm:$0xf]  ;;  %v866_v9 = vld [vmem:[%s1235_s18 + $0x3c] sm:$0xf0]  ;;  %v892_v17 = vld [vmem:[%s1235_s18 + $0x58] sm:$0xf] }
  0x20   : > { %1138 = vmatpush.bf16.msra.mxu1 %v1094_v10  ;;  %1139 = vmatpush.bf16.msra.mxu2 %v1094_v10  ;;  %v873_v7 = vor.u32 %v1080_v6, %v872_v5  ;;  %v1085_v18 = vld [vmem:[%s1235_s18 + $0x68] sm:$0xf0]  ;;  %v886_v21 = vld [vmem:[%s1235_s18 + $0x64] sm:$0xf0]  ;;  %v912_v26 = vld [vmem:[%s1235_s18 + $0x80] sm:$0xf] }
  0x21   : > { %612 = vmatpush.bf16.msra.mxu0 %v1094_v10  ;;  %699 = vmatpush.bf16.msra.mxu3 %v1118_v11  ;;  %v900_v10 = vld [vmem:[%s1235_s18 + $0x60] sm:$0xf]  ;;  %v869_v11 = vor.u32 %v1077_v8, %v866_v9  ;;  %v1090_v27 = vld [vmem:[%s1235_s18 + $0x90] sm:$0xf0] }
  0x24   : > { %1140 = vmatpush.bf16.msra.mxu1 %v1093_v12  ;;  %1141 = vmatpush.bf16.msra.mxu2 %v1093_v12 }
  0x25   : > { %613 = vmatpush.bf16.msra.mxu0 %v1093_v12  ;;  %700 = vmatpush.bf16.msra.mxu3 %v1117_v13  ;;  %v1086_v12 = vld [vmem:[%s1235_s18 + $0x70] sm:$0xf0]  ;;  %v1088_v13 = vld [vmem:[%s1235_s18 + $0x84] sm:$0xf] }
  0x26   : > { %v901_v15 = vor.u32 %v1086_v12, %v900_v10 }
  0x28   : > { %1142 = vmatpush.bf16.msra.mxu1 %v1092_v14  ;;  %1143 = vmatpush.bf16.msra.mxu2 %v1092_v14 }
  0x29   : > { %614 = vmatpush.bf16.msra.mxu0 %v1092_v14  ;;  %701 = vmatpush.bf16.msra.mxu3 %v1116_v22  ;;  %v914_v14 = vld [vmem:[%s1235_s18 + $0x94] sm:$0xf0] }
  0x2a   : > { %v917_v16 = vor.u32 %v1088_v13, %v914_v14 }
  0x2b   : > { %620 = vmatmul.bf16.vlgmr.msra.gmra.mxu1 %v865_v23  ;;  %630 = vmatmul.bf16.vlgmr.msra.gmra.mxu2 %v905_v24  ;;  %v920_v23 = vld [vmem:[%s1235_s18 + $0x88] sm:$0xf]  ;;  %v1091_v24 = vld [vmem:[%s1235_s18 + $0x98] sm:$0xf0] }
  0x2c   : > { %665 = vmatpush.bf16.msrb.mxu2 %v1115_v19  ;;  %636 = vmatpush.bf16.msrb.mxu1 %v1107_v20  ;;  %v893_v19 = vor.u32 %v1085_v18, %v892_v17  ;;  %v1082_v20 = vld [vmem:[%s1235_s18 + $0x54] sm:$0xf]  ;;  %v921_v25 = vor.u32 %v1091_v24, %v920_v23 }
  0x2d   : > { %727 = vmatpush.bf16.msrb.mxu0 %v1127_v28  ;;  %702 = vmatmul.bf16.vlgmr.msra.gmra.mxu3 %v857_v32  ;;  %v889_v22 = vor.u32 %v1082_v20, %v886_v21  ;;  %v913_v28 = vor.u32 %v1090_v27, %v912_v26 }
  0x2e   : > { %615 = vmatmul.bf16.vlgmr.msra.gmra.mxu0 %v845_v31 }
  0x30   : > { %666 = vmatpush.bf16.msrb.mxu2 %v1114_v29  ;;  %637 = vmatpush.bf16.msrb.mxu1 %v1106_v30  ;;  %v1087_v29 = vld [vmem:[%s1235_s18 + $0x7c] sm:$0xf]  ;;  %v906_v30 = vld [vmem:[%s1235_s18 + $0x8c] sm:$0xf0]  ;;  %s841_s18 = sshll.u32 %s1399_s24, 2 }
  0x31   : > { %728 = vmatpush.bf16.msrb.mxu0 %v1126_v33  ;;  %v909_v31 = vor.u32 %v1087_v29, %v906_v30  ;;  %s1365_s21 = scalar_lea.vmem %s1397_s3, %s841_s18 }
  0x34   : > { %667 = vmatpush.bf16.msrb.mxu2 %v1113_v34  ;;  %638 = vmatpush.bf16.msrb.mxu1 %v1105_v35 }
  0x35   : > { %729 = vmatpush.bf16.msrb.mxu0 %v1125_v36 }
  0x38   : > { %668 = vmatpush.bf16.msrb.mxu2 %v1112_v37  ;;  %639 = vmatpush.bf16.msrb.mxu1 %v1104_v38 }
  0x39   : > { %730 = vmatpush.bf16.msrb.mxu0 %v1124_v41 }
  0x3b   : > { %625 = vmatmul.bf16.gmra.mxu1 %v885_v45 }
  0x3c   : > { %669 = vmatpush.bf16.msrb.mxu2 %v1111_v42  ;;  %640 = vmatpush.bf16.msrb.mxu1 %v1103_v43  ;;  %v1357_v42 = vld [vmem:[%s1396_s2] ss:$0 sm:$0xff] }
  0x3d   : > { %707 = vmatmul.bf16.gmra.mxu3 %v877_v52 }
  0x3e   : > { %1066 = vmatmul.msk.bf16.vlgmr.msrb.gmra.mxu0 %vm594_vm0, %v861_v51 }
  0x40   : > { %670 = vmatpush.bf16.msrb.mxu2 %v1110_v49  ;;  %641 = vmatpush.bf16.msrb.mxu1 %v1102_v50 }
  0x44   : > { %671 = vmatpush.bf16.msrb.mxu2 %v1109_v53  ;;  %642 = vmatpush.bf16.msrb.mxu1 %v1101_v54 }
  0x48   : > { %672 = vmatpush.bf16.msrb.mxu2 %v1108_v55  ;;  %643 = vmatpush.bf16.msrb.mxu1 %v1100_v56 }
  0x4b   : > { %673 = vmatmul.bf16.vlgmr.msrb.gmra.mxu2 %v853_v59  ;;  %644 = vmatmul.bf16.vlgmr.msrb.gmra.mxu1 %v849_v63 }
  0x4d   : > { %712 = vmatmul.bf16.gmra.mxu3 %v897_v4 }
  0x4e   : > { %1067 = vmatmul.msk.bf16.gmra.mxu0 %vm594_vm0, %v881_v3 }
  0x5b   : > { %678 = vmatmul.bf16.gmra.mxu2 %v873_v7  ;;  %649 = vmatmul.bf16.gmra.mxu1 %v869_v11 }
  0x5d   : > { %717 = vmatmul.bf16.gmra.mxu3 %v917_v16 }
  0x5e   : > { %1068 = vmatmul.msk.bf16.gmra.mxu0 %vm594_vm0, %v901_v15 }
  0x6b   : > { %683 = vmatmul.bf16.gmra.mxu2 %v893_v19  ;;  %654 = vmatmul.bf16.gmra.mxu1 %v889_v22 }
  0x6e   : > { %1069 = vmatmul.msk.bf16.gmra.mxu0 %vm594_vm0, %v921_v25 }
  0x7b   : > { %688 = vmatmul.bf16.gmra.mxu2 %v913_v28  ;;  %659 = vmatmul.bf16.gmra.mxu1 %v909_v31 }
  0xa8   : > { %v621_v32 = vpop.f32.mrf.mxu1 }
  0xa9   : > { %v622_v62 = vadd.f32 %v1357_v42, %v621_v32 }
  0xab   : > { %v616_v33 = vpop.f32.mrf.mxu0 }
  0xac   : > { %v617_v43 = vadd.f32 %v1357_v42, %v616_v33 }
  0xae   : > { %v1350_v37 = vpop.f32.mrf.mxu2 }
  0xb0   : > { %v623_v34 = vpop.f32.mrf.mxu1  ;;  %v703_v38 = vpop.f32.mrf.mxu3 }
  0xb1   : > { %v624_v8 = vadd.f32 %v1357_v42, %v623_v34 }
  0xb3   : > { %v618_v35 = vpop.f32.mrf.mxu0 }
  0xb4   : > { %v619_v51 = vadd.f32 %v1357_v42, %v618_v35 }
  0xb6   : > { %v1352_v41 = vpop.f32.mrf.mxu2 }
  0xb8   : > { %v626_v36 = vpop.f32.mrf.mxu1  ;;  %v705_v46 = vpop.f32.mrf.mxu3 }
  0xb9   : > { %v627_v18 = vadd.f32 %v1357_v42, %v626_v36 }
  0xbb   : > { %v732_v40 = vpop.f32.mrf.mxu0 }
  0xc0   : > { %v628_v39 = vpop.f32.mrf.mxu1  ;;  %v708_v57 = vpop.f32.mrf.mxu3 }
  0xc1   : > { %v629_v29 = vadd.f32 %v1357_v42, %v628_v39 }
  0xc3   : > { %v734_v48 = vpop.f32.mrf.mxu0 }
  0xc8   : > { %v645_v44 = vpop.f32.mrf.mxu1  ;;  %v710_v6 = vpop.f32.mrf.mxu3 }
  0xc9   : > { %v646_v45 = vadd.f32 %v645_v44, %v617_v43  ;;  %v632_v44 = vadd.f32 %v1357_v42, %v1350_v37 }
  0xcb   : > { %v737_v60 = vpop.f32.mrf.mxu0 }
  0xce   : > { %v674_v47 = vpop.f32.mrf.mxu2 }
  0xcf   : > { %v675_v49 = vadd.f32 %v674_v47, %v646_v45 }
  0xd0   : > { %v647_v53 = vpop.f32.mrf.mxu1  ;;  %v713_v19 = vpop.f32.mrf.mxu3 }
  0xd1   : > { %v704_v50 = vadd.f32 %v703_v38, %v675_v49  ;;  %v648_v54 = vadd.f32 %v647_v53, %v619_v51 }
  0xd3   : > { %v733_v52 = vadd.f32 %v732_v40, %v704_v50  ;;  %v739_v9 = vpop.f32.mrf.mxu0 }
  0xd5   : > { %v752_v55 = vmax.f32 %v733_v52, 0.0 }
  0xd6   : > { %v676_v56 = vpop.f32.mrf.mxu2 }
  0xd7   : > { %v760_v58 = vpack.c.bf16 %v752_v55, %v752_v55  ;;  %v677_v59 = vadd.f32 %v676_v56, %v648_v54  ;;  %v634_v54 = vadd.f32 %v1357_v42, %v1352_v41 }
  0xd8   : > { %v650_v0 = vpop.f32.mrf.mxu1  ;;  %v715_v32 = vpop.f32.mrf.mxu3 }
  0xd9   : > { %769 = vst.msk [vmem:[%s1365_s21] sm:$0xf] %vm768_vm1, %v760_v58  ;;  %v706_v61 = vadd.f32 %v705_v46, %v677_v59  ;;  %v651_v1 = vadd.f32 %v650_v0, %v622_v62 }
  0xdb   : > { %v735_v63 = vadd.f32 %v734_v48, %v706_v61  ;;  %v742_v22 = vpop.f32.mrf.mxu0 }
  0xdd   : > { %v753_v2 = vmax.f32 %v735_v63, 0.0 }
  0xde   : > { %v679_v3 = vpop.f32.mrf.mxu2 }
  0xdf   : > { %v761_v4 = vpack.c.bf16 %v753_v2, %v753_v2  ;;  %v680_v5 = vadd.f32 %v679_v3, %v651_v1 }
  0xe0   : > { %v652_v11 = vpop.f32.mrf.mxu1  ;;  %v718_v48 = vpop.f32.mrf.mxu3 }
  0xe1   : > { %770 = vst.msk [vmem:[%s1365_s21 + $0x4] sm:$0xf] %vm768_vm1, %v761_v4  ;;  %v709_v7 = vadd.f32 %v708_v57, %v680_v5  ;;  %v653_v12 = vadd.f32 %v652_v11, %v624_v8 }
  0xe3   : > { %v738_v10 = vadd.f32 %v737_v60, %v709_v7  ;;  %v744_v35 = vpop.f32.mrf.mxu0 }
  0xe5   : > { %v754_v13 = vmax.f32 %v738_v10, 0.0 }
  0xe6   : > { %v681_v14 = vpop.f32.mrf.mxu2 }
  0xe7   : > { %v762_v15 = vpack.c.bf16 %v754_v13, %v754_v13  ;;  %v682_v16 = vadd.f32 %v681_v14, %v653_v12 }
  0xe8   : > { %v655_v21 = vpop.f32.mrf.mxu1  ;;  %v720_v61 = vpop.f32.mrf.mxu3 }
  0xe9   : > { %771 = vst.msk [vmem:[%s1365_s21 + $0x8] sm:$0xf] %vm768_vm1, %v762_v15  ;;  %v711_v17 = vadd.f32 %v710_v6, %v682_v16  ;;  %v656_v23 = vadd.f32 %v655_v21, %v627_v18 }
  0xeb   : > { %v740_v20 = vadd.f32 %v739_v9, %v711_v17  ;;  %v747_v52 = vpop.f32.mrf.mxu0 }
  0xed   : > { %v755_v24 = vmax.f32 %v740_v20, 0.0 }
  0xee   : > { %v684_v25 = vpop.f32.mrf.mxu2 }
  0xef   : > { %v763_v26 = vpack.c.bf16 %v755_v24, %v755_v24  ;;  %v685_v27 = vadd.f32 %v684_v25, %v656_v23 }
  0xf0   : > { %v657_v31 = vpop.f32.mrf.mxu1 }
  0xf1   : > { %772 = vst.msk [vmem:[%s1365_s21 + $0xc] sm:$0xf] %vm768_vm1, %v763_v26  ;;  %v714_v28 = vadd.f32 %v713_v19, %v685_v27  ;;  %v658_v33 = vadd.f32 %v657_v31, %v629_v29 }
  0xf3   : > { %v743_v30 = vadd.f32 %v742_v22, %v714_v28  ;;  %v749_v63 = vpop.f32.mrf.mxu0 }
  0xf5   : > { %v756_v34 = vmax.f32 %v743_v30, 0.0 }
  0xf6   : > { %v686_v36 = vpop.f32.mrf.mxu2 }
  0xf7   : > { %v764_v38 = vpack.c.bf16 %v756_v34, %v756_v34  ;;  %v687_v40 = vadd.f32 %v686_v36, %v658_v33 }
  0xf8   : > { %v660_v46 = vpop.f32.mrf.mxu1 }
  0xf9   : > { %773 = vst.msk [vmem:[%s1365_s21 + $0x10] sm:$0xf] %vm768_vm1, %v764_v38  ;;  %v716_v43 = vadd.f32 %v715_v32, %v687_v40  ;;  %v661_v47 = vadd.f32 %v660_v46, %v632_v44 }
  0xfb   : > { %v745_v45 = vadd.f32 %v744_v35, %v716_v43 }
  0xfd   : > { %v757_v39 = vmax.f32 %v745_v45, 0.0 }
  0xfe   : > { %v689_v49 = vpop.f32.mrf.mxu2 }
  0xff   : > { %v765_v50 = vpack.c.bf16 %v757_v39, %v757_v39  ;;  %v690_v51 = vadd.f32 %v689_v49, %v661_v47 }
 0x100   : > { %v662_v56 = vpop.f32.mrf.mxu1 }
 0x101   : > { %774 = vst.msk [vmem:[%s1365_s21 + $0x14] sm:$0xf] %vm768_vm1, %v765_v50  ;;  %v719_v53 = vadd.f32 %v718_v48, %v690_v51  ;;  %v663_v37 = vadd.f32 %v662_v56, %v634_v54 }
 0x103   : > { %v748_v55 = vadd.f32 %v747_v52, %v719_v53 }
 0x105   : > { %v758_v57 = vmax.f32 %v748_v55, 0.0 }
 0x106   : > { %v691_v58 = vpop.f32.mrf.mxu2 }
 0x107   : > { %v766_v59 = vpack.c.bf16 %v758_v57, %v758_v57  ;;  %v692_v60 = vadd.f32 %v691_v58, %v663_v37 }
 0x109   : > { %775 = vst.msk [vmem:[%s1365_s21 + $0x18] sm:$0xf] %vm768_vm1, %v766_v59  ;;  %v721_v62 = vadd.f32 %v720_v61, %v692_v60 }
 0x10b   : > { %v750_v0 = vadd.f32 %v749_v63, %v721_v62 }
 0x10d   : > { %v759_v1 = vmax.f32 %v750_v0, 0.0 }
 0x10f   : > { %v767_v2 = vpack.c.bf16 %v759_v1, %v759_v1 }
 0x111   : > { %776 = vst.msk [vmem:[%s1365_s21 + $0x1c] sm:$0xf] %vm768_vm1, %v767_v2 }
 0x112 PF: > { %s13_s12 = sadd.s32 1, %s1160_s12  }
 0x113   : > { %p10_p4 = scmp.ge.s32.totalorder %s13_s12, 4  }
 0x115   :  { %12 = sbr.rel (!%p10_p4) target bundleno = 1 (0x1), region = 62 }

// kernel: finetune_net_wa_forward.54
= control target key start
LH: loop header
LB: loop body
LE: loop exit
PB: predicated region body
PF: predicated region fallthrough
CT: control target
= control target key end

     0   :  { %s1293_s15 = smov 0   ;;  %s1517_s0 = inlined_call_operand.vmem [shape: bf16[128,576], index: 0, kind: input, shape index: {}]   ;;  %s1518_s1 = inlined_call_operand.vmem [shape: bf16[576,64], index: 1, kind: input, shape index: {}]   ;;  %s1519_s2 = inlined_call_operand.vmem [shape: f32[1,64], index: 2, kind: input, shape index: {}]   ;;  %s1520_s3 = inlined_call_operand.vmem [shape: bf16[128,64], index: 3, kind: input, shape index: {}]   ;;  %s1521_s4 = inlined_call_operand.vmem [shape: bf16[128,64], index: 4, kind: output, shape index: {}]  }
   0x1 LB: > { %s918_s16 = sadd.s32 4294967295, %s1266_s15   ;;  %p922_p0 = scmp.ge.s32.totalorder %s1266_s15, 1  ;;  %s1266_s15 = sphi %s1293_s15, %s14_s15  }
   0x2   : > { %p175_p1 = scmp.lt.s32.totalorder %s1266_s15, 3 }
   0x4   : > { %p176_p2 = pnand %p922_p0, %p175_p1 }
   0x5   : > { %s923_s27 = sshll.u32 (!%p176_p2), %s918_s16, 3 }
   0x6   : > { %179 = sbr.rel (%p176_p2) target bundleno = 276 (0x114), region = 36  ;;  %p208_p3 = scmp.lt.s32.totalorder (!%p176_p2), %s923_s27, 15 }
   0xb   : > { %v1186_v0 = vld [vmem:[%s1518_s1 + $0x38] sm:$0xff]  ;;  %v1185_v1 = vld [vmem:[%s1518_s1 + $0x30] sm:$0xff]  ;;  %v1184_v4 = vld [vmem:[%s1518_s1 + $0x28] sm:$0xff]  ;;  %s1523_s27 = smov (!%p208_p3, %s923_s27), 15  ;;  %vm643_vm0 = vcmask 523264   ;;  %vm841_vm1 = vcmask 519168  }
   0xc   : > { %1234 = vmatpush.bf16.msra.mxu1 %v1186_v0  ;;  %1235 = vmatpush.bf16.msra.mxu2 %v1186_v0  ;;  %v1210_v2 = vld [vmem:[%s1518_s1 + $0xf8] sm:$0xff]  ;;  %v1209_v3 = vld [vmem:[%s1518_s1 + $0xf0] sm:$0xff]  ;;  %v1208_v5 = vld [vmem:[%s1518_s1 + $0xe8] sm:$0xff]  ;;  %s1250_s14 = smul.u32 20, %s1523_s27 }
   0xd   : > { %656 = vmatpush.bf16.msra.mxu0 %v1186_v0  ;;  %743 = vmatpush.bf16.msra.mxu3 %v1210_v2  ;;  %v1183_v6 = vld [vmem:[%s1518_s1 + $0x20] sm:$0xff]  ;;  %v1182_v8 = vld [vmem:[%s1518_s1 + $0x18] sm:$0xff]  ;;  %v1181_v10 = vld [vmem:[%s1518_s1 + $0x10] sm:$0xff] }
   0xe   : > { %v1207_v7 = vld [vmem:[%s1518_s1 + $0xe0] sm:$0xff]  ;;  %v1206_v9 = vld [vmem:[%s1518_s1 + $0xd8] sm:$0xff]  ;;  %v1205_v11 = vld [vmem:[%s1518_s1 + $0xd0] sm:$0xff]  ;;  %s1346_s22 = scalar_lea.vmem %s1517_s0, %s1250_s14 }
   0xf   : > { %v1180_v12 = vld [vmem:[%s1518_s1 + $0x8] sm:$0xff]  ;;  %v1179_v14 = vld [vmem:[%s1518_s1] sm:$0xff]  ;;  %v1166_v16 = vld [vmem:[%s1346_s22 + $0x38] sm:$0xf0] }
  0x10   : > { %1236 = vmatpush.bf16.msra.mxu1 %v1185_v1  ;;  %1237 = vmatpush.bf16.msra.mxu2 %v1185_v1  ;;  %v1204_v13 = vld [vmem:[%s1518_s1 + $0xc8] sm:$0xff]  ;;  %v991_v17 = vld [vmem:[%s1346_s22 + $0x78] sm:$0xf]  ;;  %v931_v21 = vld [vmem:[%s1346_s22] sm:$0xf] }
  0x11   : > { %657 = vmatpush.bf16.msra.mxu0 %v1185_v1  ;;  %744 = vmatpush.bf16.msra.mxu3 %v1209_v3  ;;  %v951_v15 = vld [vmem:[%s1346_s22 + $0x28] sm:$0xf]  ;;  %v1176_v18 = vld [vmem:[%s1346_s22 + $0x88] sm:$0xf0]  ;;  %v1202_v19 = vld [vmem:[%s1518_s1 + $0xb8] sm:$0xff] }
  0x12   : > { %v1194_v20 = vld [vmem:[%s1518_s1 + $0x78] sm:$0xff]  ;;  %v1203_v22 = vld [vmem:[%s1518_s1 + $0xc0] sm:$0xff]  ;;  %v952_v23 = vor.u32 %v1166_v16, %v951_v15  ;;  %v992_v24 = vor.u32 %v1176_v18, %v991_v17  ;;  %v1161_v25 = vld [vmem:[%s1346_s22 + $0x10] sm:$0xf0] }
  0x13   : > { %v1160_v26 = vld [vmem:[%s1346_s22 + $0xc] sm:$0xf]  ;;  %v941_v27 = vld [vmem:[%s1346_s22 + $0x1c] sm:$0xf0]  ;;  %v1214_v28 = vld [vmem:[%s1518_s1 + $0x118] sm:$0xff]  ;;  %v932_v31 = vor.u32 %v1161_v25, %v931_v21 }
  0x14   : > { %1238 = vmatpush.bf16.msra.mxu1 %v1184_v4  ;;  %1239 = vmatpush.bf16.msra.mxu2 %v1184_v4  ;;  %v1201_v29 = vld [vmem:[%s1518_s1 + $0xb0] sm:$0xff]  ;;  %v944_v32 = vor.u32 %v1160_v26, %v941_v27  ;;  %v1200_v34 = vld [vmem:[%s1518_s1 + $0xa8] sm:$0xff]  ;;  %v1199_v37 = vld [vmem:[%s1518_s1 + $0xa0] sm:$0xff] }
  0x15   : > { %658 = vmatpush.bf16.msra.mxu0 %v1184_v4  ;;  %745 = vmatpush.bf16.msra.mxu3 %v1208_v5  ;;  %v1193_v30 = vld [vmem:[%s1518_s1 + $0x70] sm:$0xff]  ;;  %v1192_v35 = vld [vmem:[%s1518_s1 + $0x68] sm:$0xff]  ;;  %v1191_v38 = vld [vmem:[%s1518_s1 + $0x60] sm:$0xff] }
  0x16   : > { %v1213_v33 = vld [vmem:[%s1518_s1 + $0x110] sm:$0xff]  ;;  %v1212_v36 = vld [vmem:[%s1518_s1 + $0x108] sm:$0xff]  ;;  %v1171_v40 = vld [vmem:[%s1346_s22 + $0x60] sm:$0xf0] }
  0x17   : > { %v971_v39 = vld [vmem:[%s1346_s22 + $0x50] sm:$0xf]  ;;  %v1211_v41 = vld [vmem:[%s1518_s1 + $0x100] sm:$0xff]  ;;  %v1198_v42 = vld [vmem:[%s1518_s1 + $0x98] sm:$0xff] }
  0x18   : > { %1240 = vmatpush.bf16.msra.mxu1 %v1183_v6  ;;  %1241 = vmatpush.bf16.msra.mxu2 %v1183_v6  ;;  %v1190_v43 = vld [vmem:[%s1518_s1 + $0x58] sm:$0xff]  ;;  %v947_v44 = vld [vmem:[%s1346_s22 + $0x10] sm:$0xf]  ;;  %v972_v45 = vor.u32 %v1171_v40, %v971_v39  ;;  %v1163_v46 = vld [vmem:[%s1346_s22 + $0x20] sm:$0xf0] }
  0x19   : > { %659 = vmatpush.bf16.msra.mxu0 %v1183_v6  ;;  %746 = vmatpush.bf16.msra.mxu3 %v1207_v7  ;;  %v1165_v47 = vld [vmem:[%s1346_s22 + $0x34] sm:$0xf]  ;;  %v961_v48 = vld [vmem:[%s1346_s22 + $0x44] sm:$0xf0]  ;;  %v948_v51 = vor.u32 %v1163_v46, %v947_v44  ;;  %v1195_v55 = vld [vmem:[%s1518_s1 + $0x80] sm:$0xff] }
  0x1a   : > { %v1197_v49 = vld [vmem:[%s1518_s1 + $0x90] sm:$0xff]  ;;  %v964_v52 = vor.u32 %v1165_v47, %v961_v48  ;;  %v1196_v53 = vld [vmem:[%s1518_s1 + $0x88] sm:$0xff]  ;;  %v1187_v56 = vld [vmem:[%s1518_s1 + $0x40] sm:$0xff] }
  0x1b   : > { %v1189_v50 = vld [vmem:[%s1518_s1 + $0x50] sm:$0xff]  ;;  %v1188_v54 = vld [vmem:[%s1518_s1 + $0x48] sm:$0xff]  ;;  %v1162_v58 = vld [vmem:[%s1346_s22 + $0x18] sm:$0xf0] }
  0x1c   : > { %1242 = vmatpush.bf16.msra.mxu1 %v1182_v8  ;;  %1243 = vmatpush.bf16.msra.mxu2 %v1182_v8  ;;  %v939_v57 = vld [vmem:[%s1346_s22 + $0x8] sm:$0xf]  ;;  %v1159_v60 = vld [vmem:[%s1346_s22 + $0x4] sm:$0xf]  ;;  %v933_v61 = vld [vmem:[%s1346_s22 + $0x14] sm:$0xf0] }
  0x1d   : > { %660 = vmatpush.bf16.msra.mxu0 %v1182_v8  ;;  %747 = vmatpush.bf16.msra.mxu3 %v1206_v9  ;;  %v940_v59 = vor.u32 %v1162_v58, %v939_v57  ;;  %v967_v62 = vld [vmem:[%s1346_s22 + $0x38] sm:$0xf]  ;;  %v936_v63 = vor.u32 %v1159_v60, %v933_v61  ;;  %v1168_v0 = vld [vmem:[%s1346_s22 + $0x48] sm:$0xf0]  ;;  %v1170_v1 = vld [vmem:[%s1346_s22 + $0x5c] sm:$0xf] }
  0x1e   : > { %v981_v2 = vld [vmem:[%s1346_s22 + $0x6c] sm:$0xf0]  ;;  %v968_v3 = vor.u32 %v1168_v0, %v967_v62  ;;  %v1167_v6 = vld [vmem:[%s1346_s22 + $0x40] sm:$0xf0]  ;;  %v1164_v8 = vld [vmem:[%s1346_s22 + $0x2c] sm:$0xf] }
  0x1f   : > { %v984_v4 = vor.u32 %v1170_v1, %v981_v2  ;;  %v959_v5 = vld [vmem:[%s1346_s22 + $0x30] sm:$0xf]  ;;  %v953_v9 = vld [vmem:[%s1346_s22 + $0x3c] sm:$0xf0]  ;;  %v979_v17 = vld [vmem:[%s1346_s22 + $0x58] sm:$0xf] }
  0x20   : > { %1244 = vmatpush.bf16.msra.mxu1 %v1181_v10  ;;  %1245 = vmatpush.bf16.msra.mxu2 %v1181_v10  ;;  %v960_v7 = vor.u32 %v1167_v6, %v959_v5  ;;  %v1172_v18 = vld [vmem:[%s1346_s22 + $0x68] sm:$0xf0]  ;;  %v973_v21 = vld [vmem:[%s1346_s22 + $0x64] sm:$0xf0]  ;;  %v999_v26 = vld [vmem:[%s1346_s22 + $0x80] sm:$0xf] }
  0x21   : > { %661 = vmatpush.bf16.msra.mxu0 %v1181_v10  ;;  %748 = vmatpush.bf16.msra.mxu3 %v1205_v11  ;;  %v987_v10 = vld [vmem:[%s1346_s22 + $0x60] sm:$0xf]  ;;  %v956_v11 = vor.u32 %v1164_v8, %v953_v9  ;;  %v1177_v27 = vld [vmem:[%s1346_s22 + $0x90] sm:$0xf0] }
  0x24   : > { %1246 = vmatpush.bf16.msra.mxu1 %v1180_v12  ;;  %1247 = vmatpush.bf16.msra.mxu2 %v1180_v12 }
  0x25   : > { %662 = vmatpush.bf16.msra.mxu0 %v1180_v12  ;;  %749 = vmatpush.bf16.msra.mxu3 %v1204_v13  ;;  %v1173_v12 = vld [vmem:[%s1346_s22 + $0x70] sm:$0xf0]  ;;  %v1175_v13 = vld [vmem:[%s1346_s22 + $0x84] sm:$0xf] }
  0x26   : > { %v988_v15 = vor.u32 %v1173_v12, %v987_v10 }
  0x28   : > { %1248 = vmatpush.bf16.msra.mxu1 %v1179_v14  ;;  %1249 = vmatpush.bf16.msra.mxu2 %v1179_v14 }
  0x29   : > { %663 = vmatpush.bf16.msra.mxu0 %v1179_v14  ;;  %750 = vmatpush.bf16.msra.mxu3 %v1203_v22  ;;  %v1001_v14 = vld [vmem:[%s1346_s22 + $0x94] sm:$0xf0] }
  0x2a   : > { %v1004_v16 = vor.u32 %v1175_v13, %v1001_v14 }
  0x2b   : > { %669 = vmatmul.bf16.vlgmr.msra.gmra.mxu1 %v952_v23  ;;  %679 = vmatmul.bf16.vlgmr.msra.gmra.mxu2 %v992_v24  ;;  %v1007_v23 = vld [vmem:[%s1346_s22 + $0x88] sm:$0xf]  ;;  %v1178_v24 = vld [vmem:[%s1346_s22 + $0x98] sm:$0xf0] }
  0x2c   : > { %714 = vmatpush.bf16.msrb.mxu2 %v1202_v19  ;;  %685 = vmatpush.bf16.msrb.mxu1 %v1194_v20  ;;  %v980_v19 = vor.u32 %v1172_v18, %v979_v17  ;;  %v1169_v20 = vld [vmem:[%s1346_s22 + $0x54] sm:$0xf]  ;;  %v1008_v25 = vor.u32 %v1178_v24, %v1007_v23 }
  0x2d   : > { %776 = vmatpush.bf16.msrb.mxu0 %v1214_v28  ;;  %751 = vmatmul.bf16.vlgmr.msra.gmra.mxu3 %v944_v32  ;;  %v976_v22 = vor.u32 %v1169_v20, %v973_v21  ;;  %v1000_v28 = vor.u32 %v1177_v27, %v999_v26 }
  0x2e   : > { %664 = vmatmul.bf16.vlgmr.msra.gmra.mxu0 %v932_v31 }
  0x30   : > { %715 = vmatpush.bf16.msrb.mxu2 %v1201_v29  ;;  %686 = vmatpush.bf16.msrb.mxu1 %v1193_v30  ;;  %v1174_v29 = vld [vmem:[%s1346_s22 + $0x7c] sm:$0xf]  ;;  %v993_v30 = vld [vmem:[%s1346_s22 + $0x8c] sm:$0xf0]  ;;  %s926_s22 = sshll.u32 %s1523_s27, 2 }
  0x31   : > { %777 = vmatpush.bf16.msrb.mxu0 %v1213_v33  ;;  %v996_v31 = vor.u32 %v1174_v29, %v993_v30  ;;  %s1477_s28 = scalar_lea.vmem %s1520_s3, %s926_s22  ;;  %s1484_s30 = scalar_lea.vmem %s1521_s4, %s926_s22 }
  0x32   : > { %v1216_v48 = vld [vmem:[%s1477_s28] sm:$0xff]   ;;  %v1231_v8 = vld [vmem:[%s1477_s28 + $0x8] sm:$0xff]  }
  0x33   : > { %v1218_v1 = vunpack.c.h.bf16 %v1216_v48  ;;  %v1221_v14 = vunpack.c.l.bf16 %v1231_v8  ;;  %v1222_v26 = vunpack.c.h.bf16 %v1231_v8 }
  0x34   : > { %716 = vmatpush.bf16.msrb.mxu2 %v1200_v34  ;;  %687 = vmatpush.bf16.msrb.mxu1 %v1192_v35 }
  0x35   : > { %778 = vmatpush.bf16.msrb.mxu0 %v1212_v36 }
  0x38   : > { %717 = vmatpush.bf16.msrb.mxu2 %v1199_v37  ;;  %688 = vmatpush.bf16.msrb.mxu1 %v1191_v38 }
  0x39   : > { %779 = vmatpush.bf16.msrb.mxu0 %v1211_v41 }
  0x3b   : > { %674 = vmatmul.bf16.gmra.mxu1 %v972_v45 }
  0x3c   : > { %718 = vmatpush.bf16.msrb.mxu2 %v1198_v42  ;;  %689 = vmatpush.bf16.msrb.mxu1 %v1190_v43  ;;  %v1470_v42 = vld [vmem:[%s1519_s2] ss:$0 sm:$0xff] }
  0x3d   : > { %756 = vmatmul.bf16.gmra.mxu3 %v964_v52  ;;  %v1217_v52 = vunpack.c.l.bf16 %v1216_v48 }
  0x3e   : > { %1153 = vmatmul.msk.bf16.vlgmr.msrb.gmra.mxu0 %vm643_vm0, %v948_v51 }
  0x40   : > { %719 = vmatpush.bf16.msrb.mxu2 %v1197_v49  ;;  %690 = vmatpush.bf16.msrb.mxu1 %v1189_v50 }
  0x44   : > { %720 = vmatpush.bf16.msrb.mxu2 %v1196_v53  ;;  %691 = vmatpush.bf16.msrb.mxu1 %v1188_v54 }
  0x48   : > { %721 = vmatpush.bf16.msrb.mxu2 %v1195_v55  ;;  %692 = vmatpush.bf16.msrb.mxu1 %v1187_v56 }
  0x4b   : > { %722 = vmatmul.bf16.vlgmr.msrb.gmra.mxu2 %v940_v59  ;;  %693 = vmatmul.bf16.vlgmr.msrb.gmra.mxu1 %v936_v63 }
  0x4d   : > { %761 = vmatmul.bf16.gmra.mxu3 %v984_v4 }
  0x4e   : > { %1154 = vmatmul.msk.bf16.gmra.mxu0 %vm643_vm0, %v968_v3 }
  0x5b   : > { %727 = vmatmul.bf16.gmra.mxu2 %v960_v7  ;;  %698 = vmatmul.bf16.gmra.mxu1 %v956_v11 }
  0x5d   : > { %766 = vmatmul.bf16.gmra.mxu3 %v1004_v16 }
  0x5e   : > { %1155 = vmatmul.msk.bf16.gmra.mxu0 %vm643_vm0, %v988_v15 }
  0x6b   : > { %732 = vmatmul.bf16.gmra.mxu2 %v980_v19  ;;  %703 = vmatmul.bf16.gmra.mxu1 %v976_v22 }
  0x6e   : > { %1156 = vmatmul.msk.bf16.gmra.mxu0 %vm643_vm0, %v1008_v25 }
  0x7b   : > { %737 = vmatmul.bf16.gmra.mxu2 %v1000_v28  ;;  %708 = vmatmul.bf16.gmra.mxu1 %v996_v31 }
  0xa8   : > { %v670_v32 = vpop.f32.mrf.mxu1 }
  0xa9   : > { %v671_v2 = vadd.f32 %v1470_v42, %v670_v32 }
  0xab   : > { %v665_v33 = vpop.f32.mrf.mxu0 }
  0xac   : > { %v666_v43 = vadd.f32 %v1470_v42, %v665_v33 }
  0xae   : > { %v1461_v37 = vpop.f32.mrf.mxu2 }
  0xb0   : > { %v672_v34 = vpop.f32.mrf.mxu1  ;;  %v752_v38 = vpop.f32.mrf.mxu3 }
  0xb1   : > { %v673_v15 = vadd.f32 %v1470_v42, %v672_v34 }
  0xb3   : > { %v667_v35 = vpop.f32.mrf.mxu0 }
  0xb4   : > { %v668_v53 = vadd.f32 %v1470_v42, %v667_v35  ;;  %v1232_v35 = vld [vmem:[%s1477_s28 + $0x10] sm:$0xff]  }
  0xb6   : > { %v1465_v41 = vpop.f32.mrf.mxu2 }
  0xb8   : > { %v675_v36 = vpop.f32.mrf.mxu1  ;;  %v754_v46 = vpop.f32.mrf.mxu3 }
  0xb9   : > { %v676_v27 = vadd.f32 %v1470_v42, %v675_v36 }
  0xbb   : > { %v781_v40 = vpop.f32.mrf.mxu0 }
  0xc0   : > { %v1463_v39 = vpop.f32.mrf.mxu1  ;;  %v757_v59 = vpop.f32.mrf.mxu3 }
  0xc1   : > { %v678_v36 = vadd.f32 %v1470_v42, %v1463_v39 }
  0xc3   : > { %v783_v49 = vpop.f32.mrf.mxu0 }
  0xc8   : > { %v694_v44 = vpop.f32.mrf.mxu1  ;;  %v759_v11 = vpop.f32.mrf.mxu3 }
  0xc9   : > { %v695_v45 = vadd.f32 %v694_v44, %v666_v43 }
  0xcb   : > { %v786_v62 = vpop.f32.mrf.mxu0 }
  0xce   : > { %v723_v47 = vpop.f32.mrf.mxu2 }
  0xcf   : > { %v724_v50 = vadd.f32 %v723_v47, %v695_v45  ;;  %v1225_v45 = vunpack.c.l.bf16 %v1232_v35 }
  0xd0   : > { %v696_v55 = vpop.f32.mrf.mxu1  ;;  %v762_v28 = vpop.f32.mrf.mxu3 }
  0xd1   : > { %v753_v51 = vadd.f32 %v752_v38, %v724_v50  ;;  %v697_v56 = vadd.f32 %v696_v55, %v668_v53 }
  0xd3   : > { %v782_v54 = vadd.f32 %v781_v40, %v753_v51  ;;  %v788_v16 = vpop.f32.mrf.mxu0 }
  0xd5   : > { %v817_v57 = vadd.f32 %v1217_v52, %v782_v54 }
  0xd6   : > { %v725_v58 = vpop.f32.mrf.mxu2 }
  0xd7   : > { %v825_v60 = vmax.f32 %v817_v57, 0.0  ;;  %v726_v61 = vadd.f32 %v725_v58, %v697_v56  ;;  %v1226_v57 = vunpack.c.h.bf16 %v1232_v35  ;;  %v681_v58 = vadd.f32 %v1470_v42, %v1461_v37 }
  0xd8   : > { %v699_v4 = vpop.f32.mrf.mxu1  ;;  %v764_v48 = vpop.f32.mrf.mxu3  ;;  %v683_v37 = vadd.f32 %v1470_v42, %v1465_v41 }
  0xd9   : > { %v833_v63 = vpack.c.bf16 %v825_v60, %v825_v60  ;;  %v755_v0 = vadd.f32 %v754_v46, %v726_v61  ;;  %v700_v5 = vadd.f32 %v699_v4, %v671_v2 }
  0xdb   : > { %842 = vst.msk [vmem:[%s1484_s30] sm:$0xf] %vm841_vm1, %v833_v63  ;;  %v784_v3 = vadd.f32 %v783_v49, %v755_v0  ;;  %v791_v31 = vpop.f32.mrf.mxu0  ;;  %v1233_v0 = vld [vmem:[%s1477_s28 + $0x18] sm:$0xff]  }
  0xdd   : > { %v818_v6 = vadd.f32 %v1218_v1, %v784_v3 }
  0xde   : > { %v728_v7 = vpop.f32.mrf.mxu2 }
  0xdf   : > { %v826_v9 = vmax.f32 %v818_v6, 0.0  ;;  %v729_v10 = vadd.f32 %v728_v7, %v700_v5  ;;  %v1229_v6 = vunpack.c.l.bf16 %v1233_v0 }
  0xe0   : > { %v701_v18 = vpop.f32.mrf.mxu1 }
  0xe1   : > { %v834_v12 = vpack.c.bf16 %v826_v9, %v826_v9  ;;  %v758_v13 = vadd.f32 %v757_v59, %v729_v10  ;;  %v702_v19 = vadd.f32 %v701_v18, %v673_v15 }
  0xe3   : > { %843 = vst.msk [vmem:[%s1484_s30 + $0x4] sm:$0xf] %vm841_vm1, %v834_v12  ;;  %v787_v17 = vadd.f32 %v786_v62, %v758_v13  ;;  %v793_v51 = vpop.f32.mrf.mxu0  ;;  %v767_v62 = vpop.f32.mrf.mxu3 }
  0xe5   : > { %v819_v20 = vadd.f32 %v1221_v14, %v787_v17  ;;  %v1230_v17 = vunpack.c.h.bf16 %v1233_v0 }
  0xe6   : > { %v730_v21 = vpop.f32.mrf.mxu2 }
  0xe7   : > { %v827_v22 = vmax.f32 %v819_v20, 0.0  ;;  %v731_v23 = vadd.f32 %v730_v21, %v702_v19 }
  0xe8   : > { %v704_v30 = vpop.f32.mrf.mxu1 }
  0xe9   : > { %v835_v24 = vpack.c.bf16 %v827_v22, %v827_v22  ;;  %v760_v25 = vadd.f32 %v759_v11, %v731_v23  ;;  %v705_v32 = vadd.f32 %v704_v30, %v676_v27 }
  0xeb   : > { %844 = vst.msk [vmem:[%s1484_s30 + $0x8] sm:$0xf] %vm841_vm1, %v835_v24  ;;  %v789_v29 = vadd.f32 %v788_v16, %v760_v25  ;;  %v796_v3 = vpop.f32.mrf.mxu0  ;;  %v769_v14 = vpop.f32.mrf.mxu3 }
  0xed   : > { %v820_v33 = vadd.f32 %v1222_v26, %v789_v29 }
  0xee   : > { %v733_v34 = vpop.f32.mrf.mxu2 }
  0xef   : > { %v828_v38 = vmax.f32 %v820_v33, 0.0  ;;  %v734_v40 = vadd.f32 %v733_v34, %v705_v32 }
  0xf0   : > { %v706_v47 = vpop.f32.mrf.mxu1 }
  0xf1   : > { %v836_v43 = vpack.c.bf16 %v828_v38, %v828_v38  ;;  %v763_v44 = vadd.f32 %v762_v28, %v734_v40  ;;  %v707_v49 = vadd.f32 %v706_v47, %v678_v36 }
  0xf3   : > { %845 = vst.msk [vmem:[%s1484_s30 + $0xc] sm:$0xf] %vm841_vm1, %v836_v43  ;;  %v792_v46 = vadd.f32 %v791_v31, %v763_v44  ;;  %v798_v18 = vpop.f32.mrf.mxu0 }
  0xf5   : > { %v821_v50 = vadd.f32 %v1225_v45, %v792_v46 }
  0xf6   : > { %v735_v52 = vpop.f32.mrf.mxu2 }
  0xf7   : > { %v829_v53 = vmax.f32 %v821_v50, 0.0  ;;  %v736_v54 = vadd.f32 %v735_v52, %v707_v49 }
  0xf8   : > { %v709_v59 = vpop.f32.mrf.mxu1 }
  0xf9   : > { %v837_v55 = vpack.c.bf16 %v829_v53, %v829_v53  ;;  %v765_v56 = vadd.f32 %v764_v48, %v736_v54  ;;  %v710_v60 = vadd.f32 %v709_v59, %v681_v58 }
  0xfb   : > { %846 = vst.msk [vmem:[%s1484_s30 + $0x10] sm:$0xf] %vm841_vm1, %v837_v55  ;;  %v794_v39 = vadd.f32 %v793_v51, %v765_v56 }
  0xfd   : > { %v822_v61 = vadd.f32 %v1226_v57, %v794_v39 }
  0xfe   : > { %v738_v63 = vpop.f32.mrf.mxu2 }
  0xff   : > { %v830_v1 = vmax.f32 %v822_v61, 0.0  ;;  %v739_v2 = vadd.f32 %v738_v63, %v710_v60 }
 0x100   : > { %v711_v8 = vpop.f32.mrf.mxu1 }
 0x101   : > { %v838_v4 = vpack.c.bf16 %v830_v1, %v830_v1  ;;  %v768_v5 = vadd.f32 %v767_v62, %v739_v2  ;;  %v712_v9 = vadd.f32 %v711_v8, %v683_v37 }
 0x103   : > { %847 = vst.msk [vmem:[%s1484_s30 + $0x14] sm:$0xf] %vm841_vm1, %v838_v4  ;;  %v797_v7 = vadd.f32 %v796_v3, %v768_v5 }
 0x105   : > { %v823_v10 = vadd.f32 %v1229_v6, %v797_v7 }
 0x106   : > { %v740_v11 = vpop.f32.mrf.mxu2 }
 0x107   : > { %v831_v12 = vmax.f32 %v823_v10, 0.0  ;;  %v741_v13 = vadd.f32 %v740_v11, %v712_v9 }
 0x109   : > { %v839_v15 = vpack.c.bf16 %v831_v12, %v831_v12  ;;  %v770_v16 = vadd.f32 %v769_v14, %v741_v13 }
 0x10b   : > { %848 = vst.msk [vmem:[%s1484_s30 + $0x18] sm:$0xf] %vm841_vm1, %v839_v15  ;;  %v799_v19 = vadd.f32 %v798_v18, %v770_v16 }
 0x10d   : > { %v824_v20 = vadd.f32 %v1230_v17, %v799_v19 }
 0x10f   : > { %v832_v41 = vmax.f32 %v824_v20, 0.0 }
 0x111   : > { %v840_v42 = vpack.c.bf16 %v832_v41, %v832_v41 }
 0x113   : > { %849 = vst.msk [vmem:[%s1484_s30 + $0x1c] sm:$0xf] %vm841_vm1, %v840_v42 }
 0x114 PF: > { %s14_s15 = sadd.s32 1, %s1266_s15  }
 0x115   : > { %p11_p4 = scmp.ge.s32.totalorder %s14_s15, 4  }
 0x117   :  { %13 = sbr.rel (!%p11_p4) target bundleno = 1 (0x1), region = 69 }

</bundles_post_ra>
